<compile_context>
chip_gen: v6e
topology: v6e:2x2x1
jax: 0.10.0
libtpu: 0.0.40
codegen_flags: <defaults>
</compile_context>

<pallas_src>
import jax
import jax.numpy as jnp
from jax.experimental import pallas as pl
from jax.experimental.pallas import tpu as pltpu

IN_FEATURES = 48 * 48  # 2304 = 18 * 128 -> lane-aligned


def _round_up(x, m):
    return ((x + m - 1) // m) * m


def linear_gemv_kernel(x_ref, w_ref, b_ref, o_ref):
    # x_ref: (TB, K) VMEM   w_ref: (K, 1) VMEM (grid-resident)
    # b_ref: (1,)   SMEM    o_ref: (TB, 1) VMEM
    acc = jnp.dot(
        x_ref[...], w_ref[...],
        preferred_element_type=jnp.float32,
        precision=jax.lax.Precision.HIGHEST,   # MXU contraction, f32-accurate
    )                                          # (TB, 1); no (TB, K) temp
    o_ref[...] = (acc + b_ref[0]).astype(o_ref.dtype)


def net_forward(x, weight, bias, *, block_b=1024):
    """x: [B, 1, 48, 48] f32; weight: [1, 2304]; bias: [1] -> [B, 1] f32."""
    B = x.shape[0]
    x_flat = x.reshape(B, -1)            # glue: matches torch .view(B, -1)
    K = x_flat.shape[1]
    assert K == weight.shape[1]

    # Balanced batch tiling (see header).
    if B < 8:
        tb = B                            # full-dim block; no padding for tiny B
    else:
        min_steps = 2 if B >= 16 else 1   # >=2 steps so both v7x TCs get work
        n_tiles = max(pl.cdiv(B, block_b), min_steps)
        tb = _round_up(pl.cdiv(B, n_tiles), 8)
    grid = (pl.cdiv(B, tb),)

    w_col = weight.reshape(K, 1)          # (K, 1): MXU RHS, VMEM-resident
    b_vec = bias.reshape(1)               # (1,):   SMEM scalar

    # Explicit scoped-VMEM budget: double-buffered x tile + weight column +
    # output tile + headroom.  tb=1024 -> ~27 MiB; fits v5e/v6e/v7x.
    vmem_bytes = 2 * (tb * K + K + tb) * 4 + (8 << 20)

    return pl.pallas_call(
        linear_gemv_kernel,
        out_shape=jax.ShapeDtypeStruct((B, 1), jnp.float32),
        grid=grid,
        in_specs=[
            pl.BlockSpec((tb, K), lambda i: (i, 0)),              # x tile
            pl.BlockSpec((K, 1), lambda i: (0, 0)),               # weight col
            pl.BlockSpec(memory_space=pltpu.MemorySpace.SMEM),    # bias scalar
        ],
        # TODO(synk): optional lane-dense output layout ((n_tiles, tb), batch
        # along lanes) would remove masked vst.msk stores; output bytes are
        # tiny so it is skipped per the perf review.
        out_specs=pl.BlockSpec((tb, 1), lambda i: (i, 0)),
        compiler_params=pltpu.CompilerParams(
            dimension_semantics=("parallel",),
            vmem_limit_bytes=vmem_bytes),
    )(x_flat, w_col, b_vec)


def init_params(key):
    # nn.Linear default init: U(-1/sqrt(fan_in), +1/sqrt(fan_in))
    in_features = IN_FEATURES
    out_features = 1
    kw, kb = jax.random.split(key)
    bound = 1.0 / jnp.sqrt(jnp.float32(in_features))
    weight = jax.random.uniform(
        kw, (out_features, in_features), jnp.float32, -bound, bound)
    bias = jax.random.uniform(
        kb, (out_features,), jnp.float32, -bound, bound)
    return weight, bias


def _reference(x, weight, bias):
    B = x.shape[0]
    return jnp.dot(x.reshape(B, -1), weight.T,
                   precision=jax.lax.Precision.HIGHEST) + bias


if __name__ == "__main__":
    key = jax.random.PRNGKey(0)
    k_x, k_x2, k_p = jax.random.split(key, 3)

    weight, bias = init_params(k_p)

    # Small demo batch (matches the module's NCHW [B, 1, 48, 48] input).
    B = 2
    x = jax.random.normal(k_x, (B, 1, 48, 48), dtype=jnp.float32)
    out = jax.block_until_ready(net_forward(x, weight, bias))
    ref = _reference(x, weight, bias)
    assert out.shape == (B, 1)
    assert jnp.allclose(out, ref, atol=1e-3, rtol=1e-3)

    # Exercise the balanced multi-step pipeline: B=520 -> 2 steps of tb=264
    # (no nearly-empty padded tail block; padded rows discarded on write).
    B2 = 520
    x2 = jax.random.normal(k_x2, (B2, 1, 48, 48), dtype=jnp.float32)
    out2 = jax.block_until_ready(net_forward(x2, weight, bias))
    ref2 = _reference(x2, weight, bias)
    assert out2.shape == (B2, 1)
    assert jnp.allclose(out2, ref2, atol=1e-3, rtol=1e-3)

    print("KERNEL_OK")
</pallas_src>

<mosaic_0001>
module attributes {stable_mosaic.version = 11 : i64} {
  func.func @linear_gemv_kernel(%arg0: i32, %arg1: memref<2x2304xf32, #tpu.memory_space<vmem>>, %arg2: memref<2304x1xf32, #tpu.memory_space<vmem>>, %arg3: memref<1xf32, #tpu.memory_space<smem>>, %arg4: memref<2x1xf32, #tpu.memory_space<vmem>>) attributes {dimension_semantics = [#tpu.dimension_semantics<parallel>], iteration_bounds = array<i64: 1>, scalar_prefetch = 0 : i64, scratch_operands = 0 : i64, tpu.core_type = #tpu.core_type<tc>, window_params = [{transform_indices = @transform_0, window_bounds = array<i64: 2, 2304>}, {pipeline_mode = #tpu.pipeline_mode<synchronous>, transform_indices = @transform_1, window_bounds = array<i64: 2304, 1>}, {transform_indices = @transform_2, window_bounds = array<i64: 1>}, {transform_indices = @transform_3, window_bounds = array<i64: 2, 1>}]} {
    %c0 = arith.constant 0 : index
    %c0_0 = arith.constant 0 : index
    %0 = vector.load %arg1[%c0, %c0_0] : memref<2x2304xf32, #tpu.memory_space<vmem>>, vector<2x2304xf32>
    %c0_1 = arith.constant 0 : index
    %c0_2 = arith.constant 0 : index
    %1 = vector.load %arg2[%c0_1, %c0_2] : memref<2304x1xf32, #tpu.memory_space<vmem>>, vector<2304x1xf32>
    %cst = arith.constant dense<0.000000e+00> : vector<2x1xf32>
    %2 = tpu.matmul %0, %1, %cst {dimension_numbers = #tpu.dot_dimension_numbers<[1], [0], [0], [1], [0, 0, 1, 1], [], []>, precision = #tpu.contract_precision<fp32>} : vector<2x2304xf32>, vector<2304x1xf32>, vector<2x1xf32> -> vector<2x1xf32>
    %c0_3 = arith.constant 0 : index
    %3 = memref.load %arg3[%c0_3] : memref<1xf32, #tpu.memory_space<smem>>
    %4 = vector.broadcast %3 : f32 to vector<2x1xf32>
    %5 = arith.addf %2, %4 : vector<2x1xf32>
    %c0_4 = arith.constant 0 : index
    %c0_5 = arith.constant 0 : index
    %6 = vector.load %arg4[%c0_4, %c0_5] : memref<2x1xf32, #tpu.memory_space<vmem>>, vector<2x1xf32>
    tpu.vector_store %arg4[%c0_4, %c0_5], %5 {strides = array<i32>} : memref<2x1xf32, #tpu.memory_space<vmem>>, vector<2x1xf32>,
    return
  }
  func.func @transform_0(%arg0: i32) -> (i32, i32) {
    %c0_i32 = arith.constant 0 : i32
    %c0_i32_0 = arith.constant 0 : i32
    return %arg0, %c0_i32 : i32, i32
  }
  func.func @transform_1(%arg0: i32) -> (i32, i32) {
    %c0_i32 = arith.constant 0 : i32
    %c0_i32_0 = arith.constant 0 : i32
    %c0_i32_1 = arith.constant 0 : i32
    return %c0_i32, %c0_i32_0 : i32, i32
  }
  func.func @transform_2(%arg0: i32) -> i32 {
    %c0_i32 = arith.constant 0 : i32
    %c0_i32_0 = arith.constant 0 : i32
    return %c0_i32 : i32
  }
  func.func @transform_3(%arg0: i32) -> (i32, i32) {
    %c0_i32 = arith.constant 0 : i32
    %c0_i32_0 = arith.constant 0 : i32
    return %arg0, %c0_i32 : i32, i32
  }
}

</mosaic_0001>

<bundles_post_ra>
// kernel: tpu_custom_call.1
= control target key start
LH: loop header
LB: loop body
LE: loop exit
PB: predicated region body
PF: predicated region fallthrough
CT: control target
= control target key end

     0   :  { %v10069_v3 = vmov 1983009808   ;;  %vm8167_vm0 = vcmask 1024   ;;  %s16357_s1 = inlined_call_operand.vmem [shape: f32[2304,1], index: 1, kind: input, shape index: {}]   ;;  %s16358_s0 = inlined_call_operand.vmem [shape: f32[2,2304], index: 0, kind: input, shape index: {}]   ;;  %s16359_s2 = inlined_call_operand.<no memory space> [shape: f32[1], index: 2, kind: input, shape index: {}]   ;;  %s16360_s3 = inlined_call_operand.vmem [shape: f32[2,1], index: 3, kind: output, shape index: {}]  }
   0x1   :  { %v51_v0 = vld [vmem:[%s16357_s1 + $0xf8] sm:$0xff]  ;;  %v50_v2 = vld [vmem:[%s16357_s1 + $0xf0] sm:$0xff]  ;;  %v10099_v4 = vunpack.c.l.s4 %v10069_v3  ;;  %v49_v9 = vld [vmem:[%s16357_s1 + $0xe8] sm:$0xff] }
   0x2   :  { %v35_v1 = vld [vmem:[%s16357_s1 + $0x78] sm:$0xff]  ;;  %v10101_v5 = vand.u32 4294901760, %v51_v0  ;;  %v10105_v7 = vand.u32 4294901760, %v50_v2  ;;  %v34_v8 = vld [vmem:[%s16357_s1 + $0x70] sm:$0xff]  ;;  %v33_v10 = vld [vmem:[%s16357_s1 + $0x68] sm:$0xff]  ;;  %v10118_v13 = vand.u32 4294901760, %v49_v9 }
   0x3   :  { %v10103_v6 = vand.u32 4294901760, %v35_v1  ;;  %v10116_v12 = vand.u32 4294901760, %v34_v8  ;;  %v10120_v14 = vand.u32 4294901760, %v33_v10  ;;  %v48_v15 = vld [vmem:[%s16357_s1 + $0xe0] sm:$0xff]  ;;  %v10131_v17 = vld [vmem:[%s16357_s1 + $0xd8] sm:$0xff]  ;;  %v10153_v24 = vld [vmem:[%s16357_s1 + $0xd0] sm:$0xff] }
   0x4   :  { %v32_v16 = vld [vmem:[%s16357_s1 + $0x60] sm:$0xff]  ;;  %8174 = vmatprep.subr.mxu0 %v10101_v5  ;;  %v10135_v19 = vand.u32 4294901760, %v48_v15  ;;  %v10140_v21 = vand.u32 4294901760, %v10131_v17  ;;  %v10143_v22 = vsub.f32 %v51_v0, %v10101_v5  ;;  %v10148_v23 = vld [vmem:[%s16357_s1 + $0x58] sm:$0xff]  ;;  %v10158_v25 = vld [vmem:[%s16357_s1 + $0x50] sm:$0xff]  ;;  %v10168_v28 = vand.u32 4294901760, %v10153_v24 }
   0x5   :  { %v10137_v20 = vand.u32 4294901760, %v32_v16  ;;  %8175 = vmatpush3.msra.mxu0 %v10103_v6  ;;  %v10162_v26 = vand.u32 4294901760, %v10148_v23  ;;  %v10165_v27 = vsub.f32 %v35_v1, %v10103_v6  ;;  %v10171_v29 = vsub.f32 %v50_v2, %v10105_v7  ;;  %v10176_v30 = vld [vmem:[%s16357_s1 + $0xc8] sm:$0xff]  ;;  %v10186_v32 = vld [vmem:[%s16357_s1 + $0xc0] sm:$0xff]  ;;  %v10238_v50 = vld [vmem:[%s16357_s1 + $0xb8] sm:$0xff] }
   0x6   :  { %16966 = vst [vmem:[#allocation3_spill] sm:$0xff] %v10143_v22  ;;  %v10181_v31 = vld [vmem:[%s16357_s1 + $0x48] sm:$0xff]  ;;  %8176 = vmatprep.subr.mxu0 %v10105_v7  ;;  %v16373_v33 = vand.u32 4294901760, %v10143_v22  ;;  %v10191_v34 = vand.u32 4294901760, %v10158_v25  ;;  %v10194_v35 = vsub.f32 %v34_v8, %v10116_v12  ;;  %v10197_v36 = vand.u32 4294901760, %v10176_v30  ;;  %v10211_v41 = vld [vmem:[%s16357_s1 + $0x40] sm:$0xff] }
   0x7   :  { %8177 = vmatpush3.msra.mxu0 %v10116_v12  ;;  %v16371_v37 = vand.u32 4294901760, %v10165_v27  ;;  %v16369_v38 = vand.u32 4294901760, %v10171_v29  ;;  %v10203_v39 = vsub.f32 %v49_v9, %v10118_v13  ;;  %v10206_v40 = vand.u32 4294901760, %v10181_v31  ;;  %v10251_v55 = vld [vmem:[%s16357_s1 + $0x38] sm:$0xff]  ;;  %v10261_v60 = vld [vmem:[%s16357_s1 + $0xb0] sm:$0xff]  ;;  %v10428_v11 = vld [vmem:[%s16357_s1 + $0x88] sm:$0xff] }
   0x8   :  { %8178 = vmatprep.subr.mxu0 %v10118_v13  ;;  %v637_v42 = vsub.f32 %v10143_v22, %v16373_v33  ;;  %v16368_v43 = vand.u32 4294901760, %v10194_v35  ;;  %v10219_v44 = vsub.f32 %v33_v10, %v10120_v14  ;;  %v10222_v45 = vand.u32 4294901760, %v10186_v32  ;;  %v10276_v1 = vld [vmem:[%s16357_s1 + $0x30] sm:$0xff]  ;;  %v10292_v10 = vld [vmem:[%s16357_s1 + $0xa8] sm:$0xff] }
   0x9   :  { %8179 = vmatpush3.msra.mxu0 %v10120_v14  ;;  %v525_v46 = vsub.f32 %v10165_v27, %v16371_v37  ;;  %v644_v47 = vsub.f32 %v10171_v29, %v16369_v38  ;;  %v16366_v48 = vand.u32 4294901760, %v10203_v39  ;;  %v10233_v49 = vsub.f32 %v48_v15, %v10135_v19  ;;  %v10385_v38 = vld [vmem:[%s16357_s1 + $0x18] sm:$0xff]  ;;  %v10401_v37 = vld [vmem:[%s16357_s1 + $0x90] sm:$0xff] }
   0xa   :  { %16967 = vst [vmem:[#allocation4_spill] sm:$0xff] %v10222_v45  ;;  %8180 = vmatprep.subr.mxu0 %v10135_v19  ;;  %v638_v51 = vand.u32 4294901760, %v637_v42  ;;  %v532_v52 = vsub.f32 %v10194_v35, %v16368_v43  ;;  %v16364_v53 = vand.u32 4294901760, %v10219_v44  ;;  %v10246_v54 = vand.u32 4294901760, %v10211_v41 }
   0xb   :  { %8181 = vmatpush3.msra.mxu0 %v10137_v20  ;;  %v526_v56 = vand.u32 4294901760, %v525_v46  ;;  %v645_v57 = vand.u32 4294901760, %v644_v47  ;;  %v651_v58 = vsub.f32 %v10203_v39, %v16366_v48  ;;  %v16362_v59 = vand.u32 4294901760, %v10233_v49  ;;  %v10306_v46 = vld [vmem:[%s16357_s1 + $0x28] sm:$0xff] }
   0xc   :  { %16968 = vst [vmem:[#allocation5_spill] sm:$0xff] %v10246_v54  ;;  %8182 = vmatprep.subr.mxu0 %v10140_v21  ;;  %8209 = vmatprep.subr.mxu1 %v638_v51  ;;  %v533_v61 = vand.u32 4294901760, %v532_v52  ;;  %v539_v62 = vsub.f32 %v10219_v44, %v16364_v53  ;;  %v10268_v63 = vsub.f32 %v32_v16, %v10137_v20  ;;  %v10271_v0 = vand.u32 4294901760, %v10238_v50 }
   0xd   :  { %8183 = vmatpush3.msra.mxu0 %v10162_v26  ;;  %8210 = vmatpush3.msra.mxu1 %v526_v56  ;;  %v652_v2 = vand.u32 4294901760, %v651_v58  ;;  %v658_v3 = vsub.f32 %v10233_v49, %v16362_v59  ;;  %v10284_v8 = vsub.f32 %v10131_v17, %v10140_v21  ;;  %v10287_v9 = vand.u32 4294901760, %v10251_v55 }
   0xe   :  { %16969 = vst [vmem:[#allocation6_spill] sm:$0xff] %v10271_v0  ;;  %8184 = vmatprep.subr.mxu0 %v10168_v28  ;;  %8211 = vmatprep.subr.mxu1 %v645_v57  ;;  %v540_v15 = vand.u32 4294901760, %v539_v62  ;;  %v16361_v16 = vand.u32 4294901760, %v10268_v63  ;;  %v10298_v42 = vsub.f32 %v10148_v23, %v10162_v26  ;;  %v10301_v17 = vand.u32 4294901760, %v10261_v60 }
   0xf   :  { %16970 = vst [vmem:[#allocation7_spill] sm:$0xff] %v10287_v9  ;;  %8185 = vmatpush3.msra.mxu0 %v10191_v34  ;;  %8212 = vmatpush3.msra.mxu1 %v533_v61  ;;  %v659_v47 = vand.u32 4294901760, %v658_v3  ;;  %v16363_v51 = vand.u32 4294901760, %v10284_v8  ;;  %v10312_v52 = vsub.f32 %v10153_v24, %v10168_v28  ;;  %v10315_v23 = vand.u32 4294901760, %v10276_v1  ;;  %v10332_v24 = vld [vmem:[%s16357_s1 + $0xa0] sm:$0xff] }
  0x10   :  { %16971 = vst [vmem:[#allocation8_spill] sm:$0xff] %v10301_v17  ;;  %8186 = vmatprep.subr.mxu0 %v10197_v36  ;;  %8213 = vmatprep.subr.mxu1 %v652_v2  ;;  %v546_v56 = vsub.f32 %v10268_v63, %v16361_v16  ;;  %v16365_v57 = vand.u32 4294901760, %v10298_v42  ;;  %v10324_v58 = vsub.f32 %v10158_v25, %v10191_v34  ;;  %v10327_v61 = vand.u32 4294901760, %v10292_v10 }
  0x11   :  { %16972 = vst [vmem:[#allocation9_spill] sm:$0xff] %v10315_v23  ;;  %8187 = vmatpush3.msra.mxu0 %v10206_v40  ;;  %8214 = vmatpush3.msra.mxu1 %v540_v15  ;;  %v665_v62 = vsub.f32 %v10284_v8, %v16363_v51  ;;  %v16367_v2 = vand.u32 4294901760, %v10312_v52  ;;  %v10341_v25 = vsub.f32 %v10176_v30, %v10197_v36  ;;  %v10344_v3 = vand.u32 4294901760, %v10306_v46  ;;  %v10358_v30 = vld [vmem:[%s16357_s1 + $0x20] sm:$0xff] }
  0x12   :  { %16973 = vst [vmem:[#allocation10_spill] sm:$0xff] %v10327_v61  ;;  %8188 = vmatprep.subr.mxu0 %v10222_v45  ;;  %8215 = vmatprep.subr.mxu1 %v659_v47  ;;  %v547_v16 = vand.u32 4294901760, %v546_v56  ;;  %v553_v15 = vsub.f32 %v10298_v42, %v16365_v57  ;;  %v16370_v59 = vand.u32 4294901760, %v10324_v58  ;;  %v10353_v51 = vsub.f32 %v10181_v31, %v10206_v40  ;;  %v10371_v31 = vld [vmem:[%s16357_s1 + $0x98] sm:$0xff] }
  0x13   :  { %16974 = vst [vmem:[#allocation11_spill] sm:$0xff] %v10344_v3  ;;  %8189 = vmatpush3.msra.mxu0 %v10246_v54  ;;  %v666_v53 = vand.u32 4294901760, %v665_v62  ;;  %v672_v47 = vsub.f32 %v10312_v52, %v16367_v2  ;;  %v16372_v56 = vand.u32 4294901760, %v10341_v25  ;;  %v10366_v57 = vand.u32 4294901760, %v10332_v24 }
  0x14   :  { %8216 = vmatpush3.msra.mxu1 %v547_v16  ;;  %8190 = vmatprep.subr.mxu0 %v10271_v0  ;;  %v554_v48 = vand.u32 4294901760, %v553_v15  ;;  %v560_v62 = vsub.f32 %v10324_v58, %v16370_v59  ;;  %v16374_v2 = vand.u32 4294901760, %v10353_v51  ;;  %v10380_v43 = vsub.f32 %v10186_v32, %v10222_v45 }
  0x15   :  { %16975 = vst [vmem:[#allocation12_spill] sm:$0xff] %v10366_v57  ;;  %8217 = vmatprep.subr.mxu1 %v666_v53  ;;  %8191 = vmatpush3.msra.mxu0 %v10287_v9  ;;  %v673_v16 = vand.u32 4294901760, %v672_v47  ;;  %v679_v15 = vsub.f32 %v10341_v25, %v16372_v56  ;;  %v10392_v59 = vand.u32 4294901760, %v10358_v30  ;;  %v10396_v32 = vsub.f32 %v10211_v41, %v10246_v54  ;;  %v10414_v41 = vld [vmem:[%s16357_s1 + $0x10] sm:$0xff] }
  0x16   :  { %8218 = vmatpush3.msra.mxu1 %v554_v48  ;;  %8192 = vmatprep.subr.mxu0 %v10301_v17  ;;  %v561_v53 = vand.u32 4294901760, %v560_v62  ;;  %v567_v47 = vsub.f32 %v10353_v51, %v16374_v2  ;;  %v16379_v56 = vand.u32 4294901760, %v10380_v43  ;;  %v10409_v33 = vand.u32 4294901760, %v10371_v31 }
  0x17   :  { %16976 = vst [vmem:[#allocation13_spill] sm:$0xff] %v10396_v32  ;;  %8219 = vmatprep.subr.mxu1 %v673_v16  ;;  %8193 = vmatpush3.msra.mxu0 %v10315_v23  ;;  %v680_v48 = vand.u32 4294901760, %v679_v15  ;;  %v10420_v18 = vsub.f32 %v10238_v50, %v10271_v0  ;;  %v10423_v2 = vand.u32 4294901760, %v10385_v38  ;;  %v10436_v50 = vsub.f32 %v10251_v55, %v10287_v9  ;;  %v10456_v55 = vld [vmem:[%s16357_s1 + $0x8] sm:$0xff] }
  0x18   :  { %16977 = vst [vmem:[#allocation14_spill] sm:$0xff] %v10409_v33  ;;  %8220 = vmatpush3.msra.mxu1 %v561_v53  ;;  %8194 = vmatprep.subr.mxu0 %v10327_v61  ;;  %v568_v16 = vand.u32 4294901760, %v567_v47  ;;  %v686_v15 = vsub.f32 %v10380_v43, %v16379_v56  ;;  %v10439_v62 = vand.u32 4294901760, %v10401_v37  ;;  %v16981_v0 = vand.u32 4294901760, %v10396_v32 }
  0x19   :  { %16978 = vst [vmem:[#allocation15_spill] sm:$0xff] %v10423_v2  ;;  %16979 = vst [vmem:[#allocation16_spill] sm:$0xff] %v10436_v50  ;;  %8221 = vmatprep.subr.mxu1 %v680_v48  ;;  %8195 = vmatpush3.msra.mxu0 %v10344_v3  ;;  %v10448_v54 = vsub.f32 %v10261_v60, %v10301_v17  ;;  %v10451_v56 = vand.u32 4294901760, %v10414_v41  ;;  %v10462_v47 = vsub.f32 %v10276_v1, %v10315_v23  ;;  %v10470_v17 = vld [vmem:[%s16357_s1 + $0x80] sm:$0xff] }
  0x1a   :  { %16980 = vst [vmem:[#allocation17_spill] sm:$0xff] %v10439_v62  ;;  %v574_v53 = vsub.f32 %v10396_v32, %v16981_v0  ;;  %8222 = vmatpush3.msra.mxu1 %v568_v16  ;;  %8196 = vmatprep.subr.mxu0 %v10366_v57  ;;  %v687_v48 = vand.u32 4294901760, %v686_v15  ;;  %v10465_v60 = vand.u32 4294901760, %v10428_v11  ;;  %v16986_v9 = vand.u32 4294901760, %v10420_v18 }
  0x1b   :  { %16982 = vst [vmem:[#allocation18_spill] sm:$0xff] %v10448_v54  ;;  %16983 = vst [vmem:[#allocation19_spill] sm:$0xff] %v10451_v56  ;;  %8197 = vmatpush3.msra.mxu0 %v10392_v59  ;;  %v16396_v0 = vand.u32 4294901760, %v10448_v54  ;;  %v10479_v1 = vsub.f32 %v10292_v10, %v10327_v61  ;;  %v16988_v23 = vand.u32 4294901760, %v10436_v50  ;;  %v10496_v10 = vld [vmem:[%s16357_s1] sm:$0xff]  ;;  %v10504_v61 = vand.u32 4294901760, %v10470_v17 }
  0x1c   :  { %16984 = vst [vmem:[#allocation20_spill] sm:$0xff] %v10462_v47  ;;  %16985 = vst [vmem:[#allocation21_spill] sm:$0xff] %v10465_v60  ;;  %v575_v16 = vand.u32 4294901760, %v574_v53  ;;  %v693_v15 = vsub.f32 %v10420_v18, %v16986_v9  ;;  %8223 = vmatprep.subr.mxu1 %v687_v48  ;;  %8198 = vmatprep.subr.mxu0 %v10409_v33  ;;  %v10487_v53 = vand.u32 4294901760, %v10456_v55 }
  0x1d   :  { %16987 = vst [vmem:[#allocation22_spill] sm:$0xff] %v10479_v1  ;;  %v581_v32 = vsub.f32 %v10436_v50, %v16988_v23  ;;  %v10491_v9 = vsub.f32 %v10306_v46, %v10344_v3  ;;  %8199 = vmatpush3.msra.mxu0 %v10423_v2  ;;  %v700_v23 = vsub.f32 %v10448_v54, %v16396_v0  ;;  %v16401_v45 = vand.u32 4294901760, %v10479_v1 }
  0x1e   :  { %16989 = vst [vmem:[#allocation23_spill] sm:$0xff] %v10487_v53  ;;  %8224 = vmatpush3.msra.mxu1 %v575_v16  ;;  %v694_v48 = vand.u32 4294901760, %v693_v15  ;;  %16990 = vst [vmem:[#allocation24_spill] sm:$0xff] %v10504_v61  ;;  %8200 = vmatprep.subr.mxu0 %v10439_v62  ;;  %v16991_v3 = vand.u32 4294901760, %v10462_v47  ;;  %v10513_v15 = vsub.f32 %v10332_v24, %v10366_v57  ;;  %v10520_v54 = vand.u32 4294901760, %v10496_v10 }
  0x1f   :  { %v582_v46 = vand.u32 4294901760, %v581_v32  ;;  %v701_v0 = vand.u32 4294901760, %v700_v23  ;;  %8201 = vmatpush3.msra.mxu0 %v10451_v56  ;;  %v707_v32 = vsub.f32 %v10479_v1, %v16401_v45  ;;  %v16992_v24 = vand.u32 4294901760, %v10491_v9 }
  0x20   :  { %v588_v50 = vsub.f32 %v10462_v47, %v16991_v3  ;;  %8225 = vmatprep.subr.mxu1 %v694_v48  ;;  %v10524_v3 = vsub.f32 %v10358_v30, %v10392_v59  ;;  %8202 = vmatprep.subr.mxu0 %v10465_v60  ;;  %v16406_v23 = vand.u32 4294901760, %v10513_v15  ;;  %v16993_v1 = vlaneseq }
  0x21   :  { %8226 = vmatpush3.msra.mxu1 %v582_v46  ;;  %v595_v48 = vsub.f32 %v10491_v9, %v16992_v24  ;;  %v708_v57 = vand.u32 4294901760, %v707_v32  ;;  %8203 = vmatpush3.msra.mxu0 %v10487_v53  ;;  %v10536_v30 = vsub.f32 %v10371_v31, %v10409_v33  ;;  %v10553_v31 = vsub.f32 %v10401_v37, %v10439_v62 }
  0x22   :  { %v589_v16 = vand.u32 4294901760, %v588_v50  ;;  %8227 = vmatprep.subr.mxu1 %v701_v0  ;;  %v16407_v45 = vand.u32 4294901760, %v10524_v3  ;;  %v320_v47 = vshrl.u32 %v16993_v1, 7  ;;  %8204 = vmatprep.subr.mxu0 %v10504_v61  ;;  %v714_v46 = vsub.f32 %v10513_v15, %v16406_v23  ;;  %v10545_v0 = vld [vmem:[%s16358_s0] sm:$0xff] }
  0x23   :  { %v596_v50 = vand.u32 4294901760, %v595_v48  ;;  %16994 = vst [vmem:[#allocation25_spill] sm:$0xff] %v10545_v0  ;;  %v10549_v1 = vsub.f32 %v10385_v38, %v10423_v2  ;;  %8205 = vmatpush3.msra.mxu0 %v10520_v54  ;;  %v16995_v32 = vunpack.c.0.s8 %v10099_v4  ;;  %v16410_v48 = vand.u32 4294901760, %v10536_v30 }
  0x24   :  { %8228 = vmatpush3.msra.mxu1 %v589_v16  ;;  %v602_v16 = vsub.f32 %v10524_v3, %v16407_v45  ;;  %v10566_v38 = vsub.f32 %v10414_v41, %v10451_v56  ;;  %v715_v37 = vand.u32 4294901760, %v714_v46  ;;  %8244 = vmatprep.subr.mxu0 %v10143_v22  ;;  %v16415_v23 = vand.u32 4294901760, %v10553_v31 }
  0x25   :  { %8229 = vmatprep.subr.mxu1 %v708_v57  ;;  %v10561_v24 = vsub.s32 %v16995_v32, %v320_v47  ;;  %v16413_v57 = vand.u32 4294901760, %v10549_v1  ;;  %v10573_v45 = vsub.f32 %v10428_v11, %v10465_v60  ;;  %v721_v41 = vsub.f32 %v10536_v30, %v16410_v48 }
  0x26   :  { %8230 = vmatpush3.msra.mxu1 %v596_v50  ;;  %v603_v4 = vand.u32 4294901760, %v602_v16  ;;  %v728_v11 = vsub.f32 %v10553_v31, %v16415_v23  ;;  %v10590_v32 = vsub.f32 %v10456_v55, %v10487_v53 }
  0x27   :  { %16996 = vst [vmem:[#allocation26_spill] sm:$0xff] %v10561_v24  ;;  %v322_v47 = vrot.slane %v10545_v0, %v10561_v24  ;;  %8231 = vmatprep.subr.mxu1 %v715_v37  ;;  %v609_v46 = vsub.f32 %v10549_v1, %v16413_v57  ;;  %v16421_v16 = vand.u32 4294901760, %v10573_v45  ;;  %v722_v50 = vand.u32 4294901760, %v721_v41 }
  0x28   :  { %8232 = vmatpush3.msra.mxu1 %v603_v4  ;;  %v16998_v37 = vand.u32 4294901760, %v10566_v38  ;;  %v729_v22 = vand.u32 4294901760, %v728_v11  ;;  %v16420_v60 = vand.u32 4294901760, %v10590_v32  ;;  %v10608_v41 = vsub.f32 %v10470_v17, %v10504_v61 }
  0x29   :  { %v330_v24 = vcombine.high %v322_v47, %v322_v47  ;;  %v10592_v48 = vand.u32 4294901760, %v322_v47  ;;  %v610_v57 = vand.u32 4294901760, %v609_v46  ;;  %v735_v23 = vsub.f32 %v10573_v45, %v16421_v16  ;;  %8233 = vmatprep.subr.mxu1 %v722_v50 }
  0x2a   :  { %v616_v0 = vsub.f32 %v10566_v38, %v16998_v37  ;;  %v623_v11 = vsub.f32 %v10590_v32, %v16420_v60  ;;  %v10615_v37 = vsub.f32 %v10496_v10, %v10520_v54 }
  0x2b   :  { %16997 = vst [vmem:[#allocation27_spill] sm:$0xff] %v10592_v48  ;;  %v10601_v56 = vand.u32 4294901760, %v330_v24  ;;  %v10604_v55 = vsub.f32 %v322_v47, %v10592_v48  ;;  %8234 = vmatpush3.msra.mxu1 %v610_v57  ;;  %v736_v46 = vand.u32 4294901760, %v735_v23 }
  0x2c   :  { %v617_v4 = vand.u32 4294901760, %v616_v0  ;;  %8235 = vmatprep.subr.mxu1 %v729_v22  ;;  %v16425_v0 = vand.u32 4294901760, %v10608_v41  ;;  %v624_v17 = vand.u32 4294901760, %v623_v11  ;;  %v16424_v23 = vand.u32 4294901760, %v10615_v37 }
  0x2d   :  { %16999 = vst [vmem:[#allocation28_spill] sm:$0xff] %v10601_v56  ;;  %v10618_v50 = vsub.f32 %v330_v24, %v10601_v56  ;;  %v16426_v47 = vand.u32 4294901760, %v10604_v55  ;;  %746 = vmatprep.mubr.f32.mxu1 %v10601_v56 }
  0x2e   :  { %8236 = vmatpush3.msra.mxu1 %v617_v4  ;;  %v742_v24 = vsub.f32 %v10608_v41, %v16425_v0  ;;  %v630_v22 = vsub.f32 %v10615_v37, %v16424_v23  ;;  %v17010_v23 = vld [vmem:[#allocation22_spill] sm:$0xff] }
  0x2f   :  { %v16427_v57 = vand.u32 4294901760, %v10618_v50  ;;  %v514_v10 = vsub.f32 %v10604_v55, %v16426_v47  ;;  %8237 = vmatprep.subr.mxu1 %v736_v46  ;;  %v17003_v46 = vld [vmem:[#allocation6_spill] sm:$0xff]  ;;  %v17012_v47 = vld [vmem:[#allocation11_spill] sm:$0xff] }
  0x30   :  { %8238 = vmatpush3.msra.mxu1 %v624_v17  ;;  %v743_v11 = vand.u32 4294901760, %v742_v24  ;;  %v631_v16 = vand.u32 4294901760, %v630_v22  ;;  %v17004_v17 = vld [vmem:[#allocation16_spill] sm:$0xff]  ;;  %v17006_v24 = vld [vmem:[#allocation18_spill] sm:$0xff] }
  0x31   :  { %v508_v4 = vsub.f32 %v10618_v50, %v16427_v57  ;;  %v515_v60 = vand.u32 4294901760, %v514_v10  ;;  %v17005_v10 = vld [vmem:[#allocation7_spill] sm:$0xff]  ;;  %v17007_v22 = vld [vmem:[#allocation8_spill] sm:$0xff]  ;;  %v17011_v0 = vld [vmem:[#allocation10_spill] sm:$0xff] }
  0x32   :  { %8239 = vmatprep.subr.mxu1 %v743_v11  ;;  %v17009_v11 = vld [vmem:[#allocation9_spill] sm:$0xff]  ;;  %v17013_v57 = vld [vmem:[#allocation12_spill] sm:$0xff] }
  0x33   :  { %v509_v56 = vand.u32 4294901760, %v508_v4  ;;  %8240 = vmatpush3.msra.mxu1 %v631_v16  ;;  %v17002_v16 = vld [vmem:[#allocation5_spill] sm:$0xff]  ;;  %v17008_v4 = vld [vmem:[#allocation20_spill] sm:$0xff] }
  0x34   :  { %748 = vmatmul.mubr.f32.vlgmr.msra.gmra.mxu1 %v10592_v48  ;;  %8279 = vmatprep.subr.mxu1 %v10101_v5  ;;  %v17014_v48 = vld [vmem:[#allocation19_spill] sm:$0xff] }
  0x35   :  { %510 = vmatprep.mubr.f32.mxu0 %v509_v56  ;;  %8280 = vmatpush3.msra.mxu1 %v10103_v6  ;;  %v17000_v56 = vld [vmem:[#allocation4_spill] sm:$0xff] }
  0x36   :  { %516 = vmatmul.mubr.f32.vlgmr.msra.gmra.mxu0 %v515_v60  ;;  %8281 = vmatprep.subr.mxu1 %v10105_v7  ;;  %v17001_v60 = vld [vmem:[#allocation13_spill] sm:$0xff] }
  0x37   :  { %8245 = vmatpush3.msra.mxu0 %v10165_v27  ;;  %8282 = vmatpush3.msra.mxu1 %v10116_v12 }
  0x38   :  { %8246 = vmatprep.subr.mxu0 %v10171_v29  ;;  %8283 = vmatprep.subr.mxu1 %v10118_v13 }
  0x39   :  { %8247 = vmatpush3.msra.mxu0 %v10194_v35  ;;  %8284 = vmatpush3.msra.mxu1 %v10120_v14 }
  0x3a   :  { %8248 = vmatprep.subr.mxu0 %v10203_v39  ;;  %8285 = vmatprep.subr.mxu1 %v10135_v19 }
  0x3b   :  { %8249 = vmatpush3.msra.mxu0 %v10219_v44  ;;  %8286 = vmatpush3.msra.mxu1 %v10137_v20 }
  0x3c   :  { %8250 = vmatprep.subr.mxu0 %v10233_v49  ;;  %8287 = vmatprep.subr.mxu1 %v10140_v21 }
  0x3d   :  { %8251 = vmatpush3.msra.mxu0 %v10268_v63  ;;  %8288 = vmatpush3.msra.mxu1 %v10162_v26 }
  0x3e   :  { %8252 = vmatprep.subr.mxu0 %v10284_v8  ;;  %8289 = vmatprep.subr.mxu1 %v10168_v28 }
  0x3f   :  { %8253 = vmatpush3.msra.mxu0 %v10298_v42  ;;  %8290 = vmatpush3.msra.mxu1 %v10191_v34 }
  0x40   :  { %8254 = vmatprep.subr.mxu0 %v10312_v52  ;;  %8291 = vmatprep.subr.mxu1 %v10197_v36 }
  0x41   :  { %8255 = vmatpush3.msra.mxu0 %v10324_v58  ;;  %8292 = vmatpush3.msra.mxu1 %v10206_v40 }
  0x42   :  { %8256 = vmatprep.subr.mxu0 %v10341_v25  ;;  %8293 = vmatprep.subr.mxu1 %v17000_v56 }
  0x43   :  { %8257 = vmatpush3.msra.mxu0 %v10353_v51  ;;  %8294 = vmatpush3.msra.mxu1 %v17002_v16 }
  0x44   :  { %8258 = vmatprep.subr.mxu0 %v10380_v43  ;;  %8295 = vmatprep.subr.mxu1 %v17003_v46 }
  0x45   :  { %8259 = vmatpush3.msra.mxu0 %v17001_v60  ;;  %8296 = vmatpush3.msra.mxu1 %v17005_v10 }
  0x46   :  { %8260 = vmatprep.subr.mxu0 %v10420_v18  ;;  %8297 = vmatprep.subr.mxu1 %v17007_v22 }
  0x47   :  { %8261 = vmatpush3.msra.mxu0 %v17004_v17  ;;  %8298 = vmatpush3.msra.mxu1 %v17009_v11 }
  0x48   :  { %8262 = vmatprep.subr.mxu0 %v17006_v24  ;;  %8299 = vmatprep.subr.mxu1 %v17011_v0 }
  0x49   :  { %8263 = vmatpush3.msra.mxu0 %v17008_v4  ;;  %8300 = vmatpush3.msra.mxu1 %v17012_v47 }
  0x4a   :  { %8264 = vmatprep.subr.mxu0 %v17010_v23  ;;  %8301 = vmatprep.subr.mxu1 %v17013_v57  ;;  %v17015_v57 = vld [vmem:[#allocation21_spill] sm:$0xff] }
  0x4b   :  { %8265 = vmatpush3.msra.mxu0 %v10491_v9  ;;  %883 = vmatprep.mubr.f32.mxu0 %v10618_v50 }
  0x4c   :  { %8266 = vmatprep.subr.mxu0 %v10513_v15  ;;  %8302 = vmatpush3.msra.mxu1 %v10392_v59 }
  0x4d   :  { %8267 = vmatpush3.msra.mxu0 %v10524_v3  ;;  %8303 = vmatprep.subr.mxu1 %v10409_v33  ;;  %v17018_v33 = vand.u32 4294901760, %v10165_v27  ;;  %v17024_v27 = vand.u32 4294901760, %v10219_v44 }
  0x4e   :  { %8268 = vmatprep.subr.mxu0 %v10536_v30  ;;  %8304 = vmatpush3.msra.mxu1 %v10423_v2  ;;  %v17016_v2 = vld [vmem:[#allocation3_spill] sm:$0xff] }
  0x4f   :  { %8269 = vmatpush3.msra.mxu0 %v10549_v1  ;;  %8305 = vmatprep.subr.mxu1 %v10439_v62  ;;  %v17017_v62 = vand.u32 4294901760, %v17016_v2  ;;  %v17023_v2 = vand.u32 4294901760, %v10203_v39  ;;  %v17032_v39 = vand.u32 4294901760, %v10353_v51  ;;  %v17036_v51 = vand.u32 4294901760, %v17004_v17 }
  0x50   :  { %8270 = vmatprep.subr.mxu0 %v10553_v31  ;;  %8306 = vmatpush3.msra.mxu1 %v17014_v48  ;;  %v17020_v48 = vand.u32 4294901760, %v10618_v50  ;;  %v63_v50 = vld [vmem:[%s16357_s1 + $0x158] sm:$0xff]  ;;  %v17045_v17 = vand.u32 4294901760, %v10513_v15  ;;  %v78_v15 = vld [vmem:[%s16357_s1 + $0x1d0] sm:$0xff] }
  0x51   :  { %8271 = vmatpush3.msra.mxu0 %v10566_v38  ;;  %8307 = vmatprep.subr.mxu1 %v17015_v57  ;;  %v17019_v57 = vand.u32 4294901760, %v10171_v29  ;;  %v17025_v29 = vand.u32 4294901760, %v10233_v49  ;;  %v17033_v49 = vand.u32 4294901760, %v10380_v43 }
  0x52   :  { %8272 = vmatprep.subr.mxu0 %v10573_v45  ;;  %8308 = vmatpush3.msra.mxu1 %v10487_v53  ;;  %v17021_v53 = vand.u32 4294901760, %v10194_v35  ;;  %v17027_v35 = vand.u32 4294901760, %v10284_v8  ;;  %v17034_v8 = vand.u32 4294901760, %v17001_v60 }
  0x53   :  { %8273 = vmatpush3.msra.mxu0 %v10590_v32  ;;  %8309 = vmatprep.subr.mxu1 %v10504_v61  ;;  %v17022_v61 = vand.u32 4294901760, %v10604_v55 }
  0x54   :  { %8274 = vmatprep.subr.mxu0 %v10608_v41  ;;  %8310 = vmatpush3.msra.mxu1 %v10520_v54 }
  0x55   :  { %8275 = vmatpush3.msra.mxu0 %v10615_v37  ;;  %990 = vmatprep.mubr.f32.mxu1 %v17020_v48 }
  0x56   :  { %886 = vmatmul.mubr.f32.vlgmr.msra.gmra.mxu0 %v10604_v55  ;;  %8314 = vmatprep.subr.mxu0 %v17017_v62  ;;  %v79_v55 = vld [vmem:[%s16357_s1 + $0x1d8] sm:$0xff] }
  0x57   :  { %8315 = vmatpush3.msra.mxu0 %v17018_v33  ;;  %994 = vmatmul.mubr.f32.vlgmr.msra.gmra.mxu1 %v17022_v61  ;;  %v17026_v33 = vand.u32 4294901760, %v10268_v63  ;;  %v81_v63 = vld [vmem:[%s16357_s1 + $0x1e8] sm:$0xff]  ;;  %v17039_v61 = vand.u32 4294901760, %v17008_v4  ;;  %v10844_v4 = vand.u32 4294901760, %v79_v55 }
  0x58   :  { %8316 = vmatprep.subr.mxu0 %v17019_v57  ;;  %8349 = vmatprep.subr.mxu1 %v10101_v5  ;;  %v17028_v5 = vand.u32 4294901760, %v10298_v42  ;;  %v17035_v42 = vand.u32 4294901760, %v10420_v18  ;;  %v80_v18 = vld [vmem:[%s16357_s1 + $0x1e0] sm:$0xff] }
  0x59   :  { %8317 = vmatpush3.msra.mxu0 %v17021_v53  ;;  %8350 = vmatpush3.msra.mxu1 %v10103_v6  ;;  %v17029_v6 = vand.u32 4294901760, %v10312_v52  ;;  %v10786_v52 = vand.u32 4294901760, %v81_v63  ;;  %v17041_v53 = vand.u32 4294901760, %v17010_v23  ;;  %v10811_v48 = vand.u32 4294901760, %v80_v18  ;;  %17047 = vst [vmem:[#allocation16_spill] sm:$0xff] %v10844_v4 }
  0x5a   :  { %8318 = vmatprep.subr.mxu0 %v17023_v2  ;;  %8351 = vmatprep.subr.mxu1 %v10105_v7  ;;  %v67_v7 = vld [vmem:[%s16357_s1 + $0x178] sm:$0xff]  ;;  %v10846_v2 = vand.u32 4294901760, %v63_v50 }
  0x5b   :  { %8319 = vmatpush3.msra.mxu0 %v17024_v27  ;;  %8352 = vmatpush3.msra.mxu1 %v10116_v12  ;;  %v17030_v12 = vand.u32 4294901760, %v10324_v58  ;;  %v10754_v44 = vand.u32 4294901760, %v67_v7  ;;  %17037 = vst [vmem:[#allocation4_spill] sm:$0xff] %v10786_v52  ;;  %v64_v58 = vld [vmem:[%s16357_s1 + $0x160] sm:$0xff]  ;;  %17042 = vst [vmem:[#allocation5_spill] sm:$0xff] %v10811_v48  ;;  %v17049_v27 = vand.u32 4294901760, %v10536_v30 }
  0x5c   :  { %8320 = vmatprep.subr.mxu0 %v17025_v29  ;;  %8353 = vmatprep.subr.mxu1 %v10118_v13  ;;  %v83_v13 = vld [vmem:[%s16357_s1 + $0x1f8] sm:$0xff]  ;;  %v10825_v23 = vand.u32 4294901760, %v64_v58  ;;  %17048 = vst [vmem:[#allocation7_spill] sm:$0xff] %v10846_v2  ;;  %v10859_v29 = vsub.f32 %v80_v18, %v10811_v48 }
  0x5d   :  { %8321 = vmatpush3.msra.mxu0 %v17026_v33  ;;  %8354 = vmatpush3.msra.mxu1 %v10120_v14  ;;  %v17031_v14 = vand.u32 4294901760, %v10341_v25  ;;  %v17051_v33 = vand.u32 4294901760, %v10549_v1 }
  0x5e   :  { %8322 = vmatprep.subr.mxu0 %v17027_v35  ;;  %8355 = vmatprep.subr.mxu1 %v10135_v19  ;;  %v66_v19 = vld [vmem:[%s16357_s1 + $0x170] sm:$0xff]  ;;  %17044 = vst [vmem:[#allocation6_spill] sm:$0xff] %v10825_v23  ;;  %v10865_v35 = vsub.f32 %v64_v58, %v10825_v23  ;;  %v59_v58 = vld [vmem:[%s16357_s1 + $0x138] sm:$0xff] }
  0x5f   :  { %8323 = vmatpush3.msra.mxu0 %v17028_v5  ;;  %8356 = vmatpush3.msra.mxu1 %v10137_v20  ;;  %v82_v20 = vld [vmem:[%s16357_s1 + $0x1f0] sm:$0xff]  ;;  %v61_v5 = vld [vmem:[%s16357_s1 + $0x148] sm:$0xff] }
  0x60   :  { %8324 = vmatprep.subr.mxu0 %v17029_v6  ;;  %8357 = vmatprep.subr.mxu1 %v10140_v21  ;;  %v10762_v21 = vand.u32 4294901760, %v83_v13  ;;  %v10775_v43 = vand.u32 4294901760, %v82_v20  ;;  %v17052_v6 = vld [vmem:[#allocation25_spill] sm:$0xff]  ;;  %v10925_v18 = vand.u32 4294901760, %v61_v5 }
  0x61   :  { %8325 = vmatpush3.msra.mxu0 %v17030_v12  ;;  %8358 = vmatpush3.msra.mxu1 %v10162_v26  ;;  %v10770_v26 = vand.u32 4294901760, %v66_v19  ;;  %v315_v1 = vcombine.high %v17052_v6, %v17052_v6 }
  0x62   :  { %8326 = vmatprep.subr.mxu0 %v17031_v14  ;;  %8359 = vmatprep.subr.mxu1 %v10168_v28  ;;  %v65_v28 = vld [vmem:[%s16357_s1 + $0x168] sm:$0xff]  ;;  %v10820_v57 = vsub.f32 %v82_v20, %v10775_v43  ;;  %17059 = vst [vmem:[#allocation20_spill] sm:$0xff] %v10925_v18 }
  0x63   :  { %8327 = vmatpush3.msra.mxu0 %v17032_v39  ;;  %8360 = vmatpush3.msra.mxu1 %v10191_v34  ;;  %v10784_v34 = vsub.f32 %v67_v7, %v10754_v44  ;;  %v10804_v25 = vsub.f32 %v66_v19, %v10770_v26  ;;  %v10806_v62 = vand.u32 4294901760, %v65_v28  ;;  %v17053_v7 = vand.u32 4294901760, %v10553_v31  ;;  %v77_v14 = vld [vmem:[%s16357_s1 + $0x1c8] sm:$0xff] }
  0x64   :  { %8328 = vmatprep.subr.mxu0 %v17033_v49  ;;  %8361 = vmatprep.subr.mxu1 %v10197_v36  ;;  %v17038_v36 = vand.u32 4294901760, %v17006_v24  ;;  %v17056_v19 = vand.u32 4294901760, %v10566_v38  ;;  %v17057_v39 = vld [vmem:[#allocation28_spill] sm:$0xff]  ;;  %v10895_v31 = vsub.f32 %v63_v50, %v10846_v2  ;;  %v60_v38 = vld [vmem:[%s16357_s1 + $0x140] sm:$0xff]  ;;  %v16440_v50 = vand.u32 4294901760, %v10865_v35 }
  0x65   :  { %8329 = vmatpush3.msra.mxu0 %v17034_v8  ;;  %8362 = vmatpush3.msra.mxu1 %v10206_v40  ;;  %v10798_v40 = vsub.f32 %v83_v13, %v10762_v21  ;;  %17040 = vst [vmem:[#allocation13_spill] sm:$0xff] %v10806_v62  ;;  %v16441_v60 = vand.u32 4294901760, %v10784_v34  ;;  %v10842_v24 = vsub.f32 %v65_v28, %v10806_v62  ;;  %v10886_v13 = vand.u32 4294901760, %v78_v15 }
  0x66   :  { %8330 = vmatprep.subr.mxu0 %v17035_v42  ;;  %8363 = vmatprep.subr.mxu1 %v17000_v56  ;;  %v17043_v56 = vand.u32 4294901760, %v10491_v9  ;;  %v10912_v8 = vsub.f32 %v79_v55, %v10844_v4  ;;  %v17058_v42 = vand.u32 4294901760, %v10573_v45  ;;  %v17060_v45 = vand.u32 4294901760, %v10590_v32 }
  0x67   :  { %8331 = vmatpush3.msra.mxu0 %v17036_v51  ;;  %8364 = vmatpush3.msra.mxu1 %v17002_v16  ;;  %v62_v16 = vld [vmem:[%s16357_s1 + $0x150] sm:$0xff]  ;;  %v16442_v9 = vand.u32 4294901760, %v10798_v40  ;;  %v10870_v30 = vsub.f32 %v10784_v34, %v16441_v60  ;;  %17055 = vst [vmem:[#allocation8_spill] sm:$0xff] %v10886_v13  ;;  %v16435_v49 = vand.u32 4294901760, %v10842_v24 }
  0x68   :  { %8332 = vmatprep.subr.mxu0 %v17038_v36  ;;  %8365 = vmatprep.subr.mxu1 %v17003_v46  ;;  %v10832_v46 = vsub.f32 %v81_v63, %v10786_v52  ;;  %v10906_v63 = vld [vmem:[%s16357_s1 + $0x1c0] sm:$0xff]  ;;  %v16437_v36 = vand.u32 4294901760, %v10859_v29 }
  0x69   :  { %8333 = vmatpush3.msra.mxu0 %v17039_v61  ;;  %8366 = vmatpush3.msra.mxu1 %v17005_v10  ;;  %v17046_v10 = vand.u32 4294901760, %v10524_v3  ;;  %v16439_v3 = vand.u32 4294901760, %v10820_v57  ;;  %v10884_v12 = vsub.f32 %v10798_v40, %v16442_v9  ;;  %v17078_v61 = vld [vmem:[#allocation26_spill] sm:$0xff]  ;;  %v73_v9 = vld [vmem:[%s16357_s1 + $0x1a8] sm:$0xff] }
  0x6a   :  { %8334 = vmatprep.subr.mxu0 %v17041_v53  ;;  %8367 = vmatprep.subr.mxu1 %v17007_v22  ;;  %v16438_v22 = vand.u32 4294901760, %v10804_v25  ;;  %v10935_v53 = vand.u32 4294901760, %v77_v14  ;;  %v11034_v32 = vrot.slane %v315_v1, %v17078_v61 }
  0x6b   :  { %8335 = vmatpush3.msra.mxu0 %v17043_v56  ;;  %8368 = vmatpush3.msra.mxu1 %v17009_v11  ;;  %v10856_v11 = vand.u32 4294901760, %v62_v16  ;;  %v10920_v28 = vsub.f32 %v10820_v57, %v16439_v3  ;;  %v17063_v56 = vand.u32 4294901760, %v10608_v41  ;;  %v17067_v41 = vand.u32 4294901760, %v10615_v37  ;;  %v56_v37 = vld [vmem:[%s16357_s1 + $0x120] sm:$0xff] }
  0x6c   :  { %8336 = vmatprep.subr.mxu0 %v17045_v17  ;;  %8369 = vmatprep.subr.mxu1 %v17011_v0  ;;  %v16436_v0 = vand.u32 4294901760, %v10832_v46  ;;  %v10900_v20 = vsub.f32 %v10804_v25, %v16438_v22  ;;  %17062 = vst [vmem:[#allocation9_spill] sm:$0xff] %v10935_v53  ;;  %v10948_v17 = vand.u32 4294901760, %v10906_v63  ;;  %v11002_v22 = vsub.f32 %v77_v14, %v10935_v53  ;;  %v17077_v14 = vld [vmem:[#allocation23_spill] sm:$0xff] }
  0x6d   :  { %8337 = vmatpush3.msra.mxu0 %v17046_v10  ;;  %17050 = vst [vmem:[#allocation18_spill] sm:$0xff] %v10856_v11  ;;  %8370 = vmatpush3.msra.mxu1 %v17012_v47  ;;  %v17054_v47 = vld [vmem:[#allocation12_spill] sm:$0xff]  ;;  %v10923_v51 = vsub.f32 %v62_v16, %v10856_v11  ;;  %v17064_v16 = vld [vmem:[#allocation15_spill] sm:$0xff]  ;;  %v10950_v10 = vand.u32 4294901760, %v60_v38  ;;  %v11078_v61 = vand.u32 4294901760, %v56_v37 }
  0x6e   :  { %8338 = vmatprep.subr.mxu0 %v17049_v27  ;;  %8371 = vmatprep.subr.mxu1 %v17054_v47  ;;  %v10940_v55 = vsub.f32 %v10832_v46, %v16436_v0  ;;  %17065 = vst [vmem:[#allocation22_spill] sm:$0xff] %v10948_v17  ;;  %v10955_v27 = vld [vmem:[%s16357_s1 + $0x1b8] sm:$0xff]  ;;  %v10993_v0 = vsub.f32 %v10865_v35, %v16440_v50  ;;  %v72_v50 = vld [vmem:[%s16357_s1 + $0x1a0] sm:$0xff] }
  0x6f   :  { %8339 = vmatpush3.msra.mxu0 %v17051_v33  ;;  %1160 = vmatprep.mubr.f32.mxu0 %v17057_v39  ;;  %17066 = vst [vmem:[#allocation10_spill] sm:$0xff] %v10950_v10  ;;  %v10958_v33 = vsub.f32 %v78_v15, %v10886_v13  ;;  %v58_v15 = vld [vmem:[%s16357_s1 + $0x130] sm:$0xff]  ;;  %v11007_v3 = vsub.f32 %v60_v38, %v10950_v10 }
  0x70   :  { %8340 = vmatprep.subr.mxu0 %v17053_v7  ;;  %8372 = vmatpush3.msra.mxu1 %v10392_v59  ;;  %v17061_v59 = vld [vmem:[#allocation14_spill] sm:$0xff]  ;;  %v17068_v7 = vld [vmem:[#allocation17_spill] sm:$0xff]  ;;  %v11010_v60 = vand.u32 4294901760, %v58_v15  ;;  %v11051_v6 = vsub.f32 %v10906_v63, %v10948_v17 }
  0x71   :  { %8341 = vmatpush3.msra.mxu0 %v17056_v19  ;;  %8373 = vmatprep.subr.mxu1 %v17061_v59  ;;  %v10967_v19 = vsub.f32 %v10842_v24, %v16435_v49  ;;  %v17070_v59 = vld [vmem:[#allocation27_spill] sm:$0xff]  ;;  %17075 = vst [vmem:[#allocation12_spill] sm:$0xff] %v11007_v3  ;;  %v57_v49 = vld [vmem:[%s16357_s1 + $0x128] sm:$0xff]  ;;  %v17083_v63 = vand.u32 4294901760, %v10958_v33 }
  0x72   :  { %8342 = vmatprep.subr.mxu0 %v17058_v42  ;;  %8374 = vmatpush3.msra.mxu1 %v17064_v16  ;;  %v16443_v42 = vand.u32 4294901760, %v10912_v8  ;;  %v10984_v16 = vsub.f32 %v10859_v29, %v16437_v36  ;;  %v74_v36 = vld [vmem:[%s16357_s1 + $0x1b0] sm:$0xff]  ;;  %17076 = vst [vmem:[#allocation28_spill] sm:$0xff] %v11010_v60  ;;  %17081 = vst [vmem:[#allocation15_spill] sm:$0xff] %v11051_v6  ;;  %v11071_v1 = vsub.f32 %v58_v15, %v11010_v60 }
  0x73   :  { %8343 = vmatpush3.msra.mxu0 %v17060_v45  ;;  %8375 = vmatprep.subr.mxu1 %v17068_v7  ;;  %v10970_v45 = vand.u32 4294901760, %v59_v58  ;;  %v17072_v7 = vld [vmem:[#allocation19_spill] sm:$0xff]  ;;  %v11044_v47 = vand.u32 4294901760, %v74_v36  ;;  %v331_v15 = vcombine.high %v11034_v32, %v11034_v32 }
  0x74   :  { %8344 = vmatprep.subr.mxu0 %v17063_v56  ;;  %v10979_v56 = vsub.f32 %v61_v5, %v10925_v18  ;;  %8376 = vmatpush3.msra.mxu1 %v17072_v7  ;;  %v10996_v5 = vand.u32 4294901760, %v10955_v27  ;;  %v17074_v7 = vld [vmem:[#allocation21_spill] sm:$0xff]  ;;  %v11022_v38 = vsub.f32 %v10912_v8, %v16443_v42  ;;  %17084 = vst [vmem:[#allocation27_spill] sm:$0xff] %v11071_v1  ;;  %17086 = vst [vmem:[#allocation19_spill] sm:$0xff] %v11078_v61 }
  0x75   :  { %8345 = vmatpush3.msra.mxu0 %v17067_v41  ;;  %17069 = vst [vmem:[#allocation11_spill] sm:$0xff] %v10970_v45  ;;  %v16444_v41 = vand.u32 4294901760, %v10895_v31  ;;  %8377 = vmatprep.subr.mxu1 %v17074_v7  ;;  %v11025_v7 = vsub.f32 %v59_v58, %v10970_v45  ;;  %17080 = vst [vmem:[#allocation14_spill] sm:$0xff] %v11044_v47 }
  0x76   :  { %1162 = vmatmul.mubr.f32.vlgmr.msra.gmra.mxu0 %v17070_v59  ;;  %8384 = vmatprep.subr.mxu0 %v10762_v21  ;;  %17071 = vst [vmem:[#allocation3_spill] sm:$0xff] %v10979_v56  ;;  %17073 = vst [vmem:[#allocation25_spill] sm:$0xff] %v10996_v5 }
  0x77   :  { %8385 = vmatpush3.msra.mxu0 %v10754_v44  ;;  %8378 = vmatpush3.msra.mxu1 %v17077_v14  ;;  %v17079_v14 = vld [vmem:[#allocation24_spill] sm:$0xff]  ;;  %v11042_v58 = vsub.f32 %v10895_v31, %v16444_v41  ;;  %v11057_v41 = vand.u32 4294901760, %v57_v49 }
  0x78   :  { %8386 = vmatprep.subr.mxu0 %v10775_v43  ;;  %8379 = vmatprep.subr.mxu1 %v17079_v14  ;;  %v17085_v14 = vand.u32 4294901760, %v10923_v51 }
  0x79   :  { %8387 = vmatpush3.msra.mxu0 %v10770_v26  ;;  %8380 = vmatpush3.msra.mxu1 %v10520_v54  ;;  %17082 = vst [vmem:[#allocation17_spill] sm:$0xff] %v11057_v41  ;;  %v11068_v54 = vsub.f32 %v10958_v33, %v17083_v63  ;;  %v55_v63 = vld [vmem:[%s16357_s1 + $0x118] sm:$0xff] }
  0x7a   :  { %8388 = vmatprep.subr.mxu0 %v10786_v52  ;;  %1264 = vmatprep.mubr.f32.mxu1 %v17057_v39  ;;  %v11076_v42 = vsub.f32 %v10923_v51, %v17085_v14  ;;  %v1528_v39 = vand.u32 4294901760, %v11022_v38  ;;  %v17088_v14 = vand.u32 4294901760, %v10884_v12  ;;  %v11092_v52 = vand.u32 4294901760, %v72_v50 }
  0x7b   :  { %8389 = vmatpush3.msra.mxu0 %v10806_v62  ;;  %1266 = vmatmul.mubr.f32.vlgmr.msra.gmra.mxu1 %v17070_v59  ;;  %v1416_v62 = vand.u32 4294901760, %v11042_v58  ;;  %v11097_v38 = vsub.f32 %v10955_v27, %v10996_v5  ;;  %v17090_v12 = vand.u32 4294901760, %v11002_v22  ;;  %v17091_v27 = vand.u32 4294901760, %v10979_v56 }
  0x7c   :  { %8390 = vmatprep.subr.mxu0 %v10811_v48  ;;  %v11083_v48 = vand.u32 4294901760, %v73_v9  ;;  %8419 = vmatprep.subr.mxu1 %v17088_v14  ;;  %v11111_v14 = vsub.f32 %v57_v49, %v11057_v41  ;;  %v1423_v49 = vand.u32 4294901760, %v11076_v42  ;;  %v70_v42 = vld [vmem:[%s16357_s1 + $0x190] sm:$0xff] }
  0x7d   :  { %8391 = vmatpush3.msra.mxu0 %v10825_v23  ;;  %v11108_v58 = vsub.f32 %v11002_v22, %v17090_v12  ;;  %v11116_v59 = vsub.f32 %v10979_v56, %v17091_v27  ;;  %v1535_v12 = vand.u32 4294901760, %v11068_v54  ;;  %v11128_v23 = vsub.f32 %v56_v37, %v11078_v61 }
  0x7e   :  { %17087 = vst [vmem:[#allocation21_spill] sm:$0xff] %v11083_v48  ;;  %8392 = vmatprep.subr.mxu0 %v10844_v4  ;;  %v17089_v4 = vand.u32 4294901760, %v10870_v30  ;;  %v11131_v27 = vsub.f32 %v74_v36, %v11044_v47  ;;  %v17094_v56 = vand.u32 4294901760, %v10900_v20  ;;  %v17095_v30 = vand.u32 4294901760, %v11007_v3  ;;  %v54_v36 = vld [vmem:[%s16357_s1 + $0x110] sm:$0xff] }
  0x7f   :  { %8393 = vmatpush3.msra.mxu0 %v10846_v2  ;;  %v71_v2 = vld [vmem:[%s16357_s1 + $0x198] sm:$0xff]  ;;  %17093 = vst [vmem:[#allocation23_spill] sm:$0xff] %v11128_v23  ;;  %v11150_v37 = vsub.f32 %v73_v9, %v11083_v48  ;;  %v11152_v20 = vand.u32 4294901760, %v331_v15  ;;  %v17098_v54 = vand.u32 4294901760, %v11051_v6  ;;  %v17100_v9 = vand.u32 4294901760, %v10967_v19 }
  0x80   :  { %8420 = vmatpush3.msra.mxu1 %v17089_v4  ;;  %8394 = vmatprep.subr.mxu0 %v10886_v13  ;;  %v17092_v4 = vand.u32 4294901760, %v10920_v28  ;;  %v11139_v28 = vsub.f32 %v11007_v3, %v17095_v30  ;;  %v11166_v3 = vand.u32 4294901760, %v11034_v32  ;;  %v69_v13 = vld [vmem:[%s16357_s1 + $0x188] sm:$0xff]  ;;  %v17102_v19 = vand.u32 4294901760, %v10984_v16 }
  0x81   :  { %8395 = vmatpush3.msra.mxu0 %v10856_v11  ;;  %17096 = vst [vmem:[#allocation24_spill] sm:$0xff] %v11152_v20  ;;  %v11160_v30 = vsub.f32 %v11051_v6, %v17098_v54  ;;  %v11162_v11 = vand.u32 4294901760, %v71_v2  ;;  %v17104_v6 = vand.u32 4294901760, %v10993_v0  ;;  %1608 = vmatprep.mubr.f32.mxu1 %v11152_v20 }
  0x82   :  { %8421 = vmatprep.subr.mxu1 %v17092_v4  ;;  %v11141_v4 = vand.u32 4294901760, %v55_v63  ;;  %8396 = vmatprep.subr.mxu0 %v10935_v53  ;;  %17099 = vst [vmem:[#allocation29_spill] sm:$0xff] %v11166_v3  ;;  %v17101_v53 = vand.u32 4294901760, %v11025_v7  ;;  %v11219_v16 = vsub.f32 %v11034_v32, %v11166_v3 }
  0x83   :  { %8422 = vmatpush3.msra.mxu1 %v17094_v56  ;;  %v17097_v56 = vand.u32 4294901760, %v10940_v55  ;;  %8397 = vmatpush3.msra.mxu0 %v10925_v18  ;;  %v1542_v55 = vand.u32 4294901760, %v11108_v58  ;;  %v11188_v58 = vand.u32 4294901760, %v54_v36  ;;  %v1437_v18 = vand.u32 4294901760, %v11139_v28  ;;  %v68_v28 = vld [vmem:[%s16357_s1 + $0x180] sm:$0xff] }
  0x84   :  { %v11176_v54 = vsub.f32 %v11025_v7, %v17101_v53  ;;  %8398 = vmatprep.subr.mxu0 %v10948_v17  ;;  %v11191_v53 = vsub.f32 %v72_v50, %v11092_v52  ;;  %v11198_v17 = vsub.f32 %v55_v63, %v11141_v4  ;;  %v1549_v0 = vand.u32 4294901760, %v11160_v30 }
  0x85   :  { %8423 = vmatprep.subr.mxu1 %v17097_v56  ;;  %v1430_v56 = vand.u32 4294901760, %v11116_v59  ;;  %8399 = vmatpush3.msra.mxu0 %v10950_v10  ;;  %v11205_v59 = vsub.f32 %v331_v15, %v11152_v20  ;;  %v17105_v50 = vand.u32 4294901760, %v11097_v38  ;;  %v11212_v63 = vand.u32 4294901760, %v69_v13  ;;  %v17139_v20 = vld [vmem:[#allocation28_spill] sm:$0xff] }
  0x86   :  { %8424 = vmatpush3.msra.mxu1 %v17100_v9  ;;  %v11185_v9 = vand.u32 4294901760, %v70_v42  ;;  %8400 = vmatprep.subr.mxu0 %v10996_v5  ;;  %v17106_v15 = vand.u32 4294901760, %v11071_v1  ;;  %v52_v5 = vld [vmem:[%s16357_s1 + $0x100] sm:$0xff]  ;;  %v11231_v10 = vsub.f32 %v71_v2, %v11162_v11  ;;  %v17108_v2 = vand.u32 4294901760, %v11150_v37 }
  0x87   :  { %8425 = vmatprep.subr.mxu1 %v17102_v19  ;;  %v53_v19 = vld [vmem:[%s16357_s1 + $0x108] sm:$0xff]  ;;  %8401 = vmatpush3.msra.mxu0 %v10970_v45 }
  0x88   :  { %17103 = vst [vmem:[#allocation30_spill] sm:$0xff] %v11185_v9  ;;  %8426 = vmatpush3.msra.mxu1 %v17104_v6  ;;  %v1555_v6 = vsub.f32 %v11097_v38, %v17105_v50  ;;  %v1450_v30 = vsub.f32 %v11071_v1, %v17106_v15  ;;  %8402 = vmatprep.subr.mxu0 %v11044_v47  ;;  %v11240_v15 = vand.u32 4294901760, %v53_v19  ;;  %v11247_v47 = vand.u32 4294901760, %v68_v28 }
  0x89   :  { %8427 = vmatprep.subr.mxu1 %v1528_v39  ;;  %v1444_v39 = vand.u32 4294901760, %v11176_v54  ;;  %v11238_v54 = vsub.f32 %v54_v36, %v11188_v58  ;;  %8403 = vmatpush3.msra.mxu0 %v11010_v60  ;;  %v1569_v45 = vsub.f32 %v11150_v37, %v17108_v2  ;;  %v11254_v1 = vand.u32 4294901760, %v52_v5 }
  0x8a   :  { %8428 = vmatpush3.msra.mxu1 %v1416_v62  ;;  %v17107_v62 = vand.u32 4294901760, %v11131_v27  ;;  %8404 = vmatprep.subr.mxu0 %v11083_v48  ;;  %v1556_v36 = vand.u32 4294901760, %v1555_v6  ;;  %v16487_v50 = vand.u32 4294901760, %v11128_v23  ;;  %v1451_v2 = vand.u32 4294901760, %v1450_v30 }
  0x8b   :  { %8429 = vmatprep.subr.mxu1 %v1535_v12  ;;  %8405 = vmatpush3.msra.mxu0 %v11057_v41  ;;  %v17109_v60 = vand.u32 4294901760, %v11111_v14  ;;  %v11264_v48 = vsub.f32 %v69_v13, %v11212_v63  ;;  %v11268_v6 = vsub.f32 %v53_v19, %v11240_v15  ;;  %v16490_v30 = vand.u32 4294901760, %v11198_v17 }
  0x8c   :  { %v1562_v32 = vsub.f32 %v11131_v27, %v17107_v62  ;;  %8430 = vmatpush3.msra.mxu1 %v1423_v49  ;;  %v11251_v62 = vsub.f32 %v70_v42, %v11185_v9  ;;  %8406 = vmatprep.subr.mxu0 %v11092_v52  ;;  %v17110_v49 = vand.u32 4294901760, %v11191_v53  ;;  %v17111_v13 = vand.u32 4294901760, %v11205_v59 }
  0x8d   :  { %8431 = vmatprep.subr.mxu1 %v1542_v55  ;;  %v1457_v12 = vsub.f32 %v11111_v14, %v17109_v60  ;;  %8407 = vmatpush3.msra.mxu0 %v11078_v61  ;;  %v1570_v60 = vand.u32 4294901760, %v1569_v45  ;;  %v11284_v19 = vsub.f32 %v52_v5, %v11254_v1  ;;  %v17114_v45 = vand.u32 4294901760, %v11219_v16 }
  0x8e   :  { %8432 = vmatpush3.msra.mxu1 %v1430_v56  ;;  %v1563_v55 = vand.u32 4294901760, %v1562_v32  ;;  %v1576_v56 = vsub.f32 %v11191_v53, %v17110_v49  ;;  %v1370_v42 = vsub.f32 %v11205_v59, %v17111_v13  ;;  %v11280_v32 = vsub.f32 %v68_v28, %v11247_v47  ;;  %8408 = vmatprep.subr.mxu0 %v11162_v11 }
  0x8f   :  { %8433 = vmatprep.subr.mxu1 %v1549_v0  ;;  %17113 = vst [vmem:[#allocation32_spill] sm:$0xff] %v11284_v19  ;;  %v1376_v49 = vsub.f32 %v11219_v16, %v17114_v45  ;;  %8409 = vmatpush3.msra.mxu0 %v11141_v4  ;;  %v1458_v28 = vand.u32 4294901760, %v1457_v12  ;;  %v17115_v0 = vand.u32 4294901760, %v11231_v10  ;;  %v1471_v45 = vsub.f32 %v11198_v17, %v16490_v30 }
  0x90   :  { %8434 = vmatpush3.msra.mxu1 %v1437_v18  ;;  %17112 = vst [vmem:[#allocation31_spill] sm:$0xff] %v11280_v32  ;;  %v1464_v18 = vsub.f32 %v11128_v23, %v16487_v50  ;;  %8410 = vmatprep.subr.mxu0 %v11185_v9  ;;  %v1577_v50 = vand.u32 4294901760, %v1576_v56  ;;  %v17116_v12 = vand.u32 4294901760, %v11251_v62  ;;  %v16492_v5 = vand.u32 4294901760, %v11280_v32 }
  0x91   :  { %8435 = vmatprep.subr.mxu1 %v1556_v36  ;;  %v1583_v36 = vsub.f32 %v11231_v10, %v17115_v0  ;;  %8411 = vmatpush3.msra.mxu0 %v11188_v58  ;;  %v1377_v56 = vand.u32 4294901760, %v1376_v49  ;;  %v17117_v9 = vand.u32 4294901760, %v11238_v54  ;;  %v16491_v13 = vand.u32 4294901760, %v11284_v19 }
  0x92   :  { %8436 = vmatpush3.msra.mxu1 %v1444_v39  ;;  %v1371_v39 = vand.u32 4294901760, %v1370_v42  ;;  %v1590_v0 = vsub.f32 %v11251_v62, %v17116_v12  ;;  %8412 = vmatprep.subr.mxu0 %v11212_v63  ;;  %v17118_v42 = vand.u32 4294901760, %v11264_v48 }
  0x93   :  { %8437 = vmatprep.subr.mxu1 %v1563_v55  ;;  %v1465_v55 = vand.u32 4294901760, %v1464_v18  ;;  %v1478_v30 = vsub.f32 %v11238_v54, %v17117_v9  ;;  %8413 = vmatpush3.msra.mxu0 %v11240_v15  ;;  %v17119_v18 = vand.u32 4294901760, %v11268_v6 }
  0x94   :  { %8438 = vmatpush3.msra.mxu1 %v1451_v2  ;;  %v1584_v2 = vand.u32 4294901760, %v1583_v36  ;;  %v1597_v12 = vsub.f32 %v11264_v48, %v17118_v42  ;;  %8414 = vmatprep.subr.mxu0 %v11247_v47  ;;  %v1591_v9 = vand.u32 4294901760, %v1590_v0  ;;  %v17123_v42 = vld [vmem:[#allocation15_spill] sm:$0xff] }
  0x95   :  { %8439 = vmatprep.subr.mxu1 %v1570_v60  ;;  %v1472_v60 = vand.u32 4294901760, %v1471_v45  ;;  %v1485_v49 = vsub.f32 %v11268_v6, %v17119_v18  ;;  %8415 = vmatpush3.msra.mxu0 %v11254_v1  ;;  %v1479_v36 = vand.u32 4294901760, %v1478_v30  ;;  %v17126_v18 = vld [vmem:[#allocation6_spill] sm:$0xff] }
  0x96   :  { %8440 = vmatpush3.msra.mxu1 %v1458_v28  ;;  %1372 = vmatprep.mubr.f32.mxu0 %v1371_v39  ;;  %v1604_v28 = vsub.f32 %v11280_v32, %v16492_v5  ;;  %v1598_v45 = vand.u32 4294901760, %v1597_v12  ;;  %v17124_v12 = vld [vmem:[#allocation5_spill] sm:$0xff]  ;;  %v17137_v5 = vld [vmem:[#allocation11_spill] sm:$0xff] }
  0x97   :  { %8441 = vmatprep.subr.mxu1 %v1577_v50  ;;  %1378 = vmatmul.mubr.f32.vlgmr.msra.gmra.mxu0 %v1377_v56  ;;  %v1492_v50 = vsub.f32 %v11284_v19, %v16491_v13  ;;  %v1486_v39 = vand.u32 4294901760, %v1485_v49  ;;  %v17121_v56 = vld [vmem:[#allocation3_spill] sm:$0xff]  ;;  %v17127_v49 = vld [vmem:[#allocation16_spill] sm:$0xff]  ;;  %v17136_v13 = vld [vmem:[#allocation25_spill] sm:$0xff] }
  0x98   :  { %8442 = vmatpush3.msra.mxu1 %v1465_v55  ;;  %8454 = vmatprep.subr.mxu0 %v10798_v40  ;;  %v1605_v0 = vand.u32 4294901760, %v1604_v28  ;;  %v17120_v55 = vld [vmem:[#allocation4_spill] sm:$0xff] }
  0x99   :  { %8443 = vmatprep.subr.mxu1 %v1584_v2  ;;  %8455 = vmatpush3.msra.mxu0 %v10784_v34  ;;  %v1493_v30 = vand.u32 4294901760, %v1492_v50  ;;  %v17122_v2 = vld [vmem:[#allocation13_spill] sm:$0xff]  ;;  %v17129_v28 = vld [vmem:[#allocation8_spill] sm:$0xff]  ;;  %v17131_v50 = vld [vmem:[#allocation18_spill] sm:$0xff] }
  0x9a   :  { %8444 = vmatpush3.msra.mxu1 %v1472_v60  ;;  %8456 = vmatprep.subr.mxu0 %v10820_v57  ;;  %v17125_v60 = vld [vmem:[#allocation12_spill] sm:$0xff] }
  0x9b   :  { %8445 = vmatprep.subr.mxu1 %v1591_v9  ;;  %8457 = vmatpush3.msra.mxu0 %v10804_v25  ;;  %v17128_v9 = vld [vmem:[#allocation7_spill] sm:$0xff] }
  0x9c   :  { %8446 = vmatpush3.msra.mxu1 %v1479_v36  ;;  %8458 = vmatprep.subr.mxu0 %v10832_v46  ;;  %v17130_v36 = vld [vmem:[#allocation27_spill] sm:$0xff] }
  0x9d   :  { %8447 = vmatprep.subr.mxu1 %v1598_v45  ;;  %8459 = vmatpush3.msra.mxu0 %v10842_v24  ;;  %v17132_v45 = vld [vmem:[#allocation9_spill] sm:$0xff] }
  0x9e   :  { %8448 = vmatpush3.msra.mxu1 %v1486_v39  ;;  %8460 = vmatprep.subr.mxu0 %v10859_v29  ;;  %v17133_v39 = vld [vmem:[#allocation20_spill] sm:$0xff] }
  0x9f   :  { %8449 = vmatprep.subr.mxu1 %v1605_v0  ;;  %8461 = vmatpush3.msra.mxu0 %v10865_v35  ;;  %v17134_v0 = vld [vmem:[#allocation22_spill] sm:$0xff] }
  0xa0   :  { %8450 = vmatpush3.msra.mxu1 %v1493_v30  ;;  %8462 = vmatprep.subr.mxu0 %v10912_v8  ;;  %v17135_v30 = vld [vmem:[#allocation10_spill] sm:$0xff] }
  0xa1   :  { %1610 = vmatmul.mubr.f32.vlgmr.msra.gmra.mxu1 %v11166_v3  ;;  %8489 = vmatprep.subr.mxu1 %v10762_v21  ;;  %v17138_v3 = vld [vmem:[#allocation14_spill] sm:$0xff] }
  0xa2   :  { %8463 = vmatpush3.msra.mxu0 %v10895_v31  ;;  %8490 = vmatpush3.msra.mxu1 %v10754_v44 }
  0xa3   :  { %8464 = vmatprep.subr.mxu0 %v10958_v33  ;;  %8491 = vmatprep.subr.mxu1 %v10775_v43 }
  0xa4   :  { %8465 = vmatpush3.msra.mxu0 %v10923_v51  ;;  %8492 = vmatpush3.msra.mxu1 %v10770_v26 }
  0xa5   :  { %8466 = vmatprep.subr.mxu0 %v11002_v22  ;;  %8493 = vmatprep.subr.mxu1 %v17120_v55 }
  0xa6   :  { %8467 = vmatpush3.msra.mxu0 %v17121_v56  ;;  %8494 = vmatpush3.msra.mxu1 %v17122_v2 }
  0xa7   :  { %8468 = vmatprep.subr.mxu0 %v17123_v42  ;;  %8495 = vmatprep.subr.mxu1 %v17124_v12 }
  0xa8   :  { %8469 = vmatpush3.msra.mxu0 %v17125_v60  ;;  %8496 = vmatpush3.msra.mxu1 %v17126_v18 }
  0xa9   :  { %8470 = vmatprep.subr.mxu0 %v11097_v38  ;;  %8497 = vmatprep.subr.mxu1 %v17127_v49 }
  0xaa   :  { %8471 = vmatpush3.msra.mxu0 %v11025_v7  ;;  %8498 = vmatpush3.msra.mxu1 %v17128_v9 }
  0xab   :  { %8472 = vmatprep.subr.mxu0 %v11131_v27  ;;  %8499 = vmatprep.subr.mxu1 %v17129_v28 }
  0xac   :  { %8473 = vmatpush3.msra.mxu0 %v17130_v36  ;;  %8500 = vmatpush3.msra.mxu1 %v17131_v50 }
  0xad   :  { %8474 = vmatprep.subr.mxu0 %v11150_v37  ;;  %8501 = vmatprep.subr.mxu1 %v17132_v45 }
  0xae   :  { %8475 = vmatpush3.msra.mxu0 %v11111_v14  ;;  %8502 = vmatpush3.msra.mxu1 %v17133_v39 }
  0xaf   :  { %8476 = vmatprep.subr.mxu0 %v11191_v53  ;;  %8503 = vmatprep.subr.mxu1 %v17134_v0 }
  0xb0   :  { %8477 = vmatpush3.msra.mxu0 %v11128_v23  ;;  %8504 = vmatpush3.msra.mxu1 %v17135_v30  ;;  %v17140_v23 = vld [vmem:[#allocation21_spill] sm:$0xff] }
  0xb1   :  { %8478 = vmatprep.subr.mxu0 %v11231_v10  ;;  %8505 = vmatprep.subr.mxu1 %v17136_v13 }
  0xb2   :  { %8479 = vmatpush3.msra.mxu0 %v11198_v17  ;;  %8506 = vmatpush3.msra.mxu1 %v17137_v5 }
  0xb3   :  { %8480 = vmatprep.subr.mxu0 %v11251_v62  ;;  %8507 = vmatprep.subr.mxu1 %v17138_v3 }
  0xb4   :  { %8481 = vmatpush3.msra.mxu0 %v11238_v54  ;;  %8508 = vmatpush3.msra.mxu1 %v17139_v20 }
  0xb5   :  { %8482 = vmatprep.subr.mxu0 %v11264_v48  ;;  %8509 = vmatprep.subr.mxu1 %v17140_v23  ;;  %v17141_v23 = vand.u32 4294901760, %v10798_v40  ;;  %v17146_v40 = vand.u32 4294901760, %v10832_v46  ;;  %v17151_v46 = vand.u32 4294901760, %v11219_v16 }
  0xb6   :  { %8483 = vmatpush3.msra.mxu0 %v11268_v6  ;;  %8510 = vmatpush3.msra.mxu1 %v11057_v41  ;;  %v17142_v41 = vand.u32 4294901760, %v10784_v34  ;;  %v17147_v34 = vand.u32 4294901760, %v10842_v24  ;;  %v17153_v24 = vand.u32 4294901760, %v10895_v31  ;;  %v114_v31 = vld [vmem:[%s16357_s1 + $0x2f0] sm:$0xff] }
  0xb7   :  { %8484 = vmatprep.subr.mxu0 %v11280_v32  ;;  %8511 = vmatprep.subr.mxu1 %v11092_v52  ;;  %v17143_v32 = vld [vmem:[#allocation30_spill] sm:$0xff] }
  0xb8   :  { %8485 = vmatpush3.msra.mxu0 %v11284_v19  ;;  %1745 = vmatprep.mubr.f32.mxu0 %v11205_v59  ;;  %v17144_v19 = vand.u32 4294901760, %v10820_v57  ;;  %v17148_v57 = vand.u32 4294901760, %v10859_v29  ;;  %v17154_v29 = vand.u32 4294901760, %v10958_v33  ;;  %v17160_v33 = vand.u32 4294901760, %v11097_v38  ;;  %v97_v38 = vld [vmem:[%s16357_s1 + $0x268] sm:$0xff] }
  0xb9   :  { %8512 = vmatpush3.msra.mxu1 %v11078_v61  ;;  %1748 = vmatmul.mubr.f32.vlgmr.msra.gmra.mxu0 %v11219_v16  ;;  %v17145_v61 = vand.u32 4294901760, %v10804_v25  ;;  %v17149_v25 = vand.u32 4294901760, %v11205_v59  ;;  %v113_v59 = vld [vmem:[%s16357_s1 + $0x2e8] sm:$0xff]  ;;  %v17161_v16 = vand.u32 4294901760, %v11025_v7  ;;  %v112_v7 = vld [vmem:[%s16357_s1 + $0x2e0] sm:$0xff] }
  0xba   :  { %8513 = vmatprep.subr.mxu1 %v11162_v11  ;;  %8524 = vmatprep.subr.mxu0 %v17141_v23  ;;  %v17150_v23 = vand.u32 4294901760, %v10865_v35  ;;  %v17155_v35 = vand.u32 4294901760, %v10923_v51  ;;  %v98_v51 = vld [vmem:[%s16357_s1 + $0x270] sm:$0xff] }
  0xbb   :  { %8514 = vmatpush3.msra.mxu1 %v11141_v4  ;;  %8525 = vmatpush3.msra.mxu0 %v17142_v41 }
  0xbc   :  { %8515 = vmatprep.subr.mxu1 %v17143_v32  ;;  %8526 = vmatprep.subr.mxu0 %v17144_v19 }
  0xbd   :  { %8516 = vmatpush3.msra.mxu1 %v11188_v58  ;;  %8527 = vmatpush3.msra.mxu0 %v17145_v61  ;;  %v17152_v61 = vand.u32 4294901760, %v10912_v8  ;;  %v17156_v8 = vand.u32 4294901760, %v11002_v22  ;;  %v17159_v22 = vand.u32 4294901760, %v17125_v60  ;;  %v11486_v60 = vand.u32 4294901760, %v97_v38 }
  0xbe   :  { %8517 = vmatprep.subr.mxu1 %v11212_v63  ;;  %8528 = vmatprep.subr.mxu0 %v17146_v40 }
  0xbf   :  { %8518 = vmatpush3.msra.mxu1 %v11240_v15  ;;  %8529 = vmatpush3.msra.mxu0 %v17147_v34  ;;  %17166 = vst [vmem:[#allocation3_spill] sm:$0xff] %v11486_v60 }
  0xc0   :  { %8519 = vmatprep.subr.mxu1 %v11247_v47  ;;  %8530 = vmatprep.subr.mxu0 %v17148_v57 }
  0xc1   :  { %8520 = vmatpush3.msra.mxu1 %v11254_v1  ;;  %1852 = vmatprep.mubr.f32.mxu1 %v17149_v25 }
  0xc2   :  { %8531 = vmatpush3.msra.mxu0 %v17150_v23  ;;  %1856 = vmatmul.mubr.f32.vlgmr.msra.gmra.mxu1 %v17151_v46  ;;  %v17174_v23 = vand.u32 4294901760, %v11231_v10  ;;  %v11534_v46 = vsub.f32 %v97_v38, %v11486_v60  ;;  %v110_v10 = vld [vmem:[%s16357_s1 + $0x2d0] sm:$0xff] }
  0xc3   :  { %8532 = vmatprep.subr.mxu0 %v17152_v61  ;;  %8559 = vmatprep.subr.mxu1 %v10762_v21  ;;  %v17157_v21 = vand.u32 4294901760, %v17121_v56  ;;  %v11471_v56 = vand.u32 4294901760, %v114_v31  ;;  %v17175_v61 = vand.u32 4294901760, %v11198_v17  ;;  %v17177_v17 = vand.u32 4294901760, %v11251_v62 }
  0xc4   :  { %8533 = vmatpush3.msra.mxu0 %v17153_v24  ;;  %8560 = vmatpush3.msra.mxu1 %v10754_v44  ;;  %v115_v44 = vld [vmem:[%s16357_s1 + $0x2f8] sm:$0xff] }
  0xc5   :  { %8534 = vmatprep.subr.mxu0 %v17154_v29  ;;  %8561 = vmatprep.subr.mxu1 %v10775_v43  ;;  %v17158_v43 = vand.u32 4294901760, %v17123_v42  ;;  %v11455_v41 = vand.u32 4294901760, %v115_v44  ;;  %v17163_v42 = vand.u32 4294901760, %v17130_v36  ;;  %v11503_v36 = vand.u32 4294901760, %v112_v7 }
  0xc6   :  { %8535 = vmatpush3.msra.mxu0 %v17155_v35  ;;  %8562 = vmatpush3.msra.mxu1 %v10770_v26  ;;  %v99_v26 = vld [vmem:[%s16357_s1 + $0x278] sm:$0xff]  ;;  %v11515_v40 = vsub.f32 %v114_v31, %v11471_v56  ;;  %v11577_v31 = vand.u32 4294901760, %v110_v10 }
  0xc7   :  { %8536 = vmatprep.subr.mxu0 %v17156_v8  ;;  %8563 = vmatprep.subr.mxu1 %v17120_v55  ;;  %v11463_v19 = vand.u32 4294901760, %v99_v26  ;;  %v17162_v55 = vand.u32 4294901760, %v11131_v27  ;;  %v17165_v27 = vand.u32 4294901760, %v11150_v37  ;;  %17168 = vst [vmem:[#allocation13_spill] sm:$0xff] %v11503_v36  ;;  %v11550_v35 = vsub.f32 %v112_v7, %v11503_v36  ;;  %v17186_v7 = vld [vmem:[#allocation31_spill] sm:$0xff] }
  0xc8   :  { %8537 = vmatpush3.msra.mxu0 %v17157_v21  ;;  %8564 = vmatpush3.msra.mxu1 %v17122_v2  ;;  %v11473_v2 = vand.u32 4294901760, %v98_v51  ;;  %17182 = vst [vmem:[#allocation16_spill] sm:$0xff] %v11577_v31 }
  0xc9   :  { %8538 = vmatprep.subr.mxu0 %v17158_v43  ;;  %8565 = vmatprep.subr.mxu1 %v17124_v12  ;;  %v11481_v12 = vand.u32 4294901760, %v113_v59  ;;  %v11501_v37 = vsub.f32 %v99_v26, %v11463_v19  ;;  %v16502_v38 = vand.u32 4294901760, %v11550_v35 }
  0xca   :  { %8539 = vmatpush3.msra.mxu0 %v17159_v22  ;;  %8566 = vmatpush3.msra.mxu1 %v17126_v18  ;;  %v96_v18 = vld [vmem:[%s16357_s1 + $0x260] sm:$0xff]  ;;  %v17181_v22 = vld [vmem:[#allocation21_spill] sm:$0xff] }
  0xcb   :  { %8540 = vmatprep.subr.mxu0 %v17160_v33  ;;  %8567 = vmatprep.subr.mxu1 %v17127_v49  ;;  %17164 = vst [vmem:[#allocation4_spill] sm:$0xff] %v11481_v12  ;;  %v11492_v49 = vsub.f32 %v115_v44, %v11455_v41  ;;  %v11520_v57 = vand.u32 4294901760, %v96_v18  ;;  %v11528_v25 = vsub.f32 %v113_v59, %v11481_v12  ;;  %v16508_v29 = vand.u32 4294901760, %v11501_v37  ;;  %v17185_v59 = vld [vmem:[#allocation17_spill] sm:$0xff] }
  0xcc   :  { %8541 = vmatpush3.msra.mxu0 %v17161_v16  ;;  %8568 = vmatpush3.msra.mxu1 %v17128_v9  ;;  %v95_v9 = vld [vmem:[%s16357_s1 + $0x258] sm:$0xff]  ;;  %v17179_v44 = vand.u32 4294901760, %v11238_v54  ;;  %v16503_v33 = vand.u32 4294901760, %v11534_v46 }
  0xcd   :  { %8542 = vmatprep.subr.mxu0 %v17162_v55  ;;  %8569 = vmatprep.subr.mxu1 %v17129_v28  ;;  %v17167_v28 = vand.u32 4294901760, %v11111_v14  ;;  %v111_v14 = vld [vmem:[%s16357_s1 + $0x2d8] sm:$0xff]  ;;  %17172 = vst [vmem:[#allocation15_spill] sm:$0xff] %v11520_v57  ;;  %v11563_v43 = vsub.f32 %v96_v18, %v11520_v57  ;;  %v16504_v62 = vand.u32 4294901760, %v11528_v25  ;;  %v11591_v16 = vsub.f32 %v11501_v37, %v16508_v29  ;;  %v106_v29 = vld [vmem:[%s16357_s1 + $0x2b0] sm:$0xff] }
  0xce   :  { %8543 = vmatpush3.msra.mxu0 %v17163_v42  ;;  %8570 = vmatpush3.msra.mxu1 %v17131_v50  ;;  %v17169_v50 = vand.u32 4294901760, %v11191_v53  ;;  %v11522_v53 = vand.u32 4294901760, %v95_v9  ;;  %v11540_v24 = vand.u32 4294901760, %v111_v14  ;;  %v17187_v42 = vand.u32 4294901760, %v17186_v7 }
  0xcf   :  { %8544 = vmatprep.subr.mxu0 %v17165_v27  ;;  %8571 = vmatprep.subr.mxu1 %v17132_v45  ;;  %v11509_v45 = vsub.f32 %v98_v51, %v11473_v2  ;;  %v93_v51 = vld [vmem:[%s16357_s1 + $0x248] sm:$0xff]  ;;  %v11651_v7 = vsub.f32 %v11550_v35, %v16502_v38 }
  0xd0   :  { %8545 = vmatpush3.msra.mxu0 %v17167_v28  ;;  %8572 = vmatpush3.msra.mxu1 %v17133_v39  ;;  %v17170_v39 = vld [vmem:[#allocation23_spill] sm:$0xff]  ;;  %17173 = vst [vmem:[#allocation5_spill] sm:$0xff] %v11522_v53  ;;  %17176 = vst [vmem:[#allocation12_spill] sm:$0xff] %v11540_v24  ;;  %v11566_v26 = vsub.f32 %v95_v9, %v11522_v53  ;;  %v11595_v55 = vsub.f32 %v111_v14, %v11540_v24  ;;  %v17188_v28 = vld [vmem:[#allocation32_spill] sm:$0xff] }
  0xd1   :  { %8546 = vmatprep.subr.mxu0 %v17169_v50  ;;  %8573 = vmatprep.subr.mxu1 %v17134_v0  ;;  %v17171_v34 = vand.u32 4294901760, %v17170_v39  ;;  %v94_v0 = vld [vmem:[%s16357_s1 + $0x250] sm:$0xff]  ;;  %v16505_v21 = vand.u32 4294901760, %v11509_v45  ;;  %v92_v9 = vld [vmem:[%s16357_s1 + $0x240] sm:$0xff]  ;;  %v17189_v50 = vand.u32 4294901760, %v17188_v28  ;;  %v11622_v14 = vsub.f32 %v11528_v25, %v16504_v62  ;;  %v11669_v38 = vld [vmem:[%s16358_s0 + $0x8] sm:$0xff] }
  0xd2   :  { %8574 = vmatpush3.msra.mxu1 %v17135_v30  ;;  %v16509_v30 = vand.u32 4294901760, %v11492_v49  ;;  %v11556_v8 = vand.u32 4294901760, %v94_v0  ;;  %v11624_v39 = vand.u32 4294901760, %v93_v51  ;;  %v16511_v28 = vand.u32 4294901760, %v11595_v55  ;;  %17196 = vst [vmem:[#allocation9_spill] sm:$0xff] %v11669_v38 }
  0xd3   :  { %8547 = vmatpush3.msra.mxu0 %v17171_v34  ;;  %8575 = vmatprep.subr.mxu1 %v17136_v13  ;;  %v109_v13 = vld [vmem:[%s16357_s1 + $0x2c8] sm:$0xff]  ;;  %v11611_v18 = vsub.f32 %v11509_v45, %v16505_v21  ;;  %v108_v34 = vld [vmem:[%s16357_s1 + $0x2c0] sm:$0xff]  ;;  %v107_v21 = vld [vmem:[%s16357_s1 + $0x2b8] sm:$0xff] }
  0xd4   :  { %8548 = vmatprep.subr.mxu0 %v17174_v23  ;;  %8576 = vmatpush3.msra.mxu1 %v17137_v5  ;;  %v16506_v5 = vand.u32 4294901760, %v11515_v40  ;;  %17178 = vst [vmem:[#allocation6_spill] sm:$0xff] %v11556_v8  ;;  %v11575_v54 = vsub.f32 %v11492_v49, %v16509_v30  ;;  %v11606_v27 = vsub.f32 %v94_v0, %v11556_v8  ;;  %17191 = vst [vmem:[#allocation8_spill] sm:$0xff] %v11624_v39 }
  0xd5   :  { %8549 = vmatpush3.msra.mxu0 %v17175_v61  ;;  %8577 = vmatprep.subr.mxu1 %v17138_v3  ;;  %v17180_v3 = vand.u32 4294901760, %v11264_v48  ;;  %v17184_v48 = vand.u32 4294901760, %v11268_v6  ;;  %v16507_v0 = vand.u32 4294901760, %v11563_v43  ;;  %v16510_v23 = vand.u32 4294901760, %v11566_v26  ;;  %v17192_v61 = vld [vmem:[#allocation19_spill] sm:$0xff] }
  0xd6   :  { %8550 = vmatprep.subr.mxu0 %v17177_v17  ;;  %8578 = vmatpush3.msra.mxu1 %v17139_v20  ;;  %v11579_v20 = vand.u32 4294901760, %v109_v13  ;;  %v11603_v6 = vsub.f32 %v11515_v40, %v16506_v5  ;;  %v17193_v17 = vld [vmem:[#allocation29_spill] sm:$0xff]  ;;  %v11742_v30 = vand.u32 4294901760, %v106_v29 }
  0xd7   :  { %8551 = vmatpush3.msra.mxu0 %v17179_v44  ;;  %8579 = vmatprep.subr.mxu1 %v17181_v22  ;;  %v11640_v22 = vsub.f32 %v110_v10, %v11577_v31  ;;  %v91_v10 = vld [vmem:[%s16357_s1 + $0x238] sm:$0xff]  ;;  %v11680_v62 = vsub.f32 %v11563_v43, %v16507_v0  ;;  %v90_v5 = vld [vmem:[%s16357_s1 + $0x230] sm:$0xff] }
  0xd8   :  { %8552 = vmatprep.subr.mxu0 %v17180_v3  ;;  %17183 = vst [vmem:[#allocation7_spill] sm:$0xff] %v11579_v20  ;;  %8580 = vmatpush3.msra.mxu1 %v17185_v59  ;;  %v11637_v3 = vsub.f32 %v11534_v46, %v16503_v33  ;;  %v11675_v33 = vsub.f32 %v93_v51, %v11624_v39  ;;  %v11696_v0 = vand.u32 4294901760, %v91_v10  ;;  %17204 = vst [vmem:[#allocation28_spill] sm:$0xff] %v11742_v30 }
  0xd9   :  { %8553 = vmatpush3.msra.mxu0 %v17184_v48  ;;  %8581 = vmatprep.subr.mxu1 %v11092_v52  ;;  %v17190_v52 = vld [vmem:[#allocation24_spill] sm:$0xff]  ;;  %v11643_v48 = vsub.f32 %v109_v13, %v11579_v20  ;;  %v11712_v51 = vsub.f32 %v11595_v55, %v16511_v28 }
  0xda   :  { %8554 = vmatprep.subr.mxu0 %v17187_v42  ;;  %2022 = vmatprep.mubr.f32.mxu0 %v17190_v52  ;;  %v11653_v42 = vand.u32 4294901760, %v92_v9  ;;  %17197 = vst [vmem:[#allocation20_spill] sm:$0xff] %v11675_v33  ;;  %17198 = vst [vmem:[#allocation22_spill] sm:$0xff] %v11696_v0  ;;  %v89_v13 = vld [vmem:[%s16357_s1 + $0x228] sm:$0xff] }
  0xdb   :  { %8555 = vmatpush3.msra.mxu0 %v17189_v50  ;;  %8582 = vmatpush3.msra.mxu1 %v17192_v61  ;;  %v11663_v50 = vand.u32 4294901760, %v108_v34  ;;  %v16512_v61 = vand.u32 4294901760, %v11606_v27 }
  0xdc   :  { %2024 = vmatmul.mubr.f32.vlgmr.msra.gmra.mxu0 %v17193_v17  ;;  %8583 = vmatprep.subr.mxu1 %v11162_v11  ;;  %17194 = vst [vmem:[#allocation27_spill] sm:$0xff] %v11653_v42  ;;  %v17200_v11 = vld [vmem:[#allocation26_spill] sm:$0xff] }
  0xdd   :  { %8594 = vmatprep.subr.mxu0 %v11455_v41  ;;  %8584 = vmatpush3.msra.mxu1 %v11141_v4  ;;  %17195 = vst [vmem:[#allocation18_spill] sm:$0xff] %v11663_v50  ;;  %v11707_v4 = vsub.f32 %v92_v9, %v11653_v42  ;;  %v11719_v59 = vrot.slane %v11669_v38, %v17200_v11  ;;  %v11725_v9 = vand.u32 4294901760, %v90_v5  ;;  %v11760_v38 = vand.u32 4294901760, %v89_v13 }
  0xde   :  { %8595 = vmatpush3.msra.mxu0 %v11463_v19  ;;  %8585 = vmatprep.subr.mxu1 %v17143_v32  ;;  %v11688_v32 = vsub.f32 %v11566_v26, %v16510_v23  ;;  %v11730_v28 = vsub.f32 %v11606_v27, %v16512_v61  ;;  %v11736_v44 = vsub.f32 %v108_v34, %v11663_v50  ;;  %v17205_v34 = vand.u32 4294901760, %v11640_v22 }
  0xdf   :  { %8596 = vmatprep.subr.mxu0 %v11471_v56  ;;  %8586 = vmatpush3.msra.mxu1 %v11188_v58  ;;  %17199 = vst [vmem:[#allocation10_spill] sm:$0xff] %v11707_v4  ;;  %17202 = vst [vmem:[#allocation11_spill] sm:$0xff] %v11725_v9  ;;  %v105_v58 = vld [vmem:[%s16357_s1 + $0x2a8] sm:$0xff]  ;;  %v11748_v11 = vsub.f32 %v91_v10, %v11696_v0  ;;  %v2390_v10 = vand.u32 4294901760, %v11712_v51  ;;  %v347_v61 = vcombine.high %v11719_v59, %v11719_v59 }
  0xe0   :  { %8597 = vmatpush3.msra.mxu0 %v11473_v2  ;;  %8587 = vmatprep.subr.mxu1 %v11212_v63  ;;  %v11723_v63 = vand.u32 4294901760, %v107_v21  ;;  %17203 = vst [vmem:[#allocation14_spill] sm:$0xff] %v11736_v44  ;;  %17207 = vst [vmem:[#allocation30_spill] sm:$0xff] %v11760_v38 }
  0xe1   :  { %8598 = vmatprep.subr.mxu0 %v11481_v12  ;;  %8588 = vmatpush3.msra.mxu1 %v11240_v15  ;;  %v17206_v15 = vand.u32 4294901760, %v11643_v48  ;;  %v11850_v12 = vand.u32 4294901760, %v11719_v59 }
  0xe2   :  { %8599 = vmatpush3.msra.mxu0 %v11486_v60  ;;  %17201 = vst [vmem:[#allocation25_spill] sm:$0xff] %v11723_v63  ;;  %8589 = vmatprep.subr.mxu1 %v11247_v47  ;;  %v11753_v47 = vsub.f32 %v11640_v22, %v17205_v34  ;;  %v11771_v34 = vand.u32 4294901760, %v105_v58  ;;  %v11780_v60 = vsub.f32 %v90_v5, %v11725_v9 }
  0xe3   :  { %8600 = vmatprep.subr.mxu0 %v11503_v36  ;;  %8590 = vmatpush3.msra.mxu1 %v11254_v1  ;;  %v11758_v23 = vsub.f32 %v11643_v48, %v17206_v15  ;;  %v104_v1 = vld [vmem:[%s16357_s1 + $0x2a0] sm:$0xff]  ;;  %v17209_v36 = vand.u32 4294901760, %v11575_v54  ;;  %v11785_v51 = vsub.f32 %v107_v21, %v11723_v63  ;;  %v87_v15 = vld [vmem:[%s16357_s1 + $0x218] sm:$0xff]  ;;  %v11803_v21 = vsub.f32 %v106_v29, %v11742_v30 }
  0xe4   :  { %2126 = vmatprep.mubr.f32.mxu1 %v17190_v52  ;;  %v88_v52 = vld [vmem:[%s16357_s1 + $0x220] sm:$0xff]  ;;  %8601 = vmatpush3.msra.mxu0 %v11520_v57  ;;  %17208 = vst [vmem:[#allocation23_spill] sm:$0xff] %v11771_v34  ;;  %v11798_v54 = vand.u32 4294901760, %v104_v1  ;;  %v103_v29 = vld [vmem:[%s16357_s1 + $0x298] sm:$0xff]  ;;  %17220 = vst [vmem:[#allocation32_spill] sm:$0xff] %v11850_v12 }
  0xe5   :  { %2128 = vmatmul.mubr.f32.vlgmr.msra.gmra.mxu1 %v17193_v17  ;;  %8602 = vmatprep.subr.mxu0 %v11540_v24  ;;  %v17210_v24 = vand.u32 4294901760, %v11591_v16  ;;  %v11800_v57 = vand.u32 4294901760, %v88_v52  ;;  %17213 = vst [vmem:[#allocation17_spill] sm:$0xff] %v11803_v21  ;;  %v86_v17 = vld [vmem:[%s16357_s1 + $0x210] sm:$0xff]  ;;  %v2397_v16 = vand.u32 4294901760, %v11753_v47 }
  0xe6   :  { %8629 = vmatprep.subr.mxu1 %v17209_v36  ;;  %8603 = vmatpush3.msra.mxu0 %v11522_v53  ;;  %v17211_v36 = vand.u32 4294901760, %v11675_v33  ;;  %v11814_v53 = vsub.f32 %v89_v13, %v11760_v38  ;;  %v102_v13 = vld [vmem:[%s16357_s1 + $0x290] sm:$0xff] }
  0xe7   :  { %8630 = vmatpush3.msra.mxu1 %v17210_v24  ;;  %17212 = vst [vmem:[#allocation21_spill] sm:$0xff] %v11800_v57  ;;  %8604 = vmatprep.subr.mxu0 %v11577_v31  ;;  %v17214_v24 = vand.u32 4294901760, %v11603_v6  ;;  %v17215_v31 = vand.u32 4294901760, %v11611_v18  ;;  %v17216_v6 = vand.u32 4294901760, %v11707_v4  ;;  %v17219_v18 = vand.u32 4294901760, %v11736_v44 }
  0xe8   :  { %v11796_v5 = vsub.f32 %v11675_v33, %v17211_v36  ;;  %8605 = vmatpush3.msra.mxu0 %v11556_v8  ;;  %v11834_v36 = vsub.f32 %v105_v58, %v11771_v34  ;;  %v11836_v33 = vand.u32 4294901760, %v347_v61  ;;  %v17221_v58 = vand.u32 4294901760, %v11637_v3 }
  0xe9   :  { %8631 = vmatprep.subr.mxu1 %v17214_v24  ;;  %v11826_v47 = vsub.f32 %v11707_v4, %v17216_v6  ;;  %v11828_v24 = vand.u32 4294901760, %v87_v15  ;;  %8606 = vmatprep.subr.mxu0 %v11579_v20  ;;  %v11844_v6 = vsub.f32 %v11736_v44, %v17219_v18  ;;  %v11847_v4 = vand.u32 4294901760, %v86_v17 }
  0xea   :  { %8632 = vmatpush3.msra.mxu1 %v17215_v31  ;;  %17217 = vst [vmem:[#allocation31_spill] sm:$0xff] %v11836_v33  ;;  %v17218_v31 = vand.u32 4294901760, %v11622_v14  ;;  %8607 = vmatpush3.msra.mxu0 %v11624_v39  ;;  %v2292_v14 = vand.u32 4294901760, %v11796_v5  ;;  %v11859_v20 = vand.u32 4294901760, %v103_v29  ;;  %v17223_v8 = vand.u32 4294901760, %v11651_v7  ;;  %v85_v5 = vld [vmem:[%s16357_s1 + $0x208] sm:$0xff] }
  0xeb   :  { %8608 = vmatprep.subr.mxu0 %v11663_v50  ;;  %v17224_v44 = vand.u32 4294901760, %v11748_v11  ;;  %v11870_v3 = vand.u32 4294901760, %v102_v13  ;;  %v2299_v7 = vand.u32 4294901760, %v11826_v47  ;;  %v11891_v50 = vsub.f32 %v347_v61, %v11836_v33  ;;  %2470 = vmatprep.mubr.f32.mxu1 %v11836_v33  ;;  %v17264_v33 = vld [vmem:[#allocation11_spill] sm:$0xff] }
  0xec   :  { %8633 = vmatprep.subr.mxu1 %v17218_v31  ;;  %v11857_v31 = vsub.f32 %v88_v52, %v11800_v57  ;;  %v101_v52 = vld [vmem:[%s16357_s1 + $0x288] sm:$0xff]  ;;  %8609 = vmatpush3.msra.mxu0 %v11653_v42  ;;  %v11906_v61 = vsub.f32 %v11719_v59, %v11850_v12  ;;  %v11921_v59 = vsub.f32 %v103_v29, %v11859_v20  ;;  %v17231_v42 = vand.u32 4294901760, %v11730_v28 }
  0xed   :  { %8634 = vmatpush3.msra.mxu1 %v17221_v58  ;;  %v11868_v39 = vsub.f32 %v11748_v11, %v17224_v44  ;;  %17225 = vst [vmem:[#allocation19_spill] sm:$0xff] %v11870_v3  ;;  %v11877_v58 = vsub.f32 %v104_v1, %v11798_v54  ;;  %v11884_v44 = vsub.f32 %v87_v15, %v11828_v24  ;;  %v17227_v1 = vand.u32 4294901760, %v11785_v51 }
  0xee   :  { %17222 = vst [vmem:[#allocation24_spill] sm:$0xff] %v11857_v31  ;;  %8635 = vmatprep.subr.mxu1 %v17223_v8  ;;  %v17226_v8 = vand.u32 4294901760, %v11680_v62  ;;  %8610 = vmatprep.subr.mxu0 %v11723_v63  ;;  %v2411_v62 = vand.u32 4294901760, %v11844_v6  ;;  %v11899_v15 = vsub.f32 %v86_v17, %v11847_v4  ;;  %v17229_v6 = vand.u32 4294901760, %v11803_v21  ;;  %v84_v63 = vld [vmem:[%s16357_s1 + $0x200] sm:$0xff] }
  0xef   :  { %v2417_v47 = vsub.f32 %v11785_v51, %v17227_v1  ;;  %8611 = vmatpush3.msra.mxu0 %v11696_v0  ;;  %v11914_v18 = vand.u32 4294901760, %v101_v52  ;;  %v11928_v0 = vand.u32 4294901760, %v85_v5  ;;  %v17232_v29 = vand.u32 4294901760, %v11834_v36 }
  0xf0   :  { %8636 = vmatpush3.msra.mxu1 %v17226_v8  ;;  %v100_v8 = vld [vmem:[%s16357_s1 + $0x280] sm:$0xff]  ;;  %v2424_v1 = vsub.f32 %v11803_v21, %v17229_v6  ;;  %8612 = vmatprep.subr.mxu0 %v11742_v30  ;;  %v11941_v21 = vsub.f32 %v102_v13, %v11870_v3  ;;  %v17235_v28 = vand.u32 4294901760, %v11877_v58 }
  0xf1   :  { %8637 = vmatprep.subr.mxu1 %v2390_v10  ;;  %v17228_v10 = vand.u32 4294901760, %v11688_v32  ;;  %v2306_v32 = vand.u32 4294901760, %v11868_v39  ;;  %8613 = vmatpush3.msra.mxu0 %v11725_v9  ;;  %v2431_v30 = vsub.f32 %v11834_v36, %v17232_v29  ;;  %v2418_v17 = vand.u32 4294901760, %v2417_v47 }
  0xf2   :  { %8614 = vmatprep.subr.mxu0 %v11771_v34  ;;  %v11946_v9 = vand.u32 4294901760, %v84_v63  ;;  %v2425_v29 = vand.u32 4294901760, %v2424_v1  ;;  %v17234_v39 = vand.u32 4294901760, %v11814_v53  ;;  %v16559_v1 = vand.u32 4294901760, %v11884_v44 }
  0xf3   :  { %8638 = vmatpush3.msra.mxu1 %v17228_v10  ;;  %v17230_v10 = vand.u32 4294901760, %v11780_v60  ;;  %8615 = vmatpush3.msra.mxu0 %v11760_v38 }
  0xf4   :  { %8639 = vmatprep.subr.mxu1 %v2397_v16  ;;  %v11937_v16 = vand.u32 4294901760, %v100_v8  ;;  %v2319_v13 = vsub.f32 %v11814_v53, %v17234_v39  ;;  %8616 = vmatprep.subr.mxu0 %v11798_v54  ;;  %v2432_v39 = vand.u32 4294901760, %v2431_v30  ;;  %v17239_v30 = vand.u32 4294901760, %v11906_v61 }
  0xf5   :  { %v2312_v6 = vsub.f32 %v11780_v60, %v17230_v10  ;;  %8640 = vmatpush3.msra.mxu1 %v17231_v42  ;;  %v17233_v10 = vand.u32 4294901760, %v11758_v23  ;;  %v16556_v42 = vand.u32 4294901760, %v11857_v31  ;;  %v11956_v23 = vsub.f32 %v101_v52, %v11914_v18  ;;  %8617 = vmatpush3.msra.mxu0 %v11800_v57 }
  0xf6   :  { %v17236_v52 = vand.u32 4294901760, %v11891_v50  ;;  %8618 = vmatprep.subr.mxu0 %v11859_v20 }
  0xf7   :  { %8641 = vmatprep.subr.mxu1 %v17233_v10  ;;  %v2313_v47 = vand.u32 4294901760, %v2312_v6  ;;  %v11960_v10 = vsub.f32 %v85_v5, %v11928_v0  ;;  %v11972_v6 = vsub.f32 %v100_v8, %v11937_v16  ;;  %v11976_v5 = vsub.f32 %v84_v63, %v11946_v9  ;;  %8619 = vmatpush3.msra.mxu0 %v11828_v24 }
  0xf8   :  { %8642 = vmatpush3.msra.mxu1 %v2292_v14  ;;  %v2438_v14 = vsub.f32 %v11877_v58, %v17235_v28  ;;  %v2232_v34 = vsub.f32 %v11891_v50, %v17236_v52  ;;  %v2238_v28 = vsub.f32 %v11906_v61, %v17239_v30  ;;  %v2320_v8 = vand.u32 4294901760, %v2319_v13  ;;  %8620 = vmatprep.subr.mxu0 %v11870_v3 }
  0xf9   :  { %8643 = vmatprep.subr.mxu1 %v2411_v62  ;;  %17237 = vst [vmem:[#allocation29_spill] sm:$0xff] %v11972_v6  ;;  %17238 = vst [vmem:[#allocation33_spill] sm:$0xff] %v11976_v5  ;;  %v17240_v62 = vand.u32 4294901760, %v11921_v59  ;;  %v2333_v30 = vsub.f32 %v11884_v44, %v16559_v1  ;;  %8621 = vmatpush3.msra.mxu0 %v11847_v4  ;;  %v17241_v13 = vand.u32 4294901760, %v11941_v21  ;;  %v16561_v63 = vand.u32 4294901760, %v11972_v6 }
  0xfa   :  { %8644 = vmatpush3.msra.mxu1 %v2299_v7  ;;  %v2326_v7 = vsub.f32 %v11857_v31, %v16556_v42  ;;  %v2439_v42 = vand.u32 4294901760, %v2438_v14  ;;  %8622 = vmatprep.subr.mxu0 %v11914_v18  ;;  %v2239_v14 = vand.u32 4294901760, %v2238_v28  ;;  %v17242_v3 = vand.u32 4294901760, %v11899_v15 }
  0xfb   :  { %8645 = vmatprep.subr.mxu1 %v2418_v17  ;;  %v2445_v17 = vsub.f32 %v11921_v59, %v17240_v62  ;;  %v2452_v62 = vsub.f32 %v11941_v21, %v17241_v13  ;;  %v16560_v52 = vand.u32 4294901760, %v11976_v5  ;;  %8623 = vmatpush3.msra.mxu0 %v11928_v0 }
  0xfc   :  { %8646 = vmatpush3.msra.mxu1 %v2306_v32  ;;  %v2233_v32 = vand.u32 4294901760, %v2232_v34  ;;  %v2340_v1 = vsub.f32 %v11899_v15, %v17242_v3  ;;  %8624 = vmatprep.subr.mxu0 %v11937_v16 }
  0xfd   :  { %8647 = vmatprep.subr.mxu1 %v2425_v29  ;;  %v2327_v29 = vand.u32 4294901760, %v2326_v7  ;;  %v2446_v34 = vand.u32 4294901760, %v2445_v17  ;;  %v17244_v7 = vand.u32 4294901760, %v11960_v10  ;;  %8625 = vmatpush3.msra.mxu0 %v11946_v9  ;;  %v2453_v3 = vand.u32 4294901760, %v2452_v62 }
  0xfe   :  { %8648 = vmatpush3.msra.mxu1 %v2313_v47  ;;  %v17243_v47 = vand.u32 4294901760, %v11956_v23  ;;  %2234 = vmatprep.mubr.f32.mxu0 %v2233_v32  ;;  %v2341_v17 = vand.u32 4294901760, %v2340_v1 }
  0xff   :  { %8649 = vmatprep.subr.mxu1 %v2432_v39  ;;  %v2334_v39 = vand.u32 4294901760, %v2333_v30  ;;  %v2347_v28 = vsub.f32 %v11960_v10, %v17244_v7  ;;  %2240 = vmatmul.mubr.f32.vlgmr.msra.gmra.mxu0 %v2239_v14  ;;  %v17246_v14 = vld [vmem:[#allocation20_spill] sm:$0xff]  ;;  %v17251_v7 = vld [vmem:[#allocation15_spill] sm:$0xff] }
 0x100   :  { %8650 = vmatpush3.msra.mxu1 %v2320_v8  ;;  %v2459_v13 = vsub.f32 %v11956_v23, %v17243_v47  ;;  %v2466_v8 = vsub.f32 %v11972_v6, %v16561_v63  ;;  %8664 = vmatprep.subr.mxu0 %v11492_v49  ;;  %v17248_v47 = vld [vmem:[#allocation14_spill] sm:$0xff] }
 0x101   :  { %8651 = vmatprep.subr.mxu1 %v2439_v42  ;;  %v2354_v42 = vsub.f32 %v11976_v5, %v16560_v52  ;;  %8665 = vmatpush3.msra.mxu0 %v11501_v37  ;;  %v2348_v32 = vand.u32 4294901760, %v2347_v28  ;;  %v17252_v28 = vld [vmem:[#allocation12_spill] sm:$0xff]  ;;  %v17261_v52 = vld [vmem:[#allocation25_spill] sm:$0xff]  ;;  %v17262_v63 = vld [vmem:[#allocation22_spill] sm:$0xff] }
 0x102   :  { %8652 = vmatpush3.msra.mxu1 %v2327_v29  ;;  %v2460_v30 = vand.u32 4294901760, %v2459_v13  ;;  %8666 = vmatprep.subr.mxu0 %v11515_v40  ;;  %v2467_v62 = vand.u32 4294901760, %v2466_v8  ;;  %v17245_v29 = vld [vmem:[#allocation4_spill] sm:$0xff]  ;;  %v17249_v13 = vld [vmem:[#allocation13_spill] sm:$0xff] }
 0x103   :  { %8653 = vmatprep.subr.mxu1 %v2446_v34  ;;  %8667 = vmatpush3.msra.mxu0 %v11509_v45  ;;  %v2355_v1 = vand.u32 4294901760, %v2354_v42  ;;  %v17247_v34 = vld [vmem:[#allocation3_spill] sm:$0xff]  ;;  %v17254_v8 = vld [vmem:[#allocation17_spill] sm:$0xff]  ;;  %v17256_v42 = vld [vmem:[#allocation6_spill] sm:$0xff] }
 0x104   :  { %8654 = vmatpush3.msra.mxu1 %v2334_v39  ;;  %8668 = vmatprep.subr.mxu0 %v11528_v25  ;;  %v17250_v39 = vld [vmem:[#allocation10_spill] sm:$0xff] }
 0x105   :  { %8655 = vmatprep.subr.mxu1 %v2453_v3  ;;  %8669 = vmatpush3.msra.mxu0 %v11534_v46  ;;  %v17253_v3 = vld [vmem:[#allocation5_spill] sm:$0xff] }
 0x106   :  { %8656 = vmatpush3.msra.mxu1 %v2341_v17  ;;  %8670 = vmatprep.subr.mxu0 %v11550_v35  ;;  %v17255_v17 = vld [vmem:[#allocation16_spill] sm:$0xff] }
 0x107   :  { %8657 = vmatprep.subr.mxu1 %v2460_v30  ;;  %8671 = vmatpush3.msra.mxu0 %v11563_v43  ;;  %v17257_v30 = vld [vmem:[#allocation7_spill] sm:$0xff] }
 0x108   :  { %8658 = vmatpush3.msra.mxu1 %v2348_v32  ;;  %8672 = vmatprep.subr.mxu0 %v11595_v55  ;;  %v17258_v32 = vld [vmem:[#allocation8_spill] sm:$0xff] }
 0x109   :  { %8659 = vmatprep.subr.mxu1 %v2467_v62  ;;  %8673 = vmatpush3.msra.mxu0 %v11566_v26  ;;  %v17259_v62 = vld [vmem:[#allocation18_spill] sm:$0xff] }
 0x10a   :  { %8660 = vmatpush3.msra.mxu1 %v2355_v1  ;;  %8674 = vmatprep.subr.mxu0 %v11640_v22  ;;  %v17260_v1 = vld [vmem:[#allocation27_spill] sm:$0xff] }
 0x10b   :  { %2472 = vmatmul.mubr.f32.vlgmr.msra.gmra.mxu1 %v11850_v12  ;;  %8699 = vmatprep.subr.mxu1 %v11455_v41  ;;  %v17263_v12 = vld [vmem:[#allocation28_spill] sm:$0xff] }
 0x10c   :  { %8700 = vmatpush3.msra.mxu1 %v11463_v19  ;;  %8675 = vmatpush3.msra.mxu0 %v11606_v27 }
 0x10d   :  { %8701 = vmatprep.subr.mxu1 %v11471_v56  ;;  %8676 = vmatprep.subr.mxu0 %v11643_v48 }
 0x10e   :  { %8702 = vmatpush3.msra.mxu1 %v11473_v2  ;;  %8677 = vmatpush3.msra.mxu0 %v17246_v14 }
 0x10f   :  { %8703 = vmatprep.subr.mxu1 %v17245_v29  ;;  %8678 = vmatprep.subr.mxu0 %v17248_v47 }
 0x110   :  { %8704 = vmatpush3.msra.mxu1 %v17247_v34  ;;  %8679 = vmatpush3.msra.mxu0 %v17250_v39 }
 0x111   :  { %8705 = vmatprep.subr.mxu1 %v17249_v13  ;;  %8680 = vmatprep.subr.mxu0 %v11785_v51 }
 0x112   :  { %8706 = vmatpush3.msra.mxu1 %v17251_v7  ;;  %8681 = vmatpush3.msra.mxu0 %v11748_v11 }
 0x113   :  { %8707 = vmatprep.subr.mxu1 %v17252_v28  ;;  %8682 = vmatprep.subr.mxu0 %v17254_v8 }
 0x114   :  { %8708 = vmatpush3.msra.mxu1 %v17253_v3  ;;  %8683 = vmatpush3.msra.mxu0 %v11780_v60 }
 0x115   :  { %8709 = vmatprep.subr.mxu1 %v17255_v17  ;;  %8684 = vmatprep.subr.mxu0 %v11834_v36 }
 0x116   :  { %8710 = vmatpush3.msra.mxu1 %v17256_v42  ;;  %8685 = vmatpush3.msra.mxu0 %v11814_v53 }
 0x117   :  { %8711 = vmatprep.subr.mxu1 %v17257_v30  ;;  %8686 = vmatprep.subr.mxu0 %v11877_v58 }
 0x118   :  { %8712 = vmatpush3.msra.mxu1 %v17258_v32  ;;  %8687 = vmatpush3.msra.mxu0 %v11857_v31  ;;  %v17265_v31 = vld [vmem:[#allocation23_spill] sm:$0xff] }
 0x119   :  { %8713 = vmatprep.subr.mxu1 %v17259_v62  ;;  %8688 = vmatprep.subr.mxu0 %v11921_v59 }
 0x11a   :  { %8714 = vmatpush3.msra.mxu1 %v17260_v1  ;;  %8689 = vmatpush3.msra.mxu0 %v11884_v44 }
 0x11b   :  { %8715 = vmatprep.subr.mxu1 %v17261_v52  ;;  %8690 = vmatprep.subr.mxu0 %v11941_v21 }
 0x11c   :  { %8716 = vmatpush3.msra.mxu1 %v17262_v63  ;;  %8691 = vmatpush3.msra.mxu0 %v11899_v15 }
 0x11d   :  { %8717 = vmatprep.subr.mxu1 %v17263_v12  ;;  %8692 = vmatprep.subr.mxu0 %v11956_v23 }
 0x11e   :  { %8718 = vmatpush3.msra.mxu1 %v17264_v33  ;;  %8693 = vmatpush3.msra.mxu0 %v11960_v10 }
 0x11f   :  { %8719 = vmatprep.subr.mxu1 %v17265_v31  ;;  %8694 = vmatprep.subr.mxu0 %v11972_v6  ;;  %v17266_v31 = vand.u32 4294901760, %v11492_v49  ;;  %v17268_v6 = vld [vmem:[#allocation19_spill] sm:$0xff]  ;;  %v17271_v49 = vand.u32 4294901760, %v11528_v25  ;;  %v17276_v25 = vand.u32 4294901760, %v11906_v61 }
 0x120   :  { %8720 = vmatpush3.msra.mxu1 %v11760_v38  ;;  %8695 = vmatpush3.msra.mxu0 %v11976_v5  ;;  %v17267_v38 = vand.u32 4294901760, %v11501_v37  ;;  %v17269_v5 = vand.u32 4294901760, %v11515_v40  ;;  %v17272_v37 = vand.u32 4294901760, %v11534_v46  ;;  %v17273_v40 = vand.u32 4294901760, %v11550_v35 }
 0x121   :  { %8721 = vmatprep.subr.mxu1 %v11798_v54  ;;  %2607 = vmatprep.mubr.f32.mxu0 %v11891_v50  ;;  %v17278_v46 = vand.u32 4294901760, %v11566_v26  ;;  %v17279_v35 = vand.u32 4294901760, %v11640_v22  ;;  %v131_v26 = vld [vmem:[%s16357_s1 + $0x378] sm:$0xff]  ;;  %v130_v22 = vld [vmem:[%s16357_s1 + $0x370] sm:$0xff] }
 0x122   :  { %8722 = vmatpush3.msra.mxu1 %v11800_v57  ;;  %2610 = vmatmul.mubr.f32.vlgmr.msra.gmra.mxu0 %v11906_v61  ;;  %v17270_v57 = vand.u32 4294901760, %v11509_v45  ;;  %v17274_v45 = vand.u32 4294901760, %v11891_v50  ;;  %v17280_v50 = vand.u32 4294901760, %v11606_v27  ;;  %v17284_v27 = vand.u32 4294901760, %v17250_v39  ;;  %v145_v61 = vld [vmem:[%s16357_s1 + $0x3e8] sm:$0xff]  ;;  %v144_v39 = vld [vmem:[%s16357_s1 + $0x3e0] sm:$0xff] }
 0x123   :  { %8723 = vmatprep.subr.mxu1 %v11859_v20  ;;  %8734 = vmatprep.subr.mxu0 %v17266_v31  ;;  %v12149_v31 = vand.u32 4294901760, %v131_v26 }
 0x124   :  { %8724 = vmatpush3.msra.mxu1 %v11828_v24  ;;  %8735 = vmatpush3.msra.mxu0 %v17267_v38  ;;  %v17277_v38 = vand.u32 4294901760, %v11595_v55  ;;  %v17283_v55 = vand.u32 4294901760, %v17248_v47  ;;  %v12168_v47 = vand.u32 4294901760, %v130_v22 }
 0x125   :  { %8725 = vmatprep.subr.mxu1 %v17268_v6  ;;  %8736 = vmatprep.subr.mxu0 %v17269_v5  ;;  %v17286_v5 = vand.u32 4294901760, %v11748_v11  ;;  %v17288_v11 = vand.u32 4294901760, %v11780_v60  ;;  %v128_v60 = vld [vmem:[%s16357_s1 + $0x360] sm:$0xff] }
 0x126   :  { %8726 = vmatpush3.msra.mxu1 %v11847_v4  ;;  %8737 = vmatpush3.msra.mxu0 %v17270_v57  ;;  %v17275_v57 = vand.u32 4294901760, %v11563_v43  ;;  %v147_v43 = vld [vmem:[%s16357_s1 + $0x3f8] sm:$0xff] }
 0x127   :  { %8727 = vmatprep.subr.mxu1 %v11914_v18  ;;  %8738 = vmatprep.subr.mxu0 %v17271_v49  ;;  %v12203_v49 = vsub.f32 %v130_v22, %v12168_v47 }
 0x128   :  { %8728 = vmatpush3.msra.mxu1 %v11928_v0  ;;  %8739 = vmatpush3.msra.mxu0 %v17272_v37 }
 0x129   :  { %8729 = vmatprep.subr.mxu1 %v11937_v16  ;;  %8740 = vmatprep.subr.mxu0 %v17273_v40  ;;  %v12210_v40 = vand.u32 4294901760, %v128_v60 }
 0x12a   :  { %8730 = vmatpush3.msra.mxu1 %v11946_v9  ;;  %2714 = vmatprep.mubr.f32.mxu1 %v17274_v45  ;;  %v127_v45 = vld [vmem:[%s16357_s1 + $0x358] sm:$0xff] }
 0x12b   :  { %8741 = vmatpush3.msra.mxu0 %v17275_v57  ;;  %2718 = vmatmul.mubr.f32.vlgmr.msra.gmra.mxu1 %v17276_v25  ;;  %17297 = vst [vmem:[#allocation14_spill] sm:$0xff] %v12210_v40  ;;  %v17298_v57 = vand.u32 4294901760, %v11921_v59 }
 0x12c   :  { %8742 = vmatprep.subr.mxu0 %v17277_v38  ;;  %8769 = vmatprep.subr.mxu1 %v11455_v41  ;;  %v17281_v41 = vand.u32 4294901760, %v11643_v48  ;;  %v17285_v48 = vand.u32 4294901760, %v11785_v51  ;;  %v129_v51 = vld [vmem:[%s16357_s1 + $0x368] sm:$0xff] }
 0x12d   :  { %8743 = vmatpush3.msra.mxu0 %v17278_v46  ;;  %8770 = vmatpush3.msra.mxu1 %v11463_v19  ;;  %v17282_v19 = vand.u32 4294901760, %v17246_v14  ;;  %v142_v46 = vld [vmem:[%s16357_s1 + $0x3d0] sm:$0xff] }
 0x12e   :  { %8744 = vmatprep.subr.mxu0 %v17279_v35  ;;  %8771 = vmatprep.subr.mxu1 %v11471_v56  ;;  %v12129_v56 = vand.u32 4294901760, %v147_v43  ;;  %v17300_v35 = vand.u32 4294901760, %v11884_v44  ;;  %v12248_v44 = vand.u32 4294901760, %v127_v45 }
 0x12f   :  { %8745 = vmatpush3.msra.mxu0 %v17280_v50  ;;  %8772 = vmatpush3.msra.mxu1 %v11473_v2  ;;  %v146_v2 = vld [vmem:[%s16357_s1 + $0x3f0] sm:$0xff]  ;;  %v17301_v50 = vand.u32 4294901760, %v11941_v21  ;;  %v12262_v21 = vand.u32 4294901760, %v142_v46 }
 0x130   :  { %8746 = vmatprep.subr.mxu0 %v17281_v41  ;;  %8773 = vmatprep.subr.mxu1 %v17245_v29  ;;  %v12157_v29 = vand.u32 4294901760, %v146_v2  ;;  %v12163_v14 = vsub.f32 %v147_v43, %v12129_v56  ;;  %v141_v43 = vld [vmem:[%s16357_s1 + $0x3c8] sm:$0xff]  ;;  %17302 = vst [vmem:[#allocation10_spill] sm:$0xff] %v12248_v44 }
 0x131   :  { %8747 = vmatpush3.msra.mxu0 %v17282_v19  ;;  %8774 = vmatpush3.msra.mxu1 %v17247_v34  ;;  %v17287_v34 = vand.u32 4294901760, %v17254_v8  ;;  %v17292_v8 = vand.u32 4294901760, %v11814_v53  ;;  %v12205_v53 = vand.u32 4294901760, %v144_v39  ;;  %17305 = vst [vmem:[#allocation12_spill] sm:$0xff] %v12262_v21 }
 0x132   :  { %8748 = vmatprep.subr.mxu0 %v17283_v55  ;;  %8775 = vmatprep.subr.mxu1 %v17249_v13  ;;  %v12173_v13 = vand.u32 4294901760, %v145_v61  ;;  %v12260_v55 = vsub.f32 %v128_v60, %v12210_v40 }
 0x133   :  { %8749 = vmatpush3.msra.mxu0 %v17284_v27  ;;  %8776 = vmatpush3.msra.mxu1 %v17251_v7  ;;  %v17290_v7 = vand.u32 4294901760, %v11834_v36  ;;  %v143_v36 = vld [vmem:[%s16357_s1 + $0x3d8] sm:$0xff]  ;;  %17294 = vst [vmem:[#allocation3_spill] sm:$0xff] %v12205_v53  ;;  %v12254_v19 = vsub.f32 %v144_v39, %v12205_v53  ;;  %v17307_v27 = vld [vmem:[#allocation23_spill] sm:$0xff] }
 0x134   :  { %8750 = vmatprep.subr.mxu0 %v17285_v48  ;;  %8777 = vmatprep.subr.mxu1 %v17252_v28  ;;  %17289 = vst [vmem:[#allocation4_spill] sm:$0xff] %v12173_v13  ;;  %v12182_v28 = vsub.f32 %v131_v26, %v12149_v31  ;;  %v12227_v25 = vand.u32 4294901760, %v143_v36  ;;  %v17304_v26 = vand.u32 4294901760, %v11899_v15  ;;  %v12273_v15 = vand.u32 4294901760, %v141_v43 }
 0x135   :  { %8751 = vmatpush3.msra.mxu0 %v17286_v5  ;;  %8778 = vmatpush3.msra.mxu1 %v17253_v3  ;;  %v12184_v3 = vand.u32 4294901760, %v129_v51  ;;  %v17310_v5 = vld [vmem:[#allocation30_spill] sm:$0xff] }
 0x136   :  { %8752 = vmatprep.subr.mxu0 %v17287_v34  ;;  %8779 = vmatprep.subr.mxu1 %v17255_v17  ;;  %v16577_v17 = vand.u32 4294901760, %v12163_v14  ;;  %17299 = vst [vmem:[#allocation13_spill] sm:$0xff] %v12227_v25  ;;  %v16576_v38 = vand.u32 4294901760, %v12182_v28  ;;  %17308 = vst [vmem:[#allocation5_spill] sm:$0xff] %v12273_v15 }
 0x137   :  { %8753 = vmatpush3.msra.mxu0 %v17288_v11  ;;  %8780 = vmatpush3.msra.mxu1 %v17256_v42  ;;  %17291 = vst [vmem:[#allocation20_spill] sm:$0xff] %v12184_v3  ;;  %v12197_v42 = vsub.f32 %v146_v2, %v12157_v29  ;;  %v17306_v2 = vand.u32 4294901760, %v11956_v23  ;;  %v17309_v23 = vand.u32 4294901760, %v11960_v10  ;;  %v17311_v11 = vld [vmem:[#allocation29_spill] sm:$0xff] }
 0x138   :  { %8754 = vmatprep.subr.mxu0 %v17290_v7  ;;  %8781 = vmatprep.subr.mxu1 %v17257_v30  ;;  %v17293_v30 = vand.u32 4294901760, %v11877_v58  ;;  %v126_v58 = vld [vmem:[%s16357_s1 + $0x350] sm:$0xff]  ;;  %v12239_v59 = vsub.f32 %v12163_v14, %v16577_v17  ;;  %v12271_v22 = vsub.f32 %v12182_v28, %v16576_v38  ;;  %v17312_v39 = vand.u32 4294901760, %v17311_v11 }
 0x139   :  { %8755 = vmatpush3.msra.mxu0 %v17292_v8  ;;  %8782 = vmatpush3.msra.mxu1 %v17258_v32  ;;  %v17295_v32 = vld [vmem:[#allocation24_spill] sm:$0xff]  ;;  %v12250_v41 = vand.u32 4294901760, %v126_v58  ;;  %v12295_v7 = vsub.f32 %v127_v45, %v12248_v44  ;;  %v140_v8 = vld [vmem:[%s16357_s1 + $0x3c0] sm:$0xff]  ;;  %v122_v38 = vld [vmem:[%s16357_s1 + $0x330] sm:$0xff] }
 0x13a   :  { %8756 = vmatprep.subr.mxu0 %v17293_v30  ;;  %8783 = vmatprep.subr.mxu1 %v17259_v62  ;;  %v17296_v37 = vand.u32 4294901760, %v17295_v32  ;;  %v12219_v62 = vsub.f32 %v145_v61, %v12173_v13  ;;  %v12280_v61 = vsub.f32 %v143_v36, %v12227_v25  ;;  %v16574_v36 = vand.u32 4294901760, %v12254_v19  ;;  %v17313_v30 = vld [vmem:[#allocation33_spill] sm:$0xff] }
 0x13b   :  { %8784 = vmatpush3.msra.mxu1 %v17260_v1  ;;  %v12225_v1 = vsub.f32 %v129_v51, %v12184_v3  ;;  %17303 = vst [vmem:[#allocation15_spill] sm:$0xff] %v12250_v41  ;;  %v12298_v10 = vsub.f32 %v126_v58, %v12250_v41  ;;  %v17314_v32 = vand.u32 4294901760, %v17313_v30  ;;  %v12341_v11 = vand.u32 4294901760, %v140_v8  ;;  %v139_v30 = vld [vmem:[%s16357_s1 + $0x3b8] sm:$0xff] }
 0x13c   :  { %8757 = vmatpush3.msra.mxu0 %v17296_v37  ;;  %8785 = vmatprep.subr.mxu1 %v17261_v52  ;;  %v16575_v52 = vand.u32 4294901760, %v12197_v42  ;;  %v17315_v37 = vld [vmem:[#allocation31_spill] sm:$0xff]  ;;  %v12381_v17 = vand.u32 4294901760, %v139_v30  ;;  %v12416_v51 = vand.u32 4294901760, %v122_v38 }
 0x13d   :  { %8758 = vmatprep.subr.mxu0 %v17298_v57  ;;  %8786 = vmatpush3.msra.mxu1 %v17262_v63  ;;  %v16573_v63 = vand.u32 4294901760, %v12203_v49  ;;  %v16571_v48 = vand.u32 4294901760, %v12225_v1  ;;  %v16578_v57 = vand.u32 4294901760, %v12260_v55  ;;  %17319 = vst [vmem:[#allocation16_spill] sm:$0xff] %v12341_v11 }
 0x13e   :  { %8759 = vmatpush3.msra.mxu0 %v17300_v35  ;;  %8787 = vmatprep.subr.mxu1 %v17263_v12  ;;  %v16572_v12 = vand.u32 4294901760, %v12219_v62  ;;  %v12289_v34 = vsub.f32 %v12197_v42, %v16575_v52  ;;  %v12324_v35 = vsub.f32 %v142_v46, %v12262_v21  ;;  %17323 = vst [vmem:[#allocation8_spill] sm:$0xff] %v12381_v17  ;;  %v17327_v46 = vld [vmem:[#allocation26_spill] sm:$0xff]  ;;  %17328 = vst [vmem:[#allocation22_spill] sm:$0xff] %v12416_v51 }
 0x13f   :  { %8760 = vmatprep.subr.mxu0 %v17301_v50  ;;  %8788 = vmatpush3.msra.mxu1 %v17264_v33  ;;  %v125_v33 = vld [vmem:[%s16357_s1 + $0x348] sm:$0xff]  ;;  %v12303_v60 = vsub.f32 %v12203_v49, %v16573_v63  ;;  %v17317_v50 = vld [vmem:[#allocation21_spill] sm:$0xff]  ;;  %v16581_v63 = vand.u32 4294901760, %v12298_v10 }
 0x140   :  { %8761 = vmatpush3.msra.mxu0 %v17304_v26  ;;  %8789 = vmatprep.subr.mxu1 %v17307_v27  ;;  %v12318_v45 = vsub.f32 %v12219_v62, %v16572_v12  ;;  %v12320_v58 = vand.u32 4294901760, %v125_v33  ;;  %v17318_v26 = vld [vmem:[#allocation32_spill] sm:$0xff]  ;;  %v12332_v27 = vsub.f32 %v12225_v1, %v16571_v48  ;;  %v123_v48 = vld [vmem:[%s16357_s1 + $0x338] sm:$0xff]  ;;  %v16580_v12 = vand.u32 4294901760, %v12295_v7 }
 0x141   :  { %8762 = vmatprep.subr.mxu0 %v17306_v2  ;;  %8790 = vmatpush3.msra.mxu1 %v17310_v5  ;;  %v12336_v5 = vsub.f32 %v141_v43, %v12273_v15  ;;  %v12356_v43 = vsub.f32 %v12254_v19, %v16574_v36  ;;  %v12372_v36 = vsub.f32 %v12260_v55, %v16578_v57  ;;  %v16582_v52 = vand.u32 4294901760, %v12324_v35  ;;  %v138_v57 = vld [vmem:[%s16357_s1 + $0x3b0] sm:$0xff] }
 0x142   :  { %8763 = vmatpush3.msra.mxu0 %v17309_v23  ;;  %8791 = vmatprep.subr.mxu1 %v11798_v54  ;;  %v124_v54 = vld [vmem:[%s16357_s1 + $0x340] sm:$0xff]  ;;  %17316 = vst [vmem:[#allocation17_spill] sm:$0xff] %v12320_v58  ;;  %v16579_v23 = vand.u32 4294901760, %v12280_v61 }
 0x143   :  { %8764 = vmatprep.subr.mxu0 %v17312_v39  ;;  %2884 = vmatprep.mubr.f32.mxu0 %v17315_v37  ;;  %v12343_v39 = vand.u32 4294901760, %v124_v54 }
 0x144   :  { %8765 = vmatpush3.msra.mxu0 %v17314_v32  ;;  %8792 = vmatpush3.msra.mxu1 %v17317_v50  ;;  %v17321_v32 = vld [vmem:[#allocation9_spill] sm:$0xff] }
 0x145   :  { %2886 = vmatmul.mubr.f32.vlgmr.msra.gmra.mxu0 %v17318_v26  ;;  %8793 = vmatprep.subr.mxu1 %v11859_v20  ;;  %17320 = vst [vmem:[#allocation6_spill] sm:$0xff] %v12343_v39  ;;  %v332_v50 = vcombine.high %v17321_v32, %v17321_v32  ;;  %v12367_v32 = vsub.f32 %v125_v33, %v12320_v58 }
 0x146   :  { %8804 = vmatprep.subr.mxu0 %v12129_v56  ;;  %8794 = vmatpush3.msra.mxu1 %v11828_v24  ;;  %v12386_v33 = vsub.f32 %v12280_v61, %v16579_v23  ;;  %v16583_v24 = vand.u32 4294901760, %v12336_v5  ;;  %v121_v23 = vld [vmem:[%s16357_s1 + $0x328] sm:$0xff]  ;;  %v12403_v20 = vsub.f32 %v140_v8, %v12341_v11  ;;  %v12421_v8 = vsub.f32 %v12298_v10, %v16581_v63  ;;  %v120_v63 = vld [vmem:[%s16357_s1 + $0x320] sm:$0xff] }
 0x147   :  { %8805 = vmatpush3.msra.mxu0 %v12149_v31  ;;  %8795 = vmatprep.subr.mxu1 %v17268_v6  ;;  %17322 = vst [vmem:[#allocation7_spill] sm:$0xff] %v12367_v32  ;;  %v12397_v6 = vand.u32 4294901760, %v123_v48  ;;  %v12406_v2 = vrot.slane %v332_v50, %v17327_v46  ;;  %v12426_v50 = vand.u32 4294901760, %v138_v57  ;;  %v12445_v46 = vand.u32 4294901760, %v121_v23 }
 0x148   :  { %8806 = vmatprep.subr.mxu0 %v12157_v29  ;;  %8796 = vmatpush3.msra.mxu1 %v11847_v4  ;;  %v12395_v4 = vsub.f32 %v124_v54, %v12343_v39  ;;  %17326 = vst [vmem:[#allocation25_spill] sm:$0xff] %v12403_v20  ;;  %v12414_v54 = vsub.f32 %v12295_v7, %v16580_v12 }
 0x149   :  { %8807 = vmatpush3.msra.mxu0 %v12168_v47  ;;  %8797 = vmatprep.subr.mxu1 %v11914_v18  ;;  %17325 = vst [vmem:[#allocation27_spill] sm:$0xff] %v12397_v6  ;;  %17329 = vst [vmem:[#allocation28_spill] sm:$0xff] %v12426_v50  ;;  %v12431_v12 = vsub.f32 %v12324_v35, %v16582_v52  ;;  %v137_v18 = vld [vmem:[%s16357_s1 + $0x3a8] sm:$0xff]  ;;  %v136_v52 = vld [vmem:[%s16357_s1 + $0x3a0] sm:$0xff] }
 0x14a   :  { %8808 = vmatprep.subr.mxu0 %v12173_v13  ;;  %17324 = vst [vmem:[#allocation18_spill] sm:$0xff] %v12395_v4  ;;  %8798 = vmatpush3.msra.mxu1 %v11928_v0  ;;  %v12443_v0 = vsub.f32 %v12336_v5, %v16583_v24  ;;  %17330 = vst [vmem:[#allocation11_spill] sm:$0xff] %v12445_v46  ;;  %v17334_v24 = vand.u32 4294901760, %v12271_v22  ;;  %v17337_v22 = vand.u32 4294901760, %v12289_v34  ;;  %v17339_v34 = vand.u32 4294901760, %v12403_v20 }
 0x14b   :  { %8809 = vmatpush3.msra.mxu0 %v12184_v3  ;;  %8799 = vmatprep.subr.mxu1 %v11937_v16  ;;  %v17331_v3 = vand.u32 4294901760, %v12239_v59  ;;  %v119_v16 = vld [vmem:[%s16357_s1 + $0x318] sm:$0xff]  ;;  %v17335_v59 = vand.u32 4294901760, %v12367_v32 }
 0x14c   :  { %8810 = vmatprep.subr.mxu0 %v12205_v53  ;;  %8800 = vmatpush3.msra.mxu1 %v11946_v9  ;;  %v12454_v9 = vsub.f32 %v139_v30, %v12381_v17  ;;  %v348_v53 = vcombine.high %v12406_v2, %v12406_v2  ;;  %v3140_v30 = vand.u32 4294901760, %v12414_v54  ;;  %v12487_v54 = vand.u32 4294901760, %v136_v52 }
 0x14d   :  { %2988 = vmatprep.mubr.f32.mxu1 %v17315_v37  ;;  %8811 = vmatpush3.msra.mxu0 %v12210_v40  ;;  %v12459_v37 = vsub.f32 %v123_v48, %v12397_v6  ;;  %v12470_v40 = vsub.f32 %v122_v38, %v12416_v51  ;;  %v12485_v38 = vsub.f32 %v12367_v32, %v17335_v59  ;;  %v12489_v48 = vand.u32 4294901760, %v120_v63  ;;  %v135_v59 = vld [vmem:[%s16357_s1 + $0x398] sm:$0xff] }
 0x14e   :  { %2990 = vmatmul.mubr.f32.vlgmr.msra.gmra.mxu1 %v17318_v26  ;;  %8812 = vmatprep.subr.mxu0 %v12227_v25  ;;  %v12473_v26 = vand.u32 4294901760, %v137_v18  ;;  %v118_v25 = vld [vmem:[%s16357_s1 + $0x310] sm:$0xff]  ;;  %v12506_v32 = vsub.f32 %v138_v57, %v12426_v50  ;;  %v12521_v13 = vand.u32 4294901760, %v119_v16 }
 0x14f   :  { %8839 = vmatprep.subr.mxu1 %v17331_v3  ;;  %17332 = vst [vmem:[#allocation19_spill] sm:$0xff] %v12470_v40  ;;  %8813 = vmatpush3.msra.mxu0 %v12248_v44  ;;  %v3259_v3 = vand.u32 4294901760, %v12431_v12  ;;  %17336 = vst [vmem:[#allocation23_spill] sm:$0xff] %v12489_v48  ;;  %v134_v57 = vld [vmem:[%s16357_s1 + $0x390] sm:$0xff]  ;;  %v12526_v44 = vand.u32 4294901760, %v348_v53 }
 0x150   :  { %17333 = vst [vmem:[#allocation24_spill] sm:$0xff] %v12473_v26  ;;  %8840 = vmatpush3.msra.mxu1 %v17334_v24  ;;  %8814 = vmatprep.subr.mxu0 %v12262_v21  ;;  %v12499_v24 = vsub.f32 %v121_v23, %v12445_v46  ;;  %v17338_v21 = vand.u32 4294901760, %v12303_v60  ;;  %v17340_v23 = vand.u32 4294901760, %v12395_v4  ;;  %v12573_v60 = vsub.f32 %v119_v16, %v12521_v13 }
 0x151   :  { %8841 = vmatprep.subr.mxu1 %v17337_v22  ;;  %8815 = vmatpush3.msra.mxu0 %v12250_v41  ;;  %v12514_v22 = vsub.f32 %v12403_v20, %v17339_v34  ;;  %17341 = vst [vmem:[#allocation30_spill] sm:$0xff] %v12526_v44  ;;  %v12532_v34 = vand.u32 4294901760, %v118_v25  ;;  %v12538_v41 = vand.u32 4294901760, %v12406_v2  ;;  %v17347_v20 = vand.u32 4294901760, %v12454_v9 }
 0x152   :  { %8842 = vmatpush3.msra.mxu1 %v17338_v21  ;;  %v12519_v12 = vsub.f32 %v12395_v4, %v17340_v23  ;;  %8816 = vmatprep.subr.mxu0 %v12273_v15  ;;  %v17342_v21 = vand.u32 4294901760, %v12318_v45  ;;  %v12535_v23 = vsub.f32 %v137_v18, %v12473_v26  ;;  %v17344_v4 = vand.u32 4294901760, %v12332_v27 }
 0x153   :  { %17343 = vst [vmem:[#allocation29_spill] sm:$0xff] %v12538_v41  ;;  %8817 = vmatpush3.msra.mxu0 %v12320_v58  ;;  %v3154_v15 = vand.u32 4294901760, %v12485_v38  ;;  %v12545_v45 = vsub.f32 %v120_v63, %v12489_v48  ;;  %v17346_v18 = vand.u32 4294901760, %v12356_v43  ;;  %v12556_v58 = vsub.f32 %v12454_v9, %v17347_v20  ;;  %v133_v63 = vld [vmem:[%s16357_s1 + $0x388] sm:$0xff]  ;;  %3332 = vmatprep.mubr.f32.mxu1 %v12526_v44 }
 0x154   :  { %8843 = vmatprep.subr.mxu1 %v17342_v21  ;;  %v12547_v21 = vand.u32 4294901760, %v135_v59  ;;  %8818 = vmatprep.subr.mxu0 %v12341_v11  ;;  %v12558_v27 = vand.u32 4294901760, %v134_v57  ;;  %v12565_v38 = vsub.f32 %v136_v52, %v12487_v54  ;;  %v17349_v43 = vand.u32 4294901760, %v12372_v36 }
 0x155   :  { %8844 = vmatpush3.msra.mxu1 %v17344_v4  ;;  %17345 = vst [vmem:[#allocation33_spill] sm:$0xff] %v12545_v45  ;;  %8819 = vmatpush3.msra.mxu0 %v12343_v39  ;;  %v3161_v20 = vand.u32 4294901760, %v12519_v12  ;;  %v117_v4 = vld [vmem:[%s16357_s1 + $0x308] sm:$0xff]  ;;  %v12579_v11 = vsub.f32 %v348_v53, %v12526_v44  ;;  %v17350_v52 = vand.u32 4294901760, %v12386_v33  ;;  %v17351_v36 = vand.u32 4294901760, %v12459_v37  ;;  %v116_v53 = vld [vmem:[%s16357_s1 + $0x300] sm:$0xff] }
 0x156   :  { %8845 = vmatprep.subr.mxu1 %v17346_v18  ;;  %17348 = vst [vmem:[#allocation31_spill] sm:$0xff] %v12558_v27  ;;  %v3273_v18 = vand.u32 4294901760, %v12514_v22  ;;  %8820 = vmatprep.subr.mxu0 %v12381_v17  ;;  %v12588_v12 = vsub.f32 %v118_v25, %v12532_v34  ;;  %v12599_v33 = vsub.f32 %v12406_v2, %v12538_v41  ;;  %v17352_v25 = vand.u32 4294901760, %v12470_v40  ;;  %v17388_v44 = vld [vmem:[#allocation22_spill] sm:$0xff] }
 0x157   :  { %8846 = vmatpush3.msra.mxu1 %v17349_v43  ;;  %v3167_v22 = vsub.f32 %v12459_v37, %v17351_v36  ;;  %v132_v43 = vld [vmem:[%s16357_s1 + $0x380] sm:$0xff]  ;;  %8821 = vmatpush3.msra.mxu0 %v12397_v6  ;;  %v12605_v36 = vand.u32 4294901760, %v133_v63  ;;  %v12609_v17 = vsub.f32 %v135_v59, %v12547_v21  ;;  %v3280_v2 = vand.u32 4294901760, %v12556_v58 }
 0x158   :  { %8847 = vmatprep.subr.mxu1 %v17350_v52  ;;  %v3174_v52 = vsub.f32 %v12470_v40, %v17352_v25  ;;  %8822 = vmatprep.subr.mxu0 %v12426_v50  ;;  %v17353_v39 = vand.u32 4294901760, %v12506_v32  ;;  %v12616_v6 = vand.u32 4294901760, %v117_v4  ;;  %v17354_v16 = vand.u32 4294901760, %v12421_v8 }
 0x159   :  { %8848 = vmatpush3.msra.mxu1 %v3140_v30  ;;  %8823 = vmatpush3.msra.mxu0 %v12416_v51  ;;  %v12622_v59 = vand.u32 4294901760, %v132_v43  ;;  %v12624_v40 = vand.u32 4294901760, %v116_v53  ;;  %v12628_v58 = vsub.f32 %v134_v57, %v12558_v27  ;;  %v3168_v25 = vand.u32 4294901760, %v3167_v22 }
 0x15a   :  { %8849 = vmatprep.subr.mxu1 %v3259_v3  ;;  %v3286_v30 = vsub.f32 %v12506_v32, %v17353_v39  ;;  %8824 = vmatprep.subr.mxu0 %v12473_v26  ;;  %v17355_v39 = vand.u32 4294901760, %v12443_v0  ;;  %v17356_v51 = vand.u32 4294901760, %v12535_v23  ;;  %v3175_v3 = vand.u32 4294901760, %v3174_v52 }
 0x15b   :  { %8850 = vmatpush3.msra.mxu1 %v17354_v16  ;;  %v16626_v16 = vand.u32 4294901760, %v12545_v45  ;;  %8825 = vmatpush3.msra.mxu0 %v12445_v46  ;;  %v17357_v57 = vand.u32 4294901760, %v12499_v24  ;;  %v12644_v22 = vsub.f32 %v133_v63, %v12605_v36  ;;  %v17358_v50 = vand.u32 4294901760, %v12565_v38 }
 0x15c   :  { %8851 = vmatprep.subr.mxu1 %v17355_v39  ;;  %v3293_v8 = vsub.f32 %v12535_v23, %v17356_v51  ;;  %8826 = vmatprep.subr.mxu0 %v12487_v54  ;;  %v3287_v51 = vand.u32 4294901760, %v3286_v30  ;;  %v12648_v39 = vsub.f32 %v117_v4, %v12616_v6  ;;  %v17360_v63 = vand.u32 4294901760, %v12579_v11 }
 0x15d   :  { %8852 = vmatpush3.msra.mxu1 %v3154_v15  ;;  %v3181_v26 = vsub.f32 %v12499_v24, %v17357_v57  ;;  %v3300_v15 = vsub.f32 %v12565_v38, %v17358_v50  ;;  %8827 = vmatpush3.msra.mxu0 %v12489_v48  ;;  %v12656_v57 = vsub.f32 %v116_v53, %v12624_v40  ;;  %v17362_v53 = vand.u32 4294901760, %v12599_v33 }
 0x15e   :  { %8853 = vmatprep.subr.mxu1 %v3273_v18  ;;  %v3094_v18 = vsub.f32 %v12579_v11, %v17360_v63  ;;  %v12663_v4 = vsub.f32 %v132_v43, %v12622_v59  ;;  %8828 = vmatprep.subr.mxu0 %v12547_v21  ;;  %v3294_v50 = vand.u32 4294901760, %v3293_v8  ;;  %v17363_v43 = vand.u32 4294901760, %v12609_v17 }
 0x15f   :  { %8854 = vmatpush3.msra.mxu1 %v3161_v20  ;;  %17359 = vst [vmem:[#allocation21_spill] sm:$0xff] %v12656_v57  ;;  %v3188_v20 = vsub.f32 %v12545_v45, %v16626_v16  ;;  %v3100_v52 = vsub.f32 %v12599_v33, %v17362_v53  ;;  %8829 = vmatpush3.msra.mxu0 %v12521_v13  ;;  %v3182_v63 = vand.u32 4294901760, %v3181_v26  ;;  %v3301_v8 = vand.u32 4294901760, %v3300_v15 }
 0x160   :  { %17361 = vst [vmem:[#allocation32_spill] sm:$0xff] %v12663_v4  ;;  %8855 = vmatprep.subr.mxu1 %v3280_v2  ;;  %v3307_v30 = vsub.f32 %v12609_v17, %v17363_v43  ;;  %8830 = vmatprep.subr.mxu0 %v12558_v27  ;;  %v17364_v16 = vand.u32 4294901760, %v12573_v60  ;;  %v3095_v26 = vand.u32 4294901760, %v3094_v18  ;;  %v16630_v2 = vand.u32 4294901760, %v12663_v4 }
 0x161   :  { %8856 = vmatpush3.msra.mxu1 %v3168_v25  ;;  %8831 = vmatpush3.msra.mxu0 %v12532_v34  ;;  %v17365_v25 = vand.u32 4294901760, %v12628_v58  ;;  %v3101_v15 = vand.u32 4294901760, %v3100_v52  ;;  %v17366_v27 = vand.u32 4294901760, %v12588_v12  ;;  %v16629_v0 = vand.u32 4294901760, %v12656_v57 }
 0x162   :  { %8857 = vmatprep.subr.mxu1 %v3287_v51  ;;  %v3195_v53 = vsub.f32 %v12573_v60, %v17364_v16  ;;  %8832 = vmatprep.subr.mxu0 %v12605_v36  ;;  %v3189_v51 = vand.u32 4294901760, %v3188_v20  ;;  %v17367_v18 = vand.u32 4294901760, %v12644_v22  ;;  %v17368_v52 = vand.u32 4294901760, %v12648_v39 }
 0x163   :  { %8858 = vmatpush3.msra.mxu1 %v3175_v3  ;;  %v3314_v43 = vsub.f32 %v12628_v58, %v17365_v25  ;;  %v3202_v16 = vsub.f32 %v12588_v12, %v17366_v27  ;;  %8833 = vmatpush3.msra.mxu0 %v12616_v6  ;;  %v3308_v3 = vand.u32 4294901760, %v3307_v30  ;;  %v3328_v30 = vsub.f32 %v12663_v4, %v16630_v2  ;;  %v17386_v2 = vld [vmem:[#allocation27_spill] sm:$0xff] }
 0x164   :  { %8859 = vmatprep.subr.mxu1 %v3294_v50  ;;  %v3321_v25 = vsub.f32 %v12644_v22, %v17367_v18  ;;  %8834 = vmatprep.subr.mxu0 %v12622_v59  ;;  %v3196_v50 = vand.u32 4294901760, %v3195_v53  ;;  %v3209_v20 = vsub.f32 %v12648_v39, %v17368_v52  ;;  %v17372_v18 = vld [vmem:[#allocation25_spill] sm:$0xff]  ;;  %v17375_v52 = vld [vmem:[#allocation14_spill] sm:$0xff] }
 0x165   :  { %8860 = vmatpush3.msra.mxu1 %v3182_v63  ;;  %8835 = vmatpush3.msra.mxu0 %v12624_v40  ;;  %v3315_v27 = vand.u32 4294901760, %v3314_v43  ;;  %v3203_v63 = vand.u32 4294901760, %v3202_v16  ;;  %v3329_v43 = vand.u32 4294901760, %v3328_v30  ;;  %v17370_v16 = vld [vmem:[#allocation7_spill] sm:$0xff]  ;;  %v17378_v30 = vld [vmem:[#allocation12_spill] sm:$0xff] }
 0x166   :  { %8861 = vmatprep.subr.mxu1 %v3301_v8  ;;  %3096 = vmatprep.mubr.f32.mxu0 %v3095_v26  ;;  %v3216_v8 = vsub.f32 %v12656_v57, %v16629_v0  ;;  %v3322_v53 = vand.u32 4294901760, %v3321_v25  ;;  %v3210_v26 = vand.u32 4294901760, %v3209_v20  ;;  %v17373_v25 = vld [vmem:[#allocation3_spill] sm:$0xff]  ;;  %v17376_v20 = vld [vmem:[#allocation13_spill] sm:$0xff]  ;;  %v17385_v0 = vld [vmem:[#allocation8_spill] sm:$0xff] }
 0x167   :  { %8862 = vmatpush3.msra.mxu1 %v3189_v51  ;;  %3102 = vmatmul.mubr.f32.vlgmr.msra.gmra.mxu0 %v3101_v15  ;;  %v17369_v15 = vld [vmem:[#allocation4_spill] sm:$0xff] }
 0x168   :  { %8863 = vmatprep.subr.mxu1 %v3308_v3  ;;  %8874 = vmatprep.subr.mxu0 %v12163_v14  ;;  %v3217_v51 = vand.u32 4294901760, %v3216_v8  ;;  %v17371_v3 = vld [vmem:[#allocation20_spill] sm:$0xff]  ;;  %v17380_v8 = vld [vmem:[#allocation15_spill] sm:$0xff] }
 0x169   :  { %8864 = vmatpush3.msra.mxu1 %v3196_v50  ;;  %8875 = vmatpush3.msra.mxu0 %v12182_v28  ;;  %v17374_v50 = vld [vmem:[#allocation18_spill] sm:$0xff] }
 0x16a   :  { %8865 = vmatprep.subr.mxu1 %v3315_v27  ;;  %8876 = vmatprep.subr.mxu0 %v12197_v42  ;;  %v17377_v27 = vld [vmem:[#allocation10_spill] sm:$0xff] }
 0x16b   :  { %8866 = vmatpush3.msra.mxu1 %v3203_v63  ;;  %8877 = vmatpush3.msra.mxu0 %v12203_v49  ;;  %v17379_v63 = vld [vmem:[#allocation19_spill] sm:$0xff] }
 0x16c   :  { %8867 = vmatprep.subr.mxu1 %v3322_v53  ;;  %8878 = vmatprep.subr.mxu0 %v12219_v62  ;;  %v17381_v53 = vld [vmem:[#allocation5_spill] sm:$0xff] }
 0x16d   :  { %8868 = vmatpush3.msra.mxu1 %v3210_v26  ;;  %8879 = vmatpush3.msra.mxu0 %v12225_v1  ;;  %v17382_v26 = vld [vmem:[#allocation17_spill] sm:$0xff] }
 0x16e   :  { %8869 = vmatprep.subr.mxu1 %v3329_v43  ;;  %8880 = vmatprep.subr.mxu0 %v12254_v19  ;;  %v17383_v43 = vld [vmem:[#allocation16_spill] sm:$0xff] }
 0x16f   :  { %8870 = vmatpush3.msra.mxu1 %v3217_v51  ;;  %8881 = vmatpush3.msra.mxu0 %v12260_v55  ;;  %v17384_v51 = vld [vmem:[#allocation6_spill] sm:$0xff] }
 0x170   :  { %3334 = vmatmul.mubr.f32.vlgmr.msra.gmra.mxu1 %v12538_v41  ;;  %8882 = vmatprep.subr.mxu0 %v12280_v61  ;;  %v17387_v41 = vld [vmem:[#allocation28_spill] sm:$0xff] }
 0x171   :  { %8909 = vmatprep.subr.mxu1 %v12129_v56  ;;  %8883 = vmatpush3.msra.mxu0 %v12295_v7 }
 0x172   :  { %8910 = vmatpush3.msra.mxu1 %v12149_v31  ;;  %8884 = vmatprep.subr.mxu0 %v12324_v35 }
 0x173   :  { %8911 = vmatprep.subr.mxu1 %v12157_v29  ;;  %8885 = vmatpush3.msra.mxu0 %v12298_v10 }
 0x174   :  { %8912 = vmatpush3.msra.mxu1 %v12168_v47  ;;  %8886 = vmatprep.subr.mxu0 %v12336_v5 }
 0x175   :  { %8913 = vmatprep.subr.mxu1 %v17369_v15  ;;  %8887 = vmatpush3.msra.mxu0 %v17370_v16 }
 0x176   :  { %8914 = vmatpush3.msra.mxu1 %v17371_v3  ;;  %8888 = vmatprep.subr.mxu0 %v17372_v18 }
 0x177   :  { %8915 = vmatprep.subr.mxu1 %v17373_v25  ;;  %8889 = vmatpush3.msra.mxu0 %v17374_v50 }
 0x178   :  { %8916 = vmatpush3.msra.mxu1 %v17375_v52  ;;  %8890 = vmatprep.subr.mxu0 %v12454_v9 }
 0x179   :  { %8917 = vmatprep.subr.mxu1 %v17376_v20  ;;  %8891 = vmatpush3.msra.mxu0 %v12459_v37 }
 0x17a   :  { %8918 = vmatpush3.msra.mxu1 %v17377_v27  ;;  %8892 = vmatprep.subr.mxu0 %v12506_v32 }
 0x17b   :  { %8919 = vmatprep.subr.mxu1 %v17378_v30  ;;  %8893 = vmatpush3.msra.mxu0 %v17379_v63 }
 0x17c   :  { %8920 = vmatpush3.msra.mxu1 %v17380_v8  ;;  %8894 = vmatprep.subr.mxu0 %v12535_v23 }
 0x17d   :  { %8921 = vmatprep.subr.mxu1 %v17381_v53  ;;  %8895 = vmatpush3.msra.mxu0 %v12499_v24 }
 0x17e   :  { %8922 = vmatpush3.msra.mxu1 %v17382_v26  ;;  %8896 = vmatprep.subr.mxu0 %v12565_v38 }
 0x17f   :  { %8923 = vmatprep.subr.mxu1 %v17383_v43  ;;  %8897 = vmatpush3.msra.mxu0 %v12545_v45  ;;  %v17389_v45 = vld [vmem:[#allocation24_spill] sm:$0xff] }
 0x180   :  { %8924 = vmatpush3.msra.mxu1 %v17384_v51  ;;  %8898 = vmatprep.subr.mxu0 %v12609_v17 }
 0x181   :  { %8925 = vmatprep.subr.mxu1 %v17385_v0  ;;  %8899 = vmatpush3.msra.mxu0 %v12573_v60 }
 0x182   :  { %8926 = vmatpush3.msra.mxu1 %v17386_v2  ;;  %8900 = vmatprep.subr.mxu0 %v12628_v58 }
 0x183   :  { %8927 = vmatprep.subr.mxu1 %v17387_v41  ;;  %8901 = vmatpush3.msra.mxu0 %v12588_v12 }
 0x184   :  { %8928 = vmatpush3.msra.mxu1 %v17388_v44  ;;  %8902 = vmatprep.subr.mxu0 %v12644_v22 }
 0x185   :  { %8929 = vmatprep.subr.mxu1 %v17389_v45  ;;  %8903 = vmatpush3.msra.mxu0 %v12648_v39  ;;  %v17390_v45 = vand.u32 4294901760, %v12163_v14  ;;  %v17395_v14 = vand.u32 4294901760, %v12219_v62  ;;  %v17400_v62 = vand.u32 4294901760, %v12599_v33 }
 0x186   :  { %8930 = vmatpush3.msra.mxu1 %v12445_v46  ;;  %8904 = vmatprep.subr.mxu0 %v12663_v4  ;;  %v17391_v46 = vand.u32 4294901760, %v12182_v28  ;;  %v17392_v4 = vld [vmem:[#allocation31_spill] sm:$0xff]  ;;  %v17396_v28 = vand.u32 4294901760, %v12225_v1  ;;  %v17402_v1 = vand.u32 4294901760, %v12295_v7 }
 0x187   :  { %8931 = vmatprep.subr.mxu1 %v12487_v54  ;;  %8905 = vmatpush3.msra.mxu0 %v12656_v57  ;;  %v17393_v57 = vand.u32 4294901760, %v12197_v42  ;;  %v17397_v42 = vand.u32 4294901760, %v12254_v19  ;;  %v17403_v19 = vand.u32 4294901760, %v12324_v35  ;;  %v17408_v35 = vand.u32 4294901760, %v17374_v50 }
 0x188   :  { %3469 = vmatprep.mubr.f32.mxu0 %v12579_v11  ;;  %8932 = vmatpush3.msra.mxu1 %v12489_v48  ;;  %v17394_v48 = vand.u32 4294901760, %v12203_v49  ;;  %v17398_v49 = vand.u32 4294901760, %v12579_v11  ;;  %v17409_v11 = vand.u32 4294901760, %v12454_v9 }
 0x189   :  { %3472 = vmatmul.mubr.f32.vlgmr.msra.gmra.mxu0 %v12599_v33  ;;  %8933 = vmatprep.subr.mxu1 %v12547_v21  ;;  %v17410_v33 = vand.u32 4294901760, %v12459_v37  ;;  %v161_v37 = vld [vmem:[%s16357_s1 + $0x468] sm:$0xff] }
 0x18a   :  { %8944 = vmatprep.subr.mxu0 %v17390_v45  ;;  %8934 = vmatpush3.msra.mxu1 %v12521_v13 }
 0x18b   :  { %8945 = vmatpush3.msra.mxu0 %v17391_v46  ;;  %8935 = vmatprep.subr.mxu1 %v17392_v4  ;;  %v17399_v46 = vand.u32 4294901760, %v12260_v55  ;;  %v17404_v55 = vand.u32 4294901760, %v12298_v10  ;;  %v178_v10 = vld [vmem:[%s16357_s1 + $0x4f0] sm:$0xff] }
 0x18c   :  { %8946 = vmatprep.subr.mxu0 %v17393_v57  ;;  %8936 = vmatpush3.msra.mxu1 %v12532_v34  ;;  %v12842_v57 = vand.u32 4294901760, %v178_v10 }
 0x18d   :  { %8947 = vmatpush3.msra.mxu0 %v17394_v48  ;;  %8937 = vmatprep.subr.mxu1 %v12605_v36  ;;  %v17401_v48 = vand.u32 4294901760, %v12280_v61  ;;  %v179_v61 = vld [vmem:[%s16357_s1 + $0x4f8] sm:$0xff] }
 0x18e   :  { %8948 = vmatprep.subr.mxu0 %v17395_v14  ;;  %8938 = vmatpush3.msra.mxu1 %v12616_v6  ;;  %v12823_v7 = vand.u32 4294901760, %v179_v61 }
 0x18f   :  { %8949 = vmatpush3.msra.mxu0 %v17396_v28  ;;  %8939 = vmatprep.subr.mxu1 %v12622_v59  ;;  %v17418_v28 = vld [vmem:[#allocation33_spill] sm:$0xff] }
 0x190   :  { %8950 = vmatprep.subr.mxu0 %v17397_v42  ;;  %8940 = vmatpush3.msra.mxu1 %v12624_v40  ;;  %v17419_v42 = vand.u32 4294901760, %v17418_v28 }
 0x191   :  { %3576 = vmatprep.mubr.f32.mxu1 %v17398_v49  ;;  %8951 = vmatpush3.msra.mxu0 %v17399_v46 }
 0x192   :  { %3580 = vmatmul.mubr.f32.vlgmr.msra.gmra.mxu1 %v17400_v62  ;;  %8952 = vmatprep.subr.mxu0 %v17401_v48 }
 0x193   :  { %8979 = vmatprep.subr.mxu1 %v12129_v56  ;;  %8953 = vmatpush3.msra.mxu0 %v17402_v1  ;;  %v17405_v56 = vand.u32 4294901760, %v12336_v5  ;;  %v162_v5 = vld [vmem:[%s16357_s1 + $0x470] sm:$0xff] }
 0x194   :  { %8980 = vmatpush3.msra.mxu1 %v12149_v31  ;;  %8954 = vmatprep.subr.mxu0 %v17403_v19  ;;  %v17406_v31 = vand.u32 4294901760, %v17370_v16  ;;  %v17411_v16 = vand.u32 4294901760, %v12506_v32  ;;  %v12850_v9 = vand.u32 4294901760, %v162_v5  ;;  %v176_v32 = vld [vmem:[%s16357_s1 + $0x4e0] sm:$0xff]  ;;  %v17424_v19 = vand.u32 4294901760, %v12573_v60 }
 0x195   :  { %8981 = vmatprep.subr.mxu1 %v12157_v29  ;;  %8955 = vmatpush3.msra.mxu0 %v17404_v55  ;;  %v163_v29 = vld [vmem:[%s16357_s1 + $0x478] sm:$0xff]  ;;  %v17425_v55 = vand.u32 4294901760, %v12628_v58 }
 0x196   :  { %8982 = vmatpush3.msra.mxu1 %v12168_v47  ;;  %8956 = vmatprep.subr.mxu0 %v17405_v56  ;;  %v17407_v47 = vand.u32 4294901760, %v17372_v18  ;;  %v12837_v45 = vand.u32 4294901760, %v163_v29  ;;  %v17412_v18 = vand.u32 4294901760, %v17379_v63  ;;  %v159_v63 = vld [vmem:[%s16357_s1 + $0x458] sm:$0xff] }
 0x197   :  { %8983 = vmatprep.subr.mxu1 %v17369_v15  ;;  %8957 = vmatpush3.msra.mxu0 %v17406_v31  ;;  %v177_v15 = vld [vmem:[%s16357_s1 + $0x4e8] sm:$0xff]  ;;  %v12911_v62 = vand.u32 4294901760, %v159_v63  ;;  %v17427_v31 = vand.u32 4294901760, %v12588_v12 }
 0x198   :  { %8984 = vmatpush3.msra.mxu1 %v17371_v3  ;;  %8958 = vmatprep.subr.mxu0 %v17407_v47  ;;  %v12856_v3 = vsub.f32 %v179_v61, %v12823_v7  ;;  %v12868_v50 = vsub.f32 %v163_v29, %v12837_v45  ;;  %v17429_v29 = vand.u32 4294901760, %v12644_v22  ;;  %v17430_v47 = vld [vmem:[#allocation24_spill] sm:$0xff] }
 0x199   :  { %8985 = vmatprep.subr.mxu1 %v17373_v25  ;;  %8959 = vmatpush3.msra.mxu0 %v17408_v35  ;;  %v17413_v25 = vand.u32 4294901760, %v12535_v23  ;;  %v175_v23 = vld [vmem:[%s16357_s1 + $0x4d8] sm:$0xff]  ;;  %17423 = vst [vmem:[#allocation25_spill] sm:$0xff] %v12911_v62  ;;  %v157_v22 = vld [vmem:[%s16357_s1 + $0x448] sm:$0xff] }
 0x19a   :  { %8986 = vmatpush3.msra.mxu1 %v17375_v52  ;;  %8960 = vmatprep.subr.mxu0 %v17409_v11  ;;  %v12870_v52 = vand.u32 4294901760, %v177_v15  ;;  %v16646_v14 = vand.u32 4294901760, %v12856_v3  ;;  %v12909_v46 = vand.u32 4294901760, %v175_v23  ;;  %v16645_v48 = vand.u32 4294901760, %v12868_v50 }
 0x19b   :  { %8987 = vmatprep.subr.mxu1 %v17376_v20  ;;  %8961 = vmatpush3.msra.mxu0 %v17410_v33  ;;  %v160_v20 = vld [vmem:[%s16357_s1 + $0x460] sm:$0xff]  ;;  %v17431_v11 = vand.u32 4294901760, %v12648_v39 }
 0x19c   :  { %8988 = vmatpush3.msra.mxu1 %v17377_v27  ;;  %8962 = vmatprep.subr.mxu0 %v17411_v16  ;;  %v17414_v27 = vand.u32 4294901760, %v12499_v24  ;;  %v12893_v24 = vsub.f32 %v162_v5, %v12850_v9  ;;  %v12901_v49 = vand.u32 4294901760, %v160_v20  ;;  %17422 = vst [vmem:[#allocation20_spill] sm:$0xff] %v12909_v46  ;;  %v12918_v1 = vsub.f32 %v177_v15, %v12870_v52  ;;  %v17432_v33 = vld [vmem:[#allocation11_spill] sm:$0xff] }
 0x19d   :  { %8989 = vmatprep.subr.mxu1 %v17378_v30  ;;  %8963 = vmatpush3.msra.mxu0 %v17412_v18  ;;  %v12878_v30 = vand.u32 4294901760, %v161_v37  ;;  %v12933_v61 = vsub.f32 %v12856_v3, %v16646_v14  ;;  %v12958_v12 = vsub.f32 %v12868_v50, %v16645_v48  ;;  %v12968_v5 = vsub.f32 %v175_v23, %v12909_v46 }
 0x19e   :  { %8990 = vmatpush3.msra.mxu1 %v17380_v8  ;;  %8964 = vmatprep.subr.mxu0 %v17413_v25  ;;  %v12887_v8 = vsub.f32 %v178_v10, %v12842_v57  ;;  %17420 = vst [vmem:[#allocation7_spill] sm:$0xff] %v12901_v49  ;;  %v16642_v60 = vand.u32 4294901760, %v12893_v24  ;;  %v12945_v58 = vsub.f32 %v160_v20, %v12901_v49  ;;  %v16641_v35 = vand.u32 4294901760, %v12918_v1  ;;  %v172_v25 = vld [vmem:[%s16357_s1 + $0x4c0] sm:$0xff] }
 0x19f   :  { %8991 = vmatprep.subr.mxu1 %v17381_v53  ;;  %8965 = vmatpush3.msra.mxu0 %v17414_v27  ;;  %17415 = vst [vmem:[#allocation9_spill] sm:$0xff] %v12878_v30  ;;  %v17416_v53 = vand.u32 4294901760, %v12565_v38  ;;  %v174_v38 = vld [vmem:[%s16357_s1 + $0x4d0] sm:$0xff]  ;;  %v12953_v10 = vsub.f32 %v159_v63, %v12911_v62  ;;  %v156_v27 = vld [vmem:[%s16357_s1 + $0x440] sm:$0xff] }
 0x1a0   :  { %8992 = vmatpush3.msra.mxu1 %v17382_v26  ;;  %v12895_v26 = vand.u32 4294901760, %v176_v32  ;;  %v12935_v56 = vand.u32 4294901760, %v174_v38  ;;  %v12986_v39 = vsub.f32 %v12893_v24, %v16642_v60  ;;  %v13051_v60 = vld [vmem:[%s16358_s0 + $0x10] sm:$0xff] }
 0x1a1   :  { %8966 = vmatprep.subr.mxu0 %v17416_v53  ;;  %8993 = vmatprep.subr.mxu1 %v17383_v43  ;;  %v17421_v43 = vand.u32 4294901760, %v12609_v17  ;;  %v12924_v17 = vsub.f32 %v161_v37, %v12878_v30  ;;  %v17433_v37 = vld [vmem:[#allocation32_spill] sm:$0xff]  ;;  %v17437_v53 = vld [vmem:[#allocation30_spill] sm:$0xff]  ;;  %17445 = vst [vmem:[#allocation15_spill] sm:$0xff] %v13051_v60 }
 0x1a2   :  { %17417 = vst [vmem:[#allocation4_spill] sm:$0xff] %v12895_v26  ;;  %8967 = vmatpush3.msra.mxu0 %v17419_v42  ;;  %8994 = vmatpush3.msra.mxu1 %v17384_v51  ;;  %v158_v51 = vld [vmem:[%s16357_s1 + $0x450] sm:$0xff]  ;;  %17426 = vst [vmem:[#allocation3_spill] sm:$0xff] %v12935_v56  ;;  %v17434_v18 = vand.u32 4294901760, %v17433_v37  ;;  %v12996_v23 = vsub.f32 %v174_v38, %v12935_v56  ;;  %v17440_v38 = vld [vmem:[#allocation23_spill] sm:$0xff] }
 0x1a3   :  { %8968 = vmatprep.subr.mxu0 %v17421_v43  ;;  %8995 = vmatprep.subr.mxu1 %v17385_v0  ;;  %v16644_v0 = vand.u32 4294901760, %v12887_v8  ;;  %v16640_v16 = vand.u32 4294901760, %v12924_v17  ;;  %v13006_v43 = vand.u32 4294901760, %v157_v22 }
 0x1a4   :  { %8969 = vmatpush3.msra.mxu0 %v17424_v19  ;;  %8996 = vmatpush3.msra.mxu1 %v17386_v2  ;;  %v12939_v2 = vsub.f32 %v176_v32, %v12895_v26  ;;  %v16647_v19 = vand.u32 4294901760, %v12945_v58 }
 0x1a5   :  { %8970 = vmatprep.subr.mxu0 %v17425_v55  ;;  %8997 = vmatprep.subr.mxu1 %v17387_v41  ;;  %v12947_v41 = vand.u32 4294901760, %v158_v51  ;;  %v12976_v15 = vsub.f32 %v12887_v8, %v16644_v0  ;;  %17439 = vst [vmem:[#allocation13_spill] sm:$0xff] %v13006_v43  ;;  %v171_v55 = vld [vmem:[%s16357_s1 + $0x4b8] sm:$0xff]  ;;  %v13028_v37 = vsub.f32 %v12924_v17, %v16640_v16  ;;  %v154_v0 = vld [vmem:[%s16357_s1 + $0x430] sm:$0xff] }
 0x1a6   :  { %8971 = vmatpush3.msra.mxu0 %v17427_v31  ;;  %8998 = vmatpush3.msra.mxu1 %v17388_v44  ;;  %v173_v44 = vld [vmem:[%s16357_s1 + $0x4c8] sm:$0xff]  ;;  %v16643_v20 = vand.u32 4294901760, %v12939_v2  ;;  %v17441_v31 = vld [vmem:[#allocation29_spill] sm:$0xff]  ;;  %v13045_v16 = vand.u32 4294901760, %v171_v55 }
 0x1a7   :  { %17428 = vst [vmem:[#allocation18_spill] sm:$0xff] %v12947_v41  ;;  %8972 = vmatprep.subr.mxu0 %v17429_v29  ;;  %8999 = vmatprep.subr.mxu1 %v17430_v47  ;;  %v13002_v28 = vsub.f32 %v158_v51, %v12947_v41  ;;  %v13004_v42 = vand.u32 4294901760, %v173_v44  ;;  %v13018_v51 = vsub.f32 %v12918_v1, %v16641_v35  ;;  %v16648_v47 = vand.u32 4294901760, %v12968_v5 }
 0x1a8   :  { %8973 = vmatpush3.msra.mxu0 %v17431_v11  ;;  %9000 = vmatpush3.msra.mxu1 %v17432_v33  ;;  %v16649_v11 = vand.u32 4294901760, %v12953_v10  ;;  %17444 = vst [vmem:[#allocation19_spill] sm:$0xff] %v13045_v16  ;;  %v16650_v35 = vand.u32 4294901760, %v12996_v23  ;;  %v17450_v33 = vld [vmem:[#allocation26_spill] sm:$0xff]  ;;  %v13115_v29 = vsub.f32 %v171_v55, %v13045_v16 }
 0x1a9   :  { %8974 = vmatprep.subr.mxu0 %v17434_v18  ;;  %9001 = vmatprep.subr.mxu1 %v12487_v54  ;;  %v17435_v54 = vld [vmem:[#allocation21_spill] sm:$0xff]  ;;  %17438 = vst [vmem:[#allocation14_spill] sm:$0xff] %v13004_v42  ;;  %v13030_v18 = vand.u32 4294901760, %v172_v25  ;;  %v16651_v48 = vand.u32 4294901760, %v13002_v28  ;;  %v13068_v14 = vsub.f32 %v173_v44, %v13004_v42 }
 0x1aa   :  { %v17436_v63 = vand.u32 4294901760, %v17435_v54  ;;  %3746 = vmatprep.mubr.f32.mxu0 %v17437_v53  ;;  %9002 = vmatpush3.msra.mxu1 %v17440_v38  ;;  %v13032_v54 = vand.u32 4294901760, %v156_v27  ;;  %v13043_v38 = vsub.f32 %v12939_v2, %v16643_v20  ;;  %v13061_v20 = vsub.f32 %v12945_v58, %v16647_v19  ;;  %17451 = vst [vmem:[#allocation8_spill] sm:$0xff] %v13115_v29 }
 0x1ab   :  { %9003 = vmatprep.subr.mxu1 %v12547_v21  ;;  %17442 = vst [vmem:[#allocation10_spill] sm:$0xff] %v13030_v18  ;;  %v13083_v21 = vsub.f32 %v12953_v10, %v16649_v11  ;;  %v13099_v11 = vrot.slane %v13051_v60, %v17450_v33  ;;  %3850 = vmatprep.mubr.f32.mxu1 %v17437_v53  ;;  %v152_v60 = vld [vmem:[%s16357_s1 + $0x420] sm:$0xff] }
 0x1ac   :  { %8975 = vmatpush3.msra.mxu0 %v17436_v63  ;;  %17443 = vst [vmem:[#allocation12_spill] sm:$0xff] %v13032_v54  ;;  %v155_v63 = vld [vmem:[%s16357_s1 + $0x438] sm:$0xff]  ;;  %9004 = vmatpush3.msra.mxu1 %v12521_v13  ;;  %v13056_v13 = vsub.f32 %v157_v22, %v13006_v43  ;;  %v13076_v22 = vsub.f32 %v12968_v5, %v16648_v47  ;;  %v170_v47 = vld [vmem:[%s16357_s1 + $0x4b0] sm:$0xff]  ;;  %v168_v53 = vld [vmem:[%s16357_s1 + $0x4a0] sm:$0xff]  ;;  %v13180_v32 = vand.u32 4294901760, %v152_v60 }
 0x1ad   :  { %3748 = vmatmul.mubr.f32.vlgmr.msra.gmra.mxu0 %v17441_v31  ;;  %9014 = vmatprep.subr.mxu0 %v12823_v7  ;;  %v13078_v19 = vand.u32 4294901760, %v155_v63  ;;  %v13089_v44 = vsub.f32 %v156_v27, %v13032_v54  ;;  %v13107_v27 = vsub.f32 %v12996_v23, %v16650_v35  ;;  %v13123_v35 = vsub.f32 %v13002_v28, %v16651_v48  ;;  %v167_v48 = vld [vmem:[%s16357_s1 + $0x498] sm:$0xff] }
 0x1ae   :  { %9015 = vmatpush3.msra.mxu0 %v12837_v45  ;;  %9005 = vmatprep.subr.mxu1 %v17392_v4  ;;  %17446 = vst [vmem:[#allocation5_spill] sm:$0xff] %v13056_v13  ;;  %v13095_v4 = vsub.f32 %v172_v25, %v13030_v18  ;;  %v153_v25 = vld [vmem:[%s16357_s1 + $0x428] sm:$0xff]  ;;  %v13137_v33 = vand.u32 4294901760, %v170_v47  ;;  %v364_v55 = vcombine.high %v13099_v11, %v13099_v11  ;;  %17460 = vst [vmem:[#allocation33_spill] sm:$0xff] %v13180_v32 }
 0x1af   :  { %9016 = vmatprep.subr.mxu0 %v12842_v57  ;;  %9006 = vmatpush3.msra.mxu1 %v12532_v34  ;;  %17447 = vst [vmem:[#allocation17_spill] sm:$0xff] %v13078_v19  ;;  %17448 = vst [vmem:[#allocation16_spill] sm:$0xff] %v13089_v44  ;;  %v13109_v34 = vand.u32 4294901760, %v154_v0 }
 0x1b0   :  { %9017 = vmatpush3.msra.mxu0 %v12850_v9  ;;  %9007 = vmatprep.subr.mxu1 %v12605_v36  ;;  %17449 = vst [vmem:[#allocation6_spill] sm:$0xff] %v13095_v4  ;;  %v169_v36 = vld [vmem:[%s16357_s1 + $0x4a8] sm:$0xff]  ;;  %17453 = vst [vmem:[#allocation28_spill] sm:$0xff] %v13137_v33 }
 0x1b1   :  { %9018 = vmatprep.subr.mxu0 %v12870_v52  ;;  %9008 = vmatpush3.msra.mxu1 %v12616_v6  ;;  %v13134_v6 = vsub.f32 %v155_v63, %v13078_v19  ;;  %v13163_v63 = vand.u32 4294901760, %v169_v36 }
 0x1b2   :  { %9019 = vmatpush3.msra.mxu0 %v12878_v30  ;;  %9009 = vmatprep.subr.mxu1 %v12622_v59  ;;  %v151_v59 = vld [vmem:[%s16357_s1 + $0x418] sm:$0xff] }
 0x1b3   :  { %9020 = vmatprep.subr.mxu0 %v12895_v26  ;;  %9010 = vmatpush3.msra.mxu1 %v12624_v40  ;;  %17452 = vst [vmem:[#allocation27_spill] sm:$0xff] %v13134_v6  ;;  %v13144_v40 = vand.u32 4294901760, %v153_v25  ;;  %17456 = vst [vmem:[#allocation31_spill] sm:$0xff] %v13163_v63  ;;  %v17457_v26 = vand.u32 4294901760, %v12958_v12  ;;  %v13188_v12 = vand.u32 4294901760, %v168_v53 }
 0x1b4   :  { %9021 = vmatpush3.msra.mxu0 %v12901_v49  ;;  %3852 = vmatmul.mubr.f32.vlgmr.msra.gmra.mxu1 %v17441_v31  ;;  %v17455_v31 = vand.u32 4294901760, %v12933_v61  ;;  %v13161_v49 = vsub.f32 %v154_v0, %v13109_v34 }
 0x1b5   :  { %17454 = vst [vmem:[#allocation22_spill] sm:$0xff] %v13144_v40  ;;  %9022 = vmatprep.subr.mxu0 %v12909_v46  ;;  %v17458_v46 = vand.u32 4294901760, %v13068_v14 }
 0x1b6   :  { %9049 = vmatprep.subr.mxu1 %v17455_v31  ;;  %9023 = vmatpush3.msra.mxu0 %v12911_v62  ;;  %v17459_v31 = vand.u32 4294901760, %v13056_v13  ;;  %v17462_v62 = vand.u32 4294901760, %v12986_v39  ;;  %v17466_v39 = vand.u32 4294901760, %v13018_v51  ;;  %v17469_v51 = vand.u32 4294901760, %v13028_v37 }
 0x1b7   :  { %9050 = vmatpush3.msra.mxu1 %v17457_v26  ;;  %v13173_v61 = vsub.f32 %v13068_v14, %v17458_v46  ;;  %9024 = vmatprep.subr.mxu0 %v12935_v56  ;;  %v17461_v26 = vand.u32 4294901760, %v12976_v15  ;;  %v13190_v46 = vand.u32 4294901760, %v151_v59  ;;  %v17463_v15 = vand.u32 4294901760, %v13095_v4 }
 0x1b8   :  { %v13178_v0 = vsub.f32 %v13056_v13, %v17459_v31  ;;  %v13194_v31 = vsub.f32 %v170_v47, %v13137_v33  ;;  %9025 = vmatpush3.msra.mxu0 %v12947_v41  ;;  %v13200_v13 = vsub.f32 %v153_v25, %v13144_v40  ;;  %v17464_v56 = vand.u32 4294901760, %v13089_v44 }
 0x1b9   :  { %9051 = vmatprep.subr.mxu1 %v17461_v26  ;;  %v13205_v26 = vsub.f32 %v13095_v4, %v17463_v15  ;;  %v13212_v47 = vand.u32 4294901760, %v364_v55  ;;  %9026 = vmatprep.subr.mxu0 %v13004_v42  ;;  %v17467_v25 = vand.u32 4294901760, %v13115_v29  ;;  %v166_v15 = vld [vmem:[%s16357_s1 + $0x490] sm:$0xff]  ;;  %v13239_v42 = vsub.f32 %v152_v60, %v13180_v32  ;;  %v149_v60 = vld [vmem:[%s16357_s1 + $0x408] sm:$0xff] }
 0x1ba   :  { %9052 = vmatpush3.msra.mxu1 %v17462_v62  ;;  %v13210_v30 = vsub.f32 %v13089_v44, %v17464_v56  ;;  %v13217_v62 = vand.u32 4294901760, %v167_v48  ;;  %v13228_v56 = vsub.f32 %v169_v36, %v13163_v63  ;;  %v13231_v44 = vand.u32 4294901760, %v13099_v11  ;;  %9027 = vmatpush3.msra.mxu0 %v13006_v43  ;;  %v150_v36 = vld [vmem:[%s16357_s1 + $0x410] sm:$0xff] }
 0x1bb   :  { %17465 = vst [vmem:[#allocation24_spill] sm:$0xff] %v13212_v47  ;;  %9053 = vmatprep.subr.mxu1 %v17466_v39  ;;  %v13222_v41 = vsub.f32 %v13115_v29, %v17467_v25  ;;  %v4128_v39 = vand.u32 4294901760, %v13173_v61  ;;  %v4016_v25 = vand.u32 4294901760, %v13178_v0  ;;  %9028 = vmatprep.subr.mxu0 %v13030_v18  ;;  %v17470_v43 = vand.u32 4294901760, %v13043_v38 }
 0x1bc   :  { %17468 = vst [vmem:[#allocation11_spill] sm:$0xff] %v13231_v44  ;;  %9054 = vmatpush3.msra.mxu1 %v17469_v51  ;;  %v13249_v37 = vsub.f32 %v151_v59, %v13190_v46  ;;  %v17471_v61 = vand.u32 4294901760, %v13134_v6  ;;  %v165_v51 = vld [vmem:[%s16357_s1 + $0x488] sm:$0xff]  ;;  %v13261_v29 = vsub.f32 %v168_v53, %v13188_v12  ;;  %9029 = vmatpush3.msra.mxu0 %v13032_v54  ;;  %v4135_v38 = vand.u32 4294901760, %v13205_v26  ;;  %v164_v26 = vld [vmem:[%s16357_s1 + $0x480] sm:$0xff] }
 0x1bd   :  { %9055 = vmatprep.subr.mxu1 %v17470_v43  ;;  %v17472_v43 = vand.u32 4294901760, %v13061_v20  ;;  %v4023_v59 = vand.u32 4294901760, %v13210_v30  ;;  %v13274_v18 = vsub.f32 %v364_v55, %v13212_v47  ;;  %9030 = vmatprep.subr.mxu0 %v13045_v16  ;;  %v17474_v53 = vand.u32 4294901760, %v13076_v22  ;;  %v148_v55 = vld [vmem:[%s16357_s1 + $0x400] sm:$0xff] }
 0x1be   :  { %v13254_v0 = vsub.f32 %v13134_v6, %v17471_v61  ;;  %v13268_v61 = vand.u32 4294901760, %v166_v15  ;;  %v4142_v20 = vand.u32 4294901760, %v13222_v41  ;;  %v13291_v16 = vsub.f32 %v13099_v11, %v13231_v44  ;;  %9031 = vmatpush3.msra.mxu0 %v13078_v19  ;;  %4194 = vmatprep.mubr.f32.mxu1 %v13212_v47  ;;  %v17513_v47 = vld [vmem:[#allocation31_spill] sm:$0xff] }
 0x1bf   :  { %9056 = vmatpush3.msra.mxu1 %v17472_v43  ;;  %v13280_v43 = vand.u32 4294901760, %v150_v36  ;;  %v17475_v41 = vand.u32 4294901760, %v13083_v21  ;;  %v17476_v22 = vand.u32 4294901760, %v13161_v49  ;;  %v13299_v30 = vand.u32 4294901760, %v165_v51  ;;  %9032 = vmatprep.subr.mxu0 %v13137_v33 }
 0x1c0   :  { %17473 = vst [vmem:[#allocation32_spill] sm:$0xff] %v13268_v61  ;;  %9057 = vmatprep.subr.mxu1 %v17474_v53  ;;  %v13303_v6 = vsub.f32 %v167_v48, %v13217_v62  ;;  %v17477_v11 = vand.u32 4294901760, %v13107_v27  ;;  %v4030_v19 = vand.u32 4294901760, %v13254_v0  ;;  %v17478_v21 = vand.u32 4294901760, %v13194_v31  ;;  %9033 = vmatpush3.msra.mxu0 %v13109_v34 }
 0x1c1   :  { %9058 = vmatpush3.msra.mxu1 %v17475_v41  ;;  %v4036_v53 = vsub.f32 %v13161_v49, %v17476_v22  ;;  %v13312_v4 = vand.u32 4294901760, %v149_v60  ;;  %v17479_v48 = vand.u32 4294901760, %v13123_v35  ;;  %v13318_v54 = vand.u32 4294901760, %v164_v26  ;;  %9034 = vmatprep.subr.mxu0 %v13163_v63 }
 0x1c2   :  { %9059 = vmatprep.subr.mxu1 %v17477_v11  ;;  %v4148_v41 = vsub.f32 %v13194_v31, %v17478_v21  ;;  %v13320_v33 = vand.u32 4294901760, %v148_v55  ;;  %v13324_v0 = vsub.f32 %v166_v15, %v13268_v61  ;;  %v13328_v11 = vsub.f32 %v150_v36, %v13280_v43  ;;  %9035 = vmatpush3.msra.mxu0 %v13144_v40 }
 0x1c3   :  { %9060 = vmatpush3.msra.mxu1 %v17479_v48  ;;  %v17480_v21 = vand.u32 4294901760, %v13228_v56  ;;  %v4037_v27 = vand.u32 4294901760, %v4036_v53  ;;  %v17481_v15 = vand.u32 4294901760, %v13200_v13  ;;  %v13341_v36 = vsub.f32 %v165_v51, %v13299_v30  ;;  %9036 = vmatprep.subr.mxu0 %v13188_v12 }
 0x1c4   :  { %9061 = vmatprep.subr.mxu1 %v4128_v39  ;;  %v13345_v48 = vsub.f32 %v149_v60, %v13312_v4  ;;  %v17482_v22 = vand.u32 4294901760, %v13261_v29  ;;  %9037 = vmatpush3.msra.mxu0 %v13180_v32  ;;  %v17484_v51 = vand.u32 4294901760, %v13274_v18  ;;  %v13360_v60 = vsub.f32 %v164_v26, %v13318_v54 }
 0x1c5   :  { %v4155_v35 = vsub.f32 %v13228_v56, %v17480_v21  ;;  %9062 = vmatpush3.msra.mxu1 %v4016_v25  ;;  %v4043_v63 = vsub.f32 %v13200_v13, %v17481_v15  ;;  %v4149_v21 = vand.u32 4294901760, %v4148_v41  ;;  %v13353_v15 = vsub.f32 %v148_v55, %v13320_v33  ;;  %9038 = vmatprep.subr.mxu0 %v13217_v62 }
 0x1c6   :  { %9063 = vmatprep.subr.mxu1 %v4135_v38  ;;  %v4162_v25 = vsub.f32 %v13261_v29, %v17482_v22  ;;  %v3956_v38 = vsub.f32 %v13274_v18, %v17484_v51  ;;  %17485 = vst [vmem:[#allocation30_spill] sm:$0xff] %v13360_v60  ;;  %v17486_v53 = vand.u32 4294901760, %v13239_v42  ;;  %v17487_v55 = vand.u32 4294901760, %v13291_v16  ;;  %9039 = vmatpush3.msra.mxu0 %v13190_v46 }
 0x1c7   :  { %9064 = vmatpush3.msra.mxu1 %v4023_v59  ;;  %17483 = vst [vmem:[#allocation21_spill] sm:$0xff] %v13353_v15  ;;  %v4156_v22 = vand.u32 4294901760, %v4155_v35  ;;  %v4044_v51 = vand.u32 4294901760, %v4043_v63  ;;  %v17488_v26 = vand.u32 4294901760, %v13303_v6  ;;  %9040 = vmatprep.subr.mxu0 %v13268_v61  ;;  %v17490_v63 = vand.u32 4294901760, %v13324_v0 }
 0x1c8   :  { %9065 = vmatprep.subr.mxu1 %v4142_v20  ;;  %v4050_v59 = vsub.f32 %v13239_v42, %v17486_v53  ;;  %v3962_v39 = vsub.f32 %v13291_v16, %v17487_v55  ;;  %v4163_v35 = vand.u32 4294901760, %v4162_v25  ;;  %v17489_v53 = vand.u32 4294901760, %v13249_v37  ;;  %9041 = vmatpush3.msra.mxu0 %v13280_v43 }
 0x1c9   :  { %9066 = vmatpush3.msra.mxu1 %v4030_v19  ;;  %v4169_v41 = vsub.f32 %v13303_v6, %v17488_v26  ;;  %v3957_v19 = vand.u32 4294901760, %v3956_v38  ;;  %v4176_v26 = vsub.f32 %v13324_v0, %v17490_v63  ;;  %v16698_v20 = vand.u32 4294901760, %v13360_v60  ;;  %9042 = vmatprep.subr.mxu0 %v13299_v30 }
 0x1ca   :  { %9067 = vmatprep.subr.mxu1 %v4149_v21  ;;  %v4057_v55 = vsub.f32 %v13249_v37, %v17489_v53  ;;  %v4051_v21 = vand.u32 4294901760, %v4050_v59  ;;  %v3963_v25 = vand.u32 4294901760, %v3962_v39  ;;  %v17491_v61 = vand.u32 4294901760, %v13328_v11  ;;  %9043 = vmatpush3.msra.mxu0 %v13312_v4 }
 0x1cb   :  { %9068 = vmatpush3.msra.mxu1 %v4037_v27  ;;  %v16697_v32 = vand.u32 4294901760, %v13353_v15  ;;  %v4170_v27 = vand.u32 4294901760, %v4169_v41  ;;  %v17492_v38 = vand.u32 4294901760, %v13341_v36  ;;  %9044 = vmatprep.subr.mxu0 %v13318_v54  ;;  %v17493_v39 = vand.u32 4294901760, %v13345_v48 }
 0x1cc   :  { %9069 = vmatprep.subr.mxu1 %v4156_v22  ;;  %v4064_v53 = vsub.f32 %v13328_v11, %v17491_v61  ;;  %v4058_v22 = vand.u32 4294901760, %v4057_v55  ;;  %9045 = vmatpush3.msra.mxu0 %v13320_v33  ;;  %v4177_v61 = vand.u32 4294901760, %v4176_v26  ;;  %v4190_v41 = vsub.f32 %v13360_v60, %v16698_v20  ;;  %v17511_v20 = vld [vmem:[#allocation17_spill] sm:$0xff] }
 0x1cd   :  { %9070 = vmatpush3.msra.mxu1 %v4044_v51  ;;  %v4183_v63 = vsub.f32 %v13341_v36, %v17492_v38  ;;  %v4071_v59 = vsub.f32 %v13345_v48, %v17493_v39  ;;  %3958 = vmatprep.mubr.f32.mxu0 %v3957_v19  ;;  %v17497_v38 = vld [vmem:[#allocation4_spill] sm:$0xff] }
 0x1ce   :  { %9071 = vmatprep.subr.mxu1 %v4163_v35  ;;  %3964 = vmatmul.mubr.f32.vlgmr.msra.gmra.mxu0 %v3963_v25  ;;  %v4065_v51 = vand.u32 4294901760, %v4064_v53  ;;  %v4078_v35 = vsub.f32 %v13353_v15, %v16697_v32  ;;  %v4191_v26 = vand.u32 4294901760, %v4190_v41  ;;  %v17494_v25 = vld [vmem:[#allocation5_spill] sm:$0xff]  ;;  %v17500_v39 = vld [vmem:[#allocation8_spill] sm:$0xff]  ;;  %v17510_v32 = vld [vmem:[#allocation19_spill] sm:$0xff] }
 0x1cf   :  { %9072 = vmatpush3.msra.mxu1 %v4051_v21  ;;  %9084 = vmatprep.subr.mxu0 %v12856_v3  ;;  %v4184_v55 = vand.u32 4294901760, %v4183_v63  ;;  %v4072_v19 = vand.u32 4294901760, %v4071_v59  ;;  %v17495_v53 = vld [vmem:[#allocation9_spill] sm:$0xff]  ;;  %v17498_v63 = vld [vmem:[#allocation16_spill] sm:$0xff] }
 0x1d0   :  { %9073 = vmatprep.subr.mxu1 %v4170_v27  ;;  %9085 = vmatpush3.msra.mxu0 %v12868_v50  ;;  %v4079_v21 = vand.u32 4294901760, %v4078_v35  ;;  %v17496_v27 = vld [vmem:[#allocation6_spill] sm:$0xff]  ;;  %v17501_v59 = vld [vmem:[#allocation20_spill] sm:$0xff]  ;;  %v17503_v41 = vld [vmem:[#allocation25_spill] sm:$0xff] }
 0x1d1   :  { %9074 = vmatpush3.msra.mxu1 %v4058_v22  ;;  %9086 = vmatprep.subr.mxu0 %v12887_v8  ;;  %v17499_v22 = vld [vmem:[#allocation7_spill] sm:$0xff]  ;;  %v17505_v35 = vld [vmem:[#allocation18_spill] sm:$0xff] }
 0x1d2   :  { %9075 = vmatprep.subr.mxu1 %v4177_v61  ;;  %9087 = vmatpush3.msra.mxu0 %v12893_v24  ;;  %v17502_v61 = vld [vmem:[#allocation27_spill] sm:$0xff] }
 0x1d3   :  { %9076 = vmatpush3.msra.mxu1 %v4065_v51  ;;  %9088 = vmatprep.subr.mxu0 %v12918_v1  ;;  %v17504_v51 = vld [vmem:[#allocation3_spill] sm:$0xff] }
 0x1d4   :  { %9077 = vmatprep.subr.mxu1 %v4184_v55  ;;  %9089 = vmatpush3.msra.mxu0 %v12924_v17  ;;  %v17506_v55 = vld [vmem:[#allocation14_spill] sm:$0xff] }
 0x1d5   :  { %9078 = vmatpush3.msra.mxu1 %v4072_v19  ;;  %9090 = vmatprep.subr.mxu0 %v12939_v2  ;;  %v17507_v19 = vld [vmem:[#allocation13_spill] sm:$0xff] }
 0x1d6   :  { %9079 = vmatprep.subr.mxu1 %v4191_v26  ;;  %9091 = vmatpush3.msra.mxu0 %v12945_v58  ;;  %v17508_v26 = vld [vmem:[#allocation10_spill] sm:$0xff] }
 0x1d7   :  { %9080 = vmatpush3.msra.mxu1 %v4079_v21  ;;  %9092 = vmatprep.subr.mxu0 %v12968_v5  ;;  %v17509_v21 = vld [vmem:[#allocation12_spill] sm:$0xff] }
 0x1d8   :  { %4196 = vmatmul.mubr.f32.vlgmr.msra.gmra.mxu1 %v13231_v44  ;;  %9119 = vmatprep.subr.mxu1 %v12823_v7  ;;  %v17512_v44 = vld [vmem:[#allocation28_spill] sm:$0xff] }
 0x1d9   :  { %9093 = vmatpush3.msra.mxu0 %v12953_v10  ;;  %9120 = vmatpush3.msra.mxu1 %v12837_v45 }
 0x1da   :  { %9094 = vmatprep.subr.mxu0 %v12996_v23  ;;  %9121 = vmatprep.subr.mxu1 %v12842_v57 }
 0x1db   :  { %9095 = vmatpush3.msra.mxu0 %v13002_v28  ;;  %9122 = vmatpush3.msra.mxu1 %v12850_v9 }
 0x1dc   :  { %9096 = vmatprep.subr.mxu0 %v13068_v14  ;;  %9123 = vmatprep.subr.mxu1 %v12870_v52 }
 0x1dd   :  { %9097 = vmatpush3.msra.mxu0 %v17494_v25  ;;  %9124 = vmatpush3.msra.mxu1 %v17495_v53 }
 0x1de   :  { %9098 = vmatprep.subr.mxu0 %v17496_v27  ;;  %9125 = vmatprep.subr.mxu1 %v17497_v38 }
 0x1df   :  { %9099 = vmatpush3.msra.mxu0 %v17498_v63  ;;  %9126 = vmatpush3.msra.mxu1 %v17499_v22 }
 0x1e0   :  { %9100 = vmatprep.subr.mxu0 %v17500_v39  ;;  %9127 = vmatprep.subr.mxu1 %v17501_v59 }
 0x1e1   :  { %9101 = vmatpush3.msra.mxu0 %v17502_v61  ;;  %9128 = vmatpush3.msra.mxu1 %v17503_v41 }
 0x1e2   :  { %9102 = vmatprep.subr.mxu0 %v13194_v31  ;;  %9129 = vmatprep.subr.mxu1 %v17504_v51 }
 0x1e3   :  { %9103 = vmatpush3.msra.mxu0 %v13161_v49  ;;  %9130 = vmatpush3.msra.mxu1 %v17505_v35 }
 0x1e4   :  { %9104 = vmatprep.subr.mxu0 %v13228_v56  ;;  %9131 = vmatprep.subr.mxu1 %v17506_v55 }
 0x1e5   :  { %9105 = vmatpush3.msra.mxu0 %v13200_v13  ;;  %9132 = vmatpush3.msra.mxu1 %v17507_v19 }
 0x1e6   :  { %9106 = vmatprep.subr.mxu0 %v13261_v29  ;;  %9133 = vmatprep.subr.mxu1 %v17508_v26 }
 0x1e7   :  { %9107 = vmatpush3.msra.mxu0 %v13239_v42  ;;  %9134 = vmatpush3.msra.mxu1 %v17509_v21 }
 0x1e8   :  { %9108 = vmatprep.subr.mxu0 %v13303_v6  ;;  %9135 = vmatprep.subr.mxu1 %v17510_v32 }
 0x1e9   :  { %9109 = vmatpush3.msra.mxu0 %v13249_v37  ;;  %9136 = vmatpush3.msra.mxu1 %v17511_v20 }
 0x1ea   :  { %9110 = vmatprep.subr.mxu0 %v13324_v0  ;;  %9137 = vmatprep.subr.mxu1 %v17512_v44  ;;  %v17514_v44 = vld [vmem:[#allocation33_spill] sm:$0xff] }
 0x1eb   :  { %9111 = vmatpush3.msra.mxu0 %v13328_v11  ;;  %9138 = vmatpush3.msra.mxu1 %v13109_v34 }
 0x1ec   :  { %9112 = vmatprep.subr.mxu0 %v13341_v36  ;;  %9139 = vmatprep.subr.mxu1 %v17513_v47  ;;  %v17515_v47 = vand.u32 4294901760, %v12856_v3  ;;  %v17520_v3 = vand.u32 4294901760, %v12918_v1  ;;  %v17525_v1 = vand.u32 4294901760, %v13291_v16 }
 0x1ed   :  { %9113 = vmatpush3.msra.mxu0 %v13345_v48  ;;  %9140 = vmatpush3.msra.mxu1 %v13144_v40  ;;  %v17516_v40 = vand.u32 4294901760, %v12868_v50  ;;  %v17521_v50 = vand.u32 4294901760, %v12924_v17  ;;  %v17527_v17 = vand.u32 4294901760, %v12953_v10 }
 0x1ee   :  { %9114 = vmatprep.subr.mxu0 %v13360_v60  ;;  %9141 = vmatprep.subr.mxu1 %v13188_v12  ;;  %v17517_v60 = vld [vmem:[#allocation32_spill] sm:$0xff] }
 0x1ef   :  { %9115 = vmatpush3.msra.mxu0 %v13353_v15  ;;  %4331 = vmatprep.mubr.f32.mxu0 %v13274_v18  ;;  %v17518_v15 = vand.u32 4294901760, %v12887_v8  ;;  %v17522_v8 = vand.u32 4294901760, %v12939_v2  ;;  %v17528_v2 = vand.u32 4294901760, %v12996_v23  ;;  %v194_v23 = vld [vmem:[%s16357_s1 + $0x570] sm:$0xff] }
 0x1f0   :  { %9142 = vmatpush3.msra.mxu1 %v17514_v44  ;;  %4334 = vmatmul.mubr.f32.vlgmr.msra.gmra.mxu0 %v13291_v16  ;;  %v17519_v44 = vand.u32 4294901760, %v12893_v24  ;;  %v17523_v24 = vand.u32 4294901760, %v13274_v18  ;;  %v17529_v16 = vand.u32 4294901760, %v13002_v28  ;;  %v17534_v28 = vand.u32 4294901760, %v17500_v39 }
 0x1f1   :  { %9143 = vmatprep.subr.mxu1 %v13217_v62  ;;  %9154 = vmatprep.subr.mxu0 %v17515_v47  ;;  %v209_v47 = vld [vmem:[%s16357_s1 + $0x5e8] sm:$0xff] }
 0x1f2   :  { %9144 = vmatpush3.msra.mxu1 %v13190_v46  ;;  %9155 = vmatpush3.msra.mxu0 %v17516_v40  ;;  %v17526_v40 = vand.u32 4294901760, %v12968_v5  ;;  %v17532_v5 = vand.u32 4294901760, %v17496_v27  ;;  %v13561_v39 = vand.u32 4294901760, %v209_v47 }
 0x1f3   :  { %9145 = vmatprep.subr.mxu1 %v17517_v60  ;;  %9156 = vmatprep.subr.mxu0 %v17518_v15  ;;  %v17535_v15 = vand.u32 4294901760, %v17502_v61  ;;  %v192_v61 = vld [vmem:[%s16357_s1 + $0x560] sm:$0xff] }
 0x1f4   :  { %9146 = vmatpush3.msra.mxu1 %v13280_v43  ;;  %9157 = vmatpush3.msra.mxu0 %v17519_v44  ;;  %v17524_v44 = vand.u32 4294901760, %v12945_v58  ;;  %v211_v58 = vld [vmem:[%s16357_s1 + $0x5f8] sm:$0xff]  ;;  %17538 = vst [vmem:[#allocation23_spill] sm:$0xff] %v13561_v39 }
 0x1f5   :  { %9147 = vmatprep.subr.mxu1 %v13299_v30  ;;  %9158 = vmatprep.subr.mxu0 %v17520_v3  ;;  %v13517_v10 = vand.u32 4294901760, %v211_v58  ;;  %v17542_v3 = vand.u32 4294901760, %v13261_v29  ;;  %v206_v29 = vld [vmem:[%s16357_s1 + $0x5d0] sm:$0xff] }
 0x1f6   :  { %9148 = vmatpush3.msra.mxu1 %v13312_v4  ;;  %9159 = vmatpush3.msra.mxu0 %v17521_v50 }
 0x1f7   :  { %9149 = vmatprep.subr.mxu1 %v13318_v54  ;;  %9160 = vmatprep.subr.mxu0 %v17522_v8  ;;  %v17544_v8 = vand.u32 4294901760, %v13239_v42 }
 0x1f8   :  { %9150 = vmatpush3.msra.mxu1 %v13320_v33  ;;  %4438 = vmatprep.mubr.f32.mxu1 %v17523_v24  ;;  %v13599_v24 = vand.u32 4294901760, %v192_v61 }
 0x1f9   :  { %9161 = vmatpush3.msra.mxu0 %v17524_v44  ;;  %4442 = vmatmul.mubr.f32.vlgmr.msra.gmra.mxu1 %v17525_v1  ;;  %v17546_v44 = vand.u32 4294901760, %v13303_v6 }
 0x1fa   :  { %9162 = vmatprep.subr.mxu0 %v17526_v40  ;;  %9189 = vmatprep.subr.mxu1 %v12823_v7  ;;  %v195_v7 = vld [vmem:[%s16357_s1 + $0x578] sm:$0xff]  ;;  %17545 = vst [vmem:[#allocation9_spill] sm:$0xff] %v13599_v24  ;;  %v17549_v40 = vand.u32 4294901760, %v13249_v37 }
 0x1fb   :  { %9163 = vmatpush3.msra.mxu0 %v17527_v17  ;;  %9190 = vmatpush3.msra.mxu1 %v12837_v45  ;;  %v17530_v45 = vand.u32 4294901760, %v13068_v14  ;;  %v13525_v14 = vand.u32 4294901760, %v195_v7 }
 0x1fc   :  { %9164 = vmatprep.subr.mxu0 %v17528_v2  ;;  %9191 = vmatprep.subr.mxu1 %v12842_v57  ;;  %v17531_v57 = vand.u32 4294901760, %v17494_v25  ;;  %v13545_v25 = vsub.f32 %v211_v58, %v13517_v10  ;;  %v17550_v2 = vand.u32 4294901760, %v13324_v0  ;;  %v17551_v58 = vld [vmem:[#allocation28_spill] sm:$0xff]  ;;  %v13647_v0 = vsub.f32 %v192_v61, %v13599_v24 }
 0x1fd   :  { %9165 = vmatpush3.msra.mxu0 %v17529_v16  ;;  %9192 = vmatpush3.msra.mxu1 %v12850_v9  ;;  %v210_v9 = vld [vmem:[%s16357_s1 + $0x5f0] sm:$0xff]  ;;  %v13551_v27 = vsub.f32 %v195_v7, %v13525_v14 }
 0x1fe   :  { %9166 = vmatprep.subr.mxu0 %v17530_v45  ;;  %9193 = vmatprep.subr.mxu1 %v12870_v52  ;;  %v17533_v52 = vand.u32 4294901760, %v17498_v63  ;;  %v13536_v18 = vand.u32 4294901760, %v210_v9  ;;  %v193_v63 = vld [vmem:[%s16357_s1 + $0x568] sm:$0xff]  ;;  %v17553_v45 = vand.u32 4294901760, %v13328_v11 }
 0x1ff   :  { %9167 = vmatpush3.msra.mxu0 %v17531_v57  ;;  %9194 = vmatpush3.msra.mxu1 %v17495_v53  ;;  %v17536_v53 = vand.u32 4294901760, %v13194_v31  ;;  %v208_v31 = vld [vmem:[%s16357_s1 + $0x5e0] sm:$0xff]  ;;  %v16710_v50 = vand.u32 4294901760, %v13551_v27 }
 0x200   :  { %9168 = vmatprep.subr.mxu0 %v17532_v5  ;;  %9195 = vmatprep.subr.mxu1 %v17497_v38  ;;  %v13553_v38 = vand.u32 4294901760, %v194_v23  ;;  %v17555_v5 = vld [vmem:[#allocation31_spill] sm:$0xff] }
 0x201   :  { %9169 = vmatpush3.msra.mxu0 %v17533_v52  ;;  %9196 = vmatpush3.msra.mxu1 %v17499_v22  ;;  %v17537_v22 = vand.u32 4294901760, %v13161_v49  ;;  %v13573_v49 = vsub.f32 %v210_v9, %v13536_v18  ;;  %v13635_v37 = vsub.f32 %v13551_v27, %v16710_v50  ;;  %v17554_v9 = vand.u32 4294901760, %v13341_v36  ;;  %v189_v36 = vld [vmem:[%s16357_s1 + $0x548] sm:$0xff] }
 0x202   :  { %9170 = vmatprep.subr.mxu0 %v17534_v28  ;;  %9197 = vmatprep.subr.mxu1 %v17501_v59  ;;  %v17539_v59 = vand.u32 4294901760, %v13228_v56  ;;  %v207_v56 = vld [vmem:[%s16357_s1 + $0x5d8] sm:$0xff] }
 0x203   :  { %9171 = vmatpush3.msra.mxu0 %v17535_v15  ;;  %9198 = vmatpush3.msra.mxu1 %v17503_v41  ;;  %v17540_v41 = vand.u32 4294901760, %v13200_v13  ;;  %v13591_v13 = vsub.f32 %v194_v23, %v13553_v38  ;;  %v13610_v1 = vand.u32 4294901760, %v207_v56  ;;  %v17558_v15 = vld [vmem:[#allocation22_spill] sm:$0xff] }
 0x204   :  { %9172 = vmatprep.subr.mxu0 %v17536_v53  ;;  %9199 = vmatprep.subr.mxu1 %v17504_v51  ;;  %v13578_v51 = vand.u32 4294901760, %v193_v63  ;;  %v184_v53 = vld [vmem:[%s16357_s1 + $0x520] sm:$0xff] }
 0x205   :  { %9173 = vmatpush3.msra.mxu0 %v17537_v22  ;;  %9200 = vmatpush3.msra.mxu1 %v17505_v35  ;;  %v16712_v35 = vand.u32 4294901760, %v13545_v25  ;;  %17547 = vst [vmem:[#allocation6_spill] sm:$0xff] %v13610_v1  ;;  %v16708_v16 = vand.u32 4294901760, %v13591_v13  ;;  %v13670_v28 = vsub.f32 %v207_v56, %v13610_v1  ;;  %v17559_v22 = vld [vmem:[#allocation30_spill] sm:$0xff]  ;;  %v188_v56 = vld [vmem:[%s16357_s1 + $0x540] sm:$0xff] }
 0x206   :  { %9174 = vmatprep.subr.mxu0 %v17539_v59  ;;  %9201 = vmatprep.subr.mxu1 %v17506_v55  ;;  %17541 = vst [vmem:[#allocation29_spill] sm:$0xff] %v13578_v51  ;;  %v191_v55 = vld [vmem:[%s16357_s1 + $0x558] sm:$0xff]  ;;  %v13619_v17 = vsub.f32 %v193_v63, %v13578_v51 }
 0x207   :  { %9175 = vmatpush3.msra.mxu0 %v17540_v41  ;;  %9202 = vmatpush3.msra.mxu1 %v17507_v19  ;;  %v13593_v19 = vand.u32 4294901760, %v208_v31  ;;  %v13612_v42 = vand.u32 4294901760, %v191_v55  ;;  %v13624_v6 = vsub.f32 %v13545_v25, %v16712_v35  ;;  %v13684_v61 = vsub.f32 %v13591_v13, %v16708_v16 }
 0x208   :  { %9176 = vmatprep.subr.mxu0 %v17542_v3  ;;  %9203 = vmatprep.subr.mxu1 %v17508_v26  ;;  %v13605_v26 = vsub.f32 %v209_v47, %v13561_v39  ;;  %v17557_v47 = vand.u32 4294901760, %v13345_v48  ;;  %v16707_v63 = vand.u32 4294901760, %v13619_v17  ;;  %v204_v48 = vld [vmem:[%s16357_s1 + $0x5c0] sm:$0xff] }
 0x209   :  { %17543 = vst [vmem:[#allocation5_spill] sm:$0xff] %v13593_v19  ;;  %9177 = vmatpush3.msra.mxu0 %v17544_v8  ;;  %9204 = vmatpush3.msra.mxu1 %v17509_v21  ;;  %17548 = vst [vmem:[#allocation4_spill] sm:$0xff] %v13612_v42  ;;  %v16709_v21 = vand.u32 4294901760, %v13573_v49  ;;  %v13641_v7 = vsub.f32 %v208_v31, %v13593_v19  ;;  %v13654_v52 = vsub.f32 %v191_v55, %v13612_v42  ;;  %v17563_v8 = vld [vmem:[#allocation24_spill] sm:$0xff] }
 0x20a   :  { %9178 = vmatprep.subr.mxu0 %v17546_v44  ;;  %9205 = vmatprep.subr.mxu1 %v17510_v32  ;;  %v190_v32 = vld [vmem:[%s16357_s1 + $0x550] sm:$0xff]  ;;  %v16706_v57 = vand.u32 4294901760, %v13605_v26  ;;  %v17560_v31 = vand.u32 4294901760, %v17559_v22  ;;  %v17580_v59 = vand.u32 4294901760, %v13624_v6 }
 0x20b   :  { %9179 = vmatpush3.msra.mxu0 %v17549_v40  ;;  %9206 = vmatpush3.msra.mxu1 %v17511_v20  ;;  %v13637_v20 = vand.u32 4294901760, %v206_v29  ;;  %v13659_v11 = vsub.f32 %v13573_v49, %v16709_v21  ;;  %v13661_v23 = vand.u32 4294901760, %v190_v32  ;;  %v16711_v41 = vand.u32 4294901760, %v13641_v7 }
 0x20c   :  { %9180 = vmatprep.subr.mxu0 %v17550_v2  ;;  %9207 = vmatprep.subr.mxu1 %v17551_v58  ;;  %v13704_v40 = vsub.f32 %v13605_v26, %v16706_v57  ;;  %v13706_v2 = vand.u32 4294901760, %v189_v36  ;;  %v16713_v58 = vand.u32 4294901760, %v13647_v0  ;;  %v16715_v22 = vand.u32 4294901760, %v13654_v52 }
 0x20d   :  { %17552 = vst [vmem:[#allocation16_spill] sm:$0xff] %v13637_v20  ;;  %9181 = vmatpush3.msra.mxu0 %v17553_v45  ;;  %9208 = vmatpush3.msra.mxu1 %v13109_v34  ;;  %17556 = vst [vmem:[#allocation7_spill] sm:$0xff] %v13661_v23  ;;  %v205_v34 = vld [vmem:[%s16357_s1 + $0x5c8] sm:$0xff]  ;;  %v13694_v55 = vsub.f32 %v206_v29, %v13637_v20  ;;  %v203_v29 = vld [vmem:[%s16357_s1 + $0x5b8] sm:$0xff] }
 0x20e   :  { %9182 = vmatprep.subr.mxu0 %v17554_v9  ;;  %9209 = vmatprep.subr.mxu1 %v17555_v5  ;;  %v13699_v44 = vand.u32 4294901760, %v205_v34  ;;  %17565 = vst [vmem:[#allocation20_spill] sm:$0xff] %v13706_v2  ;;  %v17566_v45 = vld [vmem:[#allocation33_spill] sm:$0xff]  ;;  %v17567_v9 = vld [vmem:[#allocation11_spill] sm:$0xff]  ;;  %v13744_v16 = vand.u32 4294901760, %v203_v29  ;;  %v13756_v50 = vsub.f32 %v13647_v0, %v16713_v58  ;;  %v13776_v58 = vsub.f32 %v13654_v52, %v16715_v22  ;;  %v17575_v22 = vld [vmem:[#allocation26_spill] sm:$0xff] }
 0x20f   :  { %9183 = vmatpush3.msra.mxu0 %v17557_v47  ;;  %9210 = vmatpush3.msra.mxu1 %v17558_v15  ;;  %v13716_v47 = vsub.f32 %v190_v32, %v13661_v23  ;;  %v16714_v15 = vand.u32 4294901760, %v13670_v28  ;;  %v187_v32 = vld [vmem:[%s16357_s1 + $0x538] sm:$0xff]  ;;  %v16716_v21 = vand.u32 4294901760, %v13694_v55 }
 0x210   :  { %9184 = vmatprep.subr.mxu0 %v17560_v31  ;;  %9211 = vmatprep.subr.mxu1 %v13188_v12  ;;  %v17561_v12 = vld [vmem:[#allocation21_spill] sm:$0xff]  ;;  %17564 = vst [vmem:[#allocation8_spill] sm:$0xff] %v13699_v44  ;;  %v13725_v31 = vsub.f32 %v13619_v17, %v16707_v63  ;;  %v13742_v63 = vsub.f32 %v13641_v7, %v16711_v41  ;;  %17571 = vst [vmem:[#allocation3_spill] sm:$0xff] %v13744_v16 }
 0x211   :  { %v17562_v3 = vand.u32 4294901760, %v17561_v12  ;;  %4608 = vmatprep.mubr.f32.mxu0 %v17563_v8  ;;  %9212 = vmatpush3.msra.mxu1 %v17566_v45  ;;  %v13727_v12 = vand.u32 4294901760, %v204_v48  ;;  %v17570_v45 = vld [vmem:[#allocation15_spill] sm:$0xff]  ;;  %v186_v41 = vld [vmem:[%s16357_s1 + $0x530] sm:$0xff]  ;;  %v13762_v35 = vsub.f32 %v205_v34, %v13699_v44 }
 0x212   :  { %9213 = vmatprep.subr.mxu1 %v13217_v62  ;;  %v349_v57 = vcombine.high %v17570_v45, %v17570_v45  ;;  %v202_v34 = vld [vmem:[%s16357_s1 + $0x5b0] sm:$0xff]  ;;  %4712 = vmatprep.mubr.f32.mxu1 %v17563_v8 }
 0x213   :  { %9185 = vmatpush3.msra.mxu0 %v17562_v3  ;;  %17568 = vst [vmem:[#allocation27_spill] sm:$0xff] %v13727_v12  ;;  %v13729_v3 = vand.u32 4294901760, %v188_v56  ;;  %9214 = vmatpush3.msra.mxu1 %v13190_v46  ;;  %v13751_v46 = vsub.f32 %v189_v36, %v13706_v2  ;;  %v13771_v36 = vand.u32 4294901760, %v187_v32  ;;  %v13789_v62 = vsub.f32 %v204_v48, %v13727_v12  ;;  %v185_v48 = vld [vmem:[%s16357_s1 + $0x528] sm:$0xff] }
 0x214   :  { %4610 = vmatmul.mubr.f32.vlgmr.msra.gmra.mxu0 %v17567_v9  ;;  %9224 = vmatprep.subr.mxu0 %v13517_v10  ;;  %v13792_v5 = vrot.slane %v349_v57, %v17575_v22  ;;  %v13808_v57 = vsub.f32 %v203_v29, %v13744_v16  ;;  %v13840_v8 = vand.u32 4294901760, %v185_v48 }
 0x215   :  { %17569 = vst [vmem:[#allocation25_spill] sm:$0xff] %v13729_v3  ;;  %9225 = vmatpush3.msra.mxu0 %v13525_v14  ;;  %9215 = vmatprep.subr.mxu1 %v17517_v60  ;;  %17572 = vst [vmem:[#allocation18_spill] sm:$0xff] %v13751_v46  ;;  %v13769_v60 = vsub.f32 %v13670_v28, %v16714_v15  ;;  %v13786_v45 = vsub.f32 %v188_v56, %v13729_v3  ;;  %v13802_v15 = vand.u32 4294901760, %v186_v41 }
 0x216   :  { %9226 = vmatprep.subr.mxu0 %v13536_v18  ;;  %9216 = vmatpush3.msra.mxu1 %v13280_v43  ;;  %17573 = vst [vmem:[#allocation14_spill] sm:$0xff] %v13771_v36  ;;  %v16717_v43 = vand.u32 4294901760, %v13716_v47  ;;  %17576 = vst [vmem:[#allocation10_spill] sm:$0xff] %v13808_v57  ;;  %v13813_v56 = vand.u32 4294901760, %v202_v34  ;;  %v13824_v29 = vsub.f32 %v187_v32, %v13771_v36  ;;  %v200_v32 = vld [vmem:[%s16357_s1 + $0x5a0] sm:$0xff]  ;;  %v17584_v6 = vand.u32 4294901760, %v13751_v46 }
 0x217   :  { %9227 = vmatpush3.msra.mxu0 %v13553_v38  ;;  %9217 = vmatprep.subr.mxu1 %v13299_v30  ;;  %17574 = vst [vmem:[#allocation13_spill] sm:$0xff] %v13786_v45  ;;  %v13800_v30 = vsub.f32 %v13694_v55, %v16716_v21  ;;  %v201_v21 = vld [vmem:[%s16357_s1 + $0x5a8] sm:$0xff]  ;;  %17579 = vst [vmem:[#allocation17_spill] sm:$0xff] %v13840_v8 }
 0x218   :  { %9228 = vmatprep.subr.mxu0 %v13561_v39  ;;  %9218 = vmatpush3.msra.mxu1 %v13312_v4  ;;  %17577 = vst [vmem:[#allocation12_spill] sm:$0xff] %v13813_v56  ;;  %17578 = vst [vmem:[#allocation19_spill] sm:$0xff] %v13824_v29  ;;  %v13830_v22 = vsub.f32 %v13716_v47, %v16717_v43  ;;  %v17582_v4 = vand.u32 4294901760, %v13635_v37  ;;  %v17583_v43 = vand.u32 4294901760, %v13762_v35  ;;  %v17586_v37 = vand.u32 4294901760, %v13659_v11 }
 0x219   :  { %9229 = vmatpush3.msra.mxu0 %v13578_v51  ;;  %9219 = vmatprep.subr.mxu1 %v13318_v54  ;;  %v365_v54 = vcombine.high %v13792_v5, %v13792_v5  ;;  %v13893_v39 = vsub.f32 %v185_v48, %v13840_v8  ;;  %v17588_v11 = vand.u32 4294901760, %v13789_v62  ;;  %v17592_v48 = vand.u32 4294901760, %v13808_v57 }
 0x21a   :  { %9230 = vmatprep.subr.mxu0 %v13593_v19  ;;  %9220 = vmatpush3.msra.mxu1 %v13320_v33  ;;  %v183_v33 = vld [vmem:[%s16357_s1 + $0x518] sm:$0xff]  ;;  %v13856_v19 = vand.u32 4294901760, %v201_v21 }
 0x21b   :  { %9231 = vmatpush3.msra.mxu0 %v13599_v24  ;;  %4714 = vmatmul.mubr.f32.vlgmr.msra.gmra.mxu1 %v17567_v9  ;;  %v13854_v24 = vsub.f32 %v186_v41, %v13802_v15  ;;  %v13872_v41 = vand.u32 4294901760, %v184_v53  ;;  %v199_v9 = vld [vmem:[%s16357_s1 + $0x598] sm:$0xff]  ;;  %v13877_v51 = vand.u32 4294901760, %v183_v33 }
 0x21c   :  { %9232 = vmatprep.subr.mxu0 %v13610_v1  ;;  %9259 = vmatprep.subr.mxu1 %v17580_v59  ;;  %17581 = vst [vmem:[#allocation32_spill] sm:$0xff] %v13856_v19  ;;  %v13865_v1 = vsub.f32 %v13762_v35, %v17583_v43  ;;  %v13870_v59 = vsub.f32 %v13751_v46, %v17584_v6  ;;  %v4871_v43 = vand.u32 4294901760, %v13830_v22  ;;  %v17587_v46 = vand.u32 4294901760, %v13684_v61 }
 0x21d   :  { %9233 = vmatpush3.msra.mxu0 %v13612_v42  ;;  %9260 = vmatpush3.msra.mxu1 %v17582_v4  ;;  %17585 = vst [vmem:[#allocation28_spill] sm:$0xff] %v13872_v41  ;;  %v13883_v4 = vand.u32 4294901760, %v200_v32  ;;  %v13887_v42 = vsub.f32 %v202_v34, %v13813_v56  ;;  %v17589_v22 = vand.u32 4294901760, %v13786_v45  ;;  %v13905_v34 = vand.u32 4294901760, %v365_v54 }
 0x21e   :  { %9234 = vmatprep.subr.mxu0 %v13637_v20  ;;  %9261 = vmatprep.subr.mxu1 %v17586_v37  ;;  %v13898_v37 = vsub.f32 %v13789_v62, %v17588_v11  ;;  %v17591_v61 = vand.u32 4294901760, %v13704_v40  ;;  %v198_v11 = vld [vmem:[%s16357_s1 + $0x590] sm:$0xff]  ;;  %v13924_v20 = vand.u32 4294901760, %v13792_v5  ;;  %v17594_v40 = vand.u32 4294901760, %v13725_v31 }
 0x21f   :  { %9235 = vmatpush3.msra.mxu0 %v13661_v23  ;;  %9262 = vmatpush3.msra.mxu1 %v17587_v46  ;;  %v13903_v6 = vsub.f32 %v13786_v45, %v17589_v22  ;;  %17590 = vst [vmem:[#allocation31_spill] sm:$0xff] %v13905_v34  ;;  %v13910_v46 = vand.u32 4294901760, %v199_v9  ;;  %v13915_v23 = vsub.f32 %v13808_v57, %v17592_v48  ;;  %v4878_v48 = vand.u32 4294901760, %v13870_v59 }
 0x220   :  { %9236 = vmatprep.subr.mxu0 %v13699_v44  ;;  %9263 = vmatprep.subr.mxu1 %v17591_v61  ;;  %v13921_v22 = vsub.f32 %v201_v21, %v13856_v19  ;;  %17593 = vst [vmem:[#allocation22_spill] sm:$0xff] %v13924_v20  ;;  %v4990_v61 = vand.u32 4294901760, %v13865_v1  ;;  %v13932_v44 = vsub.f32 %v184_v53, %v13872_v41  ;;  %v182_v21 = vld [vmem:[%s16357_s1 + $0x510] sm:$0xff]  ;;  %v17596_v31 = vand.u32 4294901760, %v13824_v29 }
 0x221   :  { %9237 = vmatpush3.msra.mxu0 %v13706_v2  ;;  %9264 = vmatpush3.msra.mxu1 %v17594_v40  ;;  %v13935_v57 = vsub.f32 %v183_v33, %v13877_v51  ;;  %v17595_v2 = vand.u32 4294901760, %v13742_v63  ;;  %v197_v33 = vld [vmem:[%s16357_s1 + $0x588] sm:$0xff]  ;;  %v13957_v63 = vsub.f32 %v200_v32, %v13883_v4  ;;  %v4885_v59 = vand.u32 4294901760, %v13903_v6  ;;  %v196_v6 = vld [vmem:[%s16357_s1 + $0x580] sm:$0xff] }
 0x222   :  { %9238 = vmatprep.subr.mxu0 %v13727_v12  ;;  %v13946_v1 = vsub.f32 %v13824_v29, %v17596_v31  ;;  %v181_v40 = vld [vmem:[%s16357_s1 + $0x508] sm:$0xff]  ;;  %v4997_v31 = vand.u32 4294901760, %v13898_v37  ;;  %v13964_v53 = vand.u32 4294901760, %v198_v11  ;;  %v13967_v12 = vsub.f32 %v365_v54, %v13905_v34  ;;  %v180_v54 = vld [vmem:[%s16357_s1 + $0x500] sm:$0xff]  ;;  %5056 = vmatprep.mubr.f32.mxu1 %v13905_v34 }
 0x223   :  { %9265 = vmatprep.subr.mxu1 %v17595_v2  ;;  %9239 = vmatpush3.msra.mxu0 %v13729_v3  ;;  %v17597_v2 = vand.u32 4294901760, %v13756_v50  ;;  %v17599_v29 = vand.u32 4294901760, %v13769_v60  ;;  %v5004_v32 = vand.u32 4294901760, %v13915_v23  ;;  %v13973_v3 = vand.u32 4294901760, %v182_v21  ;;  %v17637_v34 = vld [vmem:[#allocation32_spill] sm:$0xff] }
 0x224   :  { %17598 = vst [vmem:[#allocation30_spill] sm:$0xff] %v13964_v53  ;;  %9240 = vmatprep.subr.mxu0 %v13744_v16  ;;  %v13984_v37 = vsub.f32 %v13792_v5, %v13924_v20  ;;  %v17600_v23 = vand.u32 4294901760, %v13776_v58  ;;  %v13989_v60 = vand.u32 4294901760, %v197_v33  ;;  %v13995_v50 = vsub.f32 %v199_v9, %v13910_v46 }
 0x225   :  { %9266 = vmatpush3.msra.mxu1 %v17597_v2  ;;  %9241 = vmatpush3.msra.mxu0 %v13771_v36  ;;  %v17601_v16 = vand.u32 4294901760, %v13800_v30  ;;  %v4892_v5 = vand.u32 4294901760, %v13946_v1  ;;  %v17602_v36 = vand.u32 4294901760, %v13887_v42  ;;  %v14009_v9 = vand.u32 4294901760, %v196_v6 }
 0x226   :  { %9267 = vmatprep.subr.mxu1 %v17599_v29  ;;  %v13991_v29 = vand.u32 4294901760, %v181_v40  ;;  %9242 = vmatprep.subr.mxu0 %v13813_v56  ;;  %v14011_v56 = vand.u32 4294901760, %v180_v54  ;;  %v14015_v30 = vsub.f32 %v198_v11, %v13964_v53  ;;  %v17604_v1 = vand.u32 4294901760, %v13921_v22 }
 0x227   :  { %9268 = vmatpush3.msra.mxu1 %v17600_v23  ;;  %v5010_v58 = vsub.f32 %v13887_v42, %v17602_v36  ;;  %v17603_v23 = vand.u32 4294901760, %v13854_v24  ;;  %9243 = vmatpush3.msra.mxu0 %v13802_v15  ;;  %v14019_v36 = vsub.f32 %v182_v21, %v13973_v3 }
 0x228   :  { %9269 = vmatprep.subr.mxu1 %v17601_v16  ;;  %9244 = vmatprep.subr.mxu0 %v13856_v19  ;;  %v14028_v11 = vsub.f32 %v181_v40, %v13991_v29  ;;  %v17605_v16 = vand.u32 4294901760, %v13893_v39  ;;  %v14035_v19 = vsub.f32 %v197_v33, %v13989_v60  ;;  %v17608_v33 = vand.u32 4294901760, %v13967_v12 }
 0x229   :  { %v4898_v45 = vsub.f32 %v13854_v24, %v17603_v23  ;;  %9270 = vmatpush3.msra.mxu1 %v4871_v43  ;;  %v5017_v23 = vsub.f32 %v13921_v22, %v17604_v1  ;;  %9245 = vmatpush3.msra.mxu0 %v13840_v8  ;;  %v5011_v1 = vand.u32 4294901760, %v5010_v58  ;;  %v17606_v43 = vand.u32 4294901760, %v13957_v63 }
 0x22a   :  { %9271 = vmatprep.subr.mxu1 %v4990_v61  ;;  %v4905_v61 = vsub.f32 %v13893_v39, %v17605_v16  ;;  %9246 = vmatprep.subr.mxu0 %v13883_v4  ;;  %v14044_v16 = vsub.f32 %v180_v54, %v14011_v56  ;;  %v4818_v21 = vsub.f32 %v13967_v12, %v17608_v33  ;;  %v17611_v54 = vand.u32 4294901760, %v13984_v37 }
 0x22b   :  { %9272 = vmatpush3.msra.mxu1 %v4878_v48  ;;  %v4899_v2 = vand.u32 4294901760, %v4898_v45  ;;  %v5024_v48 = vsub.f32 %v13957_v63, %v17606_v43  ;;  %9247 = vmatpush3.msra.mxu0 %v13872_v41  ;;  %v14051_v45 = vsub.f32 %v196_v6, %v14009_v9  ;;  %v5018_v58 = vand.u32 4294901760, %v5017_v23 }
 0x22c   :  { %9273 = vmatprep.subr.mxu1 %v4997_v31  ;;  %17607 = vst [vmem:[#allocation21_spill] sm:$0xff] %v14044_v16  ;;  %9248 = vmatprep.subr.mxu0 %v13910_v46  ;;  %v17610_v43 = vand.u32 4294901760, %v13932_v44  ;;  %v4824_v40 = vsub.f32 %v13984_v37, %v17611_v54  ;;  %v4906_v33 = vand.u32 4294901760, %v4905_v61  ;;  %v17612_v6 = vand.u32 4294901760, %v13995_v50 }
 0x22d   :  { %9274 = vmatpush3.msra.mxu1 %v4885_v59  ;;  %17609 = vst [vmem:[#allocation24_spill] sm:$0xff] %v14051_v45  ;;  %9249 = vmatpush3.msra.mxu0 %v13877_v51  ;;  %v5025_v23 = vand.u32 4294901760, %v5024_v48  ;;  %v17614_v61 = vand.u32 4294901760, %v14015_v30  ;;  %v16762_v41 = vand.u32 4294901760, %v14044_v16 }
 0x22e   :  { %9275 = vmatprep.subr.mxu1 %v5004_v32  ;;  %v4912_v59 = vsub.f32 %v13932_v44, %v17610_v43  ;;  %v5031_v31 = vsub.f32 %v13995_v50, %v17612_v6  ;;  %9250 = vmatprep.subr.mxu0 %v13964_v53  ;;  %v17613_v43 = vand.u32 4294901760, %v13935_v57  ;;  %v16763_v32 = vand.u32 4294901760, %v14051_v45 }
 0x22f   :  { %9276 = vmatpush3.msra.mxu1 %v4892_v5  ;;  %9251 = vmatpush3.msra.mxu0 %v13973_v3  ;;  %v4819_v5 = vand.u32 4294901760, %v4818_v21  ;;  %v5038_v6 = vsub.f32 %v14015_v30, %v17614_v61  ;;  %v4825_v48 = vand.u32 4294901760, %v4824_v40  ;;  %v17615_v53 = vand.u32 4294901760, %v14019_v36 }
 0x230   :  { %9277 = vmatprep.subr.mxu1 %v5011_v1  ;;  %v4919_v54 = vsub.f32 %v13935_v57, %v17613_v43  ;;  %9252 = vmatprep.subr.mxu0 %v13989_v60  ;;  %v4913_v1 = vand.u32 4294901760, %v4912_v59  ;;  %v17616_v21 = vand.u32 4294901760, %v14035_v19  ;;  %v17617_v40 = vand.u32 4294901760, %v14028_v11 }
 0x231   :  { %9278 = vmatpush3.msra.mxu1 %v4899_v2  ;;  %v4926_v43 = vsub.f32 %v14019_v36, %v17615_v53  ;;  %9253 = vmatpush3.msra.mxu0 %v13991_v29  ;;  %v5032_v2 = vand.u32 4294901760, %v5031_v31  ;;  %v5039_v53 = vand.u32 4294901760, %v5038_v6  ;;  %v5052_v31 = vsub.f32 %v14051_v45, %v16763_v32  ;;  %v17635_v32 = vld [vmem:[#allocation14_spill] sm:$0xff] }
 0x232   :  { %9279 = vmatprep.subr.mxu1 %v5018_v58  ;;  %v5045_v61 = vsub.f32 %v14035_v19, %v17616_v21  ;;  %9254 = vmatprep.subr.mxu0 %v14009_v9  ;;  %v4920_v58 = vand.u32 4294901760, %v4919_v54  ;;  %v4933_v59 = vsub.f32 %v14028_v11, %v17617_v40  ;;  %v17621_v21 = vld [vmem:[#allocation5_spill] sm:$0xff]  ;;  %v17624_v40 = vld [vmem:[#allocation10_spill] sm:$0xff] }
 0x233   :  { %9280 = vmatpush3.msra.mxu1 %v4906_v33  ;;  %9255 = vmatpush3.msra.mxu0 %v14011_v56  ;;  %v4927_v33 = vand.u32 4294901760, %v4926_v43  ;;  %v5053_v6 = vand.u32 4294901760, %v5052_v31  ;;  %v17619_v43 = vld [vmem:[#allocation18_spill] sm:$0xff]  ;;  %v17627_v31 = vld [vmem:[#allocation4_spill] sm:$0xff] }
 0x234   :  { %9281 = vmatprep.subr.mxu1 %v5025_v23  ;;  %4820 = vmatprep.mubr.f32.mxu0 %v4819_v5  ;;  %v4940_v23 = vsub.f32 %v14044_v16, %v16762_v41  ;;  %v5046_v54 = vand.u32 4294901760, %v5045_v61  ;;  %v4934_v5 = vand.u32 4294901760, %v4933_v59  ;;  %v17622_v61 = vld [vmem:[#allocation13_spill] sm:$0xff]  ;;  %v17625_v59 = vld [vmem:[#allocation6_spill] sm:$0xff]  ;;  %v17634_v41 = vld [vmem:[#allocation3_spill] sm:$0xff] }
 0x235   :  { %9282 = vmatpush3.msra.mxu1 %v4913_v1  ;;  %4826 = vmatmul.mubr.f32.vlgmr.msra.gmra.mxu0 %v4825_v48  ;;  %v17618_v48 = vld [vmem:[#allocation23_spill] sm:$0xff] }
 0x236   :  { %9283 = vmatprep.subr.mxu1 %v5032_v2  ;;  %9294 = vmatprep.subr.mxu0 %v13545_v25  ;;  %v4941_v1 = vand.u32 4294901760, %v4940_v23  ;;  %v17620_v2 = vld [vmem:[#allocation29_spill] sm:$0xff]  ;;  %v17629_v23 = vld [vmem:[#allocation7_spill] sm:$0xff] }
 0x237   :  { %9284 = vmatpush3.msra.mxu1 %v4920_v58  ;;  %9295 = vmatpush3.msra.mxu0 %v13551_v27  ;;  %v17623_v58 = vld [vmem:[#allocation9_spill] sm:$0xff] }
 0x238   :  { %9285 = vmatprep.subr.mxu1 %v5039_v53  ;;  %9296 = vmatprep.subr.mxu0 %v13573_v49  ;;  %v17626_v53 = vld [vmem:[#allocation19_spill] sm:$0xff] }
 0x239   :  { %9286 = vmatpush3.msra.mxu1 %v4927_v33  ;;  %9297 = vmatpush3.msra.mxu0 %v13591_v13  ;;  %v17628_v33 = vld [vmem:[#allocation16_spill] sm:$0xff] }
 0x23a   :  { %9287 = vmatprep.subr.mxu1 %v5046_v54  ;;  %9298 = vmatprep.subr.mxu0 %v13605_v26  ;;  %v17630_v54 = vld [vmem:[#allocation8_spill] sm:$0xff] }
 0x23b   :  { %9288 = vmatpush3.msra.mxu1 %v4934_v5  ;;  %9299 = vmatpush3.msra.mxu0 %v13619_v17  ;;  %v17631_v5 = vld [vmem:[#allocation20_spill] sm:$0xff] }
 0x23c   :  { %9289 = vmatprep.subr.mxu1 %v5053_v6  ;;  %9300 = vmatprep.subr.mxu0 %v13641_v7  ;;  %v17632_v6 = vld [vmem:[#allocation27_spill] sm:$0xff] }
 0x23d   :  { %9290 = vmatpush3.msra.mxu1 %v4941_v1  ;;  %9301 = vmatpush3.msra.mxu0 %v13647_v0  ;;  %v17633_v1 = vld [vmem:[#allocation25_spill] sm:$0xff] }
 0x23e   :  { %5058 = vmatmul.mubr.f32.vlgmr.msra.gmra.mxu1 %v13924_v20  ;;  %9302 = vmatprep.subr.mxu0 %v13670_v28  ;;  %v17636_v20 = vld [vmem:[#allocation12_spill] sm:$0xff] }
 0x23f   :  { %9329 = vmatprep.subr.mxu1 %v13517_v10  ;;  %9303 = vmatpush3.msra.mxu0 %v13654_v52 }
 0x240   :  { %9330 = vmatpush3.msra.mxu1 %v13525_v14  ;;  %9304 = vmatprep.subr.mxu0 %v13694_v55 }
 0x241   :  { %9331 = vmatprep.subr.mxu1 %v13536_v18  ;;  %9305 = vmatpush3.msra.mxu0 %v13716_v47 }
 0x242   :  { %9332 = vmatpush3.msra.mxu1 %v13553_v38  ;;  %9306 = vmatprep.subr.mxu0 %v13762_v35 }
 0x243   :  { %9333 = vmatprep.subr.mxu1 %v17618_v48  ;;  %9307 = vmatpush3.msra.mxu0 %v17619_v43 }
 0x244   :  { %9334 = vmatpush3.msra.mxu1 %v17620_v2  ;;  %9308 = vmatprep.subr.mxu0 %v13789_v62 }
 0x245   :  { %9335 = vmatprep.subr.mxu1 %v17621_v21  ;;  %9309 = vmatpush3.msra.mxu0 %v17622_v61 }
 0x246   :  { %9336 = vmatpush3.msra.mxu1 %v17623_v58  ;;  %9310 = vmatprep.subr.mxu0 %v17624_v40 }
 0x247   :  { %9337 = vmatprep.subr.mxu1 %v17625_v59  ;;  %9311 = vmatpush3.msra.mxu0 %v17626_v53 }
 0x248   :  { %9338 = vmatpush3.msra.mxu1 %v17627_v31  ;;  %9312 = vmatprep.subr.mxu0 %v13887_v42 }
 0x249   :  { %9339 = vmatprep.subr.mxu1 %v17628_v33  ;;  %9313 = vmatpush3.msra.mxu0 %v13854_v24 }
 0x24a   :  { %9340 = vmatpush3.msra.mxu1 %v17629_v23  ;;  %9314 = vmatprep.subr.mxu0 %v13921_v22 }
 0x24b   :  { %9341 = vmatprep.subr.mxu1 %v17630_v54  ;;  %9315 = vmatpush3.msra.mxu0 %v13893_v39 }
 0x24c   :  { %9342 = vmatpush3.msra.mxu1 %v17631_v5  ;;  %9316 = vmatprep.subr.mxu0 %v13957_v63 }
 0x24d   :  { %9343 = vmatprep.subr.mxu1 %v17632_v6  ;;  %9317 = vmatpush3.msra.mxu0 %v13932_v44 }
 0x24e   :  { %9344 = vmatpush3.msra.mxu1 %v17633_v1  ;;  %9318 = vmatprep.subr.mxu0 %v13995_v50 }
 0x24f   :  { %9345 = vmatprep.subr.mxu1 %v17634_v41  ;;  %9319 = vmatpush3.msra.mxu0 %v13935_v57 }
 0x250   :  { %9346 = vmatpush3.msra.mxu1 %v17635_v32  ;;  %9320 = vmatprep.subr.mxu0 %v14015_v30 }
 0x251   :  { %9347 = vmatprep.subr.mxu1 %v17636_v20  ;;  %9321 = vmatpush3.msra.mxu0 %v14019_v36  ;;  %v17638_v20 = vld [vmem:[#allocation28_spill] sm:$0xff] }
 0x252   :  { %9348 = vmatpush3.msra.mxu1 %v13802_v15  ;;  %9322 = vmatprep.subr.mxu0 %v14035_v19 }
 0x253   :  { %9349 = vmatprep.subr.mxu1 %v17637_v34  ;;  %9323 = vmatpush3.msra.mxu0 %v14028_v11  ;;  %v17639_v34 = vand.u32 4294901760, %v13545_v25  ;;  %v17644_v25 = vand.u32 4294901760, %v13605_v26  ;;  %v17649_v26 = vand.u32 4294901760, %v13984_v37 }
 0x254   :  { %9350 = vmatpush3.msra.mxu1 %v13840_v8  ;;  %9324 = vmatprep.subr.mxu0 %v14051_v45  ;;  %v17640_v8 = vand.u32 4294901760, %v13551_v27  ;;  %v17641_v45 = vld [vmem:[#allocation30_spill] sm:$0xff]  ;;  %v17645_v27 = vand.u32 4294901760, %v13619_v17  ;;  %v17651_v17 = vand.u32 4294901760, %v13654_v52 }
 0x255   :  { %9351 = vmatprep.subr.mxu1 %v13883_v4  ;;  %9325 = vmatpush3.msra.mxu0 %v14044_v16  ;;  %v17642_v16 = vand.u32 4294901760, %v13573_v49  ;;  %v17646_v49 = vand.u32 4294901760, %v13641_v7  ;;  %v17652_v7 = vand.u32 4294901760, %v13694_v55  ;;  %v17657_v55 = vand.u32 4294901760, %v17622_v61 }
 0x256   :  { %5193 = vmatprep.mubr.f32.mxu0 %v13967_v12  ;;  %9352 = vmatpush3.msra.mxu1 %v17638_v20  ;;  %v17643_v20 = vand.u32 4294901760, %v13591_v13  ;;  %v17647_v13 = vand.u32 4294901760, %v13967_v12  ;;  %v17658_v12 = vand.u32 4294901760, %v17624_v40  ;;  %v17661_v61 = vand.u32 4294901760, %v13854_v24  ;;  %v224_v24 = vld [vmem:[%s16357_s1 + $0x660] sm:$0xff] }
 0x257   :  { %5196 = vmatmul.mubr.f32.vlgmr.msra.gmra.mxu0 %v13984_v37  ;;  %9353 = vmatprep.subr.mxu1 %v13910_v46  ;;  %v17659_v37 = vand.u32 4294901760, %v17626_v53  ;;  %v17663_v40 = vand.u32 4294901760, %v13921_v22  ;;  %v17664_v53 = vand.u32 4294901760, %v13893_v39  ;;  %v239_v22 = vld [vmem:[%s16357_s1 + $0x6d8] sm:$0xff] }
 0x258   :  { %9364 = vmatprep.subr.mxu0 %v17639_v34  ;;  %9354 = vmatpush3.msra.mxu1 %v13877_v51  ;;  %v241_v34 = vld [vmem:[%s16357_s1 + $0x6e8] sm:$0xff] }
 0x259   :  { %9365 = vmatpush3.msra.mxu0 %v17640_v8  ;;  %9355 = vmatprep.subr.mxu1 %v17641_v45  ;;  %v17650_v8 = vand.u32 4294901760, %v13670_v28  ;;  %v243_v28 = vld [vmem:[%s16357_s1 + $0x6f8] sm:$0xff] }
 0x25a   :  { %9366 = vmatprep.subr.mxu0 %v17642_v16  ;;  %9356 = vmatpush3.msra.mxu1 %v13973_v3  ;;  %v14211_v52 = vand.u32 4294901760, %v243_v28 }
 0x25b   :  { %9367 = vmatpush3.msra.mxu0 %v17643_v20  ;;  %9357 = vmatprep.subr.mxu1 %v13989_v60  ;;  %v17648_v20 = vand.u32 4294901760, %v13647_v0  ;;  %v17653_v0 = vand.u32 4294901760, %v13716_v47  ;;  %v226_v47 = vld [vmem:[%s16357_s1 + $0x670] sm:$0xff] }
 0x25c   :  { %9368 = vmatprep.subr.mxu0 %v17644_v25  ;;  %9358 = vmatpush3.msra.mxu1 %v13991_v29 }
 0x25d   :  { %9369 = vmatpush3.msra.mxu0 %v17645_v27  ;;  %9359 = vmatprep.subr.mxu1 %v14009_v9  ;;  %v17668_v27 = vand.u32 4294901760, %v13932_v44 }
 0x25e   :  { %9370 = vmatprep.subr.mxu0 %v17646_v49  ;;  %9360 = vmatpush3.msra.mxu1 %v14011_v56  ;;  %v14289_v49 = vand.u32 4294901760, %v224_v24 }
 0x25f   :  { %5300 = vmatprep.mubr.f32.mxu1 %v17647_v13  ;;  %9371 = vmatpush3.msra.mxu0 %v17648_v20  ;;  %v17670_v13 = vand.u32 4294901760, %v13995_v50  ;;  %v14300_v20 = vand.u32 4294901760, %v239_v22  ;;  %v17674_v50 = vand.u32 4294901760, %v14015_v30 }
 0x260   :  { %5304 = vmatmul.mubr.f32.vlgmr.msra.gmra.mxu1 %v17649_v26  ;;  %9372 = vmatprep.subr.mxu0 %v17650_v8  ;;  %17669 = vst [vmem:[#allocation23_spill] sm:$0xff] %v14289_v49  ;;  %v17673_v26 = vand.u32 4294901760, %v13935_v57  ;;  %v14333_v30 = vsub.f32 %v224_v24, %v14289_v49 }
 0x261   :  { %9399 = vmatprep.subr.mxu1 %v13517_v10  ;;  %9373 = vmatpush3.msra.mxu0 %v17651_v17  ;;  %v17654_v10 = vand.u32 4294901760, %v13762_v35  ;;  %v242_v35 = vld [vmem:[%s16357_s1 + $0x6f0] sm:$0xff]  ;;  %17671 = vst [vmem:[#allocation18_spill] sm:$0xff] %v14300_v20 }
 0x262   :  { %9400 = vmatpush3.msra.mxu1 %v13525_v14  ;;  %9374 = vmatprep.subr.mxu0 %v17652_v7  ;;  %v17655_v14 = vand.u32 4294901760, %v17619_v43  ;;  %v14233_v16 = vand.u32 4294901760, %v242_v35  ;;  %v14238_v43 = vand.u32 4294901760, %v226_v47  ;;  %v17675_v7 = vld [vmem:[#allocation12_spill] sm:$0xff] }
 0x263   :  { %9401 = vmatprep.subr.mxu1 %v13536_v18  ;;  %9375 = vmatpush3.msra.mxu0 %v17653_v0  ;;  %v227_v18 = vld [vmem:[%s16357_s1 + $0x678] sm:$0xff] }
 0x264   :  { %9402 = vmatpush3.msra.mxu1 %v13553_v38  ;;  %9376 = vmatprep.subr.mxu0 %v17654_v10  ;;  %v17656_v38 = vand.u32 4294901760, %v13789_v62  ;;  %v14225_v62 = vand.u32 4294901760, %v227_v18  ;;  %v14281_v39 = vsub.f32 %v226_v47, %v14238_v43  ;;  %v17677_v10 = vand.u32 4294901760, %v14019_v36 }
 0x265   :  { %9403 = vmatprep.subr.mxu1 %v17618_v48  ;;  %9377 = vmatpush3.msra.mxu0 %v17655_v14  ;;  %v17660_v48 = vand.u32 4294901760, %v13887_v42  ;;  %v240_v42 = vld [vmem:[%s16357_s1 + $0x6e0] sm:$0xff]  ;;  %v14356_v47 = vsub.f32 %v239_v22, %v14300_v20 }
 0x266   :  { %9404 = vmatpush3.msra.mxu1 %v17620_v2  ;;  %9378 = vmatprep.subr.mxu0 %v17656_v38  ;;  %v225_v2 = vld [vmem:[%s16357_s1 + $0x668] sm:$0xff]  ;;  %v16773_v0 = vand.u32 4294901760, %v14281_v39 }
 0x267   :  { %9405 = vmatprep.subr.mxu1 %v17621_v21  ;;  %9379 = vmatpush3.msra.mxu0 %v17657_v55  ;;  %v14244_v21 = vsub.f32 %v243_v28, %v14211_v52  ;;  %v17679_v38 = vld [vmem:[#allocation32_spill] sm:$0xff] }
 0x268   :  { %9406 = vmatpush3.msra.mxu1 %v17623_v58  ;;  %9380 = vmatprep.subr.mxu0 %v17658_v12  ;;  %v14249_v58 = vand.u32 4294901760, %v241_v34  ;;  %v17681_v12 = vand.u32 4294901760, %v14028_v11  ;;  %v14374_v11 = vsub.f32 %v14281_v39, %v16773_v0  ;;  %v14439_v0 = vld [vmem:[%s16358_s0 + $0x18] sm:$0xff] }
 0x269   :  { %9407 = vmatprep.subr.mxu1 %v17625_v59  ;;  %9381 = vmatpush3.msra.mxu0 %v17659_v37  ;;  %v14258_v59 = vsub.f32 %v227_v18, %v14225_v62  ;;  %v16777_v25 = vand.u32 4294901760, %v14244_v21  ;;  %v17678_v18 = vand.u32 4294901760, %v14035_v19  ;;  %v221_v19 = vld [vmem:[%s16357_s1 + $0x648] sm:$0xff]  ;;  %17695 = vst [vmem:[#allocation16_spill] sm:$0xff] %v14439_v0 }
 0x26a   :  { %9408 = vmatpush3.msra.mxu1 %v17627_v31  ;;  %9382 = vmatprep.subr.mxu0 %v17660_v48  ;;  %17662 = vst [vmem:[#allocation33_spill] sm:$0xff] %v14249_v58  ;;  %v14266_v31 = vand.u32 4294901760, %v225_v2 }
 0x26b   :  { %9409 = vmatprep.subr.mxu1 %v17628_v33  ;;  %9383 = vmatpush3.msra.mxu0 %v17661_v61  ;;  %v223_v33 = vld [vmem:[%s16357_s1 + $0x658] sm:$0xff]  ;;  %v14321_v57 = vsub.f32 %v14244_v21, %v16777_v25 }
 0x26c   :  { %9410 = vmatpush3.msra.mxu1 %v17629_v23  ;;  %9384 = vmatprep.subr.mxu0 %v17663_v40  ;;  %17665 = vst [vmem:[#allocation11_spill] sm:$0xff] %v14266_v31  ;;  %v14275_v23 = vsub.f32 %v242_v35, %v14233_v16  ;;  %v14302_v44 = vand.u32 4294901760, %v223_v33  ;;  %v14309_v8 = vsub.f32 %v225_v2, %v14266_v31  ;;  %v17683_v2 = vld [vmem:[#allocation24_spill] sm:$0xff]  ;;  %v236_v40 = vld [vmem:[%s16357_s1 + $0x6c0] sm:$0xff] }
 0x26d   :  { %9411 = vmatprep.subr.mxu1 %v17630_v54  ;;  %9385 = vmatpush3.msra.mxu0 %v17664_v53  ;;  %v17666_v54 = vand.u32 4294901760, %v13957_v63  ;;  %v238_v63 = vld [vmem:[%s16357_s1 + $0x6d0] sm:$0xff]  ;;  %v17684_v61 = vand.u32 4294901760, %v17683_v2  ;;  %v220_v53 = vld [vmem:[%s16357_s1 + $0x640] sm:$0xff] }
 0x26e   :  { %9412 = vmatpush3.msra.mxu1 %v17631_v5  ;;  %v14283_v5 = vand.u32 4294901760, %v240_v42  ;;  %17672 = vst [vmem:[#allocation29_spill] sm:$0xff] %v14302_v44  ;;  %v16774_v17 = vand.u32 4294901760, %v14275_v23  ;;  %v14340_v35 = vsub.f32 %v223_v33, %v14302_v44  ;;  %v16771_v48 = vand.u32 4294901760, %v14309_v8 }
 0x26f   :  { %9386 = vmatprep.subr.mxu0 %v17666_v54  ;;  %9413 = vmatprep.subr.mxu1 %v17632_v6  ;;  %v14295_v6 = vsub.f32 %v241_v34, %v14249_v58  ;;  %v17682_v34 = vld [vmem:[#allocation17_spill] sm:$0xff]  ;;  %v17687_v54 = vld [vmem:[#allocation31_spill] sm:$0xff] }
 0x270   :  { %17667 = vst [vmem:[#allocation15_spill] sm:$0xff] %v14283_v5  ;;  %9387 = vmatpush3.msra.mxu0 %v17668_v27  ;;  %9414 = vmatpush3.msra.mxu1 %v17633_v1  ;;  %v16776_v1 = vand.u32 4294901760, %v14258_v59  ;;  %v14327_v28 = vsub.f32 %v240_v42, %v14283_v5  ;;  %v14364_v37 = vsub.f32 %v14275_v23, %v16774_v17  ;;  %v17705_v42 = vand.u32 4294901760, %v14321_v57 }
 0x271   :  { %9388 = vmatprep.subr.mxu0 %v17670_v13  ;;  %9415 = vmatprep.subr.mxu1 %v17634_v41  ;;  %v222_v41 = vld [vmem:[%s16357_s1 + $0x650] sm:$0xff]  ;;  %v16772_v14 = vand.u32 4294901760, %v14295_v6 }
 0x272   :  { %9389 = vmatpush3.msra.mxu0 %v17673_v26  ;;  %9416 = vmatpush3.msra.mxu1 %v17635_v32  ;;  %v14323_v32 = vand.u32 4294901760, %v238_v63  ;;  %v14345_v36 = vsub.f32 %v14258_v59, %v16776_v1  ;;  %v14347_v55 = vand.u32 4294901760, %v222_v41  ;;  %v16775_v24 = vand.u32 4294901760, %v14327_v28  ;;  %v218_v1 = vld [vmem:[%s16357_s1 + $0x630] sm:$0xff] }
 0x273   :  { %9390 = vmatprep.subr.mxu0 %v17674_v50  ;;  %9417 = vmatprep.subr.mxu1 %v17675_v7  ;;  %v14394_v13 = vsub.f32 %v14295_v6, %v16772_v14  ;;  %v14396_v26 = vand.u32 4294901760, %v221_v19  ;;  %v16778_v50 = vand.u32 4294901760, %v14333_v30  ;;  %v17690_v7 = vld [vmem:[#allocation28_spill] sm:$0xff] }
 0x274   :  { %17676 = vst [vmem:[#allocation5_spill] sm:$0xff] %v14323_v32  ;;  %9391 = vmatpush3.msra.mxu0 %v17677_v10  ;;  %9418 = vmatpush3.msra.mxu1 %v13802_v15  ;;  %17680 = vst [vmem:[#allocation13_spill] sm:$0xff] %v14347_v55  ;;  %v237_v15 = vld [vmem:[%s16357_s1 + $0x6c8] sm:$0xff]  ;;  %v14384_v22 = vsub.f32 %v238_v63, %v14323_v32  ;;  %v235_v63 = vld [vmem:[%s16357_s1 + $0x6b8] sm:$0xff] }
 0x275   :  { %9392 = vmatprep.subr.mxu0 %v17678_v18  ;;  %9419 = vmatprep.subr.mxu1 %v17679_v38  ;;  %v14389_v27 = vand.u32 4294901760, %v237_v15  ;;  %17689 = vst [vmem:[#allocation10_spill] sm:$0xff] %v14396_v26  ;;  %v17691_v10 = vld [vmem:[#allocation22_spill] sm:$0xff]  ;;  %v14406_v38 = vsub.f32 %v222_v41, %v14347_v55  ;;  %v14445_v17 = vsub.f32 %v221_v19, %v14396_v26 }
 0x276   :  { %9393 = vmatpush3.msra.mxu0 %v17681_v12  ;;  %9420 = vmatpush3.msra.mxu1 %v17682_v34  ;;  %v16779_v12 = vand.u32 4294901760, %v14356_v47  ;;  %v16780_v34 = vand.u32 4294901760, %v14340_v35  ;;  %v219_v41 = vld [vmem:[%s16357_s1 + $0x638] sm:$0xff]  ;;  %v16781_v14 = vand.u32 4294901760, %v14384_v22 }
 0x277   :  { %9394 = vmatprep.subr.mxu0 %v17684_v61  ;;  %9421 = vmatprep.subr.mxu1 %v13883_v4  ;;  %v17685_v4 = vld [vmem:[#allocation21_spill] sm:$0xff]  ;;  %17688 = vst [vmem:[#allocation9_spill] sm:$0xff] %v14389_v27  ;;  %v14416_v61 = vsub.f32 %v14309_v8, %v16771_v48  ;;  %v14433_v48 = vand.u32 4294901760, %v235_v63  ;;  %17696 = vst [vmem:[#allocation7_spill] sm:$0xff] %v14445_v17  ;;  %v14456_v25 = vsub.f32 %v237_v15, %v14389_v27 }
 0x278   :  { %v17686_v33 = vand.u32 4294901760, %v17685_v4  ;;  %5470 = vmatprep.mubr.f32.mxu0 %v17687_v54  ;;  %9422 = vmatpush3.msra.mxu1 %v17690_v7  ;;  %v14418_v4 = vand.u32 4294901760, %v236_v40  ;;  %v14431_v7 = vsub.f32 %v14327_v28, %v16775_v24  ;;  %v14450_v24 = vsub.f32 %v14333_v30, %v16778_v50  ;;  %v234_v15 = vld [vmem:[%s16357_s1 + $0x6b0] sm:$0xff] }
 0x279   :  { %9423 = vmatprep.subr.mxu1 %v13910_v46  ;;  %17694 = vst [vmem:[#allocation4_spill] sm:$0xff] %v14433_v48  ;;  %v14465_v19 = vand.u32 4294901760, %v219_v41  ;;  %v14470_v50 = vsub.f32 %v14340_v35, %v16780_v34  ;;  %v17699_v34 = vld [vmem:[#allocation26_spill] sm:$0xff]  ;;  %v14503_v18 = vsub.f32 %v235_v63, %v14433_v48  ;;  %5574 = vmatprep.mubr.f32.mxu1 %v17687_v54  ;;  %v17709_v57 = vand.u32 4294901760, %v14445_v17 }
 0x27a   :  { %9395 = vmatpush3.msra.mxu0 %v17686_v33  ;;  %17692 = vst [vmem:[#allocation6_spill] sm:$0xff] %v14418_v4  ;;  %v14420_v33 = vand.u32 4294901760, %v220_v53  ;;  %9424 = vmatpush3.msra.mxu1 %v13877_v51  ;;  %v14483_v46 = vsub.f32 %v236_v40, %v14418_v4  ;;  %v14487_v2 = vrot.slane %v14439_v0, %v17699_v34  ;;  %v217_v40 = vld [vmem:[%s16357_s1 + $0x628] sm:$0xff]  ;;  %v17703_v34 = vand.u32 4294901760, %v14406_v38 }
 0x27b   :  { %5472 = vmatmul.mubr.f32.vlgmr.msra.gmra.mxu0 %v17691_v10  ;;  %9434 = vmatprep.subr.mxu0 %v14211_v52  ;;  %17697 = vst [vmem:[#allocation8_spill] sm:$0xff] %v14465_v19  ;;  %17700 = vst [vmem:[#allocation27_spill] sm:$0xff] %v14503_v18  ;;  %v14519_v63 = vsub.f32 %v219_v41, %v14465_v19  ;;  %v14535_v54 = vand.u32 4294901760, %v217_v40  ;;  %v232_v41 = vld [vmem:[%s16357_s1 + $0x6a0] sm:$0xff] }
 0x27c   :  { %17693 = vst [vmem:[#allocation19_spill] sm:$0xff] %v14420_v33  ;;  %9435 = vmatpush3.msra.mxu0 %v14225_v62  ;;  %9425 = vmatprep.subr.mxu1 %v17641_v45  ;;  %v14463_v45 = vsub.f32 %v14356_v47, %v16779_v12  ;;  %v14480_v51 = vsub.f32 %v220_v53, %v14420_v33  ;;  %v14497_v53 = vand.u32 4294901760, %v218_v1 }
 0x27d   :  { %9436 = vmatprep.subr.mxu0 %v14233_v16  ;;  %9426 = vmatpush3.msra.mxu1 %v13973_v3  ;;  %v14495_v12 = vsub.f32 %v14384_v22, %v16781_v14  ;;  %v233_v14 = vld [vmem:[%s16357_s1 + $0x6a8] sm:$0xff]  ;;  %17702 = vst [vmem:[#allocation3_spill] sm:$0xff] %v14519_v63  ;;  %v14525_v0 = vsub.f32 %v14406_v38, %v17703_v34  ;;  %v216_v3 = vld [vmem:[%s16357_s1 + $0x620] sm:$0xff]  ;;  %17704 = vst [vmem:[#allocation14_spill] sm:$0xff] %v14535_v54  ;;  %v17708_v34 = vand.u32 4294901760, %v14456_v25 }
 0x27e   :  { %9437 = vmatpush3.msra.mxu0 %v14238_v43  ;;  %9427 = vmatprep.subr.mxu1 %v13989_v60  ;;  %17698 = vst [vmem:[#allocation20_spill] sm:$0xff] %v14480_v51  ;;  %v14508_v60 = vand.u32 4294901760, %v234_v15 }
 0x27f   :  { %9438 = vmatprep.subr.mxu0 %v14249_v58  ;;  %9428 = vmatpush3.msra.mxu1 %v13991_v29  ;;  %v17707_v29 = vand.u32 4294901760, %v14345_v36  ;;  %v17711_v36 = vand.u32 4294901760, %v14364_v37  ;;  %v14588_v58 = vsub.f32 %v217_v40, %v14535_v54  ;;  %v17713_v37 = vand.u32 4294901760, %v14483_v46 }
 0x280   :  { %9439 = vmatpush3.msra.mxu0 %v14266_v31  ;;  %9429 = vmatprep.subr.mxu1 %v14009_v9  ;;  %17701 = vst [vmem:[#allocation25_spill] sm:$0xff] %v14508_v60  ;;  %v381_v9 = vcombine.high %v14487_v2, %v14487_v2  ;;  %v17717_v40 = vand.u32 4294901760, %v14503_v18 }
 0x281   :  { %9440 = vmatprep.subr.mxu0 %v14283_v5  ;;  %9430 = vmatpush3.msra.mxu1 %v14011_v56  ;;  %v215_v56 = vld [vmem:[%s16357_s1 + $0x618] sm:$0xff]  ;;  %v14551_v5 = vand.u32 4294901760, %v233_v14 }
 0x282   :  { %9441 = vmatpush3.msra.mxu0 %v14289_v49  ;;  %5576 = vmatmul.mubr.f32.vlgmr.msra.gmra.mxu1 %v17691_v10  ;;  %v14549_v49 = vsub.f32 %v218_v1, %v14497_v53  ;;  %v14567_v1 = vand.u32 4294901760, %v216_v3  ;;  %v231_v10 = vld [vmem:[%s16357_s1 + $0x698] sm:$0xff]  ;;  %v14572_v31 = vand.u32 4294901760, %v215_v56 }
 0x283   :  { %9442 = vmatprep.subr.mxu0 %v14300_v20  ;;  %9469 = vmatprep.subr.mxu1 %v17705_v42  ;;  %17706 = vst [vmem:[#allocation30_spill] sm:$0xff] %v14551_v5  ;;  %v14560_v20 = vsub.f32 %v14456_v25, %v17708_v34  ;;  %v14565_v42 = vsub.f32 %v14445_v17, %v17709_v57  ;;  %v14578_v34 = vand.u32 4294901760, %v232_v41  ;;  %v17712_v17 = vand.u32 4294901760, %v14374_v11 }
 0x284   :  { %9443 = vmatpush3.msra.mxu0 %v14302_v44  ;;  %9470 = vmatpush3.msra.mxu1 %v17707_v29  ;;  %17710 = vst [vmem:[#allocation12_spill] sm:$0xff] %v14567_v1  ;;  %v5733_v29 = vand.u32 4294901760, %v14525_v0  ;;  %v14582_v44 = vsub.f32 %v234_v15, %v14508_v60  ;;  %v17714_v0 = vand.u32 4294901760, %v14480_v51  ;;  %v14600_v15 = vand.u32 4294901760, %v381_v9 }
 0x285   :  { %9444 = vmatprep.subr.mxu0 %v14323_v32  ;;  %9471 = vmatprep.subr.mxu1 %v17711_v36  ;;  %v14593_v36 = vsub.f32 %v14483_v46, %v17713_v37  ;;  %v17716_v11 = vand.u32 4294901760, %v14394_v13  ;;  %v230_v37 = vld [vmem:[%s16357_s1 + $0x690] sm:$0xff]  ;;  %v14619_v32 = vand.u32 4294901760, %v14487_v2  ;;  %v17719_v13 = vand.u32 4294901760, %v14416_v61 }
 0x286   :  { %9445 = vmatpush3.msra.mxu0 %v14347_v55  ;;  %9472 = vmatpush3.msra.mxu1 %v17712_v17  ;;  %v14598_v57 = vsub.f32 %v14480_v51, %v17714_v0  ;;  %17715 = vst [vmem:[#allocation32_spill] sm:$0xff] %v14600_v15  ;;  %v14605_v17 = vand.u32 4294901760, %v231_v10  ;;  %v14610_v55 = vsub.f32 %v14503_v18, %v17717_v40  ;;  %v5740_v40 = vand.u32 4294901760, %v14565_v42 }
 0x287   :  { %9446 = vmatprep.subr.mxu0 %v14389_v27  ;;  %9473 = vmatprep.subr.mxu1 %v17716_v11  ;;  %v14616_v0 = vsub.f32 %v233_v14, %v14551_v5  ;;  %17718 = vst [vmem:[#allocation17_spill] sm:$0xff] %v14619_v32  ;;  %v5852_v11 = vand.u32 4294901760, %v14560_v20  ;;  %v14627_v27 = vsub.f32 %v216_v3, %v14567_v1  ;;  %v214_v14 = vld [vmem:[%s16357_s1 + $0x610] sm:$0xff]  ;;  %v17721_v61 = vand.u32 4294901760, %v14519_v63 }
 0x288   :  { %9447 = vmatpush3.msra.mxu0 %v14396_v26  ;;  %9474 = vmatpush3.msra.mxu1 %v17719_v13  ;;  %v14630_v18 = vsub.f32 %v215_v56, %v14572_v31  ;;  %v17720_v26 = vand.u32 4294901760, %v14431_v7  ;;  %v229_v56 = vld [vmem:[%s16357_s1 + $0x688] sm:$0xff]  ;;  %v14652_v7 = vsub.f32 %v232_v41, %v14578_v34  ;;  %v5747_v42 = vand.u32 4294901760, %v14598_v57  ;;  %v228_v57 = vld [vmem:[%s16357_s1 + $0x680] sm:$0xff] }
 0x289   :  { %9448 = vmatprep.subr.mxu0 %v14418_v4  ;;  %v14641_v20 = vsub.f32 %v14519_v63, %v17721_v61  ;;  %v213_v13 = vld [vmem:[%s16357_s1 + $0x608] sm:$0xff]  ;;  %v5859_v61 = vand.u32 4294901760, %v14593_v36  ;;  %v14659_v3 = vand.u32 4294901760, %v230_v37  ;;  %v14662_v4 = vsub.f32 %v381_v9, %v14600_v15  ;;  %v212_v9 = vld [vmem:[%s16357_s1 + $0x600] sm:$0xff]  ;;  %5918 = vmatprep.mubr.f32.mxu1 %v14600_v15 }
 0x28a   :  { %9475 = vmatprep.subr.mxu1 %v17720_v26  ;;  %9449 = vmatpush3.msra.mxu0 %v14420_v33  ;;  %v17722_v26 = vand.u32 4294901760, %v14450_v24  ;;  %v17724_v63 = vand.u32 4294901760, %v14463_v45  ;;  %v5866_v41 = vand.u32 4294901760, %v14610_v55  ;;  %v14668_v33 = vand.u32 4294901760, %v214_v14  ;;  %v17762_v15 = vld [vmem:[#allocation30_spill] sm:$0xff] }
 0x28b   :  { %17723 = vst [vmem:[#allocation24_spill] sm:$0xff] %v14659_v3  ;;  %9450 = vmatprep.subr.mxu0 %v14433_v48  ;;  %v14679_v36 = vsub.f32 %v14487_v2, %v14619_v32  ;;  %v17725_v55 = vand.u32 4294901760, %v14470_v50  ;;  %v14684_v45 = vand.u32 4294901760, %v229_v56  ;;  %v14690_v24 = vsub.f32 %v231_v10, %v14605_v17 }
 0x28c   :  { %9476 = vmatpush3.msra.mxu1 %v17722_v26  ;;  %9451 = vmatpush3.msra.mxu0 %v14465_v19  ;;  %v17726_v48 = vand.u32 4294901760, %v14495_v12  ;;  %v5754_v2 = vand.u32 4294901760, %v14641_v20  ;;  %v17727_v19 = vand.u32 4294901760, %v14582_v44  ;;  %v14704_v10 = vand.u32 4294901760, %v228_v57 }
 0x28d   :  { %9477 = vmatprep.subr.mxu1 %v17724_v63  ;;  %v14686_v63 = vand.u32 4294901760, %v213_v13  ;;  %9452 = vmatprep.subr.mxu0 %v14508_v60  ;;  %v14706_v60 = vand.u32 4294901760, %v212_v9  ;;  %v14710_v12 = vsub.f32 %v230_v37, %v14659_v3  ;;  %v17729_v20 = vand.u32 4294901760, %v14616_v0 }
 0x28e   :  { %9478 = vmatpush3.msra.mxu1 %v17725_v55  ;;  %v5872_v50 = vsub.f32 %v14582_v44, %v17727_v19  ;;  %v17728_v55 = vand.u32 4294901760, %v14549_v49  ;;  %9453 = vmatpush3.msra.mxu0 %v14497_v53  ;;  %v14714_v19 = vsub.f32 %v214_v14, %v14668_v33 }
 0x28f   :  { %9479 = vmatprep.subr.mxu1 %v17726_v48  ;;  %9454 = vmatprep.subr.mxu0 %v14551_v5  ;;  %v14723_v37 = vsub.f32 %v213_v13, %v14686_v63  ;;  %v17730_v48 = vand.u32 4294901760, %v14588_v58  ;;  %v14730_v5 = vsub.f32 %v229_v56, %v14684_v45  ;;  %v17733_v56 = vand.u32 4294901760, %v14662_v4 }
 0x290   :  { %v5760_v51 = vsub.f32 %v14549_v49, %v17728_v55  ;;  %9480 = vmatpush3.msra.mxu1 %v5733_v29  ;;  %v5879_v55 = vsub.f32 %v14616_v0, %v17729_v20  ;;  %9455 = vmatpush3.msra.mxu0 %v14535_v54  ;;  %v5873_v20 = vand.u32 4294901760, %v5872_v50  ;;  %v17731_v29 = vand.u32 4294901760, %v14652_v7 }
 0x291   :  { %9481 = vmatprep.subr.mxu1 %v5852_v11  ;;  %v5767_v11 = vsub.f32 %v14588_v58, %v17730_v48  ;;  %9456 = vmatprep.subr.mxu0 %v14578_v34  ;;  %v14739_v48 = vsub.f32 %v212_v9, %v14706_v60  ;;  %v5680_v14 = vsub.f32 %v14662_v4, %v17733_v56  ;;  %v17736_v9 = vand.u32 4294901760, %v14679_v36 }
 0x292   :  { %9482 = vmatpush3.msra.mxu1 %v5740_v40  ;;  %v5761_v26 = vand.u32 4294901760, %v5760_v51  ;;  %v5886_v40 = vsub.f32 %v14652_v7, %v17731_v29  ;;  %9457 = vmatpush3.msra.mxu0 %v14567_v1  ;;  %v14746_v51 = vsub.f32 %v228_v57, %v14704_v10  ;;  %v5880_v50 = vand.u32 4294901760, %v5879_v55 }
 0x293   :  { %9483 = vmatprep.subr.mxu1 %v5859_v61  ;;  %17732 = vst [vmem:[#allocation21_spill] sm:$0xff] %v14739_v48  ;;  %9458 = vmatprep.subr.mxu0 %v14605_v17  ;;  %v17735_v29 = vand.u32 4294901760, %v14627_v27  ;;  %v5686_v13 = vsub.f32 %v14679_v36, %v17736_v9  ;;  %v5768_v56 = vand.u32 4294901760, %v5767_v11  ;;  %v17737_v57 = vand.u32 4294901760, %v14690_v24 }
 0x294   :  { %9484 = vmatpush3.msra.mxu1 %v5747_v42  ;;  %17734 = vst [vmem:[#allocation31_spill] sm:$0xff] %v14746_v51  ;;  %9459 = vmatpush3.msra.mxu0 %v14572_v31  ;;  %v5887_v55 = vand.u32 4294901760, %v5886_v40  ;;  %v17739_v11 = vand.u32 4294901760, %v14710_v12  ;;  %v16827_v1 = vand.u32 4294901760, %v14739_v48 }
 0x295   :  { %9485 = vmatprep.subr.mxu1 %v5866_v41  ;;  %v5774_v42 = vsub.f32 %v14627_v27, %v17735_v29  ;;  %v5893_v61 = vsub.f32 %v14690_v24, %v17737_v57  ;;  %9460 = vmatprep.subr.mxu0 %v14659_v3  ;;  %v17738_v29 = vand.u32 4294901760, %v14630_v18  ;;  %v16828_v41 = vand.u32 4294901760, %v14746_v51 }
 0x296   :  { %9486 = vmatpush3.msra.mxu1 %v5754_v2  ;;  %9461 = vmatpush3.msra.mxu0 %v14668_v33  ;;  %v5681_v2 = vand.u32 4294901760, %v5680_v14  ;;  %v5900_v57 = vsub.f32 %v14710_v12, %v17739_v11  ;;  %v5687_v40 = vand.u32 4294901760, %v5686_v13  ;;  %v17740_v3 = vand.u32 4294901760, %v14714_v19 }
 0x297   :  { %9487 = vmatprep.subr.mxu1 %v5873_v20  ;;  %v5781_v9 = vsub.f32 %v14630_v18, %v17738_v29  ;;  %9462 = vmatprep.subr.mxu0 %v14684_v45  ;;  %v5775_v20 = vand.u32 4294901760, %v5774_v42  ;;  %v17741_v14 = vand.u32 4294901760, %v14730_v5  ;;  %v17742_v13 = vand.u32 4294901760, %v14723_v37 }
 0x298   :  { %9488 = vmatpush3.msra.mxu1 %v5761_v26  ;;  %v5788_v29 = vsub.f32 %v14714_v19, %v17740_v3  ;;  %9463 = vmatpush3.msra.mxu0 %v14686_v63  ;;  %v5894_v26 = vand.u32 4294901760, %v5893_v61  ;;  %v5901_v3 = vand.u32 4294901760, %v5900_v57  ;;  %v5914_v61 = vsub.f32 %v14746_v51, %v16828_v41  ;;  %v17760_v41 = vld [vmem:[#allocation8_spill] sm:$0xff] }
 0x299   :  { %9489 = vmatprep.subr.mxu1 %v5880_v50  ;;  %v5907_v11 = vsub.f32 %v14730_v5, %v17741_v14  ;;  %9464 = vmatprep.subr.mxu0 %v14704_v10  ;;  %v5782_v50 = vand.u32 4294901760, %v5781_v9  ;;  %v5795_v42 = vsub.f32 %v14723_v37, %v17742_v13  ;;  %v17746_v14 = vld [vmem:[#allocation15_spill] sm:$0xff] }
 0x29a   :  { %9490 = vmatpush3.msra.mxu1 %v5768_v56  ;;  %9465 = vmatpush3.msra.mxu0 %v14706_v60  ;;  %v5789_v56 = vand.u32 4294901760, %v5788_v29  ;;  %v5915_v57 = vand.u32 4294901760, %v5914_v61  ;;  %v17744_v29 = vld [vmem:[#allocation7_spill] sm:$0xff]  ;;  %v17752_v61 = vld [vmem:[#allocation29_spill] sm:$0xff] }
 0x29b   :  { %9491 = vmatprep.subr.mxu1 %v5887_v55  ;;  %5682 = vmatprep.mubr.f32.mxu0 %v5681_v2  ;;  %v5802_v55 = vsub.f32 %v14739_v48, %v16827_v1  ;;  %v5908_v9 = vand.u32 4294901760, %v5907_v11  ;;  %v5796_v2 = vand.u32 4294901760, %v5795_v42  ;;  %v17747_v11 = vld [vmem:[#allocation20_spill] sm:$0xff]  ;;  %v17749_v13 = vld [vmem:[#allocation27_spill] sm:$0xff]  ;;  %v17750_v42 = vld [vmem:[#allocation18_spill] sm:$0xff] }
 0x29c   :  { %9492 = vmatpush3.msra.mxu1 %v5775_v20  ;;  %5688 = vmatmul.mubr.f32.vlgmr.msra.gmra.mxu0 %v5687_v40  ;;  %v17743_v40 = vld [vmem:[#allocation33_spill] sm:$0xff]  ;;  %v17759_v1 = vld [vmem:[#allocation4_spill] sm:$0xff] }
 0x29d   :  { %9493 = vmatprep.subr.mxu1 %v5894_v26  ;;  %9504 = vmatprep.subr.mxu0 %v14244_v21  ;;  %v5803_v20 = vand.u32 4294901760, %v5802_v55  ;;  %v17745_v26 = vld [vmem:[#allocation11_spill] sm:$0xff]  ;;  %v17754_v55 = vld [vmem:[#allocation13_spill] sm:$0xff] }
 0x29e   :  { %9494 = vmatpush3.msra.mxu1 %v5782_v50  ;;  %9505 = vmatpush3.msra.mxu0 %v14258_v59  ;;  %v17748_v50 = vld [vmem:[#allocation23_spill] sm:$0xff] }
 0x29f   :  { %9495 = vmatprep.subr.mxu1 %v5901_v3  ;;  %9506 = vmatprep.subr.mxu0 %v14275_v23  ;;  %v17751_v3 = vld [vmem:[#allocation3_spill] sm:$0xff] }
 0x2a0   :  { %9496 = vmatpush3.msra.mxu1 %v5789_v56  ;;  %9507 = vmatpush3.msra.mxu0 %v14281_v39  ;;  %v17753_v56 = vld [vmem:[#allocation5_spill] sm:$0xff] }
 0x2a1   :  { %9497 = vmatprep.subr.mxu1 %v5908_v9  ;;  %9508 = vmatprep.subr.mxu0 %v14295_v6  ;;  %v17755_v9 = vld [vmem:[#allocation9_spill] sm:$0xff] }
 0x2a2   :  { %9498 = vmatpush3.msra.mxu1 %v5796_v2  ;;  %9509 = vmatpush3.msra.mxu0 %v14309_v8  ;;  %v17756_v2 = vld [vmem:[#allocation10_spill] sm:$0xff] }
 0x2a3   :  { %9499 = vmatprep.subr.mxu1 %v5915_v57  ;;  %9510 = vmatprep.subr.mxu0 %v14327_v28  ;;  %v17757_v57 = vld [vmem:[#allocation6_spill] sm:$0xff] }
 0x2a4   :  { %9500 = vmatpush3.msra.mxu1 %v5803_v20  ;;  %9511 = vmatpush3.msra.mxu0 %v14333_v30  ;;  %v17758_v20 = vld [vmem:[#allocation19_spill] sm:$0xff] }
 0x2a5   :  { %5920 = vmatmul.mubr.f32.vlgmr.msra.gmra.mxu1 %v14619_v32  ;;  %9512 = vmatprep.subr.mxu0 %v14356_v47  ;;  %v17761_v32 = vld [vmem:[#allocation25_spill] sm:$0xff] }
 0x2a6   :  { %9539 = vmatprep.subr.mxu1 %v14211_v52  ;;  %9513 = vmatpush3.msra.mxu0 %v14340_v35 }
 0x2a7   :  { %9540 = vmatpush3.msra.mxu1 %v14225_v62  ;;  %9514 = vmatprep.subr.mxu0 %v14384_v22 }
 0x2a8   :  { %9541 = vmatprep.subr.mxu1 %v14233_v16  ;;  %9515 = vmatpush3.msra.mxu0 %v14406_v38 }
 0x2a9   :  { %9542 = vmatpush3.msra.mxu1 %v14238_v43  ;;  %9516 = vmatprep.subr.mxu0 %v14456_v25 }
 0x2aa   :  { %9543 = vmatprep.subr.mxu1 %v17743_v40  ;;  %9517 = vmatpush3.msra.mxu0 %v17744_v29 }
 0x2ab   :  { %9544 = vmatpush3.msra.mxu1 %v17745_v26  ;;  %9518 = vmatprep.subr.mxu0 %v14483_v46 }
 0x2ac   :  { %9545 = vmatprep.subr.mxu1 %v17746_v14  ;;  %9519 = vmatpush3.msra.mxu0 %v17747_v11 }
 0x2ad   :  { %9546 = vmatpush3.msra.mxu1 %v17748_v50  ;;  %9520 = vmatprep.subr.mxu0 %v17749_v13 }
 0x2ae   :  { %9547 = vmatprep.subr.mxu1 %v17750_v42  ;;  %9521 = vmatpush3.msra.mxu0 %v17751_v3 }
 0x2af   :  { %9548 = vmatpush3.msra.mxu1 %v17752_v61  ;;  %9522 = vmatprep.subr.mxu0 %v14582_v44 }
 0x2b0   :  { %9549 = vmatprep.subr.mxu1 %v17753_v56  ;;  %9523 = vmatpush3.msra.mxu0 %v14549_v49 }
 0x2b1   :  { %9550 = vmatpush3.msra.mxu1 %v17754_v55  ;;  %9524 = vmatprep.subr.mxu0 %v14616_v0 }
 0x2b2   :  { %9551 = vmatprep.subr.mxu1 %v17755_v9  ;;  %9525 = vmatpush3.msra.mxu0 %v14588_v58 }
 0x2b3   :  { %9552 = vmatpush3.msra.mxu1 %v17756_v2  ;;  %9526 = vmatprep.subr.mxu0 %v14652_v7 }
 0x2b4   :  { %9553 = vmatprep.subr.mxu1 %v17757_v57  ;;  %9527 = vmatpush3.msra.mxu0 %v14627_v27 }
 0x2b5   :  { %9554 = vmatpush3.msra.mxu1 %v17758_v20  ;;  %9528 = vmatprep.subr.mxu0 %v14690_v24 }
 0x2b6   :  { %9555 = vmatprep.subr.mxu1 %v17759_v1  ;;  %9529 = vmatpush3.msra.mxu0 %v14630_v18 }
 0x2b7   :  { %9556 = vmatpush3.msra.mxu1 %v17760_v41  ;;  %9530 = vmatprep.subr.mxu0 %v14710_v12 }
 0x2b8   :  { %9557 = vmatprep.subr.mxu1 %v17761_v32  ;;  %9531 = vmatpush3.msra.mxu0 %v14714_v19  ;;  %v17763_v32 = vld [vmem:[#allocation12_spill] sm:$0xff] }
 0x2b9   :  { %9558 = vmatpush3.msra.mxu1 %v14497_v53  ;;  %9532 = vmatprep.subr.mxu0 %v14730_v5 }
 0x2ba   :  { %9559 = vmatprep.subr.mxu1 %v17762_v15  ;;  %9533 = vmatpush3.msra.mxu0 %v14723_v37  ;;  %v17764_v15 = vand.u32 4294901760, %v14244_v21  ;;  %v17769_v21 = vand.u32 4294901760, %v14295_v6  ;;  %v17774_v6 = vand.u32 4294901760, %v14679_v36 }
 0x2bb   :  { %9560 = vmatpush3.msra.mxu1 %v14535_v54  ;;  %9534 = vmatprep.subr.mxu0 %v14746_v51  ;;  %v17765_v54 = vand.u32 4294901760, %v14258_v59  ;;  %v17766_v51 = vld [vmem:[#allocation24_spill] sm:$0xff]  ;;  %v17770_v59 = vand.u32 4294901760, %v14309_v8  ;;  %v17776_v8 = vand.u32 4294901760, %v14340_v35 }
 0x2bc   :  { %9561 = vmatprep.subr.mxu1 %v14578_v34  ;;  %9535 = vmatpush3.msra.mxu0 %v14739_v48  ;;  %v17767_v48 = vand.u32 4294901760, %v14275_v23  ;;  %v17771_v23 = vand.u32 4294901760, %v14327_v28  ;;  %v17777_v28 = vand.u32 4294901760, %v14384_v22  ;;  %v17782_v22 = vand.u32 4294901760, %v17747_v11  ;;  %v257_v11 = vld [vmem:[%s16357_s1 + $0x768] sm:$0xff] }
 0x2bd   :  { %6055 = vmatprep.mubr.f32.mxu0 %v14662_v4  ;;  %9562 = vmatpush3.msra.mxu1 %v17763_v32  ;;  %v17768_v32 = vand.u32 4294901760, %v14281_v39  ;;  %v17772_v39 = vand.u32 4294901760, %v14662_v4  ;;  %v17778_v4 = vand.u32 4294901760, %v14406_v38  ;;  %v258_v38 = vld [vmem:[%s16357_s1 + $0x770] sm:$0xff] }
 0x2be   :  { %6058 = vmatmul.mubr.f32.vlgmr.msra.gmra.mxu0 %v14679_v36  ;;  %9563 = vmatprep.subr.mxu1 %v14605_v17  ;;  %v273_v36 = vld [vmem:[%s16357_s1 + $0x7e8] sm:$0xff] }
 0x2bf   :  { %9574 = vmatprep.subr.mxu0 %v17764_v15  ;;  %9564 = vmatpush3.msra.mxu1 %v14572_v31  ;;  %v17783_v15 = vand.u32 4294901760, %v17749_v13  ;;  %v14947_v13 = vand.u32 4294901760, %v273_v36 }
 0x2c0   :  { %9575 = vmatpush3.msra.mxu0 %v17765_v54  ;;  %9565 = vmatprep.subr.mxu1 %v17766_v51  ;;  %v17775_v54 = vand.u32 4294901760, %v14356_v47  ;;  %v17781_v47 = vand.u32 4294901760, %v14483_v46 }
 0x2c1   :  { %9576 = vmatprep.subr.mxu0 %v17767_v48  ;;  %9566 = vmatpush3.msra.mxu1 %v14668_v33  ;;  %v17784_v48 = vand.u32 4294901760, %v17751_v3  ;;  %17787 = vst [vmem:[#allocation28_spill] sm:$0xff] %v14947_v13  ;;  %v256_v3 = vld [vmem:[%s16357_s1 + $0x760] sm:$0xff] }
 0x2c2   :  { %9577 = vmatpush3.msra.mxu0 %v17768_v32  ;;  %9567 = vmatprep.subr.mxu1 %v14684_v45  ;;  %v17773_v32 = vand.u32 4294901760, %v14333_v30  ;;  %v275_v30 = vld [vmem:[%s16357_s1 + $0x7f8] sm:$0xff] }
 0x2c3   :  { %9578 = vmatprep.subr.mxu0 %v17769_v21  ;;  %9568 = vmatpush3.msra.mxu1 %v14686_v63  ;;  %v14903_v35 = vand.u32 4294901760, %v275_v30  ;;  %v17791_v21 = vand.u32 4294901760, %v14652_v7  ;;  %v270_v7 = vld [vmem:[%s16357_s1 + $0x7d0] sm:$0xff] }
 0x2c4   :  { %9579 = vmatpush3.msra.mxu0 %v17770_v59  ;;  %9569 = vmatprep.subr.mxu1 %v14704_v10 }
 0x2c5   :  { %9580 = vmatprep.subr.mxu0 %v17771_v23  ;;  %9570 = vmatpush3.msra.mxu1 %v14706_v60  ;;  %v17793_v23 = vand.u32 4294901760, %v14627_v27 }
 0x2c6   :  { %6162 = vmatprep.mubr.f32.mxu1 %v17772_v39  ;;  %9581 = vmatpush3.msra.mxu0 %v17773_v32  ;;  %v14985_v39 = vand.u32 4294901760, %v256_v3  ;;  %v17795_v32 = vand.u32 4294901760, %v14690_v24 }
 0x2c7   :  { %6166 = vmatmul.mubr.f32.vlgmr.msra.gmra.mxu1 %v17774_v6  ;;  %9582 = vmatprep.subr.mxu0 %v17775_v54  ;;  %v17798_v54 = vand.u32 4294901760, %v14630_v18 }
 0x2c8   :  { %9609 = vmatprep.subr.mxu1 %v14211_v52  ;;  %9583 = vmatpush3.msra.mxu0 %v17776_v8  ;;  %v259_v52 = vld [vmem:[%s16357_s1 + $0x778] sm:$0xff]  ;;  %17794 = vst [vmem:[#allocation7_spill] sm:$0xff] %v14985_v39 }
 0x2c9   :  { %9610 = vmatpush3.msra.mxu1 %v14225_v62  ;;  %9584 = vmatprep.subr.mxu0 %v17777_v28  ;;  %v17779_v62 = vand.u32 4294901760, %v14456_v25  ;;  %v14911_v25 = vand.u32 4294901760, %v259_v52  ;;  %v17799_v28 = vand.u32 4294901760, %v14710_v12  ;;  %v15033_v12 = vsub.f32 %v256_v3, %v14985_v39 }
 0x2ca   :  { %9611 = vmatprep.subr.mxu1 %v14233_v16  ;;  %9585 = vmatpush3.msra.mxu0 %v17778_v4  ;;  %v17780_v16 = vand.u32 4294901760, %v17744_v29  ;;  %v17785_v29 = vand.u32 4294901760, %v14582_v44  ;;  %v272_v44 = vld [vmem:[%s16357_s1 + $0x7e0] sm:$0xff] }
 0x2cb   :  { %9612 = vmatpush3.msra.mxu1 %v14238_v43  ;;  %9586 = vmatprep.subr.mxu0 %v17779_v62  ;;  %v274_v43 = vld [vmem:[%s16357_s1 + $0x7f0] sm:$0xff]  ;;  %v17802_v62 = vand.u32 4294901760, %v14714_v19 }
 0x2cc   :  { %9613 = vmatprep.subr.mxu1 %v17743_v40  ;;  %9587 = vmatpush3.msra.mxu0 %v17780_v16  ;;  %v14922_v46 = vand.u32 4294901760, %v274_v43  ;;  %v14931_v40 = vsub.f32 %v275_v30, %v14903_v35  ;;  %v17800_v30 = vld [vmem:[#allocation25_spill] sm:$0xff] }
 0x2cd   :  { %9614 = vmatpush3.msra.mxu1 %v17745_v26  ;;  %9588 = vmatprep.subr.mxu0 %v17781_v47  ;;  %v14937_v26 = vsub.f32 %v259_v52, %v14911_v25  ;;  %v17804_v47 = vld [vmem:[#allocation30_spill] sm:$0xff] }
 0x2ce   :  { %9615 = vmatprep.subr.mxu1 %v17746_v14  ;;  %9589 = vmatpush3.msra.mxu0 %v17782_v22  ;;  %v14939_v14 = vand.u32 4294901760, %v258_v38 }
 0x2cf   :  { %9616 = vmatpush3.msra.mxu1 %v17748_v50  ;;  %9590 = vmatprep.subr.mxu0 %v17783_v15  ;;  %v17786_v50 = vand.u32 4294901760, %v14549_v49  ;;  %v14959_v49 = vsub.f32 %v274_v43, %v14922_v46  ;;  %v16840_v59 = vand.u32 4294901760, %v14937_v26  ;;  %v17803_v43 = vand.u32 4294901760, %v14730_v5  ;;  %v253_v5 = vld [vmem:[%s16357_s1 + $0x748] sm:$0xff] }
 0x2d0   :  { %9617 = vmatprep.subr.mxu1 %v17750_v42  ;;  %9591 = vmatpush3.msra.mxu0 %v17784_v48  ;;  %v17788_v42 = vand.u32 4294901760, %v14616_v0  ;;  %v271_v0 = vld [vmem:[%s16357_s1 + $0x7d8] sm:$0xff] }
 0x2d1   :  { %9618 = vmatpush3.msra.mxu1 %v17752_v61  ;;  %9592 = vmatprep.subr.mxu0 %v17785_v29  ;;  %v17789_v61 = vand.u32 4294901760, %v14588_v58  ;;  %v14977_v58 = vsub.f32 %v258_v38, %v14939_v14  ;;  %v14996_v6 = vand.u32 4294901760, %v271_v0  ;;  %v15021_v18 = vsub.f32 %v14937_v26, %v16840_v59  ;;  %v17807_v48 = vld [vmem:[#allocation14_spill] sm:$0xff] }
 0x2d2   :  { %9619 = vmatprep.subr.mxu1 %v17753_v56  ;;  %9593 = vmatpush3.msra.mxu0 %v17786_v50  ;;  %v14964_v56 = vand.u32 4294901760, %v257_v11  ;;  %v17808_v50 = vld [vmem:[#allocation31_spill] sm:$0xff] }
 0x2d3   :  { %9620 = vmatpush3.msra.mxu1 %v17754_v55  ;;  %9594 = vmatprep.subr.mxu0 %v17788_v42  ;;  %v16842_v55 = vand.u32 4294901760, %v14931_v40  ;;  %17796 = vst [vmem:[#allocation11_spill] sm:$0xff] %v14996_v6  ;;  %v16838_v4 = vand.u32 4294901760, %v14977_v58  ;;  %v15056_v15 = vsub.f32 %v271_v0, %v14996_v6  ;;  %v252_v0 = vld [vmem:[%s16357_s1 + $0x740] sm:$0xff] }
 0x2d4   :  { %9621 = vmatprep.subr.mxu1 %v17755_v9  ;;  %9595 = vmatpush3.msra.mxu0 %v17789_v61  ;;  %17790 = vst [vmem:[#allocation22_spill] sm:$0xff] %v14964_v56  ;;  %v255_v9 = vld [vmem:[%s16357_s1 + $0x758] sm:$0xff]  ;;  %v15005_v8 = vsub.f32 %v257_v11, %v14964_v56  ;;  %v248_v42 = vld [vmem:[%s16357_s1 + $0x720] sm:$0xff] }
 0x2d5   :  { %9622 = vmatpush3.msra.mxu1 %v17756_v2  ;;  %9596 = vmatprep.subr.mxu0 %v17791_v21  ;;  %v14979_v2 = vand.u32 4294901760, %v272_v44  ;;  %v14998_v27 = vand.u32 4294901760, %v255_v9  ;;  %v15010_v24 = vsub.f32 %v14931_v40, %v16842_v55  ;;  %v15070_v3 = vsub.f32 %v14977_v58, %v16838_v4 }
 0x2d6   :  { %9623 = vmatprep.subr.mxu1 %v17757_v57  ;;  %9597 = vmatpush3.msra.mxu0 %v17793_v23  ;;  %v14991_v57 = vsub.f32 %v273_v36, %v14947_v13  ;;  %v17806_v36 = vand.u32 4294901760, %v14723_v37  ;;  %v16837_v11 = vand.u32 4294901760, %v15005_v8  ;;  %v268_v37 = vld [vmem:[%s16357_s1 + $0x7c0] sm:$0xff]  ;;  %v17812_v23 = vld [vmem:[#allocation32_spill] sm:$0xff] }
 0x2d7   :  { %17792 = vst [vmem:[#allocation33_spill] sm:$0xff] %v14979_v2  ;;  %9624 = vmatpush3.msra.mxu1 %v17758_v20  ;;  %9598 = vmatprep.subr.mxu0 %v17795_v32  ;;  %17797 = vst [vmem:[#allocation15_spill] sm:$0xff] %v14998_v27  ;;  %v16839_v20 = vand.u32 4294901760, %v14959_v49  ;;  %v15027_v52 = vsub.f32 %v272_v44, %v14979_v2  ;;  %v15040_v22 = vsub.f32 %v255_v9, %v14998_v27 }
 0x2d8   :  { %9625 = vmatprep.subr.mxu1 %v17759_v1  ;;  %9599 = vmatpush3.msra.mxu0 %v17798_v54  ;;  %v254_v1 = vld [vmem:[%s16357_s1 + $0x750] sm:$0xff]  ;;  %v16836_v16 = vand.u32 4294901760, %v14991_v57  ;;  %v17809_v44 = vand.u32 4294901760, %v17808_v50 }
 0x2d9   :  { %9626 = vmatpush3.msra.mxu1 %v17760_v41  ;;  %9600 = vmatprep.subr.mxu0 %v17799_v28  ;;  %v15023_v41 = vand.u32 4294901760, %v270_v7  ;;  %v15045_v19 = vsub.f32 %v14959_v49, %v16839_v20  ;;  %v15047_v38 = vand.u32 4294901760, %v254_v1  ;;  %v16841_v61 = vand.u32 4294901760, %v15027_v52 }
 0x2da   :  { %9627 = vmatprep.subr.mxu1 %v17800_v30  ;;  %9601 = vmatpush3.msra.mxu0 %v17802_v62  ;;  %v15090_v54 = vsub.f32 %v14991_v57, %v16836_v16  ;;  %v15092_v28 = vand.u32 4294901760, %v253_v5  ;;  %v16843_v30 = vand.u32 4294901760, %v15033_v12  ;;  %v17815_v62 = vld [vmem:[#allocation12_spill] sm:$0xff]  ;;  %v16845_v50 = vand.u32 4294901760, %v15040_v22 }
 0x2db   :  { %17801 = vst [vmem:[#allocation20_spill] sm:$0xff] %v15023_v41  ;;  %9628 = vmatpush3.msra.mxu1 %v14497_v53  ;;  %9602 = vmatprep.subr.mxu0 %v17803_v43  ;;  %17805 = vst [vmem:[#allocation23_spill] sm:$0xff] %v15047_v38  ;;  %v269_v53 = vld [vmem:[%s16357_s1 + $0x7c8] sm:$0xff]  ;;  %v15080_v9 = vsub.f32 %v270_v7, %v15023_v41  ;;  %v267_v7 = vld [vmem:[%s16357_s1 + $0x7b8] sm:$0xff] }
 0x2dc   :  { %9629 = vmatprep.subr.mxu1 %v17804_v47  ;;  %9603 = vmatpush3.msra.mxu0 %v17806_v36  ;;  %v15085_v32 = vand.u32 4294901760, %v269_v53  ;;  %17814 = vst [vmem:[#allocation18_spill] sm:$0xff] %v15092_v28  ;;  %v17816_v43 = vld [vmem:[#allocation17_spill] sm:$0xff]  ;;  %v15102_v36 = vsub.f32 %v254_v1, %v15047_v38  ;;  %v251_v1 = vld [vmem:[%s16357_s1 + $0x738] sm:$0xff]  ;;  %v15130_v4 = vand.u32 4294901760, %v267_v7  ;;  %v15142_v59 = vsub.f32 %v15033_v12, %v16843_v30 }
 0x2dd   :  { %9630 = vmatpush3.msra.mxu1 %v17807_v48  ;;  %9604 = vmatprep.subr.mxu0 %v17809_v44  ;;  %v16844_v48 = vand.u32 4294901760, %v15056_v15  ;;  %v15111_v44 = vsub.f32 %v15005_v8, %v16837_v11  ;;  %v15128_v11 = vsub.f32 %v15027_v52, %v16841_v61  ;;  %v16846_v20 = vand.u32 4294901760, %v15080_v9  ;;  %v250_v61 = vld [vmem:[%s16357_s1 + $0x730] sm:$0xff] }
 0x2de   :  { %9631 = vmatprep.subr.mxu1 %v14578_v34  ;;  %v17810_v34 = vld [vmem:[#allocation21_spill] sm:$0xff]  ;;  %6332 = vmatprep.mubr.f32.mxu0 %v17812_v23  ;;  %17813 = vst [vmem:[#allocation27_spill] sm:$0xff] %v15085_v32  ;;  %17820 = vst [vmem:[#allocation5_spill] sm:$0xff] %v15130_v4  ;;  %v15148_v55 = vsub.f32 %v269_v53, %v15085_v32  ;;  %v15162_v30 = vsub.f32 %v15040_v22, %v16845_v50  ;;  %v17824_v50 = vld [vmem:[#allocation26_spill] sm:$0xff] }
 0x2df   :  { %v17811_v21 = vand.u32 4294901760, %v17810_v34  ;;  %9632 = vmatpush3.msra.mxu1 %v17815_v62  ;;  %v15113_v34 = vand.u32 4294901760, %v268_v37  ;;  %v17819_v62 = vld [vmem:[#allocation16_spill] sm:$0xff]  ;;  %v266_v53 = vld [vmem:[%s16357_s1 + $0x7b0] sm:$0xff]  ;;  %6436 = vmatprep.mubr.f32.mxu1 %v17812_v23 }
 0x2e0   :  { %9633 = vmatprep.subr.mxu1 %v14605_v17  ;;  %v366_v16 = vcombine.high %v17819_v62, %v17819_v62 }
 0x2e1   :  { %9605 = vmatpush3.msra.mxu0 %v17811_v21  ;;  %17817 = vst [vmem:[#allocation3_spill] sm:$0xff] %v15113_v34  ;;  %v15115_v21 = vand.u32 4294901760, %v252_v0  ;;  %9634 = vmatpush3.msra.mxu1 %v14572_v31  ;;  %v15137_v31 = vsub.f32 %v253_v5, %v15092_v28  ;;  %v15157_v5 = vand.u32 4294901760, %v251_v1  ;;  %v15175_v17 = vsub.f32 %v268_v37, %v15113_v34  ;;  %v249_v37 = vld [vmem:[%s16357_s1 + $0x728] sm:$0xff] }
 0x2e2   :  { %6334 = vmatmul.mubr.f32.vlgmr.msra.gmra.mxu0 %v17816_v43  ;;  %9644 = vmatprep.subr.mxu0 %v14903_v35  ;;  %v15178_v47 = vrot.slane %v366_v16, %v17824_v50  ;;  %v15194_v16 = vsub.f32 %v267_v7, %v15130_v4  ;;  %v265_v50 = vld [vmem:[%s16357_s1 + $0x7a8] sm:$0xff]  ;;  %v15226_v23 = vand.u32 4294901760, %v249_v37 }
 0x2e3   :  { %17818 = vst [vmem:[#allocation29_spill] sm:$0xff] %v15115_v21  ;;  %9645 = vmatpush3.msra.mxu0 %v14911_v25  ;;  %9635 = vmatprep.subr.mxu1 %v17766_v51  ;;  %17821 = vst [vmem:[#allocation13_spill] sm:$0xff] %v15137_v31  ;;  %v15155_v51 = vsub.f32 %v15056_v15, %v16844_v48  ;;  %v15172_v62 = vsub.f32 %v252_v0, %v15115_v21  ;;  %v15188_v48 = vand.u32 4294901760, %v250_v61 }
 0x2e4   :  { %9646 = vmatprep.subr.mxu0 %v14922_v46  ;;  %9636 = vmatpush3.msra.mxu1 %v14668_v33  ;;  %17822 = vst [vmem:[#allocation9_spill] sm:$0xff] %v15157_v5  ;;  %v16847_v33 = vand.u32 4294901760, %v15102_v36  ;;  %17825 = vst [vmem:[#allocation6_spill] sm:$0xff] %v15194_v16  ;;  %v15199_v0 = vand.u32 4294901760, %v266_v53  ;;  %v15210_v7 = vsub.f32 %v251_v1, %v15157_v5  ;;  %v264_v1 = vld [vmem:[%s16357_s1 + $0x7a0] sm:$0xff] }
 0x2e5   :  { %9647 = vmatpush3.msra.mxu0 %v14939_v14  ;;  %9637 = vmatprep.subr.mxu1 %v14684_v45  ;;  %17823 = vst [vmem:[#allocation10_spill] sm:$0xff] %v15172_v62  ;;  %v15186_v45 = vsub.f32 %v15080_v9, %v16846_v20  ;;  %17828 = vst [vmem:[#allocation8_spill] sm:$0xff] %v15226_v23  ;;  %v17829_v20 = vand.u32 4294901760, %v15010_v24 }
 0x2e6   :  { %9648 = vmatprep.subr.mxu0 %v14947_v13  ;;  %9638 = vmatpush3.msra.mxu1 %v14686_v63  ;;  %17826 = vst [vmem:[#allocation19_spill] sm:$0xff] %v15199_v0  ;;  %17827 = vst [vmem:[#allocation4_spill] sm:$0xff] %v15210_v7  ;;  %v15216_v29 = vsub.f32 %v15102_v36, %v16847_v33  ;;  %v17831_v63 = vand.u32 4294901760, %v15021_v18  ;;  %v17832_v33 = vand.u32 4294901760, %v15148_v55  ;;  %v17835_v18 = vand.u32 4294901760, %v15045_v19 }
 0x2e7   :  { %9649 = vmatpush3.msra.mxu0 %v14964_v56  ;;  %9639 = vmatprep.subr.mxu1 %v14704_v10  ;;  %v382_v10 = vcombine.high %v15178_v47, %v15178_v47  ;;  %v15279_v13 = vsub.f32 %v249_v37, %v15226_v23  ;;  %v17837_v19 = vand.u32 4294901760, %v15175_v17  ;;  %v17841_v37 = vand.u32 4294901760, %v15194_v16 }
 0x2e8   :  { %9650 = vmatprep.subr.mxu0 %v14979_v2  ;;  %9640 = vmatpush3.msra.mxu1 %v14706_v60  ;;  %v247_v60 = vld [vmem:[%s16357_s1 + $0x718] sm:$0xff]  ;;  %v15242_v2 = vand.u32 4294901760, %v265_v50 }
 0x2e9   :  { %9651 = vmatpush3.msra.mxu0 %v14985_v39  ;;  %6438 = vmatmul.mubr.f32.vlgmr.msra.gmra.mxu1 %v17816_v43  ;;  %v15240_v39 = vsub.f32 %v250_v61, %v15188_v48  ;;  %v15258_v61 = vand.u32 4294901760, %v248_v42  ;;  %v263_v43 = vld [vmem:[%s16357_s1 + $0x798] sm:$0xff]  ;;  %v15263_v56 = vand.u32 4294901760, %v247_v60 }
 0x2ea   :  { %9652 = vmatprep.subr.mxu0 %v14996_v6  ;;  %9679 = vmatprep.subr.mxu1 %v17829_v20  ;;  %17830 = vst [vmem:[#allocation24_spill] sm:$0xff] %v15242_v2  ;;  %v15251_v6 = vsub.f32 %v15148_v55, %v17832_v33  ;;  %v17833_v20 = vand.u32 4294901760, %v15137_v31  ;;  %v6595_v33 = vand.u32 4294901760, %v15216_v29  ;;  %v17838_v29 = vand.u32 4294901760, %v15172_v62 }
 0x2eb   :  { %9653 = vmatpush3.msra.mxu0 %v14998_v27  ;;  %9680 = vmatpush3.msra.mxu1 %v17831_v63  ;;  %17834 = vst [vmem:[#allocation25_spill] sm:$0xff] %v15258_v61  ;;  %v15269_v63 = vand.u32 4294901760, %v264_v1  ;;  %v15273_v27 = vsub.f32 %v266_v53, %v15199_v0  ;;  %v15291_v53 = vand.u32 4294901760, %v382_v10 }
 0x2ec   :  { %v15256_v24 = vsub.f32 %v15137_v31, %v17833_v20  ;;  %9654 = vmatprep.subr.mxu0 %v15023_v41  ;;  %9681 = vmatprep.subr.mxu1 %v17835_v18  ;;  %v17836_v31 = vand.u32 4294901760, %v15070_v3  ;;  %v15284_v18 = vsub.f32 %v15175_v17, %v17837_v19  ;;  %v15289_v20 = vsub.f32 %v15172_v62, %v17838_v29  ;;  %v262_v19 = vld [vmem:[%s16357_s1 + $0x790] sm:$0xff] }
 0x2ed   :  { %9655 = vmatpush3.msra.mxu0 %v15047_v38  ;;  %17839 = vst [vmem:[#allocation30_spill] sm:$0xff] %v15291_v53  ;;  %v17840_v3 = vand.u32 4294901760, %v15090_v54  ;;  %v15301_v38 = vsub.f32 %v15194_v16, %v17841_v37  ;;  %v15307_v29 = vsub.f32 %v265_v50, %v15242_v2  ;;  %v15310_v41 = vand.u32 4294901760, %v15178_v47  ;;  %v246_v50 = vld [vmem:[%s16357_s1 + $0x710] sm:$0xff]  ;;  %6780 = vmatprep.mubr.f32.mxu1 %v15291_v53 }
 0x2ee   :  { %9682 = vmatpush3.msra.mxu1 %v17836_v31  ;;  %9656 = vmatprep.subr.mxu0 %v15085_v32  ;;  %v15296_v31 = vand.u32 4294901760, %v263_v43  ;;  %v17843_v54 = vand.u32 4294901760, %v15111_v44  ;;  %v6602_v37 = vand.u32 4294901760, %v15256_v24  ;;  %v15318_v32 = vsub.f32 %v248_v42, %v15258_v61 }
 0x2ef   :  { %9683 = vmatprep.subr.mxu1 %v17840_v3  ;;  %17842 = vst [vmem:[#allocation14_spill] sm:$0xff] %v15310_v41  ;;  %9657 = vmatpush3.msra.mxu0 %v15092_v28  ;;  %v6714_v3 = vand.u32 4294901760, %v15251_v6  ;;  %v15321_v16 = vsub.f32 %v247_v60, %v15263_v56  ;;  %v17844_v28 = vand.u32 4294901760, %v15128_v11  ;;  %v17845_v44 = vand.u32 4294901760, %v15210_v7  ;;  %v261_v60 = vld [vmem:[%s16357_s1 + $0x788] sm:$0xff] }
 0x2f0   :  { %9684 = vmatpush3.msra.mxu1 %v17843_v54  ;;  %9658 = vmatprep.subr.mxu0 %v15113_v34  ;;  %v245_v54 = vld [vmem:[%s16357_s1 + $0x708] sm:$0xff]  ;;  %v15343_v11 = vsub.f32 %v264_v1, %v15269_v63  ;;  %v6609_v24 = vand.u32 4294901760, %v15289_v20  ;;  %v15350_v42 = vand.u32 4294901760, %v262_v19  ;;  %v15353_v34 = vsub.f32 %v382_v10, %v15291_v53  ;;  %v260_v20 = vld [vmem:[%s16357_s1 + $0x780] sm:$0xff] }
 0x2f1   :  { %9685 = vmatprep.subr.mxu1 %v17844_v28  ;;  %v15332_v6 = vsub.f32 %v15210_v7, %v17845_v44  ;;  %9659 = vmatpush3.msra.mxu0 %v15115_v21  ;;  %v17846_v28 = vand.u32 4294901760, %v15142_v59  ;;  %v6721_v44 = vand.u32 4294901760, %v15284_v18  ;;  %v17848_v7 = vand.u32 4294901760, %v15155_v51  ;;  %v244_v10 = vld [vmem:[%s16357_s1 + $0x700] sm:$0xff]  ;;  %v17886_v53 = vld [vmem:[#allocation24_spill] sm:$0xff] }
 0x2f2   :  { %17847 = vst [vmem:[#allocation31_spill] sm:$0xff] %v15350_v42  ;;  %9660 = vmatprep.subr.mxu0 %v15130_v4  ;;  %v6728_v1 = vand.u32 4294901760, %v15301_v38  ;;  %v15359_v21 = vand.u32 4294901760, %v246_v50  ;;  %v15370_v18 = vsub.f32 %v15178_v47, %v15310_v41  ;;  %v17849_v38 = vand.u32 4294901760, %v15162_v30 }
 0x2f3   :  { %9686 = vmatpush3.msra.mxu1 %v17846_v28  ;;  %9661 = vmatpush3.msra.mxu0 %v15157_v5  ;;  %v15375_v51 = vand.u32 4294901760, %v261_v60  ;;  %v15381_v59 = vsub.f32 %v263_v43, %v15296_v31  ;;  %v17850_v4 = vand.u32 4294901760, %v15186_v45  ;;  %v6616_v47 = vand.u32 4294901760, %v15332_v6 }
 0x2f4   :  { %9687 = vmatprep.subr.mxu1 %v17848_v7  ;;  %v15377_v7 = vand.u32 4294901760, %v245_v54  ;;  %9662 = vmatprep.subr.mxu0 %v15199_v0  ;;  %v17851_v5 = vand.u32 4294901760, %v15273_v27  ;;  %v15395_v43 = vand.u32 4294901760, %v260_v20  ;;  %v15397_v0 = vand.u32 4294901760, %v244_v10 }
 0x2f5   :  { %9688 = vmatpush3.msra.mxu1 %v17849_v38  ;;  %v17852_v38 = vand.u32 4294901760, %v15240_v39  ;;  %9663 = vmatpush3.msra.mxu0 %v15188_v48  ;;  %v15401_v45 = vsub.f32 %v262_v19, %v15350_v42  ;;  %v17853_v6 = vand.u32 4294901760, %v15307_v29 }
 0x2f6   :  { %9689 = vmatprep.subr.mxu1 %v17850_v4  ;;  %v6734_v30 = vsub.f32 %v15273_v27, %v17851_v5  ;;  %9664 = vmatprep.subr.mxu0 %v15242_v2  ;;  %v15405_v5 = vsub.f32 %v246_v50, %v15359_v21  ;;  %v15414_v19 = vsub.f32 %v245_v54, %v15377_v7  ;;  %v17854_v4 = vand.u32 4294901760, %v15279_v13 }
 0x2f7   :  { %v6622_v62 = vsub.f32 %v15240_v39, %v17852_v38  ;;  %9690 = vmatpush3.msra.mxu1 %v6595_v33  ;;  %v6741_v38 = vsub.f32 %v15307_v29, %v17853_v6  ;;  %9665 = vmatpush3.msra.mxu0 %v15226_v23  ;;  %v15421_v2 = vsub.f32 %v261_v60, %v15375_v51  ;;  %v17855_v33 = vand.u32 4294901760, %v15343_v11 }
 0x2f8   :  { %9691 = vmatprep.subr.mxu1 %v6714_v3  ;;  %v6629_v3 = vsub.f32 %v15279_v13, %v17854_v4  ;;  %9666 = vmatprep.subr.mxu0 %v15269_v63  ;;  %v6735_v6 = vand.u32 4294901760, %v6734_v30  ;;  %v15430_v4 = vsub.f32 %v244_v10, %v15397_v0  ;;  %v17857_v60 = vand.u32 4294901760, %v15353_v34 }
 0x2f9   :  { %9692 = vmatpush3.msra.mxu1 %v6602_v37  ;;  %v6623_v28 = vand.u32 4294901760, %v6622_v62  ;;  %v6748_v37 = vsub.f32 %v15343_v11, %v17855_v33  ;;  %9667 = vmatpush3.msra.mxu0 %v15258_v61  ;;  %v15437_v62 = vsub.f32 %v260_v20, %v15395_v43  ;;  %v6742_v30 = vand.u32 4294901760, %v6741_v38 }
 0x2fa   :  { %9693 = vmatprep.subr.mxu1 %v6721_v44  ;;  %17856 = vst [vmem:[#allocation21_spill] sm:$0xff] %v15430_v4  ;;  %v6542_v50 = vsub.f32 %v15353_v34, %v17857_v60  ;;  %9668 = vmatprep.subr.mxu0 %v15296_v31  ;;  %v17859_v33 = vand.u32 4294901760, %v15318_v32  ;;  %v17860_v10 = vand.u32 4294901760, %v15370_v18  ;;  %v6630_v60 = vand.u32 4294901760, %v6629_v3 }
 0x2fb   :  { %9694 = vmatpush3.msra.mxu1 %v6609_v24  ;;  %17858 = vst [vmem:[#allocation32_spill] sm:$0xff] %v15437_v62  ;;  %9669 = vmatpush3.msra.mxu0 %v15263_v56  ;;  %v17861_v20 = vand.u32 4294901760, %v15381_v59  ;;  %v6749_v38 = vand.u32 4294901760, %v6748_v37  ;;  %v17863_v3 = vand.u32 4294901760, %v15401_v45  ;;  %v16892_v61 = vand.u32 4294901760, %v15430_v4 }
 0x2fc   :  { %9695 = vmatprep.subr.mxu1 %v6728_v1  ;;  %v6636_v24 = vsub.f32 %v15318_v32, %v17859_v33  ;;  %v6548_v54 = vsub.f32 %v15370_v18, %v17860_v10  ;;  %9670 = vmatprep.subr.mxu0 %v15350_v42  ;;  %v17862_v33 = vand.u32 4294901760, %v15321_v16  ;;  %v16893_v1 = vand.u32 4294901760, %v15437_v62 }
 0x2fd   :  { %9696 = vmatpush3.msra.mxu1 %v6616_v47  ;;  %v6755_v44 = vsub.f32 %v15381_v59, %v17861_v20  ;;  %9671 = vmatpush3.msra.mxu0 %v15359_v21  ;;  %v6543_v47 = vand.u32 4294901760, %v6542_v50  ;;  %v6762_v20 = vsub.f32 %v15401_v45, %v17863_v3  ;;  %v17864_v42 = vand.u32 4294901760, %v15405_v5 }
 0x2fe   :  { %9697 = vmatprep.subr.mxu1 %v6735_v6  ;;  %v6643_v10 = vsub.f32 %v15321_v16, %v17862_v33  ;;  %9672 = vmatprep.subr.mxu0 %v15375_v51  ;;  %v6637_v6 = vand.u32 4294901760, %v6636_v24  ;;  %v6549_v37 = vand.u32 4294901760, %v6548_v54  ;;  %v17865_v50 = vand.u32 4294901760, %v15421_v2 }
 0x2ff   :  { %9698 = vmatpush3.msra.mxu1 %v6623_v28  ;;  %v6650_v33 = vsub.f32 %v15405_v5, %v17864_v42  ;;  %9673 = vmatpush3.msra.mxu0 %v15377_v7  ;;  %v6756_v28 = vand.u32 4294901760, %v6755_v44  ;;  %v17866_v54 = vand.u32 4294901760, %v15414_v19  ;;  %v6763_v42 = vand.u32 4294901760, %v6762_v20 }
 0x300   :  { %9699 = vmatprep.subr.mxu1 %v6742_v30  ;;  %v6769_v3 = vsub.f32 %v15421_v2, %v17865_v50  ;;  %9674 = vmatprep.subr.mxu0 %v15395_v43  ;;  %v6644_v30 = vand.u32 4294901760, %v6643_v10  ;;  %v6776_v44 = vsub.f32 %v15437_v62, %v16893_v1  ;;  %v17870_v50 = vld [vmem:[#allocation33_spill] sm:$0xff] }
 0x301   :  { %9700 = vmatpush3.msra.mxu1 %v6630_v60  ;;  %v6657_v24 = vsub.f32 %v15414_v19, %v17866_v54  ;;  %9675 = vmatpush3.msra.mxu0 %v15397_v0  ;;  %v6651_v60 = vand.u32 4294901760, %v6650_v33  ;;  %v17868_v33 = vld [vmem:[#allocation13_spill] sm:$0xff]  ;;  %v17873_v54 = vld [vmem:[#allocation6_spill] sm:$0xff] }
 0x302   :  { %9701 = vmatprep.subr.mxu1 %v6749_v38  ;;  %6544 = vmatprep.mubr.f32.mxu0 %v6543_v47  ;;  %v6664_v38 = vsub.f32 %v15430_v4, %v16892_v61  ;;  %v6770_v10 = vand.u32 4294901760, %v6769_v3  ;;  %v6777_v20 = vand.u32 4294901760, %v6776_v44  ;;  %v17871_v3 = vld [vmem:[#allocation10_spill] sm:$0xff]  ;;  %v17876_v44 = vld [vmem:[#allocation15_spill] sm:$0xff]  ;;  %v17883_v61 = vld [vmem:[#allocation5_spill] sm:$0xff] }
 0x303   :  { %9702 = vmatpush3.msra.mxu1 %v6637_v6  ;;  %6550 = vmatmul.mubr.f32.vlgmr.msra.gmra.mxu0 %v6549_v37  ;;  %v6658_v47 = vand.u32 4294901760, %v6657_v24  ;;  %v17867_v37 = vld [vmem:[#allocation28_spill] sm:$0xff]  ;;  %v17874_v24 = vld [vmem:[#allocation11_spill] sm:$0xff]  ;;  %v17884_v1 = vld [vmem:[#allocation9_spill] sm:$0xff] }
 0x304   :  { %9703 = vmatprep.subr.mxu1 %v6756_v28  ;;  %9714 = vmatprep.subr.mxu0 %v14931_v40  ;;  %v6665_v6 = vand.u32 4294901760, %v6664_v38  ;;  %v17869_v28 = vld [vmem:[#allocation22_spill] sm:$0xff]  ;;  %v17878_v38 = vld [vmem:[#allocation23_spill] sm:$0xff] }
 0x305   :  { %9704 = vmatpush3.msra.mxu1 %v6644_v30  ;;  %9715 = vmatpush3.msra.mxu0 %v14937_v26  ;;  %v17872_v30 = vld [vmem:[#allocation7_spill] sm:$0xff] }
 0x306   :  { %9705 = vmatprep.subr.mxu1 %v6763_v42  ;;  %9716 = vmatprep.subr.mxu0 %v14959_v49  ;;  %v17875_v42 = vld [vmem:[#allocation4_spill] sm:$0xff] }
 0x307   :  { %9706 = vmatpush3.msra.mxu1 %v6651_v60  ;;  %9717 = vmatpush3.msra.mxu0 %v14977_v58  ;;  %v17877_v60 = vld [vmem:[#allocation20_spill] sm:$0xff] }
 0x308   :  { %9707 = vmatprep.subr.mxu1 %v6770_v10  ;;  %9718 = vmatprep.subr.mxu0 %v14991_v57  ;;  %v17879_v10 = vld [vmem:[#allocation27_spill] sm:$0xff] }
 0x309   :  { %9708 = vmatpush3.msra.mxu1 %v6658_v47  ;;  %9719 = vmatpush3.msra.mxu0 %v15005_v8  ;;  %v17880_v47 = vld [vmem:[#allocation18_spill] sm:$0xff] }
 0x30a   :  { %9709 = vmatprep.subr.mxu1 %v6777_v20  ;;  %9720 = vmatprep.subr.mxu0 %v15027_v52  ;;  %v17881_v20 = vld [vmem:[#allocation3_spill] sm:$0xff] }
 0x30b   :  { %9710 = vmatpush3.msra.mxu1 %v6665_v6  ;;  %9721 = vmatpush3.msra.mxu0 %v15033_v12  ;;  %v17882_v6 = vld [vmem:[#allocation29_spill] sm:$0xff] }
 0x30c   :  { %6782 = vmatmul.mubr.f32.vlgmr.msra.gmra.mxu1 %v15310_v41  ;;  %9722 = vmatprep.subr.mxu0 %v15056_v15  ;;  %v17885_v41 = vld [vmem:[#allocation19_spill] sm:$0xff] }
 0x30d   :  { %9749 = vmatprep.subr.mxu1 %v14903_v35  ;;  %9723 = vmatpush3.msra.mxu0 %v15040_v22 }
 0x30e   :  { %9750 = vmatpush3.msra.mxu1 %v14911_v25  ;;  %9724 = vmatprep.subr.mxu0 %v15080_v9 }
 0x30f   :  { %9751 = vmatprep.subr.mxu1 %v14922_v46  ;;  %9725 = vmatpush3.msra.mxu0 %v15102_v36 }
 0x310   :  { %9752 = vmatpush3.msra.mxu1 %v14939_v14  ;;  %9726 = vmatprep.subr.mxu0 %v15148_v55 }
 0x311   :  { %9753 = vmatprep.subr.mxu1 %v17867_v37  ;;  %9727 = vmatpush3.msra.mxu0 %v17868_v33 }
 0x312   :  { %9754 = vmatpush3.msra.mxu1 %v17869_v28  ;;  %9728 = vmatprep.subr.mxu0 %v15175_v17 }
 0x313   :  { %9755 = vmatprep.subr.mxu1 %v17870_v50  ;;  %9729 = vmatpush3.msra.mxu0 %v17871_v3 }
 0x314   :  { %9756 = vmatpush3.msra.mxu1 %v17872_v30  ;;  %9730 = vmatprep.subr.mxu0 %v17873_v54 }
 0x315   :  { %9757 = vmatprep.subr.mxu1 %v17874_v24  ;;  %9731 = vmatpush3.msra.mxu0 %v17875_v42 }
 0x316   :  { %9758 = vmatpush3.msra.mxu1 %v17876_v44  ;;  %9732 = vmatprep.subr.mxu0 %v15273_v27 }
 0x317   :  { %9759 = vmatprep.subr.mxu1 %v17877_v60  ;;  %9733 = vmatpush3.msra.mxu0 %v15240_v39 }
 0x318   :  { %9760 = vmatpush3.msra.mxu1 %v17878_v38  ;;  %9734 = vmatprep.subr.mxu0 %v15307_v29 }
 0x319   :  { %9761 = vmatprep.subr.mxu1 %v17879_v10  ;;  %9735 = vmatpush3.msra.mxu0 %v15279_v13 }
 0x31a   :  { %9762 = vmatpush3.msra.mxu1 %v17880_v47  ;;  %9736 = vmatprep.subr.mxu0 %v15343_v11 }
 0x31b   :  { %9763 = vmatprep.subr.mxu1 %v17881_v20  ;;  %9737 = vmatpush3.msra.mxu0 %v15318_v32 }
 0x31c   :  { %9764 = vmatpush3.msra.mxu1 %v17882_v6  ;;  %9738 = vmatprep.subr.mxu0 %v15381_v59 }
 0x31d   :  { %9765 = vmatprep.subr.mxu1 %v17883_v61  ;;  %9739 = vmatpush3.msra.mxu0 %v15321_v16 }
 0x31e   :  { %9766 = vmatpush3.msra.mxu1 %v17884_v1  ;;  %9740 = vmatprep.subr.mxu0 %v15401_v45 }
 0x31f   :  { %9767 = vmatprep.subr.mxu1 %v17885_v41  ;;  %9741 = vmatpush3.msra.mxu0 %v15405_v5  ;;  %v17887_v41 = vld [vmem:[#allocation25_spill] sm:$0xff] }
 0x320   :  { %9768 = vmatpush3.msra.mxu1 %v15188_v48  ;;  %9742 = vmatprep.subr.mxu0 %v15421_v2 }
 0x321   :  { %9769 = vmatprep.subr.mxu1 %v17886_v53  ;;  %9743 = vmatpush3.msra.mxu0 %v15414_v19  ;;  %v17888_v53 = vand.u32 4294901760, %v14931_v40  ;;  %v17893_v40 = vand.u32 4294901760, %v14991_v57  ;;  %v17898_v57 = vand.u32 4294901760, %v15370_v18 }
 0x322   :  { %9770 = vmatpush3.msra.mxu1 %v15226_v23  ;;  %9744 = vmatprep.subr.mxu0 %v15437_v62  ;;  %v17889_v23 = vand.u32 4294901760, %v14937_v26  ;;  %v17890_v62 = vld [vmem:[#allocation31_spill] sm:$0xff]  ;;  %v17894_v26 = vand.u32 4294901760, %v15005_v8  ;;  %v17900_v8 = vand.u32 4294901760, %v15040_v22 }
 0x323   :  { %9771 = vmatprep.subr.mxu1 %v15269_v63  ;;  %9745 = vmatpush3.msra.mxu0 %v15430_v4  ;;  %v17891_v4 = vand.u32 4294901760, %v14959_v49  ;;  %v17895_v49 = vand.u32 4294901760, %v15027_v52  ;;  %v17901_v52 = vand.u32 4294901760, %v15080_v9  ;;  %v306_v9 = vld [vmem:[%s16357_s1 + $0x8f0] sm:$0xff] }
 0x324   :  { %6917 = vmatprep.mubr.f32.mxu0 %v15353_v34  ;;  %9772 = vmatpush3.msra.mxu1 %v17887_v41  ;;  %v17892_v41 = vand.u32 4294901760, %v14977_v58  ;;  %v17896_v58 = vand.u32 4294901760, %v15353_v34  ;;  %v17907_v34 = vand.u32 4294901760, %v17873_v54  ;;  %v17912_v54 = vand.u32 4294901760, %v15307_v29  ;;  %v303_v29 = vld [vmem:[%s16357_s1 + $0x8d8] sm:$0xff] }
 0x325   :  { %6920 = vmatmul.mubr.f32.vlgmr.msra.gmra.mxu0 %v15370_v18  ;;  %9773 = vmatprep.subr.mxu1 %v15296_v31  ;;  %v17908_v18 = vand.u32 4294901760, %v17875_v42  ;;  %v288_v42 = vld [vmem:[%s16357_s1 + $0x860] sm:$0xff] }
 0x326   :  { %9784 = vmatprep.subr.mxu0 %v17888_v53  ;;  %9774 = vmatpush3.msra.mxu1 %v15263_v56  ;;  %v305_v53 = vld [vmem:[%s16357_s1 + $0x8e8] sm:$0xff] }
 0x327   :  { %9785 = vmatpush3.msra.mxu0 %v17889_v23  ;;  %9775 = vmatprep.subr.mxu1 %v17890_v62  ;;  %v17899_v23 = vand.u32 4294901760, %v15056_v15  ;;  %v307_v15 = vld [vmem:[%s16357_s1 + $0x8f8] sm:$0xff] }
 0x328   :  { %9786 = vmatprep.subr.mxu0 %v17891_v4  ;;  %9776 = vmatpush3.msra.mxu1 %v15359_v21  ;;  %v15597_v22 = vand.u32 4294901760, %v307_v15  ;;  %v17909_v4 = vand.u32 4294901760, %v15273_v27  ;;  %v17910_v27 = vand.u32 4294901760, %v15240_v39 }
 0x329   :  { %9787 = vmatpush3.msra.mxu0 %v17892_v41  ;;  %9777 = vmatprep.subr.mxu1 %v15375_v51  ;;  %v17897_v41 = vand.u32 4294901760, %v15033_v12  ;;  %v17902_v12 = vand.u32 4294901760, %v15102_v36  ;;  %v290_v36 = vld [vmem:[%s16357_s1 + $0x870] sm:$0xff] }
 0x32a   :  { %9788 = vmatprep.subr.mxu0 %v17893_v40  ;;  %9778 = vmatpush3.msra.mxu1 %v15377_v7 }
 0x32b   :  { %9789 = vmatpush3.msra.mxu0 %v17894_v26  ;;  %9779 = vmatprep.subr.mxu1 %v15395_v43  ;;  %v17917_v26 = vand.u32 4294901760, %v15318_v32 }
 0x32c   :  { %9790 = vmatprep.subr.mxu0 %v17895_v49  ;;  %9780 = vmatpush3.msra.mxu1 %v15397_v0  ;;  %v15675_v49 = vand.u32 4294901760, %v288_v42 }
 0x32d   :  { %7024 = vmatprep.mubr.f32.mxu1 %v17896_v58  ;;  %9791 = vmatpush3.msra.mxu0 %v17897_v41  ;;  %v17919_v58 = vand.u32 4294901760, %v15381_v59  ;;  %v15686_v41 = vand.u32 4294901760, %v303_v29  ;;  %v286_v59 = vld [vmem:[%s16357_s1 + $0x850] sm:$0xff] }
 0x32e   :  { %7028 = vmatmul.mubr.f32.vlgmr.msra.gmra.mxu1 %v17898_v57  ;;  %9792 = vmatprep.subr.mxu0 %v17899_v23  ;;  %17918 = vst [vmem:[#allocation26_spill] sm:$0xff] %v15675_v49  ;;  %v17922_v57 = vand.u32 4294901760, %v15321_v16 }
 0x32f   :  { %9819 = vmatprep.subr.mxu1 %v14903_v35  ;;  %9793 = vmatpush3.msra.mxu0 %v17900_v8  ;;  %v17903_v35 = vand.u32 4294901760, %v15148_v55  ;;  %v17906_v55 = vand.u32 4294901760, %v17871_v3  ;;  %v15633_v3 = vsub.f32 %v307_v15, %v15597_v22  ;;  %17920 = vst [vmem:[#allocation28_spill] sm:$0xff] %v15686_v41  ;;  %v17923_v8 = vand.u32 4294901760, %v15401_v45 }
 0x330   :  { %9820 = vmatpush3.msra.mxu1 %v14911_v25  ;;  %9794 = vmatprep.subr.mxu0 %v17901_v52  ;;  %v17904_v25 = vand.u32 4294901760, %v17868_v33  ;;  %v15624_v33 = vand.u32 4294901760, %v290_v36  ;;  %v17924_v52 = vld [vmem:[#allocation19_spill] sm:$0xff]  ;;  %v15719_v45 = vsub.f32 %v288_v42, %v15675_v49 }
 0x331   :  { %9821 = vmatprep.subr.mxu1 %v14922_v46  ;;  %9795 = vmatpush3.msra.mxu0 %v17902_v12  ;;  %v291_v46 = vld [vmem:[%s16357_s1 + $0x878] sm:$0xff]  ;;  %v300_v42 = vld [vmem:[%s16357_s1 + $0x8c0] sm:$0xff] }
 0x332   :  { %9822 = vmatpush3.msra.mxu1 %v14939_v14  ;;  %9796 = vmatprep.subr.mxu0 %v17903_v35  ;;  %v17905_v14 = vand.u32 4294901760, %v15175_v17  ;;  %v15611_v17 = vand.u32 4294901760, %v291_v46  ;;  %v17926_v35 = vand.u32 4294901760, %v15405_v5 }
 0x333   :  { %9823 = vmatprep.subr.mxu1 %v17867_v37  ;;  %9797 = vmatpush3.msra.mxu0 %v17904_v25  ;;  %v15622_v37 = vand.u32 4294901760, %v306_v9 }
 0x334   :  { %9824 = vmatpush3.msra.mxu1 %v17869_v28  ;;  %9798 = vmatprep.subr.mxu0 %v17905_v14  ;;  %v289_v28 = vld [vmem:[%s16357_s1 + $0x868] sm:$0xff] }
 0x335   :  { %9825 = vmatprep.subr.mxu1 %v17870_v50  ;;  %9799 = vmatpush3.msra.mxu0 %v17906_v55  ;;  %v304_v50 = vld [vmem:[%s16357_s1 + $0x8e0] sm:$0xff]  ;;  %v15652_v39 = vand.u32 4294901760, %v289_v28  ;;  %v15670_v40 = vsub.f32 %v306_v9, %v15622_v37  ;;  %v17928_v14 = vld [vmem:[#allocation24_spill] sm:$0xff]  ;;  %v15733_v9 = vand.u32 4294901760, %v286_v59 }
 0x336   :  { %9826 = vmatpush3.msra.mxu1 %v17872_v30  ;;  %9800 = vmatprep.subr.mxu0 %v17907_v34  ;;  %v15638_v30 = vand.u32 4294901760, %v305_v53  ;;  %v17930_v34 = vand.u32 4294901760, %v15414_v19 }
 0x337   :  { %9827 = vmatprep.subr.mxu1 %v17874_v24  ;;  %9801 = vmatpush3.msra.mxu0 %v17908_v18  ;;  %v15644_v24 = vsub.f32 %v291_v46, %v15611_v17  ;;  %17914 = vst [vmem:[#allocation17_spill] sm:$0xff] %v15652_v39  ;;  %v15695_v23 = vsub.f32 %v289_v28, %v15652_v39  ;;  %v16905_v12 = vand.u32 4294901760, %v15670_v40  ;;  %v17927_v46 = vand.u32 4294901760, %v15421_v2  ;;  %v285_v2 = vld [vmem:[%s16357_s1 + $0x848] sm:$0xff] }
 0x338   :  { %9828 = vmatpush3.msra.mxu1 %v17876_v44  ;;  %9802 = vmatprep.subr.mxu0 %v17909_v4  ;;  %17911 = vst [vmem:[#allocation12_spill] sm:$0xff] %v15638_v30  ;;  %v17913_v44 = vand.u32 4294901760, %v15279_v13  ;;  %v15666_v13 = vsub.f32 %v290_v36, %v15624_v33  ;;  %17929 = vst [vmem:[#allocation33_spill] sm:$0xff] %v15733_v9  ;;  %v15742_v36 = vsub.f32 %v303_v29, %v15686_v41  ;;  %v17932_v28 = vld [vmem:[#allocation32_spill] sm:$0xff]  ;;  %v17934_v29 = vld [vmem:[#allocation21_spill] sm:$0xff] }
 0x339   :  { %9829 = vmatprep.subr.mxu1 %v17877_v60  ;;  %9803 = vmatpush3.msra.mxu0 %v17910_v27  ;;  %v15654_v60 = vand.u32 4294901760, %v304_v50  ;;  %v16901_v18 = vand.u32 4294901760, %v15695_v23 }
 0x33a   :  { %9830 = vmatpush3.msra.mxu1 %v17878_v38  ;;  %9804 = vmatprep.subr.mxu0 %v17912_v54  ;;  %v287_v38 = vld [vmem:[%s16357_s1 + $0x858] sm:$0xff]  ;;  %v16904_v15 = vand.u32 4294901760, %v15666_v13  ;;  %v15756_v54 = vsub.f32 %v15670_v40, %v16905_v12  ;;  %v282_v12 = vld [vmem:[%s16357_s1 + $0x830] sm:$0xff] }
 0x33b   :  { %9831 = vmatprep.subr.mxu1 %v17879_v10  ;;  %9805 = vmatpush3.msra.mxu0 %v17913_v44  ;;  %17915 = vst [vmem:[#allocation16_spill] sm:$0xff] %v15654_v60  ;;  %v17916_v10 = vand.u32 4294901760, %v15343_v11  ;;  %v302_v11 = vld [vmem:[%s16357_s1 + $0x8d0] sm:$0xff]  ;;  %v15688_v32 = vand.u32 4294901760, %v287_v38 }
 0x33c   :  { %9832 = vmatpush3.msra.mxu1 %v17880_v47  ;;  %v16909_v47 = vand.u32 4294901760, %v15633_v3  ;;  %v15761_v19 = vsub.f32 %v15666_v13, %v16904_v15 }
 0x33d   :  { %9806 = vmatprep.subr.mxu0 %v17916_v10  ;;  %9833 = vmatprep.subr.mxu1 %v17881_v20  ;;  %v15681_v20 = vsub.f32 %v305_v53, %v15638_v30  ;;  %17921 = vst [vmem:[#allocation13_spill] sm:$0xff] %v15688_v32  ;;  %v15726_v55 = vsub.f32 %v287_v38, %v15688_v32  ;;  %v17931_v53 = vld [vmem:[#allocation8_spill] sm:$0xff]  ;;  %v17935_v38 = vand.u32 4294901760, %v17934_v29  ;;  %v17936_v10 = vld [vmem:[#allocation30_spill] sm:$0xff] }
 0x33e   :  { %9807 = vmatpush3.msra.mxu0 %v17917_v26  ;;  %9834 = vmatpush3.msra.mxu1 %v17882_v6  ;;  %v16906_v6 = vand.u32 4294901760, %v15644_v24  ;;  %v15709_v16 = vsub.f32 %v15633_v3, %v16909_v47  ;;  %v281_v47 = vld [vmem:[%s16357_s1 + $0x828] sm:$0xff] }
 0x33f   :  { %9808 = vmatprep.subr.mxu0 %v17919_v58  ;;  %9835 = vmatprep.subr.mxu1 %v17883_v61  ;;  %v15701_v61 = vsub.f32 %v304_v50, %v15654_v60  ;;  %v16902_v25 = vand.u32 4294901760, %v15681_v20  ;;  %v17933_v50 = vand.u32 4294901760, %v17932_v28  ;;  %v15801_v28 = vsub.f32 %v15695_v23, %v16901_v18 }
 0x340   :  { %9809 = vmatpush3.msra.mxu0 %v17922_v57  ;;  %9836 = vmatpush3.msra.mxu1 %v17884_v1  ;;  %v15711_v1 = vand.u32 4294901760, %v302_v11  ;;  %v15731_v5 = vsub.f32 %v15644_v24, %v16906_v6  ;;  %v15782_v57 = vand.u32 4294901760, %v285_v2 }
 0x341   :  { %9810 = vmatprep.subr.mxu0 %v17923_v8  ;;  %9837 = vmatprep.subr.mxu1 %v17924_v52  ;;  %v16903_v4 = vand.u32 4294901760, %v15701_v61  ;;  %v15780_v58 = vsub.f32 %v15681_v20, %v16902_v25  ;;  %v16907_v8 = vand.u32 4294901760, %v15719_v45  ;;  %v17939_v52 = vld [vmem:[#allocation25_spill] sm:$0xff] }
 0x342   :  { %17925 = vst [vmem:[#allocation22_spill] sm:$0xff] %v15711_v1  ;;  %9811 = vmatpush3.msra.mxu0 %v17926_v35  ;;  %9838 = vmatpush3.msra.mxu1 %v15188_v48  ;;  %v301_v48 = vld [vmem:[%s16357_s1 + $0x8c8] sm:$0xff]  ;;  %v15770_v44 = vsub.f32 %v302_v11, %v15711_v1  ;;  %17938 = vst [vmem:[#allocation7_spill] sm:$0xff] %v15782_v57  ;;  %v299_v11 = vld [vmem:[%s16357_s1 + $0x8b8] sm:$0xff]  ;;  %v15826_v15 = vsub.f32 %v285_v2, %v15782_v57 }
 0x343   :  { %9812 = vmatprep.subr.mxu0 %v17927_v46  ;;  %9839 = vmatprep.subr.mxu1 %v17928_v14  ;;  %v15775_v26 = vand.u32 4294901760, %v301_v48  ;;  %v17940_v35 = vld [vmem:[#allocation14_spill] sm:$0xff]  ;;  %v15792_v14 = vsub.f32 %v286_v59, %v15733_v9  ;;  %v15808_v59 = vsub.f32 %v15701_v61, %v16903_v4  ;;  %v15819_v18 = vand.u32 4294901760, %v299_v11 }
 0x344   :  { %9813 = vmatpush3.msra.mxu0 %v17930_v34  ;;  %9840 = vmatpush3.msra.mxu1 %v17931_v53  ;;  %v16908_v34 = vand.u32 4294901760, %v15742_v36  ;;  %v16910_v53 = vand.u32 4294901760, %v15726_v55  ;;  %v16911_v25 = vand.u32 4294901760, %v15770_v44  ;;  %17944 = vst [vmem:[#allocation15_spill] sm:$0xff] %v15826_v15 }
 0x345   :  { %9814 = vmatprep.subr.mxu0 %v17933_v50  ;;  %9841 = vmatprep.subr.mxu1 %v15269_v63  ;;  %v284_v63 = vld [vmem:[%s16357_s1 + $0x840] sm:$0xff]  ;;  %17937 = vst [vmem:[#allocation10_spill] sm:$0xff] %v15775_v26  ;;  %v15803_v50 = vand.u32 4294901760, %v300_v42  ;;  %17943 = vst [vmem:[#allocation4_spill] sm:$0xff] %v15819_v18  ;;  %v15837_v6 = vsub.f32 %v301_v48, %v15775_v26  ;;  %v298_v48 = vld [vmem:[%s16357_s1 + $0x8b0] sm:$0xff] }
 0x346   :  { %9815 = vmatpush3.msra.mxu0 %v17935_v38  ;;  %7194 = vmatprep.mubr.f32.mxu0 %v17936_v10  ;;  %v15810_v29 = vand.u32 4294901760, %v284_v63  ;;  %v280_v38 = vld [vmem:[%s16357_s1 + $0x820] sm:$0xff] }
 0x347   :  { %9842 = vmatpush3.msra.mxu1 %v17939_v52  ;;  %7196 = vmatmul.mubr.f32.vlgmr.msra.gmra.mxu0 %v17940_v35  ;;  %17941 = vst [vmem:[#allocation6_spill] sm:$0xff] %v15803_v50  ;;  %v15874_v52 = vand.u32 4294901760, %v282_v12 }
 0x348   :  { %9843 = vmatprep.subr.mxu1 %v15296_v31  ;;  %9854 = vmatprep.subr.mxu0 %v15597_v22  ;;  %17942 = vst [vmem:[#allocation11_spill] sm:$0xff] %v15810_v29  ;;  %v283_v31 = vld [vmem:[%s16357_s1 + $0x838] sm:$0xff]  ;;  %v15862_v4 = vsub.f32 %v284_v63, %v15810_v29  ;;  %v15880_v63 = vsub.f32 %v299_v11, %v15819_v18  ;;  %v17951_v11 = vand.u32 4294901760, %v15709_v16  ;;  %v17955_v16 = vand.u32 4294901760, %v15826_v15 }
 0x349   :  { %9844 = vmatpush3.msra.mxu1 %v15263_v56  ;;  %9855 = vmatpush3.msra.mxu0 %v15611_v17  ;;  %v15831_v56 = vsub.f32 %v15719_v45, %v16907_v8  ;;  %v15846_v2 = vand.u32 4294901760, %v283_v31  ;;  %v15851_v8 = vsub.f32 %v15726_v55, %v16910_v53  ;;  %v15865_v53 = vsub.f32 %v300_v42, %v15803_v50 }
 0x34a   :  { %9845 = vmatprep.subr.mxu1 %v17890_v62  ;;  %9856 = vmatprep.subr.mxu0 %v15622_v37  ;;  %v15844_v62 = vsub.f32 %v15742_v36, %v16908_v34  ;;  %17946 = vst [vmem:[#allocation23_spill] sm:$0xff] %v15862_v4  ;;  %17947 = vst [vmem:[#allocation27_spill] sm:$0xff] %v15880_v63  ;;  %v297_v34 = vld [vmem:[%s16357_s1 + $0x8a8] sm:$0xff]  ;;  %v17953_v42 = vand.u32 4294901760, %v15731_v5  ;;  %v17957_v5 = vand.u32 4294901760, %v15756_v54 }
 0x34b   :  { %9846 = vmatpush3.msra.mxu1 %v15359_v21  ;;  %9857 = vmatpush3.msra.mxu0 %v15624_v33  ;;  %17945 = vst [vmem:[#allocation20_spill] sm:$0xff] %v15846_v2  ;;  %v16912_v21 = vand.u32 4294901760, %v15792_v14  ;;  %v15901_v46 = vsub.f32 %v283_v31, %v15846_v2  ;;  %v296_v31 = vld [vmem:[%s16357_s1 + $0x8a0] sm:$0xff]  ;;  %v17959_v54 = vand.u32 4294901760, %v15865_v53 }
 0x34c   :  { %9847 = vmatprep.subr.mxu1 %v15375_v51  ;;  %9858 = vmatprep.subr.mxu0 %v15638_v30  ;;  %v15872_v51 = vsub.f32 %v15770_v44, %v16911_v25  ;;  %v15890_v25 = vand.u32 4294901760, %v298_v48 }
 0x34d   :  { %9848 = vmatpush3.msra.mxu1 %v15377_v7  ;;  %9859 = vmatpush3.msra.mxu0 %v15652_v39  ;;  %v15885_v7 = vld.sshfl [vmem:[%s16358_s0 + $0x20] sm:$0x33 pattern:$0x76325410]  ;;  %17949 = vst [vmem:[#allocation3_spill] sm:$0xff] %v15901_v46  ;;  %v15907_v27 = vsub.f32 %v15792_v14, %v16912_v21  ;;  %v17954_v21 = vand.u32 4294901760, %v15837_v6 }
 0x34e   :  { %9849 = vmatprep.subr.mxu1 %v15395_v43  ;;  %9860 = vmatprep.subr.mxu0 %v15654_v60  ;;  %17948 = vst [vmem:[#allocation18_spill] sm:$0xff] %v15890_v25  ;;  %v390_v43 = vcombine.high %v15885_v7, %v15885_v7  ;;  %v15933_v60 = vand.u32 4294901760, %v297_v34 }
 0x34f   :  { %9850 = vmatpush3.msra.mxu1 %v15397_v0  ;;  %7298 = vmatprep.mubr.f32.mxu1 %v17936_v10  ;;  %v279_v0 = vld [vmem:[%s16357_s1 + $0x818] sm:$0xff]  ;;  %v15917_v10 = vand.u32 4294901760, %v281_v47 }
 0x350   :  { %9861 = vmatpush3.msra.mxu0 %v15675_v49  ;;  %7300 = vmatmul.mubr.f32.vlgmr.msra.gmra.mxu1 %v17940_v35  ;;  %v15931_v49 = vsub.f32 %v282_v12, %v15874_v52  ;;  %17952 = vst [vmem:[#allocation5_spill] sm:$0xff] %v15933_v60  ;;  %v15949_v12 = vand.u32 4294901760, %v280_v38  ;;  %v295_v35 = vld [vmem:[%s16357_s1 + $0x898] sm:$0xff]  ;;  %v15954_v39 = vand.u32 4294901760, %v279_v0 }
 0x351   :  { %17950 = vst [vmem:[#allocation29_spill] sm:$0xff] %v15917_v10  ;;  %9862 = vmatprep.subr.mxu0 %v15686_v41  ;;  %9889 = vmatprep.subr.mxu1 %v17951_v11  ;;  %v15942_v41 = vsub.f32 %v15837_v6, %v17954_v21  ;;  %v15947_v11 = vsub.f32 %v15826_v15, %v17955_v16  ;;  %v7457_v21 = vand.u32 4294901760, %v15907_v27  ;;  %v17958_v15 = vand.u32 4294901760, %v15761_v19 }
 0x352   :  { %9863 = vmatpush3.msra.mxu0 %v15688_v32  ;;  %9890 = vmatpush3.msra.mxu1 %v17953_v42  ;;  %17956 = vst [vmem:[#allocation9_spill] sm:$0xff] %v15949_v12  ;;  %v15960_v42 = vand.u32 4294901760, %v296_v31  ;;  %v15964_v32 = vsub.f32 %v298_v48, %v15890_v25  ;;  %v15970_v30 = vsub.f32 %v281_v47, %v15917_v10  ;;  %v17960_v27 = vand.u32 4294901760, %v15862_v4 }
 0x353   :  { %9864 = vmatprep.subr.mxu0 %v15711_v1  ;;  %9891 = vmatprep.subr.mxu1 %v17957_v5  ;;  %v15975_v5 = vsub.f32 %v15865_v53, %v17959_v54  ;;  %v15982_v48 = vand.u32 4294901760, %v390_v43  ;;  %v17962_v19 = vand.u32 4294901760, %v15780_v58  ;;  %v17963_v47 = vand.u32 4294901760, %v15880_v63  ;;  %v294_v54 = vld [vmem:[%s16357_s1 + $0x890] sm:$0xff] }
 0x354   :  { %9865 = vmatpush3.msra.mxu0 %v15733_v9  ;;  %9892 = vmatpush3.msra.mxu1 %v17958_v15  ;;  %v15980_v16 = vsub.f32 %v15862_v4, %v17960_v27  ;;  %v15987_v15 = vand.u32 4294901760, %v295_v35  ;;  %v15998_v27 = vsub.f32 %v297_v34, %v15933_v60  ;;  %v16001_v1 = vand.u32 4294901760, %v15885_v7  ;;  %v278_v34 = vld [vmem:[%s16357_s1 + $0x810] sm:$0xff] }
 0x355   :  { %17961 = vst [vmem:[#allocation31_spill] sm:$0xff] %v15982_v48  ;;  %9866 = vmatprep.subr.mxu0 %v15775_v26  ;;  %9893 = vmatprep.subr.mxu1 %v17962_v19  ;;  %v15992_v9 = vsub.f32 %v15880_v63, %v17963_v47  ;;  %v17965_v58 = vand.u32 4294901760, %v15801_v28  ;;  %v7576_v19 = vand.u32 4294901760, %v15942_v41  ;;  %v7464_v47 = vand.u32 4294901760, %v15947_v11 }
 0x356   :  { %17964 = vst [vmem:[#allocation19_spill] sm:$0xff] %v16001_v1  ;;  %9867 = vmatpush3.msra.mxu0 %v15782_v57  ;;  %v16009_v26 = vsub.f32 %v280_v38, %v15949_v12  ;;  %v16012_v63 = vsub.f32 %v279_v0, %v15954_v39  ;;  %v17966_v57 = vand.u32 4294901760, %v15808_v59  ;;  %v17967_v28 = vand.u32 4294901760, %v15901_v46  ;;  %v293_v0 = vld [vmem:[%s16357_s1 + $0x888] sm:$0xff]  ;;  %7642 = vmatprep.mubr.f32.mxu1 %v15982_v48 }
 0x357   :  { %9894 = vmatpush3.msra.mxu1 %v17965_v58  ;;  %9868 = vmatprep.subr.mxu0 %v15803_v50  ;;  %v277_v58 = vld [vmem:[%s16357_s1 + $0x808] sm:$0xff]  ;;  %v16034_v59 = vsub.f32 %v296_v31, %v15960_v42  ;;  %v7471_v11 = vand.u32 4294901760, %v15980_v16  ;;  %v16041_v38 = vand.u32 4294901760, %v294_v54  ;;  %v16044_v50 = vsub.f32 %v390_v43, %v15982_v48  ;;  %v292_v16 = vld [vmem:[%s16357_s1 + $0x880] sm:$0xff]  ;;  %v18008_v48 = vld [vmem:[#allocation5_spill] sm:$0xff] }
 0x358   :  { %9895 = vmatprep.subr.mxu1 %v17966_v57  ;;  %v16023_v41 = vsub.f32 %v15901_v46, %v17967_v28  ;;  %9869 = vmatpush3.msra.mxu0 %v15810_v29  ;;  %v17968_v57 = vand.u32 4294901760, %v15831_v56  ;;  %v7583_v28 = vand.u32 4294901760, %v15975_v5  ;;  %v17970_v46 = vand.u32 4294901760, %v15844_v62  ;;  %v276_v43 = vld [vmem:[%s16357_s1 + $0x800] sm:$0xff] }
 0x359   :  { %17969 = vst [vmem:[#allocation24_spill] sm:$0xff] %v16041_v38  ;;  %9870 = vmatprep.subr.mxu0 %v15819_v18  ;;  %v7590_v31 = vand.u32 4294901760, %v15992_v9  ;;  %v16050_v29 = vand.u32 4294901760, %v278_v34  ;;  %v16061_v5 = vsub.f32 %v15885_v7, %v16001_v1  ;;  %v17971_v9 = vand.u32 4294901760, %v15851_v8 }
 0x35a   :  { %9896 = vmatpush3.msra.mxu1 %v17968_v57  ;;  %9871 = vmatpush3.msra.mxu0 %v15846_v2  ;;  %v16068_v62 = vand.u32 4294901760, %v277_v58  ;;  %v16072_v56 = vsub.f32 %v295_v35, %v15987_v15  ;;  %v17972_v18 = vand.u32 4294901760, %v15872_v51  ;;  %v7478_v7 = vand.u32 4294901760, %v16023_v41 }
 0x35b   :  { %9897 = vmatprep.subr.mxu1 %v17970_v46  ;;  %v16066_v46 = vand.u32 4294901760, %v293_v0  ;;  %9872 = vmatprep.subr.mxu0 %v15890_v25  ;;  %v17973_v2 = vand.u32 4294901760, %v15964_v32  ;;  %v16086_v35 = vand.u32 4294901760, %v292_v16  ;;  %v16088_v25 = vand.u32 4294901760, %v276_v43 }
 0x35c   :  { %9898 = vmatpush3.msra.mxu1 %v17971_v9  ;;  %v17974_v9 = vand.u32 4294901760, %v15931_v49  ;;  %9873 = vmatpush3.msra.mxu0 %v15874_v52  ;;  %v16092_v51 = vsub.f32 %v294_v54, %v16041_v38  ;;  %v17975_v41 = vand.u32 4294901760, %v15998_v27  ;;  %v16105_v54 = vsub.f32 %v277_v58, %v16068_v62 }
 0x35d   :  { %9899 = vmatprep.subr.mxu1 %v17972_v18  ;;  %v7596_v8 = vsub.f32 %v15964_v32, %v17973_v2  ;;  %9874 = vmatprep.subr.mxu0 %v15933_v60  ;;  %v16096_v2 = vsub.f32 %v278_v34, %v16050_v29  ;;  %v17976_v18 = vand.u32 4294901760, %v15970_v30  ;;  %v16112_v60 = vsub.f32 %v293_v0, %v16066_v46 }
 0x35e   :  { %v7484_v4 = vsub.f32 %v15931_v49, %v17974_v9  ;;  %9900 = vmatpush3.msra.mxu1 %v7457_v21  ;;  %v7603_v9 = vsub.f32 %v15998_v27, %v17975_v41  ;;  %9875 = vmatpush3.msra.mxu0 %v15917_v10  ;;  %v17977_v21 = vand.u32 4294901760, %v16034_v59  ;;  %v17979_v0 = vand.u32 4294901760, %v16044_v50 }
 0x35f   :  { %9901 = vmatprep.subr.mxu1 %v7576_v19  ;;  %v7491_v19 = vsub.f32 %v15970_v30, %v17976_v18  ;;  %9876 = vmatprep.subr.mxu0 %v15960_v42  ;;  %v7597_v41 = vand.u32 4294901760, %v7596_v8  ;;  %v16121_v18 = vsub.f32 %v276_v43, %v16088_v25  ;;  %v17982_v43 = vand.u32 4294901760, %v16061_v5 }
 0x360   :  { %9902 = vmatpush3.msra.mxu1 %v7464_v47  ;;  %v7485_v57 = vand.u32 4294901760, %v7484_v4  ;;  %v7610_v47 = vsub.f32 %v16034_v59, %v17977_v21  ;;  %9877 = vmatpush3.msra.mxu0 %v15949_v12  ;;  %v7404_v34 = vsub.f32 %v16044_v50, %v17979_v0  ;;  %v16128_v4 = vsub.f32 %v292_v16, %v16086_v35 }
 0x361   :  { %9903 = vmatprep.subr.mxu1 %v7583_v28  ;;  %17978 = vst [vmem:[#allocation8_spill] sm:$0xff] %v16121_v18  ;;  %9878 = vmatprep.subr.mxu0 %v15987_v15  ;;  %v7604_v8 = vand.u32 4294901760, %v7603_v9  ;;  %v17981_v21 = vand.u32 4294901760, %v16009_v26  ;;  %v7410_v58 = vsub.f32 %v16061_v5, %v17982_v43  ;;  %v7492_v0 = vand.u32 4294901760, %v7491_v19 }
 0x362   :  { %9904 = vmatpush3.msra.mxu1 %v7471_v11  ;;  %17980 = vst [vmem:[#allocation32_spill] sm:$0xff] %v16128_v4  ;;  %9879 = vmatpush3.msra.mxu0 %v15954_v39  ;;  %v17983_v16 = vand.u32 4294901760, %v16072_v56  ;;  %v7611_v9 = vand.u32 4294901760, %v7610_v47  ;;  %v17985_v19 = vand.u32 4294901760, %v16092_v51  ;;  %v16957_v12 = vand.u32 4294901760, %v16121_v18 }
 0x363   :  { %9905 = vmatprep.subr.mxu1 %v7590_v31  ;;  %v7498_v11 = vsub.f32 %v16009_v26, %v17981_v21  ;;  %9880 = vmatprep.subr.mxu0 %v16041_v38  ;;  %v17984_v21 = vand.u32 4294901760, %v16012_v63  ;;  %v16958_v31 = vand.u32 4294901760, %v16128_v4  ;;  %v7411_v47 = vand.u32 4294901760, %v7410_v58 }
 0x364   :  { %9906 = vmatpush3.msra.mxu1 %v7478_v7  ;;  %v7617_v28 = vsub.f32 %v16072_v56, %v17983_v16  ;;  %9881 = vmatpush3.msra.mxu0 %v16050_v29  ;;  %v7405_v7 = vand.u32 4294901760, %v7404_v34  ;;  %v7624_v16 = vsub.f32 %v16092_v51, %v17985_v19  ;;  %v17986_v38 = vand.u32 4294901760, %v16096_v2 }
 0x365   :  { %9907 = vmatprep.subr.mxu1 %v7597_v41  ;;  %v7505_v43 = vsub.f32 %v16012_v63, %v17984_v21  ;;  %9882 = vmatprep.subr.mxu0 %v16066_v46  ;;  %v7499_v41 = vand.u32 4294901760, %v7498_v11  ;;  %v17987_v34 = vand.u32 4294901760, %v16112_v60  ;;  %v17988_v58 = vand.u32 4294901760, %v16105_v54 }
 0x366   :  { %9908 = vmatpush3.msra.mxu1 %v7485_v57  ;;  %v7512_v21 = vsub.f32 %v16096_v2, %v17986_v38  ;;  %9883 = vmatpush3.msra.mxu0 %v16068_v62  ;;  %v7618_v57 = vand.u32 4294901760, %v7617_v28  ;;  %v7625_v38 = vand.u32 4294901760, %v7624_v16  ;;  %v7638_v28 = vsub.f32 %v16128_v4, %v16958_v31  ;;  %v18006_v31 = vld [vmem:[#allocation20_spill] sm:$0xff] }
 0x367   :  { %9909 = vmatprep.subr.mxu1 %v7604_v8  ;;  %v7631_v19 = vsub.f32 %v16112_v60, %v17987_v34  ;;  %9884 = vmatprep.subr.mxu0 %v16086_v35  ;;  %v7506_v8 = vand.u32 4294901760, %v7505_v43  ;;  %v7519_v11 = vsub.f32 %v16105_v54, %v17988_v58  ;;  %v17992_v34 = vld [vmem:[#allocation16_spill] sm:$0xff]  ;;  %v17995_v58 = vld [vmem:[#allocation27_spill] sm:$0xff] }
 0x368   :  { %9910 = vmatpush3.msra.mxu1 %v7492_v0  ;;  %9885 = vmatpush3.msra.mxu0 %v16088_v25  ;;  %v7513_v0 = vand.u32 4294901760, %v7512_v21  ;;  %v7639_v16 = vand.u32 4294901760, %v7638_v28  ;;  %v17990_v21 = vld [vmem:[#allocation15_spill] sm:$0xff]  ;;  %v17998_v28 = vld [vmem:[#allocation13_spill] sm:$0xff] }
 0x369   :  { %9911 = vmatprep.subr.mxu1 %v7611_v9  ;;  %7406 = vmatprep.mubr.f32.mxu0 %v7405_v7  ;;  %v7526_v9 = vsub.f32 %v16121_v18, %v16957_v12  ;;  %v7632_v43 = vand.u32 4294901760, %v7631_v19  ;;  %v7520_v7 = vand.u32 4294901760, %v7519_v11  ;;  %v17993_v19 = vld [vmem:[#allocation23_spill] sm:$0xff]  ;;  %v17996_v11 = vld [vmem:[#allocation28_spill] sm:$0xff] }
 0x36a   :  { %9912 = vmatpush3.msra.mxu1 %v7499_v41  ;;  %7412 = vmatmul.mubr.f32.vlgmr.msra.gmra.mxu0 %v7411_v47  ;;  %v17989_v47 = vld [vmem:[#allocation12_spill] sm:$0xff] }
 0x36b   :  { %9913 = vmatprep.subr.mxu1 %v7618_v57  ;;  %9924 = vmatprep.subr.mxu0 %v15633_v3  ;;  %v7527_v41 = vand.u32 4294901760, %v7526_v9  ;;  %v17991_v57 = vld [vmem:[#allocation17_spill] sm:$0xff]  ;;  %v18005_v12 = vld [vmem:[#allocation4_spill] sm:$0xff] }
 0x36c   :  { %9914 = vmatpush3.msra.mxu1 %v7506_v8  ;;  %9925 = vmatpush3.msra.mxu0 %v15644_v24  ;;  %v17994_v8 = vld [vmem:[#allocation26_spill] sm:$0xff]  ;;  %v18000_v9 = vld [vmem:[#allocation33_spill] sm:$0xff] }
 0x36d   :  { %9915 = vmatprep.subr.mxu1 %v7625_v38  ;;  %9926 = vmatprep.subr.mxu0 %v15670_v40  ;;  %v17997_v38 = vld [vmem:[#allocation3_spill] sm:$0xff] }
 0x36e   :  { %9916 = vmatpush3.msra.mxu1 %v7513_v0  ;;  %9927 = vmatpush3.msra.mxu0 %v15666_v13  ;;  %v17999_v0 = vld [vmem:[#allocation22_spill] sm:$0xff] }
 0x36f   :  { %9917 = vmatprep.subr.mxu1 %v7632_v43  ;;  %9928 = vmatprep.subr.mxu0 %v15681_v20  ;;  %v18001_v43 = vld [vmem:[#allocation10_spill] sm:$0xff] }
 0x370   :  { %9918 = vmatpush3.msra.mxu1 %v7520_v7  ;;  %9929 = vmatpush3.msra.mxu0 %v15695_v23  ;;  %v18002_v7 = vld [vmem:[#allocation7_spill] sm:$0xff] }
 0x371   :  { %9919 = vmatprep.subr.mxu1 %v7639_v16  ;;  %9930 = vmatprep.subr.mxu0 %v15701_v61  ;;  %v18003_v16 = vld [vmem:[#allocation6_spill] sm:$0xff] }
 0x372   :  { %9920 = vmatpush3.msra.mxu1 %v7527_v41  ;;  %9931 = vmatpush3.msra.mxu0 %v15719_v45  ;;  %v18004_v41 = vld [vmem:[#allocation11_spill] sm:$0xff] }
 0x373   :  { %7644 = vmatmul.mubr.f32.vlgmr.msra.gmra.mxu1 %v16001_v1  ;;  %9932 = vmatprep.subr.mxu0 %v15742_v36  ;;  %v18007_v1 = vld [vmem:[#allocation18_spill] sm:$0xff] }
 0x374   :  { %9959 = vmatprep.subr.mxu1 %v15597_v22  ;;  %9933 = vmatpush3.msra.mxu0 %v15726_v55 }
 0x375   :  { %9960 = vmatpush3.msra.mxu1 %v15611_v17  ;;  %9934 = vmatprep.subr.mxu0 %v15770_v44 }
 0x376   :  { %9961 = vmatprep.subr.mxu1 %v15622_v37  ;;  %9935 = vmatpush3.msra.mxu0 %v15792_v14 }
 0x377   :  { %9962 = vmatpush3.msra.mxu1 %v15624_v33  ;;  %9936 = vmatprep.subr.mxu0 %v15837_v6 }
 0x378   :  { %9963 = vmatprep.subr.mxu1 %v17989_v47  ;;  %9937 = vmatpush3.msra.mxu0 %v17990_v21 }
 0x379   :  { %9964 = vmatpush3.msra.mxu1 %v17991_v57  ;;  %9938 = vmatprep.subr.mxu0 %v15865_v53 }
 0x37a   :  { %9965 = vmatprep.subr.mxu1 %v17992_v34  ;;  %9939 = vmatpush3.msra.mxu0 %v17993_v19 }
 0x37b   :  { %9966 = vmatpush3.msra.mxu1 %v17994_v8  ;;  %9940 = vmatprep.subr.mxu0 %v17995_v58 }
 0x37c   :  { %9967 = vmatprep.subr.mxu1 %v17996_v11  ;;  %9941 = vmatpush3.msra.mxu0 %v17997_v38 }
 0x37d   :  { %9968 = vmatpush3.msra.mxu1 %v17998_v28  ;;  %9942 = vmatprep.subr.mxu0 %v15964_v32 }
 0x37e   :  { %9969 = vmatprep.subr.mxu1 %v17999_v0  ;;  %9943 = vmatpush3.msra.mxu0 %v15931_v49 }
 0x37f   :  { %9970 = vmatpush3.msra.mxu1 %v18000_v9  ;;  %9944 = vmatprep.subr.mxu0 %v15998_v27 }
 0x380   :  { %9971 = vmatprep.subr.mxu1 %v18001_v43  ;;  %9945 = vmatpush3.msra.mxu0 %v15970_v30 }
 0x381   :  { %9972 = vmatpush3.msra.mxu1 %v18002_v7  ;;  %9946 = vmatprep.subr.mxu0 %v16034_v59 }
 0x382   :  { %9973 = vmatprep.subr.mxu1 %v18003_v16  ;;  %9947 = vmatpush3.msra.mxu0 %v16009_v26 }
 0x383   :  { %9974 = vmatpush3.msra.mxu1 %v18004_v41  ;;  %9948 = vmatprep.subr.mxu0 %v16072_v56 }
 0x384   :  { %9975 = vmatprep.subr.mxu1 %v18005_v12  ;;  %9949 = vmatpush3.msra.mxu0 %v16012_v63 }
 0x385   :  { %9976 = vmatpush3.msra.mxu1 %v18006_v31  ;;  %9950 = vmatprep.subr.mxu0 %v16092_v51 }
 0x386   :  { %9977 = vmatprep.subr.mxu1 %v18007_v1  ;;  %9951 = vmatpush3.msra.mxu0 %v16096_v2  ;;  %v18009_v1 = vld [vmem:[#allocation9_spill] sm:$0xff] }
 0x387   :  { %9978 = vmatpush3.msra.mxu1 %v15874_v52  ;;  %9952 = vmatprep.subr.mxu0 %v16112_v60 }
 0x388   :  { %9979 = vmatprep.subr.mxu1 %v18008_v48  ;;  %9953 = vmatpush3.msra.mxu0 %v16105_v54  ;;  %v18010_v48 = vand.u32 4294901760, %v15633_v3  ;;  %v18015_v3 = vand.u32 4294901760, %v15681_v20  ;;  %v18020_v20 = vand.u32 4294901760, %v16061_v5 }
 0x389   :  { %9980 = vmatpush3.msra.mxu1 %v15917_v10  ;;  %9954 = vmatprep.subr.mxu0 %v16128_v4  ;;  %v18011_v10 = vand.u32 4294901760, %v15644_v24  ;;  %v18012_v4 = vld [vmem:[#allocation24_spill] sm:$0xff]  ;;  %v18016_v24 = vand.u32 4294901760, %v15695_v23  ;;  %v18022_v23 = vand.u32 4294901760, %v15726_v55  ;;  %v18031_v55 = vand.u32 4294901760, %v15964_v32 }
 0x38a   :  { %9981 = vmatprep.subr.mxu1 %v15960_v42  ;;  %9955 = vmatpush3.msra.mxu0 %v16121_v18  ;;  %v18013_v18 = vand.u32 4294901760, %v15670_v40  ;;  %v18017_v40 = vand.u32 4294901760, %v15701_v61  ;;  %v18023_v61 = vand.u32 4294901760, %v15770_v44  ;;  %v18032_v44 = vand.u32 4294901760, %v15931_v49 }
 0x38b   :  { %7779 = vmatprep.mubr.f32.mxu0 %v16044_v50  ;;  %9982 = vmatpush3.msra.mxu1 %v18009_v1  ;;  %v18014_v1 = vand.u32 4294901760, %v15666_v13  ;;  %v18018_v13 = vand.u32 4294901760, %v16044_v50  ;;  %v18035_v32 = vand.u32 4294901760, %v16034_v59  ;;  %v18036_v49 = vand.u32 4294901760, %v16009_v26 }
 0x38c   :  { %7782 = vmatmul.mubr.f32.vlgmr.msra.gmra.mxu0 %v16061_v5  ;;  %9983 = vmatprep.subr.mxu1 %v15987_v15  ;;  %v18037_v50 = vand.u32 4294901760, %v16072_v56  ;;  %v18041_v26 = vand.u32 4294901760, %v16096_v2  ;;  %v18042_v59 = vand.u32 4294901760, %v16112_v60  ;;  %v18043_v56 = vld [vmem:[#allocation5_spill] sm:$0xff]  ;;  %v18046_v5 = vld [vmem:[#allocation32_spill] sm:$0xff]  ;;  %v18052_v60 = vld [vmem:[#allocation19_spill] sm:$0xff] }
 0x38d   :  { %9994 = vmatprep.subr.mxu0 %v18010_v48  ;;  %9984 = vmatpush3.msra.mxu1 %v15954_v39  ;;  %v18039_v48 = vand.u32 4294901760, %v16092_v51  ;;  %v18047_v51 = vand.u32 4294901760, %v18046_v5 }
 0x38e   :  { %9995 = vmatpush3.msra.mxu0 %v18011_v10  ;;  %9985 = vmatprep.subr.mxu1 %v18012_v4  ;;  %v18021_v10 = vand.u32 4294901760, %v15742_v36  ;;  %v18025_v36 = vand.u32 4294901760, %v15837_v6  ;;  %v18030_v6 = vand.u32 4294901760, %v17997_v38 }
 0x38f   :  { %9996 = vmatprep.subr.mxu0 %v18013_v18  ;;  %9986 = vmatpush3.msra.mxu1 %v16050_v29  ;;  %v18048_v18 = vld [vmem:[#allocation8_spill] sm:$0xff] }
 0x390   :  { %9997 = vmatpush3.msra.mxu0 %v18014_v1  ;;  %9987 = vmatprep.subr.mxu1 %v16066_v46  ;;  %v18019_v1 = vand.u32 4294901760, %v15719_v45  ;;  %v18024_v45 = vand.u32 4294901760, %v15792_v14  ;;  %v18033_v14 = vand.u32 4294901760, %v15998_v27  ;;  %v18040_v27 = vld [vmem:[#allocation18_spill] sm:$0xff]  ;;  %v18049_v2 = vand.u32 4294901760, %v18048_v18 }
 0x391   :  { %9998 = vmatprep.subr.mxu0 %v18015_v3  ;;  %9988 = vmatpush3.msra.mxu1 %v16068_v62 }
 0x392   :  { %9999 = vmatpush3.msra.mxu0 %v18016_v24  ;;  %9989 = vmatprep.subr.mxu1 %v16086_v35 }
 0x393   :  { %10000 = vmatprep.subr.mxu0 %v18017_v40  ;;  %9990 = vmatpush3.msra.mxu1 %v16088_v25 }
 0x394   :  { %7886 = vmatprep.mubr.f32.mxu1 %v18018_v13  ;;  %10001 = vmatpush3.msra.mxu0 %v18019_v1 }
 0x395   :  { %7890 = vmatmul.mubr.f32.vlgmr.msra.gmra.mxu1 %v18020_v20  ;;  %10002 = vmatprep.subr.mxu0 %v18021_v10 }
 0x396   :  { %10029 = vmatprep.subr.mxu1 %v15597_v22  ;;  %10003 = vmatpush3.msra.mxu0 %v18022_v23  ;;  %v18026_v22 = vand.u32 4294901760, %v17990_v21 }
 0x397   :  { %10030 = vmatpush3.msra.mxu1 %v15611_v17  ;;  %10004 = vmatprep.subr.mxu0 %v18023_v61  ;;  %v18027_v17 = vand.u32 4294901760, %v15865_v53  ;;  %v18034_v53 = vand.u32 4294901760, %v15970_v30  ;;  %v18038_v30 = vand.u32 4294901760, %v16012_v63  ;;  %v18044_v63 = vand.u32 4294901760, %v16105_v54  ;;  %v8241_v54 = vpop.f32.mrf.mxu1 }
 0x398   :  { %10031 = vmatprep.subr.mxu1 %v15622_v37  ;;  %10005 = vmatpush3.msra.mxu0 %v18024_v45  ;;  %v18028_v37 = vand.u32 4294901760, %v17993_v19 }
 0x399   :  { %10032 = vmatpush3.msra.mxu1 %v15624_v33  ;;  %10006 = vmatprep.subr.mxu0 %v18025_v36  ;;  %v18029_v33 = vand.u32 4294901760, %v17995_v58  ;;  %v8242_v21 = vpop.f32.mrf.mxu1 }
 0x39a   :  { %10033 = vmatprep.subr.mxu1 %v17989_v47  ;;  %10007 = vmatpush3.msra.mxu0 %v18026_v22 }
 0x39b   :  { %10034 = vmatpush3.msra.mxu1 %v17991_v57  ;;  %10008 = vmatprep.subr.mxu0 %v18027_v17  ;;  %v8311_v57 = vpop.f32.mrf.mxu1  ;;  %v309_v17 = vstv %s16359_s2 }
 0x39c   :  { %10035 = vmatprep.subr.mxu1 %v17992_v34  ;;  %10009 = vmatpush3.msra.mxu0 %v18028_v37 }
 0x39d   :  { %10036 = vmatpush3.msra.mxu1 %v17994_v8  ;;  %10010 = vmatprep.subr.mxu0 %v18029_v33  ;;  %v8312_v34 = vpop.f32.mrf.mxu1 }
 0x39e   :  { %10037 = vmatprep.subr.mxu1 %v17996_v11  ;;  %10011 = vmatpush3.msra.mxu0 %v18030_v6 }
 0x39f   :  { %10038 = vmatpush3.msra.mxu1 %v17998_v28  ;;  %10012 = vmatprep.subr.mxu0 %v18031_v55  ;;  %v8381_v19 = vpop.f32.mrf.mxu1 }
 0x3a0   :  { %10039 = vmatprep.subr.mxu1 %v17999_v0  ;;  %10013 = vmatpush3.msra.mxu0 %v18032_v44  ;;  %v8243_v44 = vadd.f32 %v8242_v21, %v8241_v54 }
 0x3a1   :  { %10040 = vmatpush3.msra.mxu1 %v18000_v9  ;;  %10014 = vmatprep.subr.mxu0 %v18033_v14  ;;  %v8382_v8 = vpop.f32.mrf.mxu1 }
 0x3a2   :  { %10041 = vmatprep.subr.mxu1 %v18001_v43  ;;  %10015 = vmatpush3.msra.mxu0 %v18034_v53 }
 0x3a3   :  { %10042 = vmatpush3.msra.mxu1 %v18002_v7  ;;  %10016 = vmatprep.subr.mxu0 %v18035_v32  ;;  %v8451_v58 = vpop.f32.mrf.mxu1 }
 0x3a4   :  { %10043 = vmatprep.subr.mxu1 %v18003_v16  ;;  %10017 = vmatpush3.msra.mxu0 %v18036_v49 }
 0x3a5   :  { %10044 = vmatpush3.msra.mxu1 %v18004_v41  ;;  %10018 = vmatprep.subr.mxu0 %v18037_v50  ;;  %v8452_v11 = vpop.f32.mrf.mxu1 }
 0x3a6   :  { %10045 = vmatprep.subr.mxu1 %v18005_v12  ;;  %10019 = vmatpush3.msra.mxu0 %v18038_v30  ;;  %v18045_v12 = vld [vmem:[#allocation29_spill] sm:$0xff]  ;;  %v8313_v30 = vadd.f32 %v8312_v34, %v8311_v57 }
 0x3a7   :  { %10046 = vmatpush3.msra.mxu1 %v18006_v31  ;;  %10020 = vmatprep.subr.mxu0 %v18039_v48  ;;  %v18050_v31 = vld [vmem:[#allocation31_spill] sm:$0xff]  ;;  %v8521_v38 = vpop.f32.mrf.mxu1 }
 0x3a8   :  { %10047 = vmatprep.subr.mxu1 %v18040_v27  ;;  %10021 = vmatpush3.msra.mxu0 %v18041_v26 }
 0x3a9   :  { %10048 = vmatpush3.msra.mxu1 %v15874_v52  ;;  %10022 = vmatprep.subr.mxu0 %v18042_v59  ;;  %v18051_v52 = vld [vmem:[#allocation9_spill] sm:$0xff]  ;;  %v8522_v0 = vpop.f32.mrf.mxu1 }
 0x3aa   :  { %10049 = vmatprep.subr.mxu1 %v18043_v56  ;;  %10023 = vmatpush3.msra.mxu0 %v18044_v63  ;;  %v8383_v63 = vadd.f32 %v8382_v8, %v8381_v19 }
 0x3ab   :  { %10050 = vmatpush3.msra.mxu1 %v18045_v12  ;;  %10024 = vmatprep.subr.mxu0 %v18047_v51  ;;  %v8591_v43 = vpop.f32.mrf.mxu1 }
 0x3ac   :  { %10051 = vmatprep.subr.mxu1 %v15960_v42  ;;  %10025 = vmatpush3.msra.mxu0 %v18049_v2  ;;  %v8206_v42 = vpop.f32.mrf.mxu0 }
 0x3ad   :  { %8056 = vmatprep.mubr.f32.mxu0 %v18050_v31  ;;  %10052 = vmatpush3.msra.mxu1 %v18051_v52  ;;  %v8592_v16 = vpop.f32.mrf.mxu1  ;;  %v8453_v52 = vadd.f32 %v8452_v11, %v8451_v58 }
 0x3ae   :  { %8058 = vmatmul.mubr.f32.vlgmr.msra.gmra.mxu0 %v18052_v60  ;;  %10053 = vmatprep.subr.mxu1 %v15987_v15  ;;  %v8207_v15 = vpop.f32.mrf.mxu0  ;;  %v8593_v19 = vadd.f32 %v8592_v16, %v8591_v43 }
 0x3af   :  { %8160 = vmatprep.mubr.f32.mxu1 %v18050_v31  ;;  %10054 = vmatpush3.msra.mxu1 %v15954_v39  ;;  %v8661_v3 = vpop.f32.mrf.mxu1  ;;  %v8208_v22 = vadd.f32 %v8207_v15, %v8206_v42 }
 0x3b0   :  { %10055 = vmatprep.subr.mxu1 %v18012_v4  ;;  %v8276_v47 = vpop.f32.mrf.mxu0 }
 0x3b1   :  { %10056 = vmatpush3.msra.mxu1 %v16050_v29  ;;  %v8662_v40 = vpop.f32.mrf.mxu1  ;;  %v518_v55 = vadd.f32 %v8208_v22, %v309_v17 }
 0x3b2   :  { %10057 = vmatprep.subr.mxu1 %v16066_v46  ;;  %v8277_v39 = vpop.f32.mrf.mxu0  ;;  %v8663_v58 = vadd.f32 %v8662_v40, %v8661_v3 }
 0x3b3   :  { %10058 = vmatpush3.msra.mxu1 %v16068_v62  ;;  %v8731_v1 = vpop.f32.mrf.mxu1  ;;  %v8278_v53 = vadd.f32 %v8277_v39, %v8276_v47  ;;  %v750_v50 = vadd.f32 %v8243_v44, %v518_v55  ;;  %v8523_v39 = vadd.f32 %v8522_v0, %v8521_v38 }
 0x3b4   :  { %10059 = vmatprep.subr.mxu1 %v16086_v35  ;;  %v8346_v4 = vpop.f32.mrf.mxu0 }
 0x3b5   :  { %10060 = vmatpush3.msra.mxu1 %v16088_v25  ;;  %v8732_v10 = vpop.f32.mrf.mxu1  ;;  %v888_v27 = vadd.f32 %v8278_v53, %v750_v50 }
 0x3b6   :  { %8162 = vmatmul.mubr.f32.vlgmr.msra.gmra.mxu1 %v18052_v60  ;;  %v8347_v29 = vpop.f32.mrf.mxu0  ;;  %v8733_v38 = vadd.f32 %v8732_v10, %v8731_v1 }
 0x3b7   :  { %v8801_v61 = vpop.f32.mrf.mxu1  ;;  %v8348_v26 = vadd.f32 %v8347_v29, %v8346_v4  ;;  %v996_v56 = vadd.f32 %v8313_v30, %v888_v27 }
 0x3b8   :  { %v8416_v46 = vpop.f32.mrf.mxu0 }
 0x3b9   :  { %v8802_v36 = vpop.f32.mrf.mxu1  ;;  %v1164_v51 = vadd.f32 %v8348_v26, %v996_v56 }
 0x3ba   :  { %v8417_v62 = vpop.f32.mrf.mxu0  ;;  %v8803_v43 = vadd.f32 %v8802_v36, %v8801_v61 }
 0x3bb   :  { %v8871_v33 = vpop.f32.mrf.mxu1  ;;  %v8418_v18 = vadd.f32 %v8417_v62, %v8416_v46  ;;  %v1268_v31 = vadd.f32 %v8383_v63, %v1164_v51 }
 0x3bc   :  { %v8486_v35 = vpop.f32.mrf.mxu0 }
 0x3bd   :  { %v8872_v14 = vpop.f32.mrf.mxu1  ;;  %v1380_v42 = vadd.f32 %v8418_v18, %v1268_v31 }
 0x3be   :  { %v8487_v25 = vpop.f32.mrf.mxu0  ;;  %v8873_v40 = vadd.f32 %v8872_v14, %v8871_v33 }
 0x3bf   :  { %v8941_v49 = vpop.f32.mrf.mxu1  ;;  %v8488_v15 = vadd.f32 %v8487_v25, %v8486_v35  ;;  %v1612_v21 = vadd.f32 %v8453_v52, %v1380_v42 }
 0x3c0   :  { %v8556_v28 = vpop.f32.mrf.mxu0 }
 0x3c1   :  { %v8942_v59 = vpop.f32.mrf.mxu1  ;;  %v1750_v34 = vadd.f32 %v8488_v15, %v1612_v21 }
 0x3c2   :  { %v8557_v9 = vpop.f32.mrf.mxu0  ;;  %v8943_v31 = vadd.f32 %v8942_v59, %v8941_v49 }
 0x3c3   :  { %v9011_v5 = vpop.f32.mrf.mxu1  ;;  %v8558_v4 = vadd.f32 %v8557_v9, %v8556_v28  ;;  %v1858_v22 = vadd.f32 %v8523_v39, %v1750_v34 }
 0x3c4   :  { %v8626_v7 = vpop.f32.mrf.mxu0 }
 0x3c5   :  { %v9012_v60 = vpop.f32.mrf.mxu1  ;;  %v2026_v55 = vadd.f32 %v8558_v4, %v1858_v22 }
 0x3c6   :  { %v8627_v41 = vpop.f32.mrf.mxu0  ;;  %v9013_v42 = vadd.f32 %v9012_v60, %v9011_v5 }
 0x3c7   :  { %v9081_v47 = vpop.f32.mrf.mxu1  ;;  %v8628_v46 = vadd.f32 %v8627_v41, %v8626_v7  ;;  %v2130_v44 = vadd.f32 %v8593_v19, %v2026_v55 }
 0x3c8   :  { %v8696_v24 = vpop.f32.mrf.mxu0 }
 0x3c9   :  { %v9082_v29 = vpop.f32.mrf.mxu1  ;;  %v2242_v53 = vadd.f32 %v8628_v46, %v2130_v44 }
 0x3ca   :  { %v8697_v13 = vpop.f32.mrf.mxu0  ;;  %v9083_v14 = vadd.f32 %v9082_v29, %v9081_v47 }
 0x3cb   :  { %v9151_v17 = vpop.f32.mrf.mxu1  ;;  %v8698_v35 = vadd.f32 %v8697_v13, %v8696_v24  ;;  %v2474_v30 = vadd.f32 %v8663_v58, %v2242_v53 }
 0x3cc   :  { %v8766_v20 = vpop.f32.mrf.mxu0 }
 0x3cd   :  { %v9152_v11 = vpop.f32.mrf.mxu1  ;;  %v2612_v27 = vadd.f32 %v8698_v35, %v2474_v30 }
 0x3ce   :  { %v8767_v23 = vpop.f32.mrf.mxu0  ;;  %v9153_v49 = vadd.f32 %v9152_v11, %v9151_v17 }
 0x3cf   :  { %v9221_v50 = vpop.f32.mrf.mxu1  ;;  %v8768_v28 = vadd.f32 %v8767_v23, %v8766_v20  ;;  %v2720_v26 = vadd.f32 %v8733_v38, %v2612_v27 }
 0x3d0   :  { %v16345_v45 = vpop.f32.mrf.mxu0 }
 0x3d1   :  { %v9222_v9 = vpop.f32.mrf.mxu1  ;;  %v2888_v63 = vadd.f32 %v8768_v28, %v2720_v26 }
 0x3d2   :  { %v8837_v37 = vpop.f32.mrf.mxu0  ;;  %v9223_v5 = vadd.f32 %v9222_v9, %v9221_v50 }
 0x3d3   :  { %v9291_v56 = vpop.f32.mrf.mxu1  ;;  %v8838_v7 = vadd.f32 %v8837_v37, %v16345_v45  ;;  %v2992_v3 = vadd.f32 %v8803_v43, %v2888_v63 }
 0x3d4   :  { %v16350_v6 = vpop.f32.mrf.mxu0 }
 0x3d5   :  { %v9292_v51 = vpop.f32.mrf.mxu1  ;;  %v3104_v24 = vadd.f32 %v8838_v7, %v2992_v3 }
 0x3d6   :  { %v8907_v32 = vpop.f32.mrf.mxu0  ;;  %v9293_v47 = vadd.f32 %v9292_v51, %v9291_v56 }
 0x3d7   :  { %v8908_v13 = vadd.f32 %v8907_v32, %v16350_v6  ;;  %v9361_v1 = vpop.f32.mrf.mxu1  ;;  %v3336_v10 = vadd.f32 %v8873_v40, %v3104_v24 }
 0x3d8   :  { %v8976_v48 = vpop.f32.mrf.mxu0 }
 0x3d9   :  { %v3474_v23 = vadd.f32 %v8908_v13, %v3336_v10  ;;  %v9362_v61 = vpop.f32.mrf.mxu1 }
 0x3da   :  { %v8977_v12 = vpop.f32.mrf.mxu0  ;;  %v9363_v17 = vadd.f32 %v9362_v61, %v9361_v1 }
 0x3db   :  { %v8978_v52 = vadd.f32 %v8977_v12, %v8976_v48  ;;  %v3582_v36 = vadd.f32 %v8943_v31, %v3474_v23  ;;  %v9431_v21 = vpop.f32.mrf.mxu1 }
 0x3dc   :  { %v9046_v2 = vpop.f32.mrf.mxu0 }
 0x3dd   :  { %v3750_v45 = vadd.f32 %v8978_v52, %v3582_v36  ;;  %v9432_v34 = vpop.f32.mrf.mxu1 }
 0x3de   :  { %v9047_v54 = vpop.f32.mrf.mxu0  ;;  %v9433_v50 = vadd.f32 %v9432_v34, %v9431_v21 }
 0x3df   :  { %v9048_v37 = vadd.f32 %v9047_v54, %v9046_v2  ;;  %v3854_v33 = vadd.f32 %v9013_v42, %v3750_v45  ;;  %v9501_v22 = vpop.f32.mrf.mxu1 }
 0x3e0   :  { %v9116_v57 = vpop.f32.mrf.mxu0 }
 0x3e1   :  { %v3966_v4 = vadd.f32 %v9048_v37, %v3854_v33  ;;  %v9502_v12 = vpop.f32.mrf.mxu1 }
 0x3e2   :  { %v9117_v8 = vpop.f32.mrf.mxu0  ;;  %v9503_v56 = vadd.f32 %v9502_v12, %v9501_v22 }
 0x3e3   :  { %v9118_v6 = vadd.f32 %v9117_v8, %v9116_v57  ;;  %v4198_v19 = vadd.f32 %v9083_v14, %v3966_v4  ;;  %v9571_v44 = vpop.f32.mrf.mxu1 }
 0x3e4   :  { %v9186_v62 = vpop.f32.mrf.mxu0 }
 0x3e5   :  { %v4336_v55 = vadd.f32 %v9118_v6, %v4198_v19  ;;  %v9572_v29 = vpop.f32.mrf.mxu1 }
 0x3e6   :  { %v9187_v25 = vpop.f32.mrf.mxu0  ;;  %v9573_v13 = vadd.f32 %v9572_v29, %v9571_v44 }
 0x3e7   :  { %v9188_v48 = vadd.f32 %v9187_v25, %v9186_v62  ;;  %v4444_v46 = vadd.f32 %v9153_v49, %v4336_v55  ;;  %v9641_v30 = vpop.f32.mrf.mxu1 }
 0x3e8   :  { %v9256_v0 = vpop.f32.mrf.mxu0 }
 0x3e9   :  { %v4612_v58 = vadd.f32 %v9188_v48, %v4444_v46  ;;  %v9642_v25 = vpop.f32.mrf.mxu1 }
 0x3ea   :  { %v9257_v16 = vpop.f32.mrf.mxu0  ;;  %v9643_v23 = vadd.f32 %v9642_v25, %v9641_v30 }
 0x3eb   :  { %v9258_v2 = vadd.f32 %v9257_v16, %v9256_v0  ;;  %v4716_v53 = vadd.f32 %v9223_v5, %v4612_v58  ;;  %v9711_v26 = vpop.f32.mrf.mxu1 }
 0x3ec   :  { %v9326_v41 = vpop.f32.mrf.mxu0 }
 0x3ed   :  { %v4828_v35 = vadd.f32 %v9258_v2, %v4716_v53  ;;  %v9712_v7 = vpop.f32.mrf.mxu1 }
 0x3ee   :  { %v9327_v18 = vpop.f32.mrf.mxu0  ;;  %v9713_v45 = vadd.f32 %v9712_v7, %v9711_v26 }
 0x3ef   :  { %v9328_v57 = vadd.f32 %v9327_v18, %v9326_v41  ;;  %v5060_v38 = vadd.f32 %v9293_v47, %v4828_v35  ;;  %v9781_v51 = vpop.f32.mrf.mxu1 }
 0x3f0   :  { %v9396_v20 = vpop.f32.mrf.mxu0 }
 0x3f1   :  { %v5198_v27 = vadd.f32 %v9328_v57, %v5060_v38  ;;  %v9782_v31 = vpop.f32.mrf.mxu1 }
 0x3f2   :  { %v9397_v15 = vpop.f32.mrf.mxu0  ;;  %v9783_v6 = vadd.f32 %v9782_v31, %v9781_v51 }
 0x3f3   :  { %v9398_v62 = vadd.f32 %v9397_v15, %v9396_v20  ;;  %v5306_v28 = vadd.f32 %v9363_v17, %v5198_v27 }
 0x3f4   :  { %v9466_v39 = vpop.f32.mrf.mxu0 }
 0x3f5   :  { %v5474_v43 = vadd.f32 %v9398_v62, %v5306_v28 }
 0x3f6   :  { %v9467_v32 = vpop.f32.mrf.mxu0 }
 0x3f7   :  { %v9468_v0 = vadd.f32 %v9467_v32, %v9466_v39  ;;  %v5578_v63 = vadd.f32 %v9433_v50, %v5474_v43 }
 0x3f8   :  { %v9536_v59 = vpop.f32.mrf.mxu0 }
 0x3f9   :  { %v5690_v3 = vadd.f32 %v9468_v0, %v5578_v63 }
 0x3fa   :  { %v9537_v60 = vpop.f32.mrf.mxu0 }
 0x3fb   :  { %v9538_v41 = vadd.f32 %v9537_v60, %v9536_v59  ;;  %v5922_v24 = vadd.f32 %v9503_v56, %v5690_v3 }
 0x3fc   :  { %v9606_v54 = vpop.f32.mrf.mxu0 }
 0x3fd   :  { %v6060_v1 = vadd.f32 %v9538_v41, %v5922_v24 }
 0x3fe   :  { %v9607_v8 = vpop.f32.mrf.mxu0 }
 0x3ff   :  { %v9608_v10 = vadd.f32 %v9607_v8, %v9606_v54  ;;  %v6168_v20 = vadd.f32 %v9573_v13, %v6060_v1 }
 0x400   :  { %v9676_v11 = vpop.f32.mrf.mxu0 }
 0x401   :  { %v6336_v36 = vadd.f32 %v9608_v10, %v6168_v20 }
 0x402   :  { %v9677_v9 = vpop.f32.mrf.mxu0 }
 0x403   :  { %v9678_v42 = vadd.f32 %v9677_v9, %v9676_v11  ;;  %v6440_v21 = vadd.f32 %v9643_v23, %v6336_v36 }
 0x404   :  { %v9746_v16 = vpop.f32.mrf.mxu0 }
 0x405   :  { %v6552_v39 = vadd.f32 %v9678_v42, %v6440_v21 }
 0x406   :  { %v9747_v40 = vpop.f32.mrf.mxu0 }
 0x407   :  { %v9748_v33 = vadd.f32 %v9747_v40, %v9746_v16  ;;  %v6784_v4 = vadd.f32 %v9713_v45, %v6552_v39 }
 0x408   :  { %v9816_v18 = vpop.f32.mrf.mxu0 }
 0x409   :  { %v6922_v22 = vadd.f32 %v9748_v33, %v6784_v4 }
 0x40a   :  { %v9817_v52 = vpop.f32.mrf.mxu0 }
 0x40b   :  { %v9818_v19 = vadd.f32 %v9817_v52, %v9816_v18  ;;  %v7030_v59 = vadd.f32 %v9783_v6, %v6922_v22 }
 0x40d   :  { %v7198_v46 = vadd.f32 %v9818_v19, %v7030_v59 }
 0x410   :  { %v9851_v61 = vpop.f32.mrf.mxu1 }
 0x412   :  { %v9852_v37 = vpop.f32.mrf.mxu1 }
 0x413   :  { %v9853_v55 = vadd.f32 %v9852_v37, %v9851_v61 }
 0x415   :  { %v7302_v44 = vadd.f32 %v9853_v55, %v7198_v46 }
 0x42a   :  { %v9886_v15 = vpop.f32.mrf.mxu0 }
 0x42c   :  { %v9887_v14 = vpop.f32.mrf.mxu0 }
 0x42d   :  { %v9888_v5 = vadd.f32 %v9887_v14, %v9886_v15 }
 0x42f   :  { %v7414_v54 = vadd.f32 %v9888_v5, %v7302_v44 }
 0x433   :  { %v9921_v34 = vpop.f32.mrf.mxu1 }
 0x435   :  { %v9922_v49 = vpop.f32.mrf.mxu1 }
 0x436   :  { %v9923_v58 = vadd.f32 %v9922_v49, %v9921_v34 }
 0x438   :  { %v7646_v29 = vadd.f32 %v9923_v58, %v7414_v54 }
 0x44c   :  { %v9956_v32 = vpop.f32.mrf.mxu0 }
 0x44e   :  { %v9957_v48 = vpop.f32.mrf.mxu0 }
 0x44f   :  { %v9958_v53 = vadd.f32 %v9957_v48, %v9956_v32 }
 0x451   :  { %v7784_v57 = vadd.f32 %v9958_v53, %v7646_v29 }
 0x455   :  { %v9991_v12 = vpop.f32.mrf.mxu1 }
 0x457   :  { %v9992_v2 = vpop.f32.mrf.mxu1 }
 0x458   :  { %v9993_v35 = vadd.f32 %v9992_v2, %v9991_v12 }
 0x45a   :  { %v7892_v38 = vadd.f32 %v9993_v35, %v7784_v57 }
 0x46e   :  { %v10026_v60 = vpop.f32.mrf.mxu0 }
 0x470   :  { %v10027_v47 = vpop.f32.mrf.mxu0 }
 0x471   :  { %v10028_v8 = vadd.f32 %v10027_v47, %v10026_v60 }
 0x473   :  { %v8060_v11 = vadd.f32 %v10028_v8, %v7892_v38 }
 0x476   :  { %v10061_v30 = vpop.f32.mrf.mxu1 }
 0x478   :  { %v10062_v17 = vpop.f32.mrf.mxu1 }
 0x479   :  { %v10063_v27 = vadd.f32 %v10062_v17, %v10061_v30 }
 0x47b   :  { %v8164_v62 = vadd.f32 %v10063_v27, %v8060_v11 }
 0x47d   :  { %8168 = vst.msk [vmem:[%s16360_s3] sm:$0x3] %vm8167_vm0, %v8164_v62 }

</bundles_post_ra>
